<compile_context>
chip_gen: v6e
topology: v6e:2x2x1
jax: 0.10.0
libtpu: 0.0.40
codegen_flags: <defaults>
</compile_context>

<pallas_src>
import functools
import math

import jax
import jax.numpy as jnp
from jax import lax
from jax.experimental import pallas as pl
from jax.experimental.pallas import tpu as pltpu


# ---------------------------------------------------------------------------
# Pallas kernel: one (query-tile, key-tile, head) grid step, online softmax
# ---------------------------------------------------------------------------
def _ipa_flash_kernel(qa_ref, ka_ref, vv_ref, b_ref, mi_ref, mj_ref, z_ref,
                      ovp_ref, opair_ref, m_scr, l_scr, *, inf, z_transposed):
    """
    qa_ref   : [1, TI, Ka]   augmented queries  (scale*q | hw*q_pts | -0.5*hw*|q_pts|^2 | 1)
    ka_ref   : [1, TJ, Ka]   augmented keys     (k       | k_pts    | 1 | -0.5*hw*|k_pts|^2)
    vv_ref   : [1, TJ, Cvv]  fused values (v | v_pts, global frame), Cvv = C + 3*Pv
    b_ref    : [1, TI, TJ]   sqrt(1/3)-scaled pair bias for this head (bf16)
    mi_ref   : [TI, 1]       mask for query rows
    mj_ref   : [1, TJ]       mask for key cols
    z_ref    : [TI, Cz, TJ]  (transposed, bf16)  or  [TI, TJ, Cz] (natural, f32)
    ovp_ref  : [H, TI, Cvv]  resident output block (accumulated in place)
    opair_ref: [H, TI, Cz]   resident output block (accumulated in place)
    m_scr    : [H, TI, 1]    running max
    l_scr    : [H, TI, 1]    running softmax denominator
    """
    j = pl.program_id(1)
    h = pl.program_id(2)
    ti = qa_ref.shape[1]
    cvv = ovp_ref.shape[2]
    cz = opair_ref.shape[2]

    # ---- per-(i, h) state init at the first key tile ----
    @pl.when(j == 0)
    def _():
        m_scr[h] = jnp.full((ti, 1), -1e30, jnp.float32)
        l_scr[h] = jnp.zeros((ti, 1), jnp.float32)
        ovp_ref[h] = jnp.zeros((ti, cvv), jnp.float32)
        opair_ref[h] = jnp.zeros((ti, cz), jnp.float32)

    # ---- fused attention logits: one MXU push covers the scalar-QK term, the point
    #      cross term and the |q_pt|^2 / |k_pt|^2 terms ----
    s = lax.dot_general(qa_ref[0], ka_ref[0], (((1,), (1,)), ((), ())),
                        preferred_element_type=jnp.float32)            # [TI, TJ]
    s = s + b_ref[0].astype(jnp.float32)
    # square mask rebuilt in-kernel from the 1-D masks (no N^2 HBM stream)
    s = s + inf * (mi_ref[...] * mj_ref[...] - 1.0)

    # ---- online softmax update ----
    m_old = m_scr[h]                                                    # [TI, 1]
    m_new = jnp.maximum(m_old, jnp.max(s, axis=-1, keepdims=True))
    alpha = jnp.exp(m_old - m_new)                                      # [TI, 1]
    p = jnp.exp(s - m_new)                                              # [TI, TJ]
    l_new = alpha * l_scr[h] + jnp.sum(p, axis=-1, keepdims=True)
    m_scr[h] = m_new
    l_scr[h] = l_new

    is_last = j == (pl.num_programs(1) - 1)
    # exact reciprocal (HBM-bound kernel; approx gains nothing and costs accuracy)
    scale = jnp.where(is_last, 1.0 / l_new, jnp.ones_like(l_new))       # [TI, 1]

    # ---- fused o / o_pt weighted sum (single MXU dot, M = C + 3*Pv) ----
    ovp_new = lax.dot_general(p, vv_ref[0], (((1,), (0,)), ((), ())),
                              preferred_element_type=jnp.float32)       # [TI, Cvv]
    ovp_ref[h] = (alpha * ovp_ref[h] + ovp_new) * scale

    # ---- o_pair[i, c] = sum_j p[i, j] * z[i, j, c]  (per-query value matrices: VPU) ----
    # Channel-chunked (<=2 chunks for realistic Cz) so live temporaries stay bounded.
    for c0 in range(0, cz, 128):
        c1 = min(c0 + 128, cz)
        if z_transposed:
            zc = z_ref[:, c0:c1, :].astype(jnp.float32)                 # [TI, cc, TJ]
            part = jnp.sum(zc * p[:, None, :], axis=-1)                 # [TI, cc]
        else:
            zc = z_ref[:, :, c0:c1].astype(jnp.float32)                 # [TI, TJ, cc]
            part = jnp.sum(zc * p[:, :, None], axis=1)                  # [TI, cc]
        opair_ref[h, :, c0:c1] = (alpha * opair_ref[h, :, c0:c1] + part) * scale


def _ipa_attention_core(q_aug, k_aug, vv, bias, mask_i, mask_j, z_in,
                        *, z_transposed, inf, tile_i=None, tile_j=None):
    H, N, Ka = q_aug.shape
    Cvv = vv.shape[-1]
    Cz = z_in.shape[1] if z_transposed else z_in.shape[-1]

    def pick(t):
        if t is not None:
            return min(t, N)
        return 128 if (N % 128 == 0) else N

    ti = pick(tile_i)
    tj = pick(tile_j)
    assert N % ti == 0 and N % tj == 0, "tile sizes must divide N"
    num_i, num_j = N // ti, N // tj

    # generation-aware VMEM budget (v7x: 64 MiB physical -> cap at 48 MiB)
    vmem_limit = 64 * 1024 * 1024
    try:
        cap = pltpu.get_tpu_info().vmem_capacity_bytes
        vmem_limit = min(vmem_limit, int(cap * 3 // 4))
    except Exception:
        pass

    kernel = functools.partial(_ipa_flash_kernel, inf=inf, z_transposed=z_transposed)

    if z_transposed:
        z_spec = pl.BlockSpec((ti, Cz, tj), lambda i, j, h: (i, 0, j))
    else:
        z_spec = pl.BlockSpec((ti, tj, Cz), lambda i, j, h: (i, j, 0))

    out_shape = (
        jax.ShapeDtypeStruct((H, N, Cvv), jnp.float32),   # fused o | o_pt (global frame)
        jax.ShapeDtypeStruct((H, N, Cz), jnp.float32),    # o_pair
    )
    return pl.pallas_call(
        kernel,
        out_shape=out_shape,
        grid=(num_i, num_j, H),
        in_specs=[
            pl.BlockSpec((1, ti, Ka), lambda i, j, h: (h, i, 0)),     # augmented q
            pl.BlockSpec((1, tj, Ka), lambda i, j, h: (h, j, 0)),     # augmented k
            pl.BlockSpec((1, tj, Cvv), lambda i, j, h: (h, j, 0)),    # fused v | v_pts
            pl.BlockSpec((1, ti, tj), lambda i, j, h: (h, i, j)),     # pair bias (bf16)
            pl.BlockSpec((ti, 1), lambda i, j, h: (i, 0)),            # mask (rows)
            pl.BlockSpec((1, tj), lambda i, j, h: (0, j)),            # mask (cols)
            z_spec,                                                   # pair rep
        ],
        out_specs=(
            # index maps constant in j and h: the output blocks stay resident across the
            # whole (key-tile, head) sweep of a query tile and are written back once.
            pl.BlockSpec((H, ti, Cvv), lambda i, j, h: (0, i, 0)),
            pl.BlockSpec((H, ti, Cz), lambda i, j, h: (0, i, 0)),
        ),
        scratch_shapes=[
            pltpu.VMEM((H, ti, 1), jnp.float32),   # running max per head
            pltpu.VMEM((H, ti, 1), jnp.float32),   # running denom per head
        ],
        compiler_params=pltpu.CompilerParams(
            dimension_semantics=("parallel", "arbitrary", "arbitrary"),
            vmem_limit_bytes=vmem_limit),
    )(q_aug, k_aug, vv, bias, mask_i, mask_j, z_in)


# ---------------------------------------------------------------------------
# Parameters
# ---------------------------------------------------------------------------
def init_ipa_params(key, c_s, c_z, c_hidden, no_heads, no_qk_points, no_v_points):
    hc = c_hidden * no_heads
    hpq = no_heads * no_qk_points * 3
    hpkv = no_heads * (no_qk_points + no_v_points) * 3
    concat_out = no_heads * (c_z + c_hidden + no_v_points * 4)
    keys = jax.random.split(key, 13)

    def lin(kw, kb, out_f, in_f):
        w = jax.random.normal(kw, (out_f, in_f), jnp.float32) * 0.1
        b = jax.random.normal(kb, (out_f,), jnp.float32) * 0.01
        return w, b

    p = {}
    p['w_q'], p['b_q'] = lin(keys[0], keys[1], hc, c_s)
    p['w_kv'], p['b_kv'] = lin(keys[2], keys[3], 2 * hc, c_s)
    p['w_qp'], p['b_qp'] = lin(keys[4], keys[5], hpq, c_s)
    p['w_kvp'], p['b_kvp'] = lin(keys[6], keys[7], hpkv, c_s)
    p['w_b'], p['b_b'] = lin(keys[8], keys[9], no_heads, c_z)
    p['head_weights'] = jax.random.normal(keys[10], (no_heads,), jnp.float32) * 0.5
    p['w_out'], p['b_out'] = lin(keys[11], keys[12], c_s, concat_out)
    return p


# ---------------------------------------------------------------------------
# Full forward (Pallas-kernel path)
# ---------------------------------------------------------------------------
def invariant_point_attention(params, s, z, rot, trans, mask, cfg,
                              tile_i=None, tile_j=None):
    N = s.shape[0]
    c_z = z.shape[-1]
    H, C = cfg['no_heads'], cfg['c_hidden']
    Pq, Pv = cfg['no_qk_points'], cfg['no_v_points']
    inf, eps = cfg['inf'], cfg['eps']

    # ---- projections; constant factors folded into the small weight tensors ----
    scale_qk = math.sqrt(1.0 / (3.0 * C))
    scale_b = math.sqrt(1.0 / 3.0)
    q = s @ (params['w_q'] * scale_qk).T + params['b_q'] * scale_qk
    kv = s @ params['w_kv'].T + params['b_kv']
    q = q.reshape(N, H, C)
    kv = kv.reshape(N, H, 2 * C)
    k, v = kv[..., :C], kv[..., C:]

    def point_proj(w, b, n_pts):
        p = s @ w.T + b                                   # [N, 3*H*n_pts]
        p = p.reshape(N, 3, H * n_pts)                    # x/y/z chunks
        p = jnp.transpose(p, (0, 2, 1))                   # [N, H*n_pts, 3]
        p = jnp.einsum('nij,nmj->nmi', rot, p) + trans[:, None, :]   # r.apply
        return p.reshape(N, H, n_pts, 3)

    q_pts = point_proj(params['w_qp'], params['b_qp'], Pq)
    kv_pts = point_proj(params['w_kvp'], params['b_kvp'], Pq + Pv)
    k_pts, v_pts = kv_pts[:, :, :Pq], kv_pts[:, :, Pq:]

    b_bias = z @ (params['w_b'] * scale_b).T + params['b_b'] * scale_b   # [N, N, H]

    hw = jax.nn.softplus(params['head_weights']) * math.sqrt(
        1.0 / (3.0 * (Pq * 9.0 / 2.0)))                                  # [H]

    # ---- head-major kernel operands ----
    qh = jnp.transpose(q, (1, 0, 2))                          # [H, N, C]   (pre-scaled)
    kh = jnp.transpose(k, (1, 0, 2))
    qph = jnp.transpose(q_pts, (1, 0, 2, 3)).reshape(H, N, Pq * 3)
    kph = jnp.transpose(k_pts, (1, 0, 2, 3)).reshape(H, N, Pq * 3)
    vh = jnp.transpose(v, (1, 0, 2))                          # [H, N, C]
    vph = jnp.transpose(v_pts, (1, 0, 2, 3)).reshape(H, N, Pv * 3)
    vv = jnp.concatenate([vh, vph], axis=-1)                  # fused values [H, N, C+3Pv]
    bh = jnp.transpose(b_bias, (2, 0, 1)).astype(jnp.bfloat16)  # [H, N, N]  (pre-scaled)

    # Augmented operands: one in-kernel matmul yields
    #   scale*q.k + hw*qp.kp - 0.5*hw*(|qp|^2 + |kp|^2)
    hw3 = hw[:, None, None]
    sq_q = jnp.sum(qph * qph, axis=-1, keepdims=True)         # [H, N, 1]
    sq_k = jnp.sum(kph * kph, axis=-1, keepdims=True)
    ones = jnp.ones((H, N, 1), jnp.float32)
    q_aug = jnp.concatenate([qh, hw3 * qph, -0.5 * hw3 * sq_q, ones], axis=-1)
    k_aug = jnp.concatenate([kh, kph, ones, -0.5 * hw3 * sq_k], axis=-1)

    # 1-D masks only; the [N, N] square mask is rebuilt in-kernel.
    mask_i = mask.reshape(N, 1).astype(jnp.float32)
    mask_j = mask.reshape(1, N).astype(jnp.float32)

    # Pair rep: natural layout when Cz is lane-dense (no HBM transpose round trip),
    # transposed bf16 layout when Cz is small (key axis lane-dense for the VPU reduce).
    z_natural = (c_z % 128 == 0)
    if z_natural:
        z_in = z
    else:
        z_in = jnp.transpose(z, (0, 2, 1)).astype(jnp.bfloat16)          # [N, Cz, N]

    ovp, opair = _ipa_attention_core(
        q_aug, k_aug, vv, bh, mask_i, mask_j, z_in,
        z_transposed=not z_natural, inf=inf, tile_i=tile_i, tile_j=tile_j)

    # ---- output assembly (glue) ----
    o = jnp.transpose(ovp[:, :, :C], (1, 0, 2)).reshape(N, H * C)
    o_pt = jnp.transpose(ovp[:, :, C:], (1, 0, 2)).reshape(N, H, Pv, 3)   # global frame
    # r.invert_apply: R^T (x - t)
    o_pt = jnp.einsum('nba,nhpb->nhpa', rot, o_pt - trans[:, None, None, :])
    o_pt_norm = jnp.sqrt(jnp.sum(o_pt ** 2, axis=-1) + eps).reshape(N, H * Pv)
    o_pt_flat = o_pt.reshape(N, H * Pv, 3)
    o_pair = jnp.transpose(opair, (1, 0, 2)).reshape(N, H * c_z)

    cat = jnp.concatenate(
        [o, o_pt_flat[..., 0], o_pt_flat[..., 1], o_pt_flat[..., 2],
         o_pt_norm, o_pair], axis=-1)
    return cat @ params['w_out'].T + params['b_out']


# ---------------------------------------------------------------------------
# Pure-JAX reference (direct translation of the PyTorch forward)
# ---------------------------------------------------------------------------
def invariant_point_attention_ref(params, s, z, rot, trans, mask, cfg):
    N = s.shape[0]
    c_z = z.shape[-1]
    H, C = cfg['no_heads'], cfg['c_hidden']
    Pq, Pv = cfg['no_qk_points'], cfg['no_v_points']
    inf, eps = cfg['inf'], cfg['eps']

    q = s @ params['w_q'].T + params['b_q']
    kv = s @ params['w_kv'].T + params['b_kv']
    q = q.reshape(N, H, C)
    kv = kv.reshape(N, H, 2 * C)
    k, v = kv[..., :C], kv[..., C:]

    def point_proj(w, b, n_pts):
        p = s @ w.T + b
        p = p.reshape(N, 3, H * n_pts)
        p = jnp.transpose(p, (0, 2, 1))
        p = jnp.einsum('nij,nmj->nmi', rot, p) + trans[:, None, :]
        return p.reshape(N, H, n_pts, 3)

    q_pts = point_proj(params['w_qp'], params['b_qp'], Pq)
    kv_pts = point_proj(params['w_kvp'], params['b_kvp'], Pq + Pv)
    k_pts, v_pts = kv_pts[:, :, :Pq], kv_pts[:, :, Pq:]

    b_bias = z @ params['w_b'].T + params['b_b']

    a = jnp.einsum('ihc,jhc->hij', q, k) * math.sqrt(1.0 / (3.0 * C))
    a = a + math.sqrt(1.0 / 3.0) * jnp.transpose(b_bias, (2, 0, 1))

    d = q_pts[:, None] - k_pts[None, :]                   # [N, N, H, Pq, 3]
    pt_att = jnp.sum(d * d, axis=-1)                      # [N, N, H, Pq]
    hw = jax.nn.softplus(params['head_weights']) * math.sqrt(
        1.0 / (3.0 * (Pq * 9.0 / 2.0)))
    pt_att = pt_att * hw[None, None, :, None]
    pt_att = jnp.sum(pt_att, axis=-1) * (-0.5)            # [N, N, H]

    square_mask = inf * (mask[:, None] * mask[None, :] - 1.0)
    a = a + jnp.transpose(pt_att, (2, 0, 1))
    a = a + square_mask[None, :, :]
    a = jax.nn.softmax(a, axis=-1)

    o = jnp.einsum('hij,jhc->ihc', a, v).reshape(N, H * C)
    o_pt = jnp.einsum('hij,jhpd->ihpd', a, v_pts)
    o_pt = jnp.einsum('nba,nhpb->nhpa', rot, o_pt - trans[:, None, None, :])
    o_pt_norm = jnp.sqrt(jnp.sum(o_pt ** 2, axis=-1) + eps).reshape(N, H * Pv)
    o_pt_flat = o_pt.reshape(N, H * Pv, 3)
    o_pair = jnp.einsum('hij,ijc->ihc', a, z).reshape(N, H * c_z)

    cat = jnp.concatenate(
        [o, o_pt_flat[..., 0], o_pt_flat[..., 1], o_pt_flat[..., 2],
         o_pt_norm, o_pair], axis=-1)
    return cat @ params['w_out'].T + params['b_out']


def random_rotations(key, n):
    quat = jax.random.normal(key, (n, 4), jnp.float32)
    quat = quat / jnp.linalg.norm(quat, axis=-1, keepdims=True)
    w, x, y, zq = quat[:, 0], quat[:, 1], quat[:, 2], quat[:, 3]
    rot = jnp.stack([
        1 - 2 * (y * y + zq * zq), 2 * (x * y - w * zq), 2 * (x * zq + w * y),
        2 * (x * y + w * zq), 1 - 2 * (x * x + zq * zq), 2 * (y * zq - w * x),
        2 * (x * zq - w * y), 2 * (y * zq + w * x), 1 - 2 * (x * x + y * y),
    ], axis=-1).reshape(n, 3, 3)
    return rot


def _run_case(cfg, n_res, seed):
    key = jax.random.PRNGKey(seed)
    k_params, k_s, k_z, k_rot, k_t, k_m = jax.random.split(key, 6)

    params = init_ipa_params(k_params, cfg['c_s'], cfg['c_z'], cfg['c_hidden'],
                             cfg['no_heads'], cfg['no_qk_points'], cfg['no_v_points'])

    s = jax.random.normal(k_s, (n_res, cfg['c_s']), jnp.float32)
    z = jax.random.normal(k_z, (n_res, n_res, cfg['c_z']), jnp.float32) * 0.5
    rot = random_rotations(k_rot, n_res)
    trans = jax.random.normal(k_t, (n_res, 3), jnp.float32)
    mask = (jax.random.uniform(k_m, (n_res,)) > 0.2).astype(jnp.float32)

    out = invariant_point_attention(params, s, z, rot, trans, mask, cfg)
    out = jax.block_until_ready(out)

    ref = invariant_point_attention_ref(params, s, z, rot, trans, mask, cfg)
    ref = jax.block_until_ready(ref)

    assert out.shape == (n_res, cfg['c_s']), out.shape
    max_err = float(jnp.max(jnp.abs(out - ref)))
    if not (max_err < 2e-2):
        raise AssertionError(f"kernel/reference mismatch, max abs err = {max_err}")
    return max_err


if __name__ == "__main__":
    # Case 1: small pair-rep channels -> transposed bf16 pair-rep path, 2x2 (i, j) tiling.
    cfg_small = dict(c_s=32, c_z=16, c_hidden=16, no_heads=4,
                     no_qk_points=4, no_v_points=8, inf=1e5, eps=1e-8)
    _run_case(cfg_small, n_res=256, seed=0)

    # Case 2: lane-dense pair-rep channels (c_z = 128) -> natural-layout z path
    # (no HBM transpose round trip), same flash tiling.
    cfg_wide = dict(c_s=32, c_z=128, c_hidden=16, no_heads=4,
                    no_qk_points=4, no_v_points=8, inf=1e5, eps=1e-8)
    _run_case(cfg_wide, n_res=256, seed=0)

    print("KERNEL_OK")
</pallas_src>

<mosaic_0001>
module attributes {stable_mosaic.version = 11 : i64} {
  func.func @_ipa_flash_kernel(%arg0: i32, %arg1: i32, %arg2: i32, %arg3: memref<1x128x30xf32, #tpu.memory_space<vmem>>, %arg4: memref<1x128x30xf32, #tpu.memory_space<vmem>>, %arg5: memref<1x128x40xf32, #tpu.memory_space<vmem>>, %arg6: memref<1x128x128xbf16, #tpu.memory_space<vmem>>, %arg7: memref<128x1xf32, #tpu.memory_space<vmem>>, %arg8: memref<1x128xf32, #tpu.memory_space<vmem>>, %arg9: memref<128x16x128xbf16, #tpu.memory_space<vmem>>, %arg10: memref<4x128x40xf32, #tpu.memory_space<vmem>>, %arg11: memref<4x128x16xf32, #tpu.memory_space<vmem>>, %arg12: memref<4x128x1xf32, #tpu.memory_space<vmem>>, %arg13: memref<4x128x1xf32, #tpu.memory_space<vmem>>) attributes {dimension_semantics = [#tpu.dimension_semantics<parallel>, #tpu.dimension_semantics<arbitrary>, #tpu.dimension_semantics<arbitrary>], iteration_bounds = array<i64: 2, 2, 4>, scalar_prefetch = 0 : i64, scratch_operands = 2 : i64, tpu.core_type = #tpu.core_type<tc>, window_params = [{transform_indices = @transform_0, window_bounds = array<i64: 1, 128, 30>}, {transform_indices = @transform_1, window_bounds = array<i64: 1, 128, 30>}, {transform_indices = @transform_2, window_bounds = array<i64: 1, 128, 40>}, {transform_indices = @transform_3, window_bounds = array<i64: 1, 128, 128>}, {transform_indices = @transform_4, window_bounds = array<i64: 128, 1>}, {transform_indices = @transform_5, window_bounds = array<i64: 1, 128>}, {transform_indices = @transform_6, window_bounds = array<i64: 128, 16, 128>}, {transform_indices = @transform_7, window_bounds = array<i64: 4, 128, 40>}, {transform_indices = @transform_8, window_bounds = array<i64: 4, 128, 16>}]} {
    %c0_i32 = arith.constant 0 : i32
    %0 = arith.cmpi eq, %arg1, %c0_i32 : i32
    %1 = arith.extui %0 : i1 to i32
    %c0_i32_0 = arith.constant 0 : i32
    %2 = arith.cmpi ne, %1, %c0_i32_0 : i32
    scf.if %2 {
      %cst_43 = arith.constant -1.000000e+30 : f32
      %86 = vector.broadcast %cst_43 : f32 to vector<128x1xf32>
      %87 = arith.index_cast %arg2 : i32 to index
      %c0_44 = arith.constant 0 : index
      %c0_45 = arith.constant 0 : index
      %88 = vector.load %arg12[%87, %c0_44, %c0_45] : memref<4x128x1xf32, #tpu.memory_space<vmem>>, vector<1x128x1xf32>
      %89 = vector.shape_cast %88 : vector<1x128x1xf32> to vector<128x1xf32>
      %90 = vector.shape_cast %86 : vector<128x1xf32> to vector<1x128x1xf32>
      tpu.vector_store %arg12[%87, %c0_44, %c0_45], %90 {strides = array<i32>} : memref<4x128x1xf32, #tpu.memory_space<vmem>>, vector<1x128x1xf32>,
      %cst_46 = arith.constant 0.000000e+00 : f32
      %91 = vector.broadcast %cst_46 : f32 to vector<128x1xf32>
      %92 = arith.index_cast %arg2 : i32 to index
      %c0_47 = arith.constant 0 : index
      %c0_48 = arith.constant 0 : index
      %93 = vector.load %arg13[%92, %c0_47, %c0_48] : memref<4x128x1xf32, #tpu.memory_space<vmem>>, vector<1x128x1xf32>
      %94 = vector.shape_cast %93 : vector<1x128x1xf32> to vector<128x1xf32>
      %95 = vector.shape_cast %91 : vector<128x1xf32> to vector<1x128x1xf32>
      tpu.vector_store %arg13[%92, %c0_47, %c0_48], %95 {strides = array<i32>} : memref<4x128x1xf32, #tpu.memory_space<vmem>>, vector<1x128x1xf32>,
      %cst_49 = arith.constant 0.000000e+00 : f32
      %96 = vector.broadcast %cst_49 : f32 to vector<128x40xf32>
      %97 = arith.index_cast %arg2 : i32 to index
      %c0_50 = arith.constant 0 : index
      %c0_51 = arith.constant 0 : index
      %98 = vector.load %arg10[%97, %c0_50, %c0_51] : memref<4x128x40xf32, #tpu.memory_space<vmem>>, vector<1x128x40xf32>
      %99 = vector.shape_cast %98 : vector<1x128x40xf32> to vector<128x40xf32>
      %100 = vector.shape_cast %96 : vector<128x40xf32> to vector<1x128x40xf32>
      tpu.vector_store %arg10[%97, %c0_50, %c0_51], %100 {strides = array<i32>} : memref<4x128x40xf32, #tpu.memory_space<vmem>>, vector<1x128x40xf32>,
      %cst_52 = arith.constant 0.000000e+00 : f32
      %101 = vector.broadcast %cst_52 : f32 to vector<128x16xf32>
      %102 = arith.index_cast %arg2 : i32 to index
      %c0_53 = arith.constant 0 : index
      %c0_54 = arith.constant 0 : index
      %103 = vector.load %arg11[%102, %c0_53, %c0_54] : memref<4x128x16xf32, #tpu.memory_space<vmem>>, vector<1x128x16xf32>
      %104 = vector.shape_cast %103 : vector<1x128x16xf32> to vector<128x16xf32>
      %105 = vector.shape_cast %101 : vector<128x16xf32> to vector<1x128x16xf32>
      tpu.vector_store %arg11[%102, %c0_53, %c0_54], %105 {strides = array<i32>} : memref<4x128x16xf32, #tpu.memory_space<vmem>>, vector<1x128x16xf32>,
    } else {
    }
    %c0 = arith.constant 0 : index
    %c0_1 = arith.constant 0 : index
    %c0_2 = arith.constant 0 : index
    %3 = vector.load %arg3[%c0, %c0_1, %c0_2] : memref<1x128x30xf32, #tpu.memory_space<vmem>>, vector<1x128x30xf32>
    %4 = vector.shape_cast %3 : vector<1x128x30xf32> to vector<128x30xf32>
    %c0_3 = arith.constant 0 : index
    %c0_4 = arith.constant 0 : index
    %c0_5 = arith.constant 0 : index
    %5 = vector.load %arg4[%c0_3, %c0_4, %c0_5] : memref<1x128x30xf32, #tpu.memory_space<vmem>>, vector<1x128x30xf32>
    %6 = vector.shape_cast %5 : vector<1x128x30xf32> to vector<128x30xf32>
    %cst = arith.constant dense<0.000000e+00> : vector<128x128xf32>
    %7 = tpu.matmul %4, %6, %cst {dimension_numbers = #tpu.dot_dimension_numbers<[1], [1], [0], [0], [0, 0, 1, 0], [], []>} : vector<128x30xf32>, vector<128x30xf32>, vector<128x128xf32> -> vector<128x128xf32>
    %c0_6 = arith.constant 0 : index
    %c0_7 = arith.constant 0 : index
    %c0_8 = arith.constant 0 : index
    %8 = vector.load %arg6[%c0_6, %c0_7, %c0_8] : memref<1x128x128xbf16, #tpu.memory_space<vmem>>, vector<1x128x128xbf16>
    %9 = vector.shape_cast %8 : vector<1x128x128xbf16> to vector<128x128xbf16>
    %10 = arith.extf %9 : vector<128x128xbf16> to vector<128x128xf32>
    %11 = arith.addf %7, %10 : vector<128x128xf32>
    %c0_9 = arith.constant 0 : index
    %c0_10 = arith.constant 0 : index
    %12 = vector.load %arg7[%c0_9, %c0_10] : memref<128x1xf32, #tpu.memory_space<vmem>>, vector<128x1xf32>
    %c0_11 = arith.constant 0 : index
    %c0_12 = arith.constant 0 : index
    %13 = vector.load %arg8[%c0_11, %c0_12] : memref<1x128xf32, #tpu.memory_space<vmem>>, vector<1x128xf32>
    %14 = vector.broadcast %12 : vector<128x1xf32> to vector<128x128xf32>
    %15 = vector.broadcast %13 : vector<1x128xf32> to vector<128x128xf32>
    %16 = arith.mulf %14, %15 : vector<128x128xf32>
    %cst_13 = arith.constant 1.000000e+00 : f32
    %17 = vector.broadcast %cst_13 : f32 to vector<128x128xf32>
    %18 = arith.subf %16, %17 : vector<128x128xf32>
    %cst_14 = arith.constant 1.000000e+05 : f32
    %19 = vector.broadcast %cst_14 : f32 to vector<128x128xf32>
    %20 = arith.mulf %19, %18 : vector<128x128xf32>
    %21 = arith.addf %11, %20 : vector<128x128xf32>
    %22 = arith.index_cast %arg2 : i32 to index
    %c0_15 = arith.constant 0 : index
    %c0_16 = arith.constant 0 : index
    %23 = vector.load %arg12[%22, %c0_15, %c0_16] : memref<4x128x1xf32, #tpu.memory_space<vmem>>, vector<1x128x1xf32>
    %24 = vector.shape_cast %23 : vector<1x128x1xf32> to vector<128x1xf32>
    %cst_17 = arith.constant dense<0xFF800000> : vector<128xf32>
    %25 = vector.multi_reduction <maximumf>, %21, %cst_17 [1] : vector<128x128xf32> to vector<128xf32>
    %26 = vector.shape_cast %25 : vector<128xf32> to vector<128x1xf32>
    %27 = arith.maximumf %24, %26 : vector<128x1xf32>
    %28 = arith.subf %24, %27 : vector<128x1xf32>
    %29 = math.exp %28 : vector<128x1xf32>
    %30 = vector.broadcast %27 : vector<128x1xf32> to vector<128x128xf32>
    %31 = arith.subf %21, %30 : vector<128x128xf32>
    %32 = math.exp %31 : vector<128x128xf32>
    %33 = arith.index_cast %arg2 : i32 to index
    %c0_18 = arith.constant 0 : index
    %c0_19 = arith.constant 0 : index
    %34 = vector.load %arg13[%33, %c0_18, %c0_19] : memref<4x128x1xf32, #tpu.memory_space<vmem>>, vector<1x128x1xf32>
    %35 = vector.shape_cast %34 : vector<1x128x1xf32> to vector<128x1xf32>
    %36 = arith.mulf %29, %35 : vector<128x1xf32>
    %cst_20 = arith.constant dense<0.000000e+00> : vector<128xf32>
    %37 = vector.multi_reduction <add>, %32, %cst_20 [1] : vector<128x128xf32> to vector<128xf32>
    %38 = vector.shape_cast %37 : vector<128xf32> to vector<128x1xf32>
    %39 = arith.addf %36, %38 : vector<128x1xf32>
    %40 = arith.index_cast %arg2 : i32 to index
    %c0_21 = arith.constant 0 : index
    %c0_22 = arith.constant 0 : index
    %41 = vector.load %arg12[%40, %c0_21, %c0_22] : memref<4x128x1xf32, #tpu.memory_space<vmem>>, vector<1x128x1xf32>
    %42 = vector.shape_cast %41 : vector<1x128x1xf32> to vector<128x1xf32>
    %43 = vector.shape_cast %27 : vector<128x1xf32> to vector<1x128x1xf32>
    tpu.vector_store %arg12[%40, %c0_21, %c0_22], %43 {strides = array<i32>} : memref<4x128x1xf32, #tpu.memory_space<vmem>>, vector<1x128x1xf32>,
    %44 = arith.index_cast %arg2 : i32 to index
    %c0_23 = arith.constant 0 : index
    %c0_24 = arith.constant 0 : index
    %45 = vector.load %arg13[%44, %c0_23, %c0_24] : memref<4x128x1xf32, #tpu.memory_space<vmem>>, vector<1x128x1xf32>
    %46 = vector.shape_cast %45 : vector<1x128x1xf32> to vector<128x1xf32>
    %47 = vector.shape_cast %39 : vector<128x1xf32> to vector<1x128x1xf32>
    tpu.vector_store %arg13[%44, %c0_23, %c0_24], %47 {strides = array<i32>} : memref<4x128x1xf32, #tpu.memory_space<vmem>>, vector<1x128x1xf32>,
    %c1_i32 = arith.constant 1 : i32
    %48 = arith.cmpi eq, %arg1, %c1_i32 : i32
    %cst_25 = arith.constant 1.000000e+00 : f32
    %49 = vector.broadcast %cst_25 : f32 to vector<128x1xf32>
    %50 = arith.divf %49, %39 : vector<128x1xf32>
    %cst_26 = arith.constant 1.000000e+00 : f32
    %51 = vector.broadcast %cst_26 : f32 to vector<128x1xf32>
    %52 = arith.select %48, %50, %51 : vector<128x1xf32>
    %c0_27 = arith.constant 0 : index
    %c0_28 = arith.constant 0 : index
    %c0_29 = arith.constant 0 : index
    %53 = vector.load %arg5[%c0_27, %c0_28, %c0_29] : memref<1x128x40xf32, #tpu.memory_space<vmem>>, vector<1x128x40xf32>
    %54 = vector.shape_cast %53 : vector<1x128x40xf32> to vector<128x40xf32>
    %cst_30 = arith.constant dense<0.000000e+00> : vector<128x40xf32>
    %55 = tpu.matmul %32, %54, %cst_30 {dimension_numbers = #tpu.dot_dimension_numbers<[1], [0], [0], [1], [0, 0, 1, 1], [], []>} : vector<128x128xf32>, vector<128x40xf32>, vector<128x40xf32> -> vector<128x40xf32>
    %56 = arith.index_cast %arg2 : i32 to index
    %c0_31 = arith.constant 0 : index
    %c0_32 = arith.constant 0 : index
    %57 = vector.load %arg10[%56, %c0_31, %c0_32] : memref<4x128x40xf32, #tpu.memory_space<vmem>>, vector<1x128x40xf32>
    %58 = vector.shape_cast %57 : vector<1x128x40xf32> to vector<128x40xf32>
    %59 = vector.broadcast %29 : vector<128x1xf32> to vector<128x40xf32>
    %60 = arith.mulf %59, %58 : vector<128x40xf32>
    %61 = arith.addf %60, %55 : vector<128x40xf32>
    %62 = vector.broadcast %52 : vector<128x1xf32> to vector<128x40xf32>
    %63 = arith.mulf %61, %62 : vector<128x40xf32>
    %64 = arith.index_cast %arg2 : i32 to index
    %c0_33 = arith.constant 0 : index
    %c0_34 = arith.constant 0 : index
    %65 = vector.load %arg10[%64, %c0_33, %c0_34] : memref<4x128x40xf32, #tpu.memory_space<vmem>>, vector<1x128x40xf32>
    %66 = vector.shape_cast %65 : vector<1x128x40xf32> to vector<128x40xf32>
    %67 = vector.shape_cast %63 : vector<128x40xf32> to vector<1x128x40xf32>
    tpu.vector_store %arg10[%64, %c0_33, %c0_34], %67 {strides = array<i32>} : memref<4x128x40xf32, #tpu.memory_space<vmem>>, vector<1x128x40xf32>,
    %c0_35 = arith.constant 0 : index
    %c0_36 = arith.constant 0 : index
    %c0_37 = arith.constant 0 : index
    %68 = vector.load %arg9[%c0_35, %c0_36, %c0_37] : memref<128x16x128xbf16, #tpu.memory_space<vmem>>, vector<128x16x128xbf16>
    %69 = arith.extf %68 : vector<128x16x128xbf16> to vector<128x16x128xf32>
    %70 = vector.shape_cast %32 : vector<128x128xf32> to vector<128x1x128xf32>
    %71 = vector.broadcast %70 : vector<128x1x128xf32> to vector<128x16x128xf32>
    %72 = arith.mulf %69, %71 : vector<128x16x128xf32>
    %cst_38 = arith.constant dense<0.000000e+00> : vector<128x16xf32>
    %73 = vector.multi_reduction <add>, %72, %cst_38 [2] : vector<128x16x128xf32> to vector<128x16xf32>
    %74 = arith.index_cast %arg2 : i32 to index
    %c0_39 = arith.constant 0 : index
    %c0_40 = arith.constant 0 : index
    %75 = vector.load %arg11[%74, %c0_39, %c0_40] : memref<4x128x16xf32, #tpu.memory_space<vmem>>, vector<1x128x16xf32>
    %76 = vector.shape_cast %75 : vector<1x128x16xf32> to vector<128x16xf32>
    %77 = vector.broadcast %29 : vector<128x1xf32> to vector<128x16xf32>
    %78 = arith.mulf %77, %76 : vector<128x16xf32>
    %79 = arith.addf %78, %73 : vector<128x16xf32>
    %80 = vector.broadcast %52 : vector<128x1xf32> to vector<128x16xf32>
    %81 = arith.mulf %79, %80 : vector<128x16xf32>
    %82 = arith.index_cast %arg2 : i32 to index
    %c0_41 = arith.constant 0 : index
    %c0_42 = arith.constant 0 : index
    %83 = vector.load %arg11[%82, %c0_41, %c0_42] : memref<4x128x16xf32, #tpu.memory_space<vmem>>, vector<1x128x16xf32>
    %84 = vector.shape_cast %83 : vector<1x128x16xf32> to vector<128x16xf32>
    %85 = vector.shape_cast %81 : vector<128x16xf32> to vector<1x128x16xf32>
    tpu.vector_store %arg11[%82, %c0_41, %c0_42], %85 {strides = array<i32>} : memref<4x128x16xf32, #tpu.memory_space<vmem>>, vector<1x128x16xf32>,
    return
  }
  func.func @transform_0(%arg0: i32, %arg1: i32, %arg2: i32) -> (i32, i32, i32) {
    %c0_i32 = arith.constant 0 : i32
    %c0_i32_0 = arith.constant 0 : i32
    return %arg2, %arg0, %c0_i32 : i32, i32, i32
  }
  func.func @transform_1(%arg0: i32, %arg1: i32, %arg2: i32) -> (i32, i32, i32) {
    %c0_i32 = arith.constant 0 : i32
    %c0_i32_0 = arith.constant 0 : i32
    return %arg2, %arg1, %c0_i32 : i32, i32, i32
  }
  func.func @transform_2(%arg0: i32, %arg1: i32, %arg2: i32) -> (i32, i32, i32) {
    %c0_i32 = arith.constant 0 : i32
    %c0_i32_0 = arith.constant 0 : i32
    return %arg2, %arg1, %c0_i32 : i32, i32, i32
  }
  func.func @transform_3(%arg0: i32, %arg1: i32, %arg2: i32) -> (i32, i32, i32) {
    %c0_i32 = arith.constant 0 : i32
    return %arg2, %arg0, %arg1 : i32, i32, i32
  }
  func.func @transform_4(%arg0: i32, %arg1: i32, %arg2: i32) -> (i32, i32) {
    %c0_i32 = arith.constant 0 : i32
    %c0_i32_0 = arith.constant 0 : i32
    return %arg0, %c0_i32 : i32, i32
  }
  func.func @transform_5(%arg0: i32, %arg1: i32, %arg2: i32) -> (i32, i32) {
    %c0_i32 = arith.constant 0 : i32
    %c0_i32_0 = arith.constant 0 : i32
    return %c0_i32, %arg1 : i32, i32
  }
  func.func @transform_6(%arg0: i32, %arg1: i32, %arg2: i32) -> (i32, i32, i32) {
    %c0_i32 = arith.constant 0 : i32
    %c0_i32_0 = arith.constant 0 : i32
    return %arg0, %c0_i32, %arg1 : i32, i32, i32
  }
  func.func @transform_7(%arg0: i32, %arg1: i32, %arg2: i32) -> (i32, i32, i32) {
    %c0_i32 = arith.constant 0 : i32
    %c0_i32_0 = arith.constant 0 : i32
    %c0_i32_1 = arith.constant 0 : i32
    return %c0_i32, %arg0, %c0_i32_0 : i32, i32, i32
  }
  func.func @transform_8(%arg0: i32, %arg1: i32, %arg2: i32) -> (i32, i32, i32) {
    %c0_i32 = arith.constant 0 : i32
    %c0_i32_0 = arith.constant 0 : i32
    %c0_i32_1 = arith.constant 0 : i32
    return %c0_i32, %arg0, %c0_i32_0 : i32, i32, i32
  }
}

</mosaic_0001>

<bundles_post_ra>
// kernel: tpu_custom_call.1
= control target key start
LH: loop header
LB: loop body
LE: loop exit
PB: predicated region body
PF: predicated region fallthrough
CT: control target
= control target key end

     0   :  { %s14065_s0 = inlined_call_operand.vmem [shape: f32[4,256,30], index: 0, kind: input, shape index: {}]   ;;  %s14066_s1 = inlined_call_operand.vmem [shape: f32[4,256,30], index: 1, kind: input, shape index: {}]   ;;  %s14067_s2 = inlined_call_operand.vmem [shape: f32[4,256,40], index: 2, kind: input, shape index: {}]   ;;  %s14068_s3 = inlined_call_operand.hbm [shape: bf16[4,256,256], index: 3, kind: input, shape index: {}]   ;;  %s14069_s4 = inlined_call_operand.vmem [shape: f32[256,1], index: 4, kind: input, shape index: {}]   ;;  %s14070_s5 = inlined_call_operand.vmem [shape: f32[1,256], index: 5, kind: input, shape index: {}]   ;;  %s14071_s6 = inlined_call_operand.vmem [shape: bf16[256,16,256], index: 6, kind: input, shape index: {}]   ;;  %s14072_s7 = inlined_call_operand.vmem [shape: f32[4,256,40], index: 7, kind: output, shape index: {0}]   ;;  %s14073_s8 = inlined_call_operand.vmem [shape: f32[4,256,16], index: 8, kind: output, shape index: {1}]  }
   0x1   :  { %14117 = sst [smem:[#allocation82_spill]] %s14065_s0 }
   0x2   :  { %14118 = sst [smem:[#allocation83_spill]] %s14066_s1 }
   0x3   :  { %14119 = sst [smem:[#allocation84_spill]] %s14067_s2 }
   0x4   :  { %14120 = sst [smem:[#allocation85_spill]] %s14068_s3 }
   0x5   :  { %14121 = sst [smem:[#allocation86_spill]] %s14069_s4 }
   0x6   :  { %14122 = sst [smem:[#allocation87_spill]] %s14070_s5 }
   0x7   :  { %14123 = sst [smem:[#allocation88_spill]] %s14071_s6 }
   0x8   :  { %14124 = sst [smem:[#allocation89_spill]] %s14072_s7 }
   0x9   :  { %14125 = sst [smem:[#allocation90_spill]] %s14073_s8 }
   0xa   :  { %14 = vsyncpa [#allocation5], 0 }
   0xb   :  { %16 = vsyncpa [#allocation5 + $0x1], 0  ;;  %s9472_s27 = smov 0   ;;  %s9474_s28 = smov 0  }
   0xc   :  { %s9476_s29 = smov 0   ;;  %s9478_s30 = smov 0  }
   0xd   :  { %s9480_s9 = smov 0   ;;  %s9482_s10 = smov 0  }
   0xe   :  { %s9484_s11 = smov 0   ;;  %s9486_s12 = smov 0  }
   0xf   :  { %s9488_s13 = smov 0   ;;  %s9490_s14 = smov 0  }
  0x10   :  { %s9492_s15 = smov 0   ;;  %s9494_s16 = smov 0  }
  0x11   :  { %s9496_s17 = smov 0   ;;  %s9498_s18 = smov 0  }
  0x12 LB: > { %14126 = sst [smem:[#allocation10_spill]] %s9369_s28  ;;  %s14074_s19 = sadd.s32 4294967295, %s9417_s18   ;;  %s9417_s18 = sphi %s9498_s18, %s22_s18   ;;  %s9413_s17 = sphi %s9496_s17, %s14367_s17   ;;  %s9409_s16 = sphi %s9494_s16, %s14357_s16   ;;  %s9405_s15 = sphi %s9492_s15, %s14366_s15   ;;  %s9401_s14 = sphi %s9490_s14, %s14365_s14   ;;  %s9397_s13 = sphi %s9488_s13, %s14354_s13   ;;  %s9393_s12 = sphi %s9486_s12, %s14364_s12   ;;  %s9389_s11 = sphi %s9484_s11, %s14353_s11   ;;  %s9385_s10 = sphi %s9482_s10, %s14363_s10   ;;  %s9381_s9 = sphi %s9480_s9, %s14362_s9   ;;  %s9377_s30 = sphi %s9478_s30, %s14361_s30   ;;  %s9373_s29 = sphi %s9476_s29, %s14360_s29   ;;  %s9369_s28 = sphi %s9474_s28, %s14350_s28   ;;  %s9365_s27 = sphi %s9472_s27, %s14349_s27  }
  0x13   : > { %14127 = sst [smem:[#allocation11_spill]] %s9389_s11  ;;  %s34_s20 = sadd.s32 1, %s9405_s15 }
  0x14   : > { %14128 = sst [smem:[#allocation12_spill]] %s9393_s12  ;;  %p35_p0 = scmp.ge.s32.totalorder %s34_s20, 4 }
  0x15   : > { %14129 = sst [smem:[#allocation13_spill]] %s9397_s13  ;;  %s37_s21 = sadd.s32 1, %s9409_s16 }
  0x16   : > { %14130 = sst [smem:[#allocation14_spill]] %s9409_s16  ;;  %s41_s22 = sadd.s32 1, %s9413_s17 }
  0x17   : > { %14131 = sst [smem:[#allocation15_spill]] %s9413_s17  ;;  %s14369_s20 = smov (%p35_p0, %s34_s20), 0 }
  0x18   : > { %14132 = sst [smem:[#allocation16_spill]] %s14369_s20  ;;  %s14371_s21 = smov (!%p35_p0, %s37_s21), %s9409_s16 }
  0x19   : > { %s129_s24 = ssub.s32 %s9405_s15, %s14369_s20  ;;  %p143_p1 = scmp.ne.s32.totalorder %s9389_s11, %s9385_s10 }
  0x1a   : > { %p39_p2 = scmp.ge.s32.totalorder %s14371_s21, 2  ;;  %p144_p3 = scmp.eq.s32.totalorder %s9417_s18, 0 }
  0x1b   : > { %p149_p4 = scmp.ne.s32.totalorder %s9385_s10, %s9381_s9  ;;  %p150_p5 = scmp.eq.s32.totalorder %s14074_s19, 0 }
  0x1c   : > { %s14373_s21 = smov (%p39_p2, %s14371_s21), 0  ;;  %s14375_s22 = smov (!%p39_p2, %s41_s22), %s9413_s17 }
  0x1d   : > { %14133 = sst [smem:[#allocation17_spill]] %s14373_s21  ;;  %s132_s25 = ssub.s32 %s9409_s16, %s14373_s21 }
  0x1e   : > { %p9561_p6 = por %p144_p3, %p143_p1  ;;  %p43_p7 = scmp.ge.s32.totalorder %s14375_s22, 2 }
  0x1f   : > { %p9565_p8 = por %p150_p5, %p149_p4  ;;  %s216_s9 = sadd.s32 1, %s9377_s30 }
  0x20   : > { %p223_p9 = scmp.ne.s32.totalorder %s9377_s30, %s9373_s29  ;;  %s14377_s22 = smov (%p43_p7, %s14375_s22), 0 }
  0x21   : > { %14136 = sst [smem:[#allocation18_spill]] %s14377_s22  ;;  %s242_s21 = sadd.s32 1, %s9369_s28 }
  0x22   : > { %p9574_p10 = por %p223_p9, %p144_p3  ;;  %s130_s20 = ssub.s32 %s9413_s17, %s14377_s22 }
  0x23   : > { %p252_p11 = scmp.ne.s32.totalorder %s9369_s28, %s9365_s27  ;;  %s131_s8 = sor.u32 %s130_s20, %s129_s24 }
  0x24   : > { %s213_s7 = sor.u32 %s132_s25, %s130_s20  ;;  %s133_s2 = sor.u32 %s132_s25, %s131_s8 }
  0x25   : > { %p214_p12 = scmp.eq.s32.totalorder %s213_s7, 0  ;;  %p134_p13 = scmp.eq.s32.totalorder %s133_s2, 0 }
  0x26   : > { %p240_p0 = scmp.eq.s32.totalorder %s130_s20, 0  ;;  %s14139_s5 = sadd.s32 1, %s9389_s11 }
  0x27   : > { %s9584_s1 = scalar_select %p214_p12, %s9377_s30, %s216_s9  }
  0x28   : > { %s9589_s0 = scalar_select %p134_p13, %s9389_s11, %s14139_s5  }
  0x29   : > { %14138 = sst [smem:[#allocation19_spill]] %s9584_s1  ;;  %s14142_s13 = sadd.s32 4294967295, %s9417_s18  }
  0x2a   : > { %14140 = sst [smem:[#allocation20_spill]] %s9589_s0  ;;  %p253_p1 = scmp.eq.s32.totalorder %s14142_s13, 15 }
  0x2b   : > { %s9592_s4 = scalar_select %p240_p0, %s9369_s28, %s242_s21  }
  0x2c   : > { %p9596_p2 = por %p253_p1, %p252_p11  ;;  %p8114_p3 = scmp.ge.s32.totalorder %s9417_s18, 16 }
  0x2d   : > { %14141 = sst [smem:[#allocation21_spill]] %s9592_s4  ;;  %s344_s2 = sand.u32 (!%p8114_p3), 1, %s9389_s11  }
  0x2e   : > { %301 = sbr.rel (%p8114_p3) target bundleno = 245 (0xf5), region = 16  ;;  %s8200_s7 = sshll.u32 (!%p8114_p3), %s9413_s17, 5 }
  0x2f   : > { %s8115_s5 = sshll.u32 (!%p8114_p3), %s344_s2, 6  ;;  %s354_s8 = sadd.s32 (!%p8114_p3), %s9409_s16, %s8200_s7 }
  0x30   : > { %s8118_s20 = sshll.u32 (!%p8114_p3), %s9405_s15, 6  ;;  %s348_s21 = scalar_lea.vmem (!%p8114_p3), [#allocation4], %s8115_s5 }
  0x31   : > { %s359_s24 = sshll.u32 (!%p8114_p3), %s348_s21, 4  ;;  %s356_s13 = sadd.s32 (!%p8114_p3), %s8118_s20, %s354_s8  ;;  %s360_s24 = int_to_ptr.vmem [resolvable:$true] %s359_s24 }
  0x32   : > { %s8119_s25 = sshll.u32 (!%p8114_p3), %s356_s13, 6  ;;  %s14144_s3 = sld [smem:[#allocation85_spill]] (!%p8114_p3) }
  0x33   : > { %s345_s1 = scalar_lea.sflag [#allocation5], %s344_s2  ;;  %s9289_s4 = scalar_lea.vmem %s360_s24, 1024 }
  0x34   : > { %p9290_p4 = scmp.ne.s32.totalorder %s360_s24, %s9289_s4  ;;  %s9419_s11 = smov [#allocation4]  }
  0x35   : > { %s9293_s28 = sshll.u32 %s9419_s11, 4  ;;  %s9294_s28 = int_to_ptr.vmem [resolvable:$false] %s9293_s28 }
  0x36   : > { %p9291_p5 = pnand %p9290_p4, %p9561_p6  ;;  %s9295_s7 = scalar_lea.vmem %s9294_s28, 2048 }
  0x37   : > { %p9296_p9 = scmp.lt.s32.totalorder %s360_s24, %s9294_s28  ;;  %p9297_p11 = scmp.lt.s32.totalorder %s9295_s7, %s9289_s4 }
  0x38   : > { %s358_s0 = scalar_lea.hbm %s14144_s3, %s8119_s25  ;;  %p9292_p7 = pneg %p9291_p5 }
  0x39   : > { %p9298_p12 = por %p9297_p11, %p9296_p9 }
  0x3b   : > { %p9299_p13 = pnand %p9298_p12, %p9292_p7 }
  0x3d   : > { %9302 = shalt.err (!%p9299_p13)
}
  0x3e   : > { %s9420_s5 = smov 128   ;;  %s9421_s8 = smov 64  }
  0x3f   : > { %s9422_s22 = smov 4   ;;  %383 = sbr.rel (!%p9574_p10) target bundleno = 245 (0xf5), region = 44 }
  0x40   : > { %9058 = dma.hbm_to_vmem [thread:$0]  (%p9561_p6), %s358_s0, 1024, %s360_s24, %s345_s1, %s9420_s5, %s9421_s8, %s9422_s22  }
  0x41   : > { %s385_s11 = sand.u32 (%p9574_p10), 1, %s9377_s30   ;;  %s8201_s2 = sshll.u32 (%p9574_p10), %s9413_s17, 9 }
  0x42   : > { %s8120_s20 = sshll.u32 (%p9574_p10), %s385_s11, 10  ;;  %s390_s28 = sadd.s32 (%p9574_p10), %s9409_s16, %s8201_s2 }
  0x43   : > { %s8123_s4 = sshll.u32 (%p9574_p10), %s390_s28, 2  ;;  %s14145_s6 = sld [smem:[#allocation88_spill]] (%p9574_p10) }
  0x44   : > { %s9625_s0 = scalar_lea.vmem [#allocation6], %s8120_s20 }
  0x49   : > { %s9620_s25 = scalar_lea.vmem %s14145_s6, %s8123_s4 }
  0x4a   : > { %v409_v0 = vld [vmem:[%s9620_s25] sm:$0xf]  ;;  %v411_v1 = vld [vmem:[%s9620_s25 + $0x8] sm:$0xf]  ;;  %v413_v2 = vld [vmem:[%s9620_s25 + $0x10] sm:$0xf] }
  0x4b   : > { %410 = vst [vmem:[%s9625_s0] sm:$0xf] %v409_v0  ;;  %412 = vst [vmem:[%s9625_s0 + $0x4] sm:$0xf] %v411_v1  ;;  %v415_v3 = vld [vmem:[%s9620_s25 + $0x18] sm:$0xf] }
  0x4c   : > { %414 = vst [vmem:[%s9625_s0 + $0x8] sm:$0xf] %v413_v2  ;;  %v417_v4 = vld [vmem:[%s9620_s25 + $0x20] sm:$0xf]  ;;  %v419_v5 = vld [vmem:[%s9620_s25 + $0x28] sm:$0xf] }
  0x4d   : > { %416 = vst [vmem:[%s9625_s0 + $0xc] sm:$0xf] %v415_v3  ;;  %418 = vst [vmem:[%s9625_s0 + $0x10] sm:$0xf] %v417_v4  ;;  %v421_v6 = vld [vmem:[%s9620_s25 + $0x30] sm:$0xf] }
  0x4e   : > { %420 = vst [vmem:[%s9625_s0 + $0x14] sm:$0xf] %v419_v5  ;;  %v423_v7 = vld [vmem:[%s9620_s25 + $0x38] sm:$0xf]  ;;  %v425_v8 = vld [vmem:[%s9620_s25 + $0x40] sm:$0xf] }
  0x4f   : > { %422 = vst [vmem:[%s9625_s0 + $0x18] sm:$0xf] %v421_v6  ;;  %424 = vst [vmem:[%s9625_s0 + $0x1c] sm:$0xf] %v423_v7  ;;  %v427_v9 = vld [vmem:[%s9620_s25 + $0x48] sm:$0xf] }
  0x50   : > { %426 = vst [vmem:[%s9625_s0 + $0x20] sm:$0xf] %v425_v8  ;;  %v429_v10 = vld [vmem:[%s9620_s25 + $0x50] sm:$0xf]  ;;  %v431_v11 = vld [vmem:[%s9620_s25 + $0x58] sm:$0xf] }
  0x51   : > { %428 = vst [vmem:[%s9625_s0 + $0x24] sm:$0xf] %v427_v9  ;;  %430 = vst [vmem:[%s9625_s0 + $0x28] sm:$0xf] %v429_v10  ;;  %v433_v12 = vld [vmem:[%s9620_s25 + $0x60] sm:$0xf] }
  0x52   : > { %432 = vst [vmem:[%s9625_s0 + $0x2c] sm:$0xf] %v431_v11  ;;  %v435_v13 = vld [vmem:[%s9620_s25 + $0x68] sm:$0xf]  ;;  %v437_v14 = vld [vmem:[%s9620_s25 + $0x70] sm:$0xf] }
  0x53   : > { %434 = vst [vmem:[%s9625_s0 + $0x30] sm:$0xf] %v433_v12  ;;  %436 = vst [vmem:[%s9625_s0 + $0x34] sm:$0xf] %v435_v13  ;;  %v439_v15 = vld [vmem:[%s9620_s25 + $0x78] sm:$0xf] }
  0x54   : > { %438 = vst [vmem:[%s9625_s0 + $0x38] sm:$0xf] %v437_v14  ;;  %v441_v16 = vld [vmem:[%s9620_s25 + $0x80] sm:$0xf]  ;;  %v443_v17 = vld [vmem:[%s9620_s25 + $0x88] sm:$0xf] }
  0x55   : > { %440 = vst [vmem:[%s9625_s0 + $0x3c] sm:$0xf] %v439_v15  ;;  %442 = vst [vmem:[%s9625_s0 + $0x40] sm:$0xf] %v441_v16  ;;  %v445_v18 = vld [vmem:[%s9620_s25 + $0x90] sm:$0xf] }
  0x56   : > { %444 = vst [vmem:[%s9625_s0 + $0x44] sm:$0xf] %v443_v17  ;;  %v447_v19 = vld [vmem:[%s9620_s25 + $0x98] sm:$0xf]  ;;  %v449_v20 = vld [vmem:[%s9620_s25 + $0xa0] sm:$0xf] }
  0x57   : > { %446 = vst [vmem:[%s9625_s0 + $0x48] sm:$0xf] %v445_v18  ;;  %448 = vst [vmem:[%s9625_s0 + $0x4c] sm:$0xf] %v447_v19  ;;  %v451_v21 = vld [vmem:[%s9620_s25 + $0xa8] sm:$0xf] }
  0x58   : > { %450 = vst [vmem:[%s9625_s0 + $0x50] sm:$0xf] %v449_v20  ;;  %v453_v22 = vld [vmem:[%s9620_s25 + $0xb0] sm:$0xf]  ;;  %v455_v23 = vld [vmem:[%s9620_s25 + $0xb8] sm:$0xf] }
  0x59   : > { %452 = vst [vmem:[%s9625_s0 + $0x54] sm:$0xf] %v451_v21  ;;  %454 = vst [vmem:[%s9625_s0 + $0x58] sm:$0xf] %v453_v22  ;;  %v457_v24 = vld [vmem:[%s9620_s25 + $0xc0] sm:$0xf] }
  0x5a   : > { %456 = vst [vmem:[%s9625_s0 + $0x5c] sm:$0xf] %v455_v23  ;;  %v459_v25 = vld [vmem:[%s9620_s25 + $0xc8] sm:$0xf]  ;;  %v461_v26 = vld [vmem:[%s9620_s25 + $0xd0] sm:$0xf] }
  0x5b   : > { %458 = vst [vmem:[%s9625_s0 + $0x60] sm:$0xf] %v457_v24  ;;  %460 = vst [vmem:[%s9625_s0 + $0x64] sm:$0xf] %v459_v25  ;;  %v463_v27 = vld [vmem:[%s9620_s25 + $0xd8] sm:$0xf] }
  0x5c   : > { %462 = vst [vmem:[%s9625_s0 + $0x68] sm:$0xf] %v461_v26  ;;  %v465_v28 = vld [vmem:[%s9620_s25 + $0xe0] sm:$0xf]  ;;  %v467_v29 = vld [vmem:[%s9620_s25 + $0xe8] sm:$0xf] }
  0x5d   : > { %464 = vst [vmem:[%s9625_s0 + $0x6c] sm:$0xf] %v463_v27  ;;  %466 = vst [vmem:[%s9625_s0 + $0x70] sm:$0xf] %v465_v28  ;;  %v469_v30 = vld [vmem:[%s9620_s25 + $0xf0] sm:$0xf] }
  0x5e   : > { %468 = vst [vmem:[%s9625_s0 + $0x74] sm:$0xf] %v467_v29  ;;  %v471_v31 = vld [vmem:[%s9620_s25 + $0xf8] sm:$0xf]  ;;  %v473_v32 = vld [vmem:[%s9620_s25 + $0x100] sm:$0xf] }
  0x5f   : > { %470 = vst [vmem:[%s9625_s0 + $0x78] sm:$0xf] %v469_v30  ;;  %472 = vst [vmem:[%s9625_s0 + $0x7c] sm:$0xf] %v471_v31  ;;  %v475_v33 = vld [vmem:[%s9620_s25 + $0x108] sm:$0xf] }
  0x60   : > { %474 = vst [vmem:[%s9625_s0 + $0x80] sm:$0xf] %v473_v32  ;;  %v477_v34 = vld [vmem:[%s9620_s25 + $0x110] sm:$0xf]  ;;  %v479_v35 = vld [vmem:[%s9620_s25 + $0x118] sm:$0xf] }
  0x61   : > { %476 = vst [vmem:[%s9625_s0 + $0x84] sm:$0xf] %v475_v33  ;;  %478 = vst [vmem:[%s9625_s0 + $0x88] sm:$0xf] %v477_v34  ;;  %v481_v36 = vld [vmem:[%s9620_s25 + $0x120] sm:$0xf] }
  0x62   : > { %480 = vst [vmem:[%s9625_s0 + $0x8c] sm:$0xf] %v479_v35  ;;  %v483_v37 = vld [vmem:[%s9620_s25 + $0x128] sm:$0xf]  ;;  %v485_v38 = vld [vmem:[%s9620_s25 + $0x130] sm:$0xf] }
  0x63   : > { %482 = vst [vmem:[%s9625_s0 + $0x90] sm:$0xf] %v481_v36  ;;  %484 = vst [vmem:[%s9625_s0 + $0x94] sm:$0xf] %v483_v37  ;;  %v487_v39 = vld [vmem:[%s9620_s25 + $0x138] sm:$0xf] }
  0x64   : > { %486 = vst [vmem:[%s9625_s0 + $0x98] sm:$0xf] %v485_v38  ;;  %v489_v40 = vld [vmem:[%s9620_s25 + $0x140] sm:$0xf]  ;;  %v491_v41 = vld [vmem:[%s9620_s25 + $0x148] sm:$0xf] }
  0x65   : > { %488 = vst [vmem:[%s9625_s0 + $0x9c] sm:$0xf] %v487_v39  ;;  %490 = vst [vmem:[%s9625_s0 + $0xa0] sm:$0xf] %v489_v40  ;;  %v493_v42 = vld [vmem:[%s9620_s25 + $0x150] sm:$0xf] }
  0x66   : > { %492 = vst [vmem:[%s9625_s0 + $0xa4] sm:$0xf] %v491_v41  ;;  %v495_v43 = vld [vmem:[%s9620_s25 + $0x158] sm:$0xf]  ;;  %v497_v44 = vld [vmem:[%s9620_s25 + $0x160] sm:$0xf] }
  0x67   : > { %494 = vst [vmem:[%s9625_s0 + $0xa8] sm:$0xf] %v493_v42  ;;  %496 = vst [vmem:[%s9625_s0 + $0xac] sm:$0xf] %v495_v43  ;;  %v499_v45 = vld [vmem:[%s9620_s25 + $0x168] sm:$0xf] }
  0x68   : > { %498 = vst [vmem:[%s9625_s0 + $0xb0] sm:$0xf] %v497_v44  ;;  %v501_v46 = vld [vmem:[%s9620_s25 + $0x170] sm:$0xf]  ;;  %v503_v47 = vld [vmem:[%s9620_s25 + $0x178] sm:$0xf] }
  0x69   : > { %500 = vst [vmem:[%s9625_s0 + $0xb4] sm:$0xf] %v499_v45  ;;  %502 = vst [vmem:[%s9625_s0 + $0xb8] sm:$0xf] %v501_v46  ;;  %v505_v48 = vld [vmem:[%s9620_s25 + $0x180] sm:$0xf] }
  0x6a   : > { %504 = vst [vmem:[%s9625_s0 + $0xbc] sm:$0xf] %v503_v47  ;;  %v507_v49 = vld [vmem:[%s9620_s25 + $0x188] sm:$0xf]  ;;  %v509_v50 = vld [vmem:[%s9620_s25 + $0x190] sm:$0xf] }
  0x6b   : > { %506 = vst [vmem:[%s9625_s0 + $0xc0] sm:$0xf] %v505_v48  ;;  %508 = vst [vmem:[%s9625_s0 + $0xc4] sm:$0xf] %v507_v49  ;;  %v511_v51 = vld [vmem:[%s9620_s25 + $0x198] sm:$0xf] }
  0x6c   : > { %510 = vst [vmem:[%s9625_s0 + $0xc8] sm:$0xf] %v509_v50  ;;  %v513_v52 = vld [vmem:[%s9620_s25 + $0x1a0] sm:$0xf]  ;;  %v515_v53 = vld [vmem:[%s9620_s25 + $0x1a8] sm:$0xf] }
  0x6d   : > { %512 = vst [vmem:[%s9625_s0 + $0xcc] sm:$0xf] %v511_v51  ;;  %514 = vst [vmem:[%s9625_s0 + $0xd0] sm:$0xf] %v513_v52  ;;  %v517_v54 = vld [vmem:[%s9620_s25 + $0x1b0] sm:$0xf] }
  0x6e   : > { %516 = vst [vmem:[%s9625_s0 + $0xd4] sm:$0xf] %v515_v53  ;;  %v519_v55 = vld [vmem:[%s9620_s25 + $0x1b8] sm:$0xf]  ;;  %v521_v56 = vld [vmem:[%s9620_s25 + $0x1c0] sm:$0xf] }
  0x6f   : > { %518 = vst [vmem:[%s9625_s0 + $0xd8] sm:$0xf] %v517_v54  ;;  %520 = vst [vmem:[%s9625_s0 + $0xdc] sm:$0xf] %v519_v55  ;;  %v523_v57 = vld [vmem:[%s9620_s25 + $0x1c8] sm:$0xf] }
  0x70   : > { %522 = vst [vmem:[%s9625_s0 + $0xe0] sm:$0xf] %v521_v56  ;;  %v525_v58 = vld [vmem:[%s9620_s25 + $0x1d0] sm:$0xf]  ;;  %v527_v59 = vld [vmem:[%s9620_s25 + $0x1d8] sm:$0xf] }
  0x71   : > { %524 = vst [vmem:[%s9625_s0 + $0xe4] sm:$0xf] %v523_v57  ;;  %526 = vst [vmem:[%s9625_s0 + $0xe8] sm:$0xf] %v525_v58  ;;  %v529_v60 = vld [vmem:[%s9620_s25 + $0x1e0] sm:$0xf] }
  0x72   : > { %528 = vst [vmem:[%s9625_s0 + $0xec] sm:$0xf] %v527_v59  ;;  %v531_v61 = vld [vmem:[%s9620_s25 + $0x1e8] sm:$0xf]  ;;  %v533_v62 = vld [vmem:[%s9620_s25 + $0x1f0] sm:$0xf] }
  0x73   : > { %530 = vst [vmem:[%s9625_s0 + $0xf0] sm:$0xf] %v529_v60  ;;  %532 = vst [vmem:[%s9625_s0 + $0xf4] sm:$0xf] %v531_v61  ;;  %v535_v63 = vld [vmem:[%s9620_s25 + $0x1f8] sm:$0xf] }
  0x74   : > { %534 = vst [vmem:[%s9625_s0 + $0xf8] sm:$0xf] %v533_v62  ;;  %v537_v0 = vld [vmem:[%s9620_s25 + $0x200] sm:$0xf]  ;;  %v539_v1 = vld [vmem:[%s9620_s25 + $0x208] sm:$0xf] }
  0x75   : > { %536 = vst [vmem:[%s9625_s0 + $0xfc] sm:$0xf] %v535_v63  ;;  %538 = vst [vmem:[%s9625_s0 + $0x100] sm:$0xf] %v537_v0  ;;  %v541_v2 = vld [vmem:[%s9620_s25 + $0x210] sm:$0xf] }
  0x76   : > { %540 = vst [vmem:[%s9625_s0 + $0x104] sm:$0xf] %v539_v1  ;;  %v543_v3 = vld [vmem:[%s9620_s25 + $0x218] sm:$0xf]  ;;  %v545_v4 = vld [vmem:[%s9620_s25 + $0x220] sm:$0xf] }
  0x77   : > { %542 = vst [vmem:[%s9625_s0 + $0x108] sm:$0xf] %v541_v2  ;;  %544 = vst [vmem:[%s9625_s0 + $0x10c] sm:$0xf] %v543_v3  ;;  %v547_v5 = vld [vmem:[%s9620_s25 + $0x228] sm:$0xf] }
  0x78   : > { %546 = vst [vmem:[%s9625_s0 + $0x110] sm:$0xf] %v545_v4  ;;  %v549_v6 = vld [vmem:[%s9620_s25 + $0x230] sm:$0xf]  ;;  %v551_v7 = vld [vmem:[%s9620_s25 + $0x238] sm:$0xf] }
  0x79   : > { %548 = vst [vmem:[%s9625_s0 + $0x114] sm:$0xf] %v547_v5  ;;  %550 = vst [vmem:[%s9625_s0 + $0x118] sm:$0xf] %v549_v6  ;;  %v553_v8 = vld [vmem:[%s9620_s25 + $0x240] sm:$0xf] }
  0x7a   : > { %552 = vst [vmem:[%s9625_s0 + $0x11c] sm:$0xf] %v551_v7  ;;  %v555_v9 = vld [vmem:[%s9620_s25 + $0x248] sm:$0xf]  ;;  %v557_v10 = vld [vmem:[%s9620_s25 + $0x250] sm:$0xf] }
  0x7b   : > { %554 = vst [vmem:[%s9625_s0 + $0x120] sm:$0xf] %v553_v8  ;;  %556 = vst [vmem:[%s9625_s0 + $0x124] sm:$0xf] %v555_v9  ;;  %v559_v11 = vld [vmem:[%s9620_s25 + $0x258] sm:$0xf] }
  0x7c   : > { %558 = vst [vmem:[%s9625_s0 + $0x128] sm:$0xf] %v557_v10  ;;  %v561_v12 = vld [vmem:[%s9620_s25 + $0x260] sm:$0xf]  ;;  %v563_v13 = vld [vmem:[%s9620_s25 + $0x268] sm:$0xf] }
  0x7d   : > { %560 = vst [vmem:[%s9625_s0 + $0x12c] sm:$0xf] %v559_v11  ;;  %562 = vst [vmem:[%s9625_s0 + $0x130] sm:$0xf] %v561_v12  ;;  %v565_v14 = vld [vmem:[%s9620_s25 + $0x270] sm:$0xf] }
  0x7e   : > { %564 = vst [vmem:[%s9625_s0 + $0x134] sm:$0xf] %v563_v13  ;;  %v567_v15 = vld [vmem:[%s9620_s25 + $0x278] sm:$0xf]  ;;  %v569_v16 = vld [vmem:[%s9620_s25 + $0x280] sm:$0xf] }
  0x7f   : > { %566 = vst [vmem:[%s9625_s0 + $0x138] sm:$0xf] %v565_v14  ;;  %568 = vst [vmem:[%s9625_s0 + $0x13c] sm:$0xf] %v567_v15  ;;  %v571_v17 = vld [vmem:[%s9620_s25 + $0x288] sm:$0xf] }
  0x80   : > { %570 = vst [vmem:[%s9625_s0 + $0x140] sm:$0xf] %v569_v16  ;;  %v573_v18 = vld [vmem:[%s9620_s25 + $0x290] sm:$0xf]  ;;  %v575_v19 = vld [vmem:[%s9620_s25 + $0x298] sm:$0xf] }
  0x81   : > { %572 = vst [vmem:[%s9625_s0 + $0x144] sm:$0xf] %v571_v17  ;;  %574 = vst [vmem:[%s9625_s0 + $0x148] sm:$0xf] %v573_v18  ;;  %v577_v20 = vld [vmem:[%s9620_s25 + $0x2a0] sm:$0xf] }
  0x82   : > { %576 = vst [vmem:[%s9625_s0 + $0x14c] sm:$0xf] %v575_v19  ;;  %v579_v21 = vld [vmem:[%s9620_s25 + $0x2a8] sm:$0xf]  ;;  %v581_v22 = vld [vmem:[%s9620_s25 + $0x2b0] sm:$0xf] }
  0x83   : > { %578 = vst [vmem:[%s9625_s0 + $0x150] sm:$0xf] %v577_v20  ;;  %580 = vst [vmem:[%s9625_s0 + $0x154] sm:$0xf] %v579_v21  ;;  %v583_v23 = vld [vmem:[%s9620_s25 + $0x2b8] sm:$0xf] }
  0x84   : > { %582 = vst [vmem:[%s9625_s0 + $0x158] sm:$0xf] %v581_v22  ;;  %v585_v24 = vld [vmem:[%s9620_s25 + $0x2c0] sm:$0xf]  ;;  %v587_v25 = vld [vmem:[%s9620_s25 + $0x2c8] sm:$0xf] }
  0x85   : > { %584 = vst [vmem:[%s9625_s0 + $0x15c] sm:$0xf] %v583_v23  ;;  %586 = vst [vmem:[%s9625_s0 + $0x160] sm:$0xf] %v585_v24  ;;  %v589_v26 = vld [vmem:[%s9620_s25 + $0x2d0] sm:$0xf] }
  0x86   : > { %588 = vst [vmem:[%s9625_s0 + $0x164] sm:$0xf] %v587_v25  ;;  %v591_v27 = vld [vmem:[%s9620_s25 + $0x2d8] sm:$0xf]  ;;  %v593_v28 = vld [vmem:[%s9620_s25 + $0x2e0] sm:$0xf] }
  0x87   : > { %590 = vst [vmem:[%s9625_s0 + $0x168] sm:$0xf] %v589_v26  ;;  %592 = vst [vmem:[%s9625_s0 + $0x16c] sm:$0xf] %v591_v27  ;;  %v595_v29 = vld [vmem:[%s9620_s25 + $0x2e8] sm:$0xf] }
  0x88   : > { %594 = vst [vmem:[%s9625_s0 + $0x170] sm:$0xf] %v593_v28  ;;  %v597_v30 = vld [vmem:[%s9620_s25 + $0x2f0] sm:$0xf]  ;;  %v599_v31 = vld [vmem:[%s9620_s25 + $0x2f8] sm:$0xf] }
  0x89   : > { %596 = vst [vmem:[%s9625_s0 + $0x174] sm:$0xf] %v595_v29  ;;  %598 = vst [vmem:[%s9625_s0 + $0x178] sm:$0xf] %v597_v30  ;;  %v601_v32 = vld [vmem:[%s9620_s25 + $0x300] sm:$0xf] }
  0x8a   : > { %600 = vst [vmem:[%s9625_s0 + $0x17c] sm:$0xf] %v599_v31  ;;  %v603_v33 = vld [vmem:[%s9620_s25 + $0x308] sm:$0xf]  ;;  %v605_v34 = vld [vmem:[%s9620_s25 + $0x310] sm:$0xf] }
  0x8b   : > { %602 = vst [vmem:[%s9625_s0 + $0x180] sm:$0xf] %v601_v32  ;;  %604 = vst [vmem:[%s9625_s0 + $0x184] sm:$0xf] %v603_v33  ;;  %v607_v35 = vld [vmem:[%s9620_s25 + $0x318] sm:$0xf] }
  0x8c   : > { %606 = vst [vmem:[%s9625_s0 + $0x188] sm:$0xf] %v605_v34  ;;  %v609_v36 = vld [vmem:[%s9620_s25 + $0x320] sm:$0xf]  ;;  %v611_v37 = vld [vmem:[%s9620_s25 + $0x328] sm:$0xf] }
  0x8d   : > { %608 = vst [vmem:[%s9625_s0 + $0x18c] sm:$0xf] %v607_v35  ;;  %610 = vst [vmem:[%s9625_s0 + $0x190] sm:$0xf] %v609_v36  ;;  %v613_v38 = vld [vmem:[%s9620_s25 + $0x330] sm:$0xf] }
  0x8e   : > { %612 = vst [vmem:[%s9625_s0 + $0x194] sm:$0xf] %v611_v37  ;;  %v615_v39 = vld [vmem:[%s9620_s25 + $0x338] sm:$0xf]  ;;  %v617_v40 = vld [vmem:[%s9620_s25 + $0x340] sm:$0xf] }
  0x8f   : > { %614 = vst [vmem:[%s9625_s0 + $0x198] sm:$0xf] %v613_v38  ;;  %616 = vst [vmem:[%s9625_s0 + $0x19c] sm:$0xf] %v615_v39  ;;  %v619_v41 = vld [vmem:[%s9620_s25 + $0x348] sm:$0xf] }
  0x90   : > { %618 = vst [vmem:[%s9625_s0 + $0x1a0] sm:$0xf] %v617_v40  ;;  %v621_v42 = vld [vmem:[%s9620_s25 + $0x350] sm:$0xf]  ;;  %v623_v43 = vld [vmem:[%s9620_s25 + $0x358] sm:$0xf] }
  0x91   : > { %620 = vst [vmem:[%s9625_s0 + $0x1a4] sm:$0xf] %v619_v41  ;;  %622 = vst [vmem:[%s9625_s0 + $0x1a8] sm:$0xf] %v621_v42  ;;  %v625_v44 = vld [vmem:[%s9620_s25 + $0x360] sm:$0xf] }
  0x92   : > { %624 = vst [vmem:[%s9625_s0 + $0x1ac] sm:$0xf] %v623_v43  ;;  %v627_v45 = vld [vmem:[%s9620_s25 + $0x368] sm:$0xf]  ;;  %v629_v46 = vld [vmem:[%s9620_s25 + $0x370] sm:$0xf] }
  0x93   : > { %626 = vst [vmem:[%s9625_s0 + $0x1b0] sm:$0xf] %v625_v44  ;;  %628 = vst [vmem:[%s9625_s0 + $0x1b4] sm:$0xf] %v627_v45  ;;  %v631_v47 = vld [vmem:[%s9620_s25 + $0x378] sm:$0xf] }
  0x94   : > { %630 = vst [vmem:[%s9625_s0 + $0x1b8] sm:$0xf] %v629_v46  ;;  %v633_v48 = vld [vmem:[%s9620_s25 + $0x380] sm:$0xf]  ;;  %v635_v49 = vld [vmem:[%s9620_s25 + $0x388] sm:$0xf] }
  0x95   : > { %632 = vst [vmem:[%s9625_s0 + $0x1bc] sm:$0xf] %v631_v47  ;;  %634 = vst [vmem:[%s9625_s0 + $0x1c0] sm:$0xf] %v633_v48  ;;  %v637_v50 = vld [vmem:[%s9620_s25 + $0x390] sm:$0xf] }
  0x96   : > { %636 = vst [vmem:[%s9625_s0 + $0x1c4] sm:$0xf] %v635_v49  ;;  %v639_v51 = vld [vmem:[%s9620_s25 + $0x398] sm:$0xf]  ;;  %v641_v52 = vld [vmem:[%s9620_s25 + $0x3a0] sm:$0xf] }
  0x97   : > { %638 = vst [vmem:[%s9625_s0 + $0x1c8] sm:$0xf] %v637_v50  ;;  %640 = vst [vmem:[%s9625_s0 + $0x1cc] sm:$0xf] %v639_v51  ;;  %v643_v53 = vld [vmem:[%s9620_s25 + $0x3a8] sm:$0xf] }
  0x98   : > { %642 = vst [vmem:[%s9625_s0 + $0x1d0] sm:$0xf] %v641_v52  ;;  %v645_v54 = vld [vmem:[%s9620_s25 + $0x3b0] sm:$0xf]  ;;  %v647_v55 = vld [vmem:[%s9620_s25 + $0x3b8] sm:$0xf] }
  0x99   : > { %644 = vst [vmem:[%s9625_s0 + $0x1d4] sm:$0xf] %v643_v53  ;;  %646 = vst [vmem:[%s9625_s0 + $0x1d8] sm:$0xf] %v645_v54  ;;  %v649_v56 = vld [vmem:[%s9620_s25 + $0x3c0] sm:$0xf] }
  0x9a   : > { %648 = vst [vmem:[%s9625_s0 + $0x1dc] sm:$0xf] %v647_v55  ;;  %v651_v57 = vld [vmem:[%s9620_s25 + $0x3c8] sm:$0xf]  ;;  %v653_v58 = vld [vmem:[%s9620_s25 + $0x3d0] sm:$0xf] }
  0x9b   : > { %650 = vst [vmem:[%s9625_s0 + $0x1e0] sm:$0xf] %v649_v56  ;;  %652 = vst [vmem:[%s9625_s0 + $0x1e4] sm:$0xf] %v651_v57  ;;  %v655_v59 = vld [vmem:[%s9620_s25 + $0x3d8] sm:$0xf] }
  0x9c   : > { %654 = vst [vmem:[%s9625_s0 + $0x1e8] sm:$0xf] %v653_v58  ;;  %v657_v60 = vld [vmem:[%s9620_s25 + $0x3e0] sm:$0xf]  ;;  %v659_v61 = vld [vmem:[%s9620_s25 + $0x3e8] sm:$0xf] }
  0x9d   : > { %656 = vst [vmem:[%s9625_s0 + $0x1ec] sm:$0xf] %v655_v59  ;;  %658 = vst [vmem:[%s9625_s0 + $0x1f0] sm:$0xf] %v657_v60  ;;  %v661_v62 = vld [vmem:[%s9620_s25 + $0x3f0] sm:$0xf] }
  0x9e   : > { %660 = vst [vmem:[%s9625_s0 + $0x1f4] sm:$0xf] %v659_v61  ;;  %v663_v63 = vld [vmem:[%s9620_s25 + $0x3f8] sm:$0xf]  ;;  %v665_v0 = vld [vmem:[%s9620_s25 + $0x400] sm:$0xf] }
  0x9f   : > { %662 = vst [vmem:[%s9625_s0 + $0x1f8] sm:$0xf] %v661_v62  ;;  %664 = vst [vmem:[%s9625_s0 + $0x1fc] sm:$0xf] %v663_v63  ;;  %v667_v1 = vld [vmem:[%s9620_s25 + $0x408] sm:$0xf] }
  0xa0   : > { %666 = vst [vmem:[%s9625_s0 + $0x200] sm:$0xf] %v665_v0  ;;  %v669_v2 = vld [vmem:[%s9620_s25 + $0x410] sm:$0xf]  ;;  %v671_v3 = vld [vmem:[%s9620_s25 + $0x418] sm:$0xf] }
  0xa1   : > { %668 = vst [vmem:[%s9625_s0 + $0x204] sm:$0xf] %v667_v1  ;;  %670 = vst [vmem:[%s9625_s0 + $0x208] sm:$0xf] %v669_v2  ;;  %v673_v4 = vld [vmem:[%s9620_s25 + $0x420] sm:$0xf] }
  0xa2   : > { %672 = vst [vmem:[%s9625_s0 + $0x20c] sm:$0xf] %v671_v3  ;;  %v675_v5 = vld [vmem:[%s9620_s25 + $0x428] sm:$0xf]  ;;  %v677_v6 = vld [vmem:[%s9620_s25 + $0x430] sm:$0xf] }
  0xa3   : > { %674 = vst [vmem:[%s9625_s0 + $0x210] sm:$0xf] %v673_v4  ;;  %676 = vst [vmem:[%s9625_s0 + $0x214] sm:$0xf] %v675_v5  ;;  %v679_v7 = vld [vmem:[%s9620_s25 + $0x438] sm:$0xf] }
  0xa4   : > { %678 = vst [vmem:[%s9625_s0 + $0x218] sm:$0xf] %v677_v6  ;;  %v681_v8 = vld [vmem:[%s9620_s25 + $0x440] sm:$0xf]  ;;  %v683_v9 = vld [vmem:[%s9620_s25 + $0x448] sm:$0xf] }
  0xa5   : > { %680 = vst [vmem:[%s9625_s0 + $0x21c] sm:$0xf] %v679_v7  ;;  %682 = vst [vmem:[%s9625_s0 + $0x220] sm:$0xf] %v681_v8  ;;  %v685_v10 = vld [vmem:[%s9620_s25 + $0x450] sm:$0xf] }
  0xa6   : > { %684 = vst [vmem:[%s9625_s0 + $0x224] sm:$0xf] %v683_v9  ;;  %v687_v11 = vld [vmem:[%s9620_s25 + $0x458] sm:$0xf]  ;;  %v689_v12 = vld [vmem:[%s9620_s25 + $0x460] sm:$0xf] }
  0xa7   : > { %686 = vst [vmem:[%s9625_s0 + $0x228] sm:$0xf] %v685_v10  ;;  %688 = vst [vmem:[%s9625_s0 + $0x22c] sm:$0xf] %v687_v11  ;;  %v691_v13 = vld [vmem:[%s9620_s25 + $0x468] sm:$0xf] }
  0xa8   : > { %690 = vst [vmem:[%s9625_s0 + $0x230] sm:$0xf] %v689_v12  ;;  %v693_v14 = vld [vmem:[%s9620_s25 + $0x470] sm:$0xf]  ;;  %v695_v15 = vld [vmem:[%s9620_s25 + $0x478] sm:$0xf] }
  0xa9   : > { %692 = vst [vmem:[%s9625_s0 + $0x234] sm:$0xf] %v691_v13  ;;  %694 = vst [vmem:[%s9625_s0 + $0x238] sm:$0xf] %v693_v14  ;;  %v697_v16 = vld [vmem:[%s9620_s25 + $0x480] sm:$0xf] }
  0xaa   : > { %696 = vst [vmem:[%s9625_s0 + $0x23c] sm:$0xf] %v695_v15  ;;  %v699_v17 = vld [vmem:[%s9620_s25 + $0x488] sm:$0xf]  ;;  %v701_v18 = vld [vmem:[%s9620_s25 + $0x490] sm:$0xf] }
  0xab   : > { %698 = vst [vmem:[%s9625_s0 + $0x240] sm:$0xf] %v697_v16  ;;  %700 = vst [vmem:[%s9625_s0 + $0x244] sm:$0xf] %v699_v17  ;;  %v703_v19 = vld [vmem:[%s9620_s25 + $0x498] sm:$0xf] }
  0xac   : > { %702 = vst [vmem:[%s9625_s0 + $0x248] sm:$0xf] %v701_v18  ;;  %v705_v20 = vld [vmem:[%s9620_s25 + $0x4a0] sm:$0xf]  ;;  %v707_v21 = vld [vmem:[%s9620_s25 + $0x4a8] sm:$0xf] }
  0xad   : > { %704 = vst [vmem:[%s9625_s0 + $0x24c] sm:$0xf] %v703_v19  ;;  %706 = vst [vmem:[%s9625_s0 + $0x250] sm:$0xf] %v705_v20  ;;  %v709_v22 = vld [vmem:[%s9620_s25 + $0x4b0] sm:$0xf] }
  0xae   : > { %708 = vst [vmem:[%s9625_s0 + $0x254] sm:$0xf] %v707_v21  ;;  %v711_v23 = vld [vmem:[%s9620_s25 + $0x4b8] sm:$0xf]  ;;  %v713_v24 = vld [vmem:[%s9620_s25 + $0x4c0] sm:$0xf] }
  0xaf   : > { %710 = vst [vmem:[%s9625_s0 + $0x258] sm:$0xf] %v709_v22  ;;  %712 = vst [vmem:[%s9625_s0 + $0x25c] sm:$0xf] %v711_v23  ;;  %v715_v25 = vld [vmem:[%s9620_s25 + $0x4c8] sm:$0xf] }
  0xb0   : > { %714 = vst [vmem:[%s9625_s0 + $0x260] sm:$0xf] %v713_v24  ;;  %v717_v26 = vld [vmem:[%s9620_s25 + $0x4d0] sm:$0xf]  ;;  %v719_v27 = vld [vmem:[%s9620_s25 + $0x4d8] sm:$0xf] }
  0xb1   : > { %716 = vst [vmem:[%s9625_s0 + $0x264] sm:$0xf] %v715_v25  ;;  %718 = vst [vmem:[%s9625_s0 + $0x268] sm:$0xf] %v717_v26  ;;  %v721_v28 = vld [vmem:[%s9620_s25 + $0x4e0] sm:$0xf] }
  0xb2   : > { %720 = vst [vmem:[%s9625_s0 + $0x26c] sm:$0xf] %v719_v27  ;;  %v723_v29 = vld [vmem:[%s9620_s25 + $0x4e8] sm:$0xf]  ;;  %v725_v30 = vld [vmem:[%s9620_s25 + $0x4f0] sm:$0xf] }
  0xb3   : > { %722 = vst [vmem:[%s9625_s0 + $0x270] sm:$0xf] %v721_v28  ;;  %724 = vst [vmem:[%s9625_s0 + $0x274] sm:$0xf] %v723_v29  ;;  %v727_v31 = vld [vmem:[%s9620_s25 + $0x4f8] sm:$0xf] }
  0xb4   : > { %726 = vst [vmem:[%s9625_s0 + $0x278] sm:$0xf] %v725_v30  ;;  %v729_v32 = vld [vmem:[%s9620_s25 + $0x500] sm:$0xf]  ;;  %v731_v33 = vld [vmem:[%s9620_s25 + $0x508] sm:$0xf] }
  0xb5   : > { %728 = vst [vmem:[%s9625_s0 + $0x27c] sm:$0xf] %v727_v31  ;;  %730 = vst [vmem:[%s9625_s0 + $0x280] sm:$0xf] %v729_v32  ;;  %v733_v34 = vld [vmem:[%s9620_s25 + $0x510] sm:$0xf] }
  0xb6   : > { %732 = vst [vmem:[%s9625_s0 + $0x284] sm:$0xf] %v731_v33  ;;  %v735_v35 = vld [vmem:[%s9620_s25 + $0x518] sm:$0xf]  ;;  %v737_v36 = vld [vmem:[%s9620_s25 + $0x520] sm:$0xf] }
  0xb7   : > { %734 = vst [vmem:[%s9625_s0 + $0x288] sm:$0xf] %v733_v34  ;;  %736 = vst [vmem:[%s9625_s0 + $0x28c] sm:$0xf] %v735_v35  ;;  %v739_v37 = vld [vmem:[%s9620_s25 + $0x528] sm:$0xf] }
  0xb8   : > { %738 = vst [vmem:[%s9625_s0 + $0x290] sm:$0xf] %v737_v36  ;;  %v741_v38 = vld [vmem:[%s9620_s25 + $0x530] sm:$0xf]  ;;  %v743_v39 = vld [vmem:[%s9620_s25 + $0x538] sm:$0xf] }
  0xb9   : > { %740 = vst [vmem:[%s9625_s0 + $0x294] sm:$0xf] %v739_v37  ;;  %742 = vst [vmem:[%s9625_s0 + $0x298] sm:$0xf] %v741_v38  ;;  %v745_v40 = vld [vmem:[%s9620_s25 + $0x540] sm:$0xf] }
  0xba   : > { %744 = vst [vmem:[%s9625_s0 + $0x29c] sm:$0xf] %v743_v39  ;;  %v747_v41 = vld [vmem:[%s9620_s25 + $0x548] sm:$0xf]  ;;  %v749_v42 = vld [vmem:[%s9620_s25 + $0x550] sm:$0xf] }
  0xbb   : > { %746 = vst [vmem:[%s9625_s0 + $0x2a0] sm:$0xf] %v745_v40  ;;  %748 = vst [vmem:[%s9625_s0 + $0x2a4] sm:$0xf] %v747_v41  ;;  %v751_v43 = vld [vmem:[%s9620_s25 + $0x558] sm:$0xf] }
  0xbc   : > { %750 = vst [vmem:[%s9625_s0 + $0x2a8] sm:$0xf] %v749_v42  ;;  %v753_v44 = vld [vmem:[%s9620_s25 + $0x560] sm:$0xf]  ;;  %v755_v45 = vld [vmem:[%s9620_s25 + $0x568] sm:$0xf] }
  0xbd   : > { %752 = vst [vmem:[%s9625_s0 + $0x2ac] sm:$0xf] %v751_v43  ;;  %754 = vst [vmem:[%s9625_s0 + $0x2b0] sm:$0xf] %v753_v44  ;;  %v757_v46 = vld [vmem:[%s9620_s25 + $0x570] sm:$0xf] }
  0xbe   : > { %756 = vst [vmem:[%s9625_s0 + $0x2b4] sm:$0xf] %v755_v45  ;;  %v759_v47 = vld [vmem:[%s9620_s25 + $0x578] sm:$0xf]  ;;  %v761_v48 = vld [vmem:[%s9620_s25 + $0x580] sm:$0xf] }
  0xbf   : > { %758 = vst [vmem:[%s9625_s0 + $0x2b8] sm:$0xf] %v757_v46  ;;  %760 = vst [vmem:[%s9625_s0 + $0x2bc] sm:$0xf] %v759_v47  ;;  %v763_v49 = vld [vmem:[%s9620_s25 + $0x588] sm:$0xf] }
  0xc0   : > { %762 = vst [vmem:[%s9625_s0 + $0x2c0] sm:$0xf] %v761_v48  ;;  %v765_v50 = vld [vmem:[%s9620_s25 + $0x590] sm:$0xf]  ;;  %v767_v51 = vld [vmem:[%s9620_s25 + $0x598] sm:$0xf] }
  0xc1   : > { %764 = vst [vmem:[%s9625_s0 + $0x2c4] sm:$0xf] %v763_v49  ;;  %766 = vst [vmem:[%s9625_s0 + $0x2c8] sm:$0xf] %v765_v50  ;;  %v769_v52 = vld [vmem:[%s9620_s25 + $0x5a0] sm:$0xf] }
  0xc2   : > { %768 = vst [vmem:[%s9625_s0 + $0x2cc] sm:$0xf] %v767_v51  ;;  %v771_v53 = vld [vmem:[%s9620_s25 + $0x5a8] sm:$0xf]  ;;  %v773_v54 = vld [vmem:[%s9620_s25 + $0x5b0] sm:$0xf] }
  0xc3   : > { %770 = vst [vmem:[%s9625_s0 + $0x2d0] sm:$0xf] %v769_v52  ;;  %772 = vst [vmem:[%s9625_s0 + $0x2d4] sm:$0xf] %v771_v53  ;;  %v775_v55 = vld [vmem:[%s9620_s25 + $0x5b8] sm:$0xf] }
  0xc4   : > { %774 = vst [vmem:[%s9625_s0 + $0x2d8] sm:$0xf] %v773_v54  ;;  %v777_v56 = vld [vmem:[%s9620_s25 + $0x5c0] sm:$0xf]  ;;  %v779_v57 = vld [vmem:[%s9620_s25 + $0x5c8] sm:$0xf] }
  0xc5   : > { %776 = vst [vmem:[%s9625_s0 + $0x2dc] sm:$0xf] %v775_v55  ;;  %778 = vst [vmem:[%s9625_s0 + $0x2e0] sm:$0xf] %v777_v56  ;;  %v781_v58 = vld [vmem:[%s9620_s25 + $0x5d0] sm:$0xf] }
  0xc6   : > { %780 = vst [vmem:[%s9625_s0 + $0x2e4] sm:$0xf] %v779_v57  ;;  %v783_v59 = vld [vmem:[%s9620_s25 + $0x5d8] sm:$0xf]  ;;  %v785_v60 = vld [vmem:[%s9620_s25 + $0x5e0] sm:$0xf] }
  0xc7   : > { %782 = vst [vmem:[%s9625_s0 + $0x2e8] sm:$0xf] %v781_v58  ;;  %784 = vst [vmem:[%s9625_s0 + $0x2ec] sm:$0xf] %v783_v59  ;;  %v787_v61 = vld [vmem:[%s9620_s25 + $0x5e8] sm:$0xf] }
  0xc8   : > { %786 = vst [vmem:[%s9625_s0 + $0x2f0] sm:$0xf] %v785_v60  ;;  %v789_v62 = vld [vmem:[%s9620_s25 + $0x5f0] sm:$0xf]  ;;  %v791_v63 = vld [vmem:[%s9620_s25 + $0x5f8] sm:$0xf] }
  0xc9   : > { %788 = vst [vmem:[%s9625_s0 + $0x2f4] sm:$0xf] %v787_v61  ;;  %790 = vst [vmem:[%s9625_s0 + $0x2f8] sm:$0xf] %v789_v62  ;;  %v793_v0 = vld [vmem:[%s9620_s25 + $0x600] sm:$0xf] }
  0xca   : > { %792 = vst [vmem:[%s9625_s0 + $0x2fc] sm:$0xf] %v791_v63  ;;  %v795_v1 = vld [vmem:[%s9620_s25 + $0x608] sm:$0xf]  ;;  %v797_v2 = vld [vmem:[%s9620_s25 + $0x610] sm:$0xf] }
  0xcb   : > { %794 = vst [vmem:[%s9625_s0 + $0x300] sm:$0xf] %v793_v0  ;;  %796 = vst [vmem:[%s9625_s0 + $0x304] sm:$0xf] %v795_v1  ;;  %v799_v3 = vld [vmem:[%s9620_s25 + $0x618] sm:$0xf] }
  0xcc   : > { %798 = vst [vmem:[%s9625_s0 + $0x308] sm:$0xf] %v797_v2  ;;  %v801_v4 = vld [vmem:[%s9620_s25 + $0x620] sm:$0xf]  ;;  %v803_v5 = vld [vmem:[%s9620_s25 + $0x628] sm:$0xf] }
  0xcd   : > { %800 = vst [vmem:[%s9625_s0 + $0x30c] sm:$0xf] %v799_v3  ;;  %802 = vst [vmem:[%s9625_s0 + $0x310] sm:$0xf] %v801_v4  ;;  %v805_v6 = vld [vmem:[%s9620_s25 + $0x630] sm:$0xf] }
  0xce   : > { %804 = vst [vmem:[%s9625_s0 + $0x314] sm:$0xf] %v803_v5  ;;  %v807_v7 = vld [vmem:[%s9620_s25 + $0x638] sm:$0xf]  ;;  %v809_v8 = vld [vmem:[%s9620_s25 + $0x640] sm:$0xf] }
  0xcf   : > { %806 = vst [vmem:[%s9625_s0 + $0x318] sm:$0xf] %v805_v6  ;;  %808 = vst [vmem:[%s9625_s0 + $0x31c] sm:$0xf] %v807_v7  ;;  %v811_v9 = vld [vmem:[%s9620_s25 + $0x648] sm:$0xf] }
  0xd0   : > { %810 = vst [vmem:[%s9625_s0 + $0x320] sm:$0xf] %v809_v8  ;;  %v813_v10 = vld [vmem:[%s9620_s25 + $0x650] sm:$0xf]  ;;  %v815_v11 = vld [vmem:[%s9620_s25 + $0x658] sm:$0xf] }
  0xd1   : > { %812 = vst [vmem:[%s9625_s0 + $0x324] sm:$0xf] %v811_v9  ;;  %814 = vst [vmem:[%s9625_s0 + $0x328] sm:$0xf] %v813_v10  ;;  %v817_v12 = vld [vmem:[%s9620_s25 + $0x660] sm:$0xf] }
  0xd2   : > { %816 = vst [vmem:[%s9625_s0 + $0x32c] sm:$0xf] %v815_v11  ;;  %v819_v13 = vld [vmem:[%s9620_s25 + $0x668] sm:$0xf]  ;;  %v821_v14 = vld [vmem:[%s9620_s25 + $0x670] sm:$0xf] }
  0xd3   : > { %818 = vst [vmem:[%s9625_s0 + $0x330] sm:$0xf] %v817_v12  ;;  %820 = vst [vmem:[%s9625_s0 + $0x334] sm:$0xf] %v819_v13  ;;  %v823_v15 = vld [vmem:[%s9620_s25 + $0x678] sm:$0xf] }
  0xd4   : > { %822 = vst [vmem:[%s9625_s0 + $0x338] sm:$0xf] %v821_v14  ;;  %v825_v16 = vld [vmem:[%s9620_s25 + $0x680] sm:$0xf]  ;;  %v827_v17 = vld [vmem:[%s9620_s25 + $0x688] sm:$0xf] }
  0xd5   : > { %824 = vst [vmem:[%s9625_s0 + $0x33c] sm:$0xf] %v823_v15  ;;  %826 = vst [vmem:[%s9625_s0 + $0x340] sm:$0xf] %v825_v16  ;;  %v829_v18 = vld [vmem:[%s9620_s25 + $0x690] sm:$0xf] }
  0xd6   : > { %828 = vst [vmem:[%s9625_s0 + $0x344] sm:$0xf] %v827_v17  ;;  %v831_v19 = vld [vmem:[%s9620_s25 + $0x698] sm:$0xf]  ;;  %v833_v20 = vld [vmem:[%s9620_s25 + $0x6a0] sm:$0xf] }
  0xd7   : > { %830 = vst [vmem:[%s9625_s0 + $0x348] sm:$0xf] %v829_v18  ;;  %832 = vst [vmem:[%s9625_s0 + $0x34c] sm:$0xf] %v831_v19  ;;  %v835_v21 = vld [vmem:[%s9620_s25 + $0x6a8] sm:$0xf] }
  0xd8   : > { %834 = vst [vmem:[%s9625_s0 + $0x350] sm:$0xf] %v833_v20  ;;  %v837_v22 = vld [vmem:[%s9620_s25 + $0x6b0] sm:$0xf]  ;;  %v839_v23 = vld [vmem:[%s9620_s25 + $0x6b8] sm:$0xf] }
  0xd9   : > { %836 = vst [vmem:[%s9625_s0 + $0x354] sm:$0xf] %v835_v21  ;;  %838 = vst [vmem:[%s9625_s0 + $0x358] sm:$0xf] %v837_v22  ;;  %v841_v24 = vld [vmem:[%s9620_s25 + $0x6c0] sm:$0xf] }
  0xda   : > { %840 = vst [vmem:[%s9625_s0 + $0x35c] sm:$0xf] %v839_v23  ;;  %v843_v25 = vld [vmem:[%s9620_s25 + $0x6c8] sm:$0xf]  ;;  %v845_v26 = vld [vmem:[%s9620_s25 + $0x6d0] sm:$0xf] }
  0xdb   : > { %842 = vst [vmem:[%s9625_s0 + $0x360] sm:$0xf] %v841_v24  ;;  %844 = vst [vmem:[%s9625_s0 + $0x364] sm:$0xf] %v843_v25  ;;  %v847_v27 = vld [vmem:[%s9620_s25 + $0x6d8] sm:$0xf] }
  0xdc   : > { %846 = vst [vmem:[%s9625_s0 + $0x368] sm:$0xf] %v845_v26  ;;  %v849_v28 = vld [vmem:[%s9620_s25 + $0x6e0] sm:$0xf]  ;;  %v851_v29 = vld [vmem:[%s9620_s25 + $0x6e8] sm:$0xf] }
  0xdd   : > { %848 = vst [vmem:[%s9625_s0 + $0x36c] sm:$0xf] %v847_v27  ;;  %850 = vst [vmem:[%s9625_s0 + $0x370] sm:$0xf] %v849_v28  ;;  %v853_v30 = vld [vmem:[%s9620_s25 + $0x6f0] sm:$0xf] }
  0xde   : > { %852 = vst [vmem:[%s9625_s0 + $0x374] sm:$0xf] %v851_v29  ;;  %v855_v31 = vld [vmem:[%s9620_s25 + $0x6f8] sm:$0xf]  ;;  %v857_v32 = vld [vmem:[%s9620_s25 + $0x700] sm:$0xf] }
  0xdf   : > { %854 = vst [vmem:[%s9625_s0 + $0x378] sm:$0xf] %v853_v30  ;;  %856 = vst [vmem:[%s9625_s0 + $0x37c] sm:$0xf] %v855_v31  ;;  %v859_v33 = vld [vmem:[%s9620_s25 + $0x708] sm:$0xf] }
  0xe0   : > { %858 = vst [vmem:[%s9625_s0 + $0x380] sm:$0xf] %v857_v32  ;;  %v861_v34 = vld [vmem:[%s9620_s25 + $0x710] sm:$0xf]  ;;  %v863_v35 = vld [vmem:[%s9620_s25 + $0x718] sm:$0xf] }
  0xe1   : > { %860 = vst [vmem:[%s9625_s0 + $0x384] sm:$0xf] %v859_v33  ;;  %862 = vst [vmem:[%s9625_s0 + $0x388] sm:$0xf] %v861_v34  ;;  %v865_v36 = vld [vmem:[%s9620_s25 + $0x720] sm:$0xf] }
  0xe2   : > { %864 = vst [vmem:[%s9625_s0 + $0x38c] sm:$0xf] %v863_v35  ;;  %v867_v37 = vld [vmem:[%s9620_s25 + $0x728] sm:$0xf]  ;;  %v869_v38 = vld [vmem:[%s9620_s25 + $0x730] sm:$0xf] }
  0xe3   : > { %866 = vst [vmem:[%s9625_s0 + $0x390] sm:$0xf] %v865_v36  ;;  %868 = vst [vmem:[%s9625_s0 + $0x394] sm:$0xf] %v867_v37  ;;  %v871_v39 = vld [vmem:[%s9620_s25 + $0x738] sm:$0xf] }
  0xe4   : > { %870 = vst [vmem:[%s9625_s0 + $0x398] sm:$0xf] %v869_v38  ;;  %v873_v40 = vld [vmem:[%s9620_s25 + $0x740] sm:$0xf]  ;;  %v875_v41 = vld [vmem:[%s9620_s25 + $0x748] sm:$0xf] }
  0xe5   : > { %872 = vst [vmem:[%s9625_s0 + $0x39c] sm:$0xf] %v871_v39  ;;  %874 = vst [vmem:[%s9625_s0 + $0x3a0] sm:$0xf] %v873_v40  ;;  %v877_v42 = vld [vmem:[%s9620_s25 + $0x750] sm:$0xf] }
  0xe6   : > { %876 = vst [vmem:[%s9625_s0 + $0x3a4] sm:$0xf] %v875_v41  ;;  %v879_v43 = vld [vmem:[%s9620_s25 + $0x758] sm:$0xf]  ;;  %v881_v44 = vld [vmem:[%s9620_s25 + $0x760] sm:$0xf] }
  0xe7   : > { %878 = vst [vmem:[%s9625_s0 + $0x3a8] sm:$0xf] %v877_v42  ;;  %880 = vst [vmem:[%s9625_s0 + $0x3ac] sm:$0xf] %v879_v43  ;;  %v883_v45 = vld [vmem:[%s9620_s25 + $0x768] sm:$0xf] }
  0xe8   : > { %882 = vst [vmem:[%s9625_s0 + $0x3b0] sm:$0xf] %v881_v44  ;;  %v885_v46 = vld [vmem:[%s9620_s25 + $0x770] sm:$0xf]  ;;  %v887_v47 = vld [vmem:[%s9620_s25 + $0x778] sm:$0xf] }
  0xe9   : > { %884 = vst [vmem:[%s9625_s0 + $0x3b4] sm:$0xf] %v883_v45  ;;  %886 = vst [vmem:[%s9625_s0 + $0x3b8] sm:$0xf] %v885_v46  ;;  %v889_v48 = vld [vmem:[%s9620_s25 + $0x780] sm:$0xf] }
  0xea   : > { %888 = vst [vmem:[%s9625_s0 + $0x3bc] sm:$0xf] %v887_v47  ;;  %v891_v49 = vld [vmem:[%s9620_s25 + $0x788] sm:$0xf]  ;;  %v893_v50 = vld [vmem:[%s9620_s25 + $0x790] sm:$0xf] }
  0xeb   : > { %890 = vst [vmem:[%s9625_s0 + $0x3c0] sm:$0xf] %v889_v48  ;;  %892 = vst [vmem:[%s9625_s0 + $0x3c4] sm:$0xf] %v891_v49  ;;  %v895_v51 = vld [vmem:[%s9620_s25 + $0x798] sm:$0xf] }
  0xec   : > { %894 = vst [vmem:[%s9625_s0 + $0x3c8] sm:$0xf] %v893_v50  ;;  %v897_v52 = vld [vmem:[%s9620_s25 + $0x7a0] sm:$0xf]  ;;  %v899_v53 = vld [vmem:[%s9620_s25 + $0x7a8] sm:$0xf] }
  0xed   : > { %896 = vst [vmem:[%s9625_s0 + $0x3cc] sm:$0xf] %v895_v51  ;;  %898 = vst [vmem:[%s9625_s0 + $0x3d0] sm:$0xf] %v897_v52  ;;  %v901_v54 = vld [vmem:[%s9620_s25 + $0x7b0] sm:$0xf] }
  0xee   : > { %900 = vst [vmem:[%s9625_s0 + $0x3d4] sm:$0xf] %v899_v53  ;;  %v903_v55 = vld [vmem:[%s9620_s25 + $0x7b8] sm:$0xf]  ;;  %v905_v56 = vld [vmem:[%s9620_s25 + $0x7c0] sm:$0xf] }
  0xef   : > { %902 = vst [vmem:[%s9625_s0 + $0x3d8] sm:$0xf] %v901_v54  ;;  %904 = vst [vmem:[%s9625_s0 + $0x3dc] sm:$0xf] %v903_v55  ;;  %v907_v57 = vld [vmem:[%s9620_s25 + $0x7c8] sm:$0xf] }
  0xf0   : > { %906 = vst [vmem:[%s9625_s0 + $0x3e0] sm:$0xf] %v905_v56  ;;  %v909_v58 = vld [vmem:[%s9620_s25 + $0x7d0] sm:$0xf]  ;;  %v911_v59 = vld [vmem:[%s9620_s25 + $0x7d8] sm:$0xf] }
  0xf1   : > { %908 = vst [vmem:[%s9625_s0 + $0x3e4] sm:$0xf] %v907_v57  ;;  %910 = vst [vmem:[%s9625_s0 + $0x3e8] sm:$0xf] %v909_v58  ;;  %v913_v60 = vld [vmem:[%s9620_s25 + $0x7e0] sm:$0xf] }
  0xf2   : > { %912 = vst [vmem:[%s9625_s0 + $0x3ec] sm:$0xf] %v911_v59  ;;  %v915_v61 = vld [vmem:[%s9620_s25 + $0x7e8] sm:$0xf]  ;;  %v917_v62 = vld [vmem:[%s9620_s25 + $0x7f0] sm:$0xf] }
  0xf3   : > { %914 = vst [vmem:[%s9625_s0 + $0x3f0] sm:$0xf] %v913_v60  ;;  %916 = vst [vmem:[%s9625_s0 + $0x3f4] sm:$0xf] %v915_v61  ;;  %v919_v63 = vld [vmem:[%s9620_s25 + $0x7f8] sm:$0xf] }
  0xf4   : > { %918 = vst [vmem:[%s9625_s0 + $0x3f8] sm:$0xf] %v917_v62  ;;  %920 = vst [vmem:[%s9625_s0 + $0x3fc] sm:$0xf] %v919_v63 }
  0xf5 PF: > { %p8124_p6 = scmp.ge.s32.totalorder %s9417_s18, 1  ;;  %p1455_p10 = scmp.lt.s32.totalorder %s9417_s18, 17 }
  0xf7   : > { %p1456_p0 = pnand %p8124_p6, %p1455_p10 }
  0xf9   : > { %1459 = sbr.rel (%p1456_p0) target bundleno = 1706 (0x6aa), region = 85 }
  0xfe   : > { %s1461_s1 = sand.u32 1, %s9385_s10  }
  0xff   : > { %s8125_s19 = sshll.u32 %s1461_s1, 6  ;;  %s1462_s26 = scalar_lea.sflag [#allocation5], %s1461_s1 }
 0x100   : > { %s10139_s24 = scalar_lea.vmem [#allocation4], %s8125_s19 }
 0x101   : > { %9360 = dma.done.wait (%p9565_p8), %s1462_s26, 1024  }
 0x102   : > { %9362 = vsyncadd (%p9565_p8), %s1462_s26, 4294966272  ;;  %s14146_s9 = sld [smem:[#allocation12_spill]]  ;;  %s1471_s5 = sand.u32 1, %s9373_s29  }
 0x103   : > { %s14147_s7 = sld [smem:[#allocation13_spill]]  ;;  %s1538_s8 = sand.u32 1, %s9365_s27  }
 0x104   : > { %s8126_s22 = sshll.u32 %s1471_s5, 10  ;;  %s8127_s11 = sshll.u32 %s1538_s8, 9 }
 0x105   : > { %s8129_s2 = sshll.u32 %s9401_s14, 4  ;;  %s14148_s0 = sld [smem:[#allocation86_spill]] }
 0x106   : > { %p1550_p3 = scmp.lt.s32.totalorder %s8129_s2, 31  ;;  %s14149_s19 = sld [smem:[#allocation82_spill]] }
 0x107   : > { %s14151_s13 = sld [smem:[#allocation83_spill]]  ;;  %s10179_s1 = scalar_lea.vmem [#allocation6], %s8126_s22 }
 0x108   : > { %p1548_p1 = scmp.lt.s32.totalorder %s14146_s9, 3  ;;  %s14381_s2 = smov (!%p1550_p3, %s8129_s2), 31 }
 0x109   : > { %s8132_s20 = sshll.u32 %s14147_s7, 4  ;;  %p1584_p4 = scmp.lt.s32.totalorder %s14147_s7, 1 }
 0x10a   : > { %s14379_s9 = smov (!%p1548_p1, %s14146_s9), 3  ;;  %p1560_p8 = scmp.lt.s32.totalorder %s8132_s20, 31 }
 0x10b   : > { %s8130_s23 = sshll.u32 %s14379_s9, 5  ;;  %s8139_s4 = sshll.u32 %s14381_s2, 3 }
 0x10c   : > { %s1553_s28 = sadd.s32 %s8130_s23, %s14381_s2  ;;  %s10155_s29 = scalar_lea.vmem %s14148_s0, %s8139_s4 }
 0x10d   : > { %s8131_s21 = sshll.u32 %s1553_s28, 3  ;;  %s14383_s20 = smov (!%p1560_p8, %s8132_s20), 31 }
 0x10e   : > { %s10160_s26 = scalar_lea.vmem %s14149_s19, %s8131_s21  ;;  %s1563_s8 = sadd.s32 %s8130_s23, %s14383_s20 }
 0x10f   : > { %s10163_s5 = scalar_select %p1584_p4, %s14147_s7, 1 }
 0x110   : > { %s8134_s9 = sshll.u32 %s1563_s8, 3  ;;  %s14150_s2 = sld [smem:[#allocation87_spill]] }
 0x111   : > { %s10172_s4 = scalar_lea.vmem %s14151_s13, %s8134_s9  ;;  %s14152_s27 = sld [smem:[#allocation84_spill]] }
 0x112   : > { %s10181_s19 = scalar_lea.vmem [#allocation7], %s8127_s11  ;;  %s10183_s20 = scalar_lea.vmem [#allocation8], %s8127_s11 }
 0x113   : > { %p8140_p5 = scmp.ne.s32.totalorder %s14147_s7, 0 }
 0x114   : > { %s14153_s3 = sld [smem:[#allocation12_spill]] (!%p8140_p5) }
 0x115   : > { %1593 = sbr.rel (%p8140_p5) target bundleno = 316 (0x13c), region = 97 }
 0x116   : > { %s1586_s28 = scalar_lea.vmem %s14150_s2, %s10163_s5 }
 0x117   : > { %s10177_s21 = scalar_lea.vmem %s14152_s27, %s8134_s9 }
 0x11a   : > { %s10187_s6 = sshll.u32 %s14153_s3, 7  ;;  %vm1596_vm0 = vcmask 7168   ;;  %vm1631_vm1 = vcmask 326656   ;;  %vm1649_vm2 = vcmask 130048   ;;  %v9423_v0 = vmov -1e+30  }
 0x11b   : > { %s1595_s16 = scalar_lea.vmem [#allocation2], %s10187_s6  ;;  %s1613_s17 = scalar_lea.vmem [#allocation3], %s10187_s6  ;;  %v9424_v1 = vmov 0.0  }
 0x11c   : > { %1597 = vst.msk [vmem:[%s1595_s16] sm:$0xff] %vm1596_vm0, %v9423_v0  ;;  %1598 = vst.msk [vmem:[%s1595_s16 + $0x8] sm:$0xff] %vm1596_vm0, %v9423_v0  ;;  %s1630_s7 = scalar_lea.vmem %s10181_s19, %s10187_s6 [#allocation7]  ;;  %s10227_s22 = scalar_lea.vmem %s10183_s20, %s10187_s6 [#allocation8] }
 0x11d   : > { %1599 = vst.msk [vmem:[%s1595_s16 + $0x10] sm:$0xff] %vm1596_vm0, %v9423_v0  ;;  %1600 = vst.msk [vmem:[%s1595_s16 + $0x18] sm:$0xff] %vm1596_vm0, %v9423_v0 }
 0x11e   : > { %1601 = vst.msk [vmem:[%s1595_s16 + $0x20] sm:$0xff] %vm1596_vm0, %v9423_v0  ;;  %1602 = vst.msk [vmem:[%s1595_s16 + $0x28] sm:$0xff] %vm1596_vm0, %v9423_v0 }
 0x11f   : > { %1603 = vst.msk [vmem:[%s1595_s16 + $0x30] sm:$0xff] %vm1596_vm0, %v9423_v0  ;;  %1604 = vst.msk [vmem:[%s1595_s16 + $0x38] sm:$0xff] %vm1596_vm0, %v9423_v0 }
 0x120   : > { %1605 = vst.msk [vmem:[%s1595_s16 + $0x40] sm:$0xff] %vm1596_vm0, %v9423_v0  ;;  %1606 = vst.msk [vmem:[%s1595_s16 + $0x48] sm:$0xff] %vm1596_vm0, %v9423_v0 }
 0x121   : > { %1607 = vst.msk [vmem:[%s1595_s16 + $0x50] sm:$0xff] %vm1596_vm0, %v9423_v0  ;;  %1608 = vst.msk [vmem:[%s1595_s16 + $0x58] sm:$0xff] %vm1596_vm0, %v9423_v0 }
 0x122   : > { %1609 = vst.msk [vmem:[%s1595_s16 + $0x60] sm:$0xff] %vm1596_vm0, %v9423_v0  ;;  %1610 = vst.msk [vmem:[%s1595_s16 + $0x68] sm:$0xff] %vm1596_vm0, %v9423_v0 }
 0x123   : > { %1611 = vst.msk [vmem:[%s1595_s16 + $0x70] sm:$0xff] %vm1596_vm0, %v9423_v0  ;;  %1612 = vst.msk [vmem:[%s1595_s16 + $0x78] sm:$0xff] %vm1596_vm0, %v9423_v0 }
 0x124   : > { %1614 = vst.msk [vmem:[%s1613_s17] sm:$0xff] %vm1596_vm0, %v9424_v1  ;;  %1615 = vst.msk [vmem:[%s1613_s17 + $0x8] sm:$0xff] %vm1596_vm0, %v9424_v1 }
 0x125   : > { %1616 = vst.msk [vmem:[%s1613_s17 + $0x10] sm:$0xff] %vm1596_vm0, %v9424_v1  ;;  %1617 = vst.msk [vmem:[%s1613_s17 + $0x18] sm:$0xff] %vm1596_vm0, %v9424_v1 }
 0x126   : > { %1618 = vst.msk [vmem:[%s1613_s17 + $0x20] sm:$0xff] %vm1596_vm0, %v9424_v1  ;;  %1619 = vst.msk [vmem:[%s1613_s17 + $0x28] sm:$0xff] %vm1596_vm0, %v9424_v1 }
 0x127   : > { %1620 = vst.msk [vmem:[%s1613_s17 + $0x30] sm:$0xff] %vm1596_vm0, %v9424_v1  ;;  %1621 = vst.msk [vmem:[%s1613_s17 + $0x38] sm:$0xff] %vm1596_vm0, %v9424_v1 }
 0x128   : > { %1622 = vst.msk [vmem:[%s1613_s17 + $0x40] sm:$0xff] %vm1596_vm0, %v9424_v1  ;;  %1623 = vst.msk [vmem:[%s1613_s17 + $0x48] sm:$0xff] %vm1596_vm0, %v9424_v1 }
 0x129   : > { %1624 = vst.msk [vmem:[%s1613_s17 + $0x50] sm:$0xff] %vm1596_vm0, %v9424_v1  ;;  %1625 = vst.msk [vmem:[%s1613_s17 + $0x58] sm:$0xff] %vm1596_vm0, %v9424_v1 }
 0x12a   : > { %1626 = vst.msk [vmem:[%s1613_s17 + $0x60] sm:$0xff] %vm1596_vm0, %v9424_v1  ;;  %1627 = vst.msk [vmem:[%s1613_s17 + $0x68] sm:$0xff] %vm1596_vm0, %v9424_v1 }
 0x12b   : > { %1628 = vst.msk [vmem:[%s1613_s17 + $0x70] sm:$0xff] %vm1596_vm0, %v9424_v1  ;;  %1629 = vst.msk [vmem:[%s1613_s17 + $0x78] sm:$0xff] %vm1596_vm0, %v9424_v1 }
 0x12c   : > { %1632 = vst.msk [vmem:[%s1630_s7] sm:$0xff] %vm1631_vm1, %v9424_v1  ;;  %1633 = vst.msk [vmem:[%s1630_s7 + $0x8] sm:$0xff] %vm1631_vm1, %v9424_v1 }
 0x12d   : > { %1634 = vst.msk [vmem:[%s1630_s7 + $0x10] sm:$0xff] %vm1631_vm1, %v9424_v1  ;;  %1635 = vst.msk [vmem:[%s1630_s7 + $0x18] sm:$0xff] %vm1631_vm1, %v9424_v1 }
 0x12e   : > { %1636 = vst.msk [vmem:[%s1630_s7 + $0x20] sm:$0xff] %vm1631_vm1, %v9424_v1  ;;  %1637 = vst.msk [vmem:[%s1630_s7 + $0x28] sm:$0xff] %vm1631_vm1, %v9424_v1 }
 0x12f   : > { %1638 = vst.msk [vmem:[%s1630_s7 + $0x30] sm:$0xff] %vm1631_vm1, %v9424_v1  ;;  %1639 = vst.msk [vmem:[%s1630_s7 + $0x38] sm:$0xff] %vm1631_vm1, %v9424_v1 }
 0x130   : > { %1640 = vst.msk [vmem:[%s1630_s7 + $0x40] sm:$0xff] %vm1631_vm1, %v9424_v1  ;;  %1641 = vst.msk [vmem:[%s1630_s7 + $0x48] sm:$0xff] %vm1631_vm1, %v9424_v1 }
 0x131   : > { %1642 = vst.msk [vmem:[%s1630_s7 + $0x50] sm:$0xff] %vm1631_vm1, %v9424_v1  ;;  %1643 = vst.msk [vmem:[%s1630_s7 + $0x58] sm:$0xff] %vm1631_vm1, %v9424_v1 }
 0x132   : > { %1644 = vst.msk [vmem:[%s1630_s7 + $0x60] sm:$0xff] %vm1631_vm1, %v9424_v1  ;;  %1645 = vst.msk [vmem:[%s1630_s7 + $0x68] sm:$0xff] %vm1631_vm1, %v9424_v1 }
 0x133   : > { %1646 = vst.msk [vmem:[%s1630_s7 + $0x70] sm:$0xff] %vm1631_vm1, %v9424_v1  ;;  %1647 = vst.msk [vmem:[%s1630_s7 + $0x78] sm:$0xff] %vm1631_vm1, %v9424_v1 }
 0x134   : > { %1650 = vst.msk [vmem:[%s10227_s22] sm:$0xff] %vm1649_vm2, %v9424_v1  ;;  %1651 = vst.msk [vmem:[%s10227_s22 + $0x8] sm:$0xff] %vm1649_vm2, %v9424_v1 }
 0x135   : > { %1652 = vst.msk [vmem:[%s10227_s22 + $0x10] sm:$0xff] %vm1649_vm2, %v9424_v1  ;;  %1653 = vst.msk [vmem:[%s10227_s22 + $0x18] sm:$0xff] %vm1649_vm2, %v9424_v1 }
 0x136   : > { %1654 = vst.msk [vmem:[%s10227_s22 + $0x20] sm:$0xff] %vm1649_vm2, %v9424_v1  ;;  %1655 = vst.msk [vmem:[%s10227_s22 + $0x28] sm:$0xff] %vm1649_vm2, %v9424_v1 }
 0x137   : > { %1656 = vst.msk [vmem:[%s10227_s22 + $0x30] sm:$0xff] %vm1649_vm2, %v9424_v1  ;;  %1657 = vst.msk [vmem:[%s10227_s22 + $0x38] sm:$0xff] %vm1649_vm2, %v9424_v1 }
 0x138   : > { %1658 = vst.msk [vmem:[%s10227_s22 + $0x40] sm:$0xff] %vm1649_vm2, %v9424_v1  ;;  %1659 = vst.msk [vmem:[%s10227_s22 + $0x48] sm:$0xff] %vm1649_vm2, %v9424_v1 }
 0x139   : > { %1660 = vst.msk [vmem:[%s10227_s22 + $0x50] sm:$0xff] %vm1649_vm2, %v9424_v1  ;;  %1661 = vst.msk [vmem:[%s10227_s22 + $0x58] sm:$0xff] %vm1649_vm2, %v9424_v1 }
 0x13a   : > { %1662 = vst.msk [vmem:[%s10227_s22 + $0x60] sm:$0xff] %vm1649_vm2, %v9424_v1  ;;  %1663 = vst.msk [vmem:[%s10227_s22 + $0x68] sm:$0xff] %vm1649_vm2, %v9424_v1 }
 0x13b   : > { %1664 = vst.msk [vmem:[%s10227_s22 + $0x70] sm:$0xff] %vm1649_vm2, %v9424_v1  ;;  %1665 = vst.msk [vmem:[%s10227_s22 + $0x78] sm:$0xff] %vm1649_vm2, %v9424_v1 }
 0x13c PF: > { %v1697_v2 = vld [vmem:[%s10172_s4 + $0x78] sm:$0xff]  ;;  %vm1730_vm3 = vcmask 244736   ;;  %v1696_v3 = vld [vmem:[%s10172_s4 + $0x70] sm:$0xff]  ;;  %v9425_v4 = vmov 0   ;;  %v1695_v5 = vld [vmem:[%s10172_s4 + $0x68] sm:$0xff]  ;;  %vm2462_vm4 = vcmask 7168  }
 0x13d   : > { %8946 = vmatprep.subr.msk.mxu0 %vm1730_vm3, %v1697_v2  ;;  %9180 = vset.pattern.permute.xlu1 %v9425_v4  ;;  %v1666_v6 = vld [vmem:[%s10160_s26] sm:$0xff]  ;;  %v1974_v8 = vld [vmem:[%s10155_s29 + $0x10] sm:$0xff]  ;;  %v1693_v10 = vld [vmem:[%s10172_s4 + $0x58] sm:$0xff]  ;;  %vm5970_vm5 = vcmask 130112   ;;  %vm7115_vm6 = vcmask 1041409   ;;  %vm7117_vm7 = vcmask 1042434  }
 0x13e   : > { %8947 = vmatpush3.xpose.msk.msra.mxu0 %vm1730_vm3, %v1697_v2  ;;  %9179 = vset.pattern.permute.xlu0 %v9425_v4  ;;  %v1694_v7 = vld [vmem:[%s10172_s4 + $0x60] sm:$0xff]  ;;  %v1975_v11 = vld [vmem:[%s10155_s29 + $0x18] sm:$0xff]  ;;  %v1973_v12 = vld [vmem:[%s10155_s29 + $0x8] sm:$0xff]  ;;  %vm7119_vm8 = vcmask 1043459   ;;  %vm7121_vm9 = vcmask 1044484   ;;  %vm7123_vm10 = vcmask 1045509  }
 0x13f   : > { %8948 = vmatprep.subr.msk.mxu0 %vm1730_vm3, %v1696_v3  ;;  %8978 = vmatprep.mubr.msk.f32.mxu0 %vm1730_vm3, %v1666_v6  ;;  %v1972_v9 = vld [vmem:[%s10155_s29] sm:$0xff]  ;;  %v1692_v13 = vld [vmem:[%s10172_s4 + $0x50] sm:$0xff]  ;;  %v1977_v14 = vld [vmem:[%s10155_s29 + $0x28] sm:$0xff]  ;;  %vm7125_vm11 = vcmask 1046534   ;;  %vm7127_vm12 = vcmask 1047559   ;;  %s14231_s9 = sld [smem:[#allocation13_spill]] }
 0x140   : > { %2001 = vperm.xlu1 %9180, %v1974_v8   ;;  %1991 = vperm.xlu0 %9179, %v1972_v9   ;;  %v1976_v15 = vld [vmem:[%s10155_s29 + $0x20] sm:$0xff]  ;;  %v1691_v16 = vld [vmem:[%s10172_s4 + $0x48] sm:$0xff]  ;;  %v1979_v17 = vld [vmem:[%s10155_s29 + $0x38] sm:$0xff]  ;;  %vm2933_vm14 = vcmask 326656   ;;  %vm7282_vm15 = vcmask 130048   ;;  %s14346_s27 = sld [smem:[#allocation89_spill]] (%p9596_p2) }
 0x141   : > { %v1978_v18 = vld [vmem:[%s10155_s29 + $0x30] sm:$0xff]  ;;  %v1690_v19 = vld [vmem:[%s10172_s4 + $0x40] sm:$0xff]  ;;  %v1981_v20 = vld [vmem:[%s10155_s29 + $0x48] sm:$0xff] }
 0x142   : > { %8949 = vmatpush3.xpose.msk.msra.mxu0 %vm1730_vm3, %v1696_v3  ;;  %v1980_v21 = vld [vmem:[%s10155_s29 + $0x40] sm:$0xff]  ;;  %v1689_v22 = vld [vmem:[%s10172_s4 + $0x38] sm:$0xff]  ;;  %v1982_v24 = vld [vmem:[%s10155_s29 + $0x50] sm:$0xff] }
 0x143   : > { %8950 = vmatprep.subr.msk.mxu0 %vm1730_vm3, %v1695_v5  ;;  %v1983_v23 = vld [vmem:[%s10155_s29 + $0x58] sm:$0xff]  ;;  %v1688_v25 = vld [vmem:[%s10172_s4 + $0x30] sm:$0xff]  ;;  %v1985_v26 = vld [vmem:[%s10155_s29 + $0x68] sm:$0xff] }
 0x144   : > { %2006 = vperm.xlu1 %9180, %v1975_v11   ;;  %1996 = vperm.xlu0 %9179, %v1973_v12   ;;  %v1984_v27 = vld [vmem:[%s10155_s29 + $0x60] sm:$0xff]  ;;  %v1687_v28 = vld [vmem:[%s10172_s4 + $0x28] sm:$0xff]  ;;  %v1987_v29 = vld [vmem:[%s10155_s29 + $0x78] sm:$0xff] }
 0x145   : > { %v1986_v30 = vld [vmem:[%s10155_s29 + $0x70] sm:$0xff]  ;;  %v1686_v31 = vld [vmem:[%s10172_s4 + $0x20] sm:$0xff]  ;;  %v1685_v32 = vld [vmem:[%s10172_s4 + $0x18] sm:$0xff]  ;;  %p2495_p7 = scmp.eq.s32.totalorder %s14231_s9, 1 }
 0x146   : > { %8951 = vmatpush3.xpose.msk.msra.mxu0 %vm1730_vm3, %v1695_v5  ;;  %v1684_v33 = vld [vmem:[%s10172_s4 + $0x10] sm:$0xff]  ;;  %v1683_v34 = vld [vmem:[%s10172_s4 + $0x8] sm:$0xff]  ;;  %v1682_v35 = vld [vmem:[%s10172_s4] sm:$0xff]  ;;  %s8202_s4 = sshll.u32 (%p9596_p2), %s9401_s14, 7 }
 0x147   : > { %8952 = vmatprep.subr.msk.mxu0 %vm1730_vm3, %v1694_v7  ;;  %v1667_v36 = vld [vmem:[%s10160_s26 + $0x8] sm:$0xff]  ;;  %v1668_v37 = vld [vmem:[%s10160_s26 + $0x10] sm:$0xff]  ;;  %v1669_v38 = vld [vmem:[%s10160_s26 + $0x18] sm:$0xff]  ;;  %s2528_s2 = scalar_select %p2495_p7, 1, 0 }
 0x148   : > { %2016 = vperm.xlu1 %9180, %v1977_v14   ;;  %2011 = vperm.xlu0 %9179, %v1976_v15   ;;  %v1670_v39 = vld [vmem:[%s10160_s26 + $0x20] sm:$0xff]  ;;  %v1671_v40 = vld [vmem:[%s10160_s26 + $0x28] sm:$0xff]  ;;  %v1672_v41 = vld [vmem:[%s10160_s26 + $0x30] sm:$0xff] }
 0x149   : > { %v1673_v42 = vld [vmem:[%s10160_s26 + $0x38] sm:$0xff]  ;;  %v1674_v43 = vld [vmem:[%s10160_s26 + $0x40] sm:$0xff]  ;;  %v1675_v44 = vld [vmem:[%s10160_s26 + $0x48] sm:$0xff] }
 0x14a   : > { %8953 = vmatpush3.xpose.msk.msra.mxu0 %vm1730_vm3, %v1694_v7  ;;  %v1676_v45 = vld [vmem:[%s10160_s26 + $0x50] sm:$0xff]  ;;  %v1677_v46 = vld [vmem:[%s10160_s26 + $0x58] sm:$0xff]  ;;  %v1678_v47 = vld [vmem:[%s10160_s26 + $0x60] sm:$0xff] }
 0x14b   : > { %8954 = vmatprep.subr.msk.mxu0 %vm1730_vm3, %v1693_v10  ;;  %v1679_v48 = vld [vmem:[%s10160_s26 + $0x68] sm:$0xff]  ;;  %v1680_v49 = vld [vmem:[%s10160_s26 + $0x70] sm:$0xff]  ;;  %v1681_v50 = vld [vmem:[%s10160_s26 + $0x78] sm:$0xff] }
 0x14c   : > { %2026 = vperm.xlu1 %9180, %v1979_v17   ;;  %2021 = vperm.xlu0 %9179, %v1978_v18   ;;  %v10378_v54 = vld [vmem:[%s1586_s28] ss:$0 sm:$0xff]  ;;  %v8748_v1 = vld [vmem:[%s10139_s24 + $0x8] sm:$0xff]  }
 0x14d   : > { %v8205_v60 = vld [vmem:[%s10139_s24] sm:$0xff]   ;;  %v8211_v9 = vunpack.c.h.bf16 %v8748_v1 }
 0x14e   : > { %8955 = vmatpush3.xpose.msk.msra.mxu0 %vm1730_vm3, %v1693_v10  ;;  %v8207_v0 = vunpack.c.h.bf16 %v8205_v60  ;;  %v8206_v4 = vunpack.c.l.bf16 %v8205_v60 }
 0x14f   : > { %8956 = vmatprep.subr.msk.mxu0 %vm1730_vm3, %v1692_v13 }
 0x150   : > { %2036 = vperm.xlu1 %9180, %v1981_v20   ;;  %2031 = vperm.xlu0 %9179, %v1980_v21  }
 0x152   : > { %8957 = vmatpush3.xpose.msk.msra.mxu0 %vm1730_vm3, %v1692_v13 }
 0x153   : > { %8958 = vmatprep.subr.msk.mxu0 %vm1730_vm3, %v1691_v16 }
 0x154   : > { %2046 = vperm.xlu1 %9180, %v1983_v23   ;;  %2041 = vperm.xlu0 %9179, %v1982_v24  }
 0x156   : > { %8959 = vmatpush3.xpose.msk.msra.mxu0 %vm1730_vm3, %v1691_v16 }
 0x157   : > { %8960 = vmatprep.subr.msk.mxu0 %vm1730_vm3, %v1690_v19 }
 0x158   : > { %2056 = vperm.xlu1 %9180, %v1985_v26   ;;  %2051 = vperm.xlu0 %9179, %v1984_v27  }
 0x15a   : > { %8961 = vmatpush3.xpose.msk.msra.mxu0 %vm1730_vm3, %v1690_v19  ;;  %v8210_v19 = vunpack.c.l.bf16 %v8748_v1 }
 0x15b   : > { %8962 = vmatprep.subr.msk.mxu0 %vm1730_vm3, %v1689_v22 }
 0x15c   : > { %2066 = vperm.xlu1 %9180, %v1987_v29   ;;  %2061 = vperm.xlu0 %9179, %v1986_v30  }
 0x15e   : > { %8963 = vmatpush3.xpose.msk.msra.mxu0 %vm1730_vm3, %v1689_v22 }
 0x15f   : > { %8964 = vmatprep.subr.msk.mxu0 %vm1730_vm3, %v1688_v25 }
 0x162   : > { %8965 = vmatpush3.xpose.msk.msra.mxu0 %vm1730_vm3, %v1688_v25  ;;  %v8749_v25 = vld [vmem:[%s10139_s24 + $0x10] sm:$0xff]  }
 0x163   : > { %8966 = vmatprep.subr.msk.mxu0 %vm1730_vm3, %v1687_v28  ;;  %v8214_v29 = vunpack.c.l.bf16 %v8749_v25 }
 0x166   : > { %8967 = vmatpush3.xpose.msk.msra.mxu0 %vm1730_vm3, %v1687_v28 }
 0x167   : > { %8968 = vmatprep.subr.msk.mxu0 %vm1730_vm3, %v1686_v31 }
 0x16a   : > { %8969 = vmatpush3.xpose.msk.msra.mxu0 %vm1730_vm3, %v1686_v31 }
 0x16b   : > { %8970 = vmatprep.subr.msk.mxu0 %vm1730_vm3, %v1685_v32 }
 0x16e   : > { %8971 = vmatpush3.xpose.msk.msra.mxu0 %vm1730_vm3, %v1685_v32 }
 0x16f   : > { %8972 = vmatprep.subr.msk.mxu0 %vm1730_vm3, %v1684_v33 }
 0x172   : > { %8973 = vmatpush3.xpose.msk.msra.mxu0 %vm1730_vm3, %v1684_v33  ;;  %v8215_v33 = vunpack.c.h.bf16 %v8749_v25 }
 0x173   : > { %8974 = vmatprep.subr.msk.mxu0 %vm1730_vm3, %v1683_v34 }
 0x176   : > { %8975 = vmatpush3.xpose.msk.msra.mxu0 %vm1730_vm3, %v1683_v34 }
 0x177   : > { %8976 = vmatprep.subr.msk.mxu0 %vm1730_vm3, %v1682_v35 }
 0x17a   : > { %8977 = vmatpush3.xpose.msk.msra.mxu0 %vm1730_vm3, %v1682_v35  ;;  %v8750_v35 = vld [vmem:[%s10139_s24 + $0x18] sm:$0xff]  }
 0x17d   : > { %8979 = vmatmul.mubr.msk.f32.vlgmr.msra.gmra.mxu0 %vm1730_vm3, %v1667_v36 }
 0x17e   : > { %8981 = vmatprep.mubr.msk.f32.mxu0 %vm1730_vm3, %v1668_v37 }
 0x181   : > { %8982 = vmatmul.mubr.msk.f32.gmra.mxu0 %vm1730_vm3, %v1669_v38 }
 0x182   : > { %8984 = vmatprep.mubr.msk.f32.mxu0 %vm1730_vm3, %v1670_v39 }
 0x185   : > { %8985 = vmatmul.mubr.msk.f32.gmra.mxu0 %vm1730_vm3, %v1671_v40  ;;  %v8218_v40 = vunpack.c.l.bf16 %v8750_v35 }
 0x186   : > { %8987 = vmatprep.mubr.msk.f32.mxu0 %vm1730_vm3, %v1672_v41 }
 0x189   : > { %8988 = vmatmul.mubr.msk.f32.gmra.mxu0 %vm1730_vm3, %v1673_v42 }
 0x18a   : > { %8990 = vmatprep.mubr.msk.f32.mxu0 %vm1730_vm3, %v1674_v43 }
 0x18d   : > { %8991 = vmatmul.mubr.msk.f32.gmra.mxu0 %vm1730_vm3, %v1675_v44 }
 0x18e   : > { %8993 = vmatprep.mubr.msk.f32.mxu0 %vm1730_vm3, %v1676_v45 }
 0x191   : > { %8994 = vmatmul.mubr.msk.f32.gmra.mxu0 %vm1730_vm3, %v1677_v46 }
 0x192   : > { %8996 = vmatprep.mubr.msk.f32.mxu0 %vm1730_vm3, %v1678_v47 }
 0x195   : > { %8997 = vmatmul.mubr.msk.f32.gmra.mxu0 %vm1730_vm3, %v1679_v48  ;;  %v8219_v48 = vunpack.c.h.bf16 %v8750_v35 }
 0x196   : > { %8999 = vmatprep.mubr.msk.f32.mxu0 %vm1730_vm3, %v1680_v49 }
 0x199   : > { %9000 = vmatmul.mubr.msk.f32.gmra.mxu0 %vm1730_vm3, %v1681_v50 }
 0x1bb   : > { %v1992_v51 = vpop.permute.xlu0 %1991  ;;  %v2002_v52 = vpop.permute.xlu1 %2001 }
 0x1bc   : > { %v2075_v58 = vmul.f32 %v10378_v54, %v1992_v51  ;;  %v2077_v10 = vmul.f32 %v10378_v54, %v2002_v52  ;;  %v8751_v51 = vld [vmem:[%s10139_s24 + $0x20] sm:$0xff]  }
 0x1bd   : > { %v8223_v1 = vunpack.c.h.bf16 %v8751_v51 }
 0x1be   : > { %v8175_v63 = vadd.f32 -1.0, %v2075_v58  ;;  %v8177_v21 = vadd.f32 -1.0, %v2077_v10  ;;  %v8222_v58 = vunpack.c.l.bf16 %v8751_v51 }
 0x1bf   : > { %v1997_v53 = vpop.permute.xlu0 %1996  ;;  %v2007_v55 = vpop.permute.xlu1 %2006 }
 0x1c0   : > { %v2076_v57 = vmul.f32 %v10378_v54, %v1997_v53  ;;  %v2078_v2 = vmul.f32 %v10378_v54, %v2007_v55  ;;  %v2107_v7 = vmul.f32 100000.0, %v8175_v63  ;;  %v2109_v36 = vmul.f32 100000.0, %v8177_v21 }
 0x1c2   : > { %v8176_v61 = vadd.f32 -1.0, %v2076_v57  ;;  %v8178_v13 = vadd.f32 -1.0, %v2078_v2 }
 0x1c3   : > { %v2012_v56 = vpop.permute.xlu0 %2011  ;;  %v2017_v59 = vpop.permute.xlu1 %2016 }
 0x1c4   : > { %v2108_v3 = vmul.f32 100000.0, %v8176_v61  ;;  %v2079_v14 = vmul.f32 %v10378_v54, %v2012_v56  ;;  %v2080_v22 = vmul.f32 %v10378_v54, %v2017_v59  ;;  %v2110_v26 = vmul.f32 100000.0, %v8178_v13 }
 0x1c6   : > { %v8179_v27 = vadd.f32 -1.0, %v2079_v14  ;;  %v8180_v37 = vadd.f32 -1.0, %v2080_v22 }
 0x1c7   : > { %v2022_v62 = vpop.permute.xlu0 %2021  ;;  %v2027_v5 = vpop.permute.xlu1 %2026 }
 0x1c8   : > { %v2081_v28 = vmul.f32 %v10378_v54, %v2022_v62  ;;  %v2082_v38 = vmul.f32 %v10378_v54, %v2027_v5  ;;  %v2111_v41 = vmul.f32 100000.0, %v8179_v27  ;;  %v2112_v52 = vmul.f32 100000.0, %v8180_v37 }
 0x1ca   : > { %v8181_v42 = vadd.f32 -1.0, %v2081_v28  ;;  %v8182_v53 = vadd.f32 -1.0, %v2082_v38 }
 0x1cb   : > { %v2032_v11 = vpop.permute.xlu0 %2031  ;;  %v2037_v23 = vpop.permute.xlu1 %2036 }
 0x1cc   : > { %v2083_v43 = vmul.f32 %v10378_v54, %v2032_v11  ;;  %v2084_v55 = vmul.f32 %v10378_v54, %v2037_v23  ;;  %v2113_v59 = vmul.f32 100000.0, %v8181_v42  ;;  %v2114_v5 = vmul.f32 100000.0, %v8182_v53  ;;  %v8753_v23 = vld [vmem:[%s10139_s24 + $0x30] sm:$0xff]  }
 0x1cd   : > { %v8230_v28 = vunpack.c.l.bf16 %v8753_v23  ;;  %v8231_v37 = vunpack.c.h.bf16 %v8753_v23 }
 0x1ce   : > { %v8183_v60 = vadd.f32 -1.0, %v2083_v43 }
 0x1cf   : > { %v2042_v30 = vpop.permute.xlu0 %2041  ;;  %v2047_v45 = vpop.permute.xlu1 %2046 }
 0x1d0   : > { %v2085_v61 = vmul.f32 %v10378_v54, %v2042_v30  ;;  %v2115_v11 = vmul.f32 100000.0, %v8183_v60 }
 0x1d3   : > { %v2052_v56 = vpop.permute.xlu0 %2051 }
 0x1d4   : > { %v2087_v13 = vmul.f32 %v10378_v54, %v2052_v56 }
 0x1d6   : > { %v8187_v30 = vadd.f32 -1.0, %v2087_v13  ;;  %v2556_v13 = vld [vmem:[%s10177_s21 + $0x48] sm:$0xff] }
 0x23d   : > { %v8980_v6 = vpop.f32.mrf.mxu0 }
 0x23e   : > { %v1899_v8 = vadd.f32 %v8980_v6, %v8207_v0  ;;  %v8184_v6 = vadd.f32 -1.0, %v2084_v55 }
 0x23f   : > { %v1893_v12 = vpop.f32.mrf.mxu0 }
 0x240   : > { %v1894_v15 = vadd.f32 %v8206_v4, %v1893_v12  ;;  %v10387_v16 = vadd.f32 %v2108_v3, %v1899_v8  ;;  %v8752_v4 = vld [vmem:[%s10139_s24 + $0x28] sm:$0xff]   ;;  %v2057_v8 = vpop.permute.xlu1 %2056  ;;  %v8185_v12 = vadd.f32 -1.0, %v2085_v61 }
 0x241   : > { %v8983_v17 = vpop.f32.mrf.mxu0  ;;  %v8226_v10 = vunpack.c.l.bf16 %v8752_v4 }
 0x242   : > { %v1909_v18 = vadd.f32 %v8983_v17, %v8211_v9  ;;  %2159 = vmax.xlane.f32.xlu1 %v10387_v16  ;;  %v10390_v20 = vadd.f32 %v2107_v7, %v1894_v15  ;;  %v2086_v7 = vmul.f32 %v10378_v54, %v2047_v45  ;;  %v2062_v15 = vpop.permute.xlu0 %2061  ;;  %v2119_v45 = vmul.f32 100000.0, %v8187_v30 }
 0x243   : > { %v1903_v24 = vpop.f32.mrf.mxu0 }
 0x244   : > { %2157 = vmax.xlane.f32.xlu0 %v10390_v20  ;;  %v1904_v32 = vadd.f32 %v8210_v19, %v1903_v24  ;;  %v10396_v34 = vadd.f32 %v2110_v26, %v1909_v18  ;;  %v8227_v19 = vunpack.c.h.bf16 %v8752_v4  ;;  %v2116_v24 = vmul.f32 100000.0, %v8184_v6  ;;  %v2562_v4 = vld [vmem:[%s10177_s21 + $0x78] sm:$0xff]  ;;  %v2560_v6 = vld [vmem:[%s10177_s21 + $0x68] sm:$0xff] }
 0x245   : > { %v8986_v31 = vpop.f32.mrf.mxu0  ;;  %v8186_v25 = vadd.f32 -1.0, %v2086_v7  ;;  %v2088_v26 = vmul.f32 %v10378_v54, %v2057_v8  ;;  %9002 = vmatprep.subr.mxu1 %v2562_v4  ;;  %v2559_v7 = vld [vmem:[%s10177_s21 + $0x60] sm:$0xff]  ;;  %v2558_v8 = vld [vmem:[%s10177_s21 + $0x58] sm:$0xff] }
 0x246   : > { %v1919_v47 = vadd.f32 %v8986_v31, %v8215_v33  ;;  %v10404_v50 = vadd.f32 %v2109_v36, %v1904_v32  ;;  %v2089_v31 = vmul.f32 %v10378_v54, %v2062_v15  ;;  %v2067_v33 = vpop.permute.xlu1 %2066  ;;  %9003 = vmatpush3.msra.mxu1 %v2562_v4 }
 0x247   : > { %v1913_v39 = vpop.f32.mrf.mxu0  ;;  %v8188_v42 = vadd.f32 -1.0, %v2088_v26 }
 0x248   : > { %v1914_v44 = vadd.f32 %v8214_v29, %v1913_v39  ;;  %2163 = vmax.xlane.f32.xlu0 %v10396_v34  ;;  %v10413_v3 = vadd.f32 %v2112_v52, %v1919_v47  ;;  %v2117_v29 = vmul.f32 100000.0, %v8185_v12  ;;  %v8189_v47 = vadd.f32 -1.0, %v2089_v31  ;;  %v2552_v31 = vld [vmem:[%s10177_s21 + $0x28] sm:$0xff] }
 0x249   : > { %v8989_v46 = vpop.f32.mrf.mxu0 }
 0x24a   : > { %v10402_v49 = vadd.f32 %v2111_v41, %v1914_v44  ;;  %v1929_v0 = vadd.f32 %v8989_v46, %v8219_v48  ;;  %v2118_v41 = vmul.f32 100000.0, %v8186_v25  ;;  %v2090_v46 = vmul.f32 %v10378_v54, %v2067_v33 }
 0x24b   : > { %v1923_v57 = vpop.f32.mrf.mxu0  ;;  %v2121_v60 = vmul.f32 100000.0, %v8189_v47 }
 0x24c   : > { %v1924_v62 = vadd.f32 %v8218_v40, %v1923_v57  ;;  %2165 = vmax.xlane.f32.xlu1 %v10402_v49  ;;  %2161 = vmax.xlane.f32.xlu0 %v10404_v50  ;;  %v10422_v22 = vadd.f32 %v2114_v5, %v1929_v0  ;;  %v8754_v40 = vld [vmem:[%s10139_s24 + $0x38] sm:$0xff]   ;;  %v2561_v5 = vld [vmem:[%s10177_s21 + $0x70] sm:$0xff]  ;;  %s14155_s24 = sld [smem:[#allocation12_spill]] }
 0x24d   : > { %v8992_v63 = vpop.f32.mrf.mxu0  ;;  %v8234_v44 = vunpack.c.l.bf16 %v8754_v40  ;;  %v8235_v53 = vunpack.c.h.bf16 %v8754_v40  ;;  %9004 = vmatprep.subr.mxu1 %v2561_v5 }
 0x24e   : > { %v10411_v2 = vadd.f32 %v2113_v59, %v1924_v62  ;;  %v1939_v18 = vadd.f32 %v8992_v63, %v8223_v1  ;;  %v8190_v59 = vadd.f32 -1.0, %v2090_v46  ;;  %9005 = vmatpush3.msra.mxu1 %v2561_v5  ;;  %v2547_v5 = vld [vmem:[%s10177_s21] sm:$0xff] }
 0x24f   : > { %v1933_v9 = vpop.f32.mrf.mxu0  ;;  %9006 = vmatprep.subr.mxu1 %v2560_v6 }
 0x250   : > { %v1934_v14 = vadd.f32 %v8222_v58, %v1933_v9  ;;  %2169 = vmax.xlane.f32.xlu1 %v10411_v2  ;;  %2167 = vmax.xlane.f32.xlu0 %v10413_v3  ;;  %v10431_v39 = vadd.f32 %v2116_v24, %v1939_v18  ;;  %v2120_v58 = vmul.f32 100000.0, %v8188_v42  ;;  %v2122_v0 = vmul.f32 100000.0, %v8190_v59  ;;  %v2557_v9 = vld [vmem:[%s10177_s21 + $0x50] sm:$0xff]  ;;  %v2554_v24 = vld [vmem:[%s10177_s21 + $0x38] sm:$0xff] }
 0x251   : > { %v8995_v17 = vpop.f32.mrf.mxu0  ;;  %9007 = vmatpush3.msra.mxu1 %v2560_v6  ;;  %v8764_v18 = vld [vmem:[%s10179_s1 + $0x50] sm:$0xff]  }
 0x252   : > { %v10420_v21 = vadd.f32 %v2115_v11, %v1934_v14  ;;  %v1949_v36 = vadd.f32 %v8995_v17, %v8227_v19  ;;  %9008 = vmatprep.subr.mxu1 %v2559_v7  ;;  %s10459_s26 = sshll.u32 %s14155_s24, 7  ;;  %v2555_v17 = vld [vmem:[%s10177_s21 + $0x40] sm:$0xff] }
 0x253   : > { %v1943_v27 = vpop.f32.mrf.mxu0  ;;  %9009 = vmatpush3.msra.mxu1 %v2559_v7  ;;  %s10462_s5 = scalar_lea.vmem [#allocation2], %s10459_s26  ;;  %s11031_s8 = scalar_lea.vmem [#allocation3], %s10459_s26 }
 0x254   : > { %v1944_v32 = vadd.f32 %v8226_v10, %v1943_v27  ;;  %2173 = vmax.xlane.f32.xlu1 %v10420_v21  ;;  %2171 = vmax.xlane.f32.xlu0 %v10422_v22  ;;  %v10439_v56 = vadd.f32 %v2118_v41, %v1949_v36  ;;  %v10465_v10 = vld [vmem:[%s10462_s5 + $0x8] sm:$0xff]  ;;  %v10468_v12 = vld [vmem:[%s10462_s5] sm:$0xff]  ;;  %v10485_v23 = vld [vmem:[%s10462_s5 + $0x18] sm:$0xff]  ;;  %s13292_s28 = scalar_lea.vmem %s10181_s19, %s10459_s26 [#allocation7]  ;;  %s13296_s13 = scalar_lea.vmem %s10183_s20, %s10459_s26 [#allocation8] }
 0x255   : > { %v8998_v35 = vpop.f32.mrf.mxu0  ;;  %9010 = vmatprep.subr.mxu1 %v2558_v8  ;;  %v2553_v27 = vld [vmem:[%s10177_s21 + $0x30] sm:$0xff]  ;;  %v2551_v36 = vld [vmem:[%s10177_s21 + $0x20] sm:$0xff]  ;;  %v10522_v42 = vld [vmem:[%s10462_s5 + $0x28] sm:$0xff] }
 0x256   : > { %v10429_v38 = vadd.f32 %v2117_v29, %v1944_v32  ;;  %v1959_v52 = vadd.f32 %v8998_v35, %v8231_v37  ;;  %9011 = vmatpush3.msra.mxu1 %v2558_v8  ;;  %v10499_v29 = vld [vmem:[%s10462_s5 + $0x20] sm:$0xff]  ;;  %v10502_v30 = vld [vmem:[%s10462_s5 + $0x10] sm:$0xff]  ;;  %v10574_v7 = vld [vmem:[%s10462_s5 + $0x48] sm:$0xff] }
 0x257   : > { %v1953_v43 = vpop.f32.mrf.mxu0  ;;  %9012 = vmatprep.subr.mxu1 %v2557_v9  ;;  %v10519_v41 = vld [vmem:[%s10462_s5 + $0x30] sm:$0xff] }
 0x258   : > { %v1954_v48 = vadd.f32 %v8230_v28, %v1953_v43  ;;  %2177 = vmax.xlane.f32.xlu1 %v10429_v38  ;;  %2175 = vmax.xlane.f32.xlu0 %v10431_v39  ;;  %v10445_v63 = vadd.f32 %v2120_v58, %v1959_v52  ;;  %v2550_v43 = vld [vmem:[%s10177_s21 + $0x18] sm:$0xff]  ;;  %v2548_v58 = vld [vmem:[%s10177_s21 + $0x8] sm:$0xff]  ;;  %v10571_v6 = vld [vmem:[%s10462_s5 + $0x50] sm:$0xff] }
 0x259   : > { %v9001_v51 = vpop.f32.mrf.mxu0  ;;  %9013 = vmatpush3.msra.mxu1 %v2557_v9  ;;  %14156 = vst [vmem:[#allocation22_spill] sm:$0xff] %v10571_v6 }
 0x25a   : > { %v10437_v55 = vadd.f32 %v2119_v45, %v1954_v48  ;;  %v1969_v61 = vadd.f32 %v9001_v51, %v8235_v53  ;;  %9014 = vmatprep.subr.mxu1 %v2556_v13  ;;  %v2549_v48 = vld [vmem:[%s10177_s21 + $0x10] sm:$0xff]  ;;  %v10545_v53 = vld [vmem:[%s10462_s5 + $0x40] sm:$0xff]  ;;  %s13754_s21 = scalar_lea.vmem (%p9596_p2), %s14346_s27, %s8202_s4 }
 0x25b   : > { %v1963_v57 = vpop.f32.mrf.mxu0  ;;  %9015 = vmatpush3.msra.mxu1 %v2556_v13 }
 0x25c   : > { %v1964_v54 = vadd.f32 %v8234_v44, %v1963_v57  ;;  %2181 = vmax.xlane.f32.xlu1 %v10437_v55  ;;  %2179 = vmax.xlane.f32.xlu0 %v10439_v56  ;;  %v10449_v1 = vadd.f32 %v2122_v0, %v1969_v61  ;;  %v10548_v57 = vld [vmem:[%s10462_s5 + $0x38] sm:$0xff] }
 0x25d   : > { %9016 = vmatprep.subr.mxu1 %v2555_v17 }
 0x25e   : > { %v10443_v62 = vadd.f32 %v2121_v60, %v1964_v54  ;;  %9017 = vmatpush3.msra.mxu1 %v2555_v17  ;;  %v14084_v60 = vlaneseq }
 0x25f   : > { %9018 = vmatprep.subr.mxu1 %v2554_v24 }
 0x260   : > { %2185 = vmax.xlane.f32.xlu1 %v10443_v62  ;;  %2183 = vmax.xlane.f32.xlu0 %v10445_v63 }
 0x261   : > { %9019 = vmatpush3.msra.mxu1 %v2554_v24  ;;  %v10595_v24 = vld [vmem:[%s10462_s5 + $0x60] sm:$0xff] }
 0x262   : > { %9020 = vmatprep.subr.mxu1 %v2553_v27  ;;  %14158 = vst [vmem:[#allocation24_spill] sm:$0xff] %v10595_v24 }
 0x263   : > { %9021 = vmatpush3.msra.mxu1 %v2553_v27 }
 0x264   : > { %2187 = vmax.xlane.f32.xlu0 %v10449_v1  ;;  %9022 = vmatprep.subr.mxu1 %v2552_v31 }
 0x265   : > { %9023 = vmatpush3.msra.mxu1 %v2552_v31 }
 0x266   : > { %9024 = vmatprep.subr.mxu1 %v2551_v36 }
 0x267   : > { %9025 = vmatpush3.msra.mxu1 %v2551_v36 }
 0x268   : > { %9026 = vmatprep.subr.mxu1 %v2550_v43 }
 0x269   : > { %9027 = vmatpush3.msra.mxu1 %v2550_v43 }
 0x26a   : > { %9028 = vmatprep.subr.mxu1 %v2549_v48 }
 0x26b   : > { %9029 = vmatpush3.msra.mxu1 %v2549_v48 }
 0x26c   : > { %9030 = vmatprep.subr.mxu1 %v2548_v58 }
 0x26d   : > { %9031 = vmatpush3.msra.mxu1 %v2548_v58 }
 0x26e   : > { %9032 = vmatprep.subr.mxu1 %v2547_v5 }
 0x26f   : > { %9033 = vmatpush3.msra.mxu1 %v2547_v5 }
 0x2cb   : > { %v2160_v11 = vpop.xlane.xlu1 %2159 }
 0x2cc   : > { %v10472_v14 = vmax.f32 %v10465_v10, %v2160_v11 }
 0x2cd   : > { %v2158_v15 = vpop.xlane.xlu0 %2157 }
 0x2ce   : > { %2464 = vst.msk [vmem:[%s10462_s5 + $0x8] sm:$0xff] %vm2462_vm4, %v10472_v14  ;;  %v10481_v19 = vmax.f32 %v10468_v12, %v2158_v15  ;;  %2260 = vperm.xlu0 %9179, %v10472_v14  }
 0x2d0   : > { %2463 = vst.msk [vmem:[%s10462_s5] sm:$0xff] %vm2462_vm4, %v10481_v19  ;;  %2255 = vperm.xlu1 %9180, %v10481_v19  }
 0x2d1   : > { %v2164_v26 = vpop.xlane.xlu0 %2163 }
 0x2d2   : > { %v10496_v28 = vmax.f32 %v10485_v23, %v2164_v26  ;;  %v10598_v26 = vld [vmem:[%s10462_s5 + $0x58] sm:$0xff] }
 0x2d3   : > { %14159 = vst [vmem:[#allocation25_spill] sm:$0xff] %v10598_v26 }
 0x2d4   : > { %2466 = vst.msk [vmem:[%s10462_s5 + $0x18] sm:$0xff] %vm2462_vm4, %v10496_v28  ;;  %2270 = vperm.xlu1 %9180, %v10496_v28  }
 0x2d5   : > { %v2166_v33 = vpop.xlane.xlu1 %2165  ;;  %v2162_v35 = vpop.xlane.xlu0 %2161 }
 0x2d6   : > { %v10513_v37 = vmax.f32 %v10499_v29, %v2166_v33  ;;  %v10516_v40 = vmax.f32 %v10502_v30, %v2162_v35 }
 0x2d8   : > { %2467 = vst.msk [vmem:[%s10462_s5 + $0x20] sm:$0xff] %vm2462_vm4, %v10513_v37  ;;  %2465 = vst.msk [vmem:[%s10462_s5 + $0x10] sm:$0xff] %vm2462_vm4, %v10516_v40  ;;  %2275 = vperm.xlu0 %9179, %v10513_v37   ;;  %2265 = vperm.xlu1 %9180, %v10516_v40  }
 0x2d9   : > { %v2170_v46 = vpop.xlane.xlu1 %2169  ;;  %v2168_v47 = vpop.xlane.xlu0 %2167 }
 0x2da   : > { %v10539_v51 = vmax.f32 %v10519_v41, %v2170_v46  ;;  %v10542_v52 = vmax.f32 %v10522_v42, %v2168_v47  ;;  %v10619_v46 = vld [vmem:[%s10462_s5 + $0x70] sm:$0xff]  ;;  %v10622_v47 = vld [vmem:[%s10462_s5 + $0x68] sm:$0xff] }
 0x2db   : > { %14162 = vst [vmem:[#allocation28_spill] sm:$0xff] %v10619_v46  ;;  %14163 = vst [vmem:[#allocation29_spill] sm:$0xff] %v10622_v47 }
 0x2dc   : > { %2469 = vst.msk [vmem:[%s10462_s5 + $0x30] sm:$0xff] %vm2462_vm4, %v10539_v51  ;;  %2468 = vst.msk [vmem:[%s10462_s5 + $0x28] sm:$0xff] %vm2462_vm4, %v10542_v52  ;;  %2285 = vperm.xlu0 %9179, %v10539_v51   ;;  %2280 = vperm.xlu1 %9180, %v10542_v52  }
 0x2dd   : > { %v2174_v54 = vpop.xlane.xlu1 %2173  ;;  %v2172_v61 = vpop.xlane.xlu0 %2171 }
 0x2de   : > { %v10564_v0 = vmax.f32 %v10545_v53, %v2174_v54  ;;  %v10567_v4 = vmax.f32 %v10548_v57, %v2172_v61 }
 0x2e0   : > { %2471 = vst.msk [vmem:[%s10462_s5 + $0x40] sm:$0xff] %vm2462_vm4, %v10564_v0  ;;  %2470 = vst.msk [vmem:[%s10462_s5 + $0x38] sm:$0xff] %vm2462_vm4, %v10567_v4  ;;  %2295 = vperm.xlu0 %9179, %v10564_v0   ;;  %2290 = vperm.xlu1 %9180, %v10567_v4  }
 0x2e1   : > { %v2178_v11 = vpop.xlane.xlu1 %2177  ;;  %v2176_v13 = vpop.xlane.xlu0 %2175 }
 0x2e2   : > { %v10589_v15 = vmax.f32 %v10571_v6, %v2178_v11  ;;  %v10592_v17 = vmax.f32 %v10574_v7, %v2176_v13  ;;  %v10643_v13 = vld [vmem:[%s10462_s5 + $0x78] sm:$0xff] }
 0x2e3   : > { %14166 = vst [vmem:[#allocation32_spill] sm:$0xff] %v10643_v13 }
 0x2e4   : > { %14157 = vst [vmem:[#allocation23_spill] sm:$0xff] %v10589_v15  ;;  %2473 = vst.msk [vmem:[%s10462_s5 + $0x50] sm:$0xff] %vm2462_vm4, %v10589_v15  ;;  %2305 = vperm.xlu0 %9179, %v10589_v15   ;;  %2300 = vperm.xlu1 %9180, %v10592_v17  }
 0x2e5   : > { %2472 = vst.msk [vmem:[%s10462_s5 + $0x48] sm:$0xff] %vm2462_vm4, %v10592_v17  ;;  %v2182_v33 = vpop.xlane.xlu1 %2181  ;;  %v2180_v35 = vpop.xlane.xlu0 %2179 }
 0x2e6   : > { %v10613_v36 = vmax.f32 %v10595_v24, %v2182_v33  ;;  %v10616_v43 = vmax.f32 %v10598_v26, %v2180_v35 }
 0x2e8   : > { %14160 = vst [vmem:[#allocation26_spill] sm:$0xff] %v10613_v36  ;;  %14161 = vst [vmem:[#allocation27_spill] sm:$0xff] %v10616_v43  ;;  %2315 = vperm.xlu0 %9179, %v10613_v36   ;;  %2310 = vperm.xlu1 %9180, %v10616_v43  }
 0x2e9   : > { %2475 = vst.msk [vmem:[%s10462_s5 + $0x60] sm:$0xff] %vm2462_vm4, %v10613_v36  ;;  %2474 = vst.msk [vmem:[%s10462_s5 + $0x58] sm:$0xff] %vm2462_vm4, %v10616_v43  ;;  %v2186_v54 = vpop.xlane.xlu1 %2185  ;;  %v2184_v61 = vpop.xlane.xlu0 %2183  ;;  %v8755_v36 = vld [vmem:[%s10179_s1 + $0x8] sm:$0xff]   ;;  %v8778_v43 = vld [vmem:[%s10179_s1 + $0xc0] sm:$0xff]  }
 0x2ea   : > { %v10637_v5 = vmax.f32 %v10619_v46, %v2186_v54  ;;  %v10640_v11 = vmax.f32 %v10622_v47, %v2184_v61 }
 0x2ec   : > { %14164 = vst [vmem:[#allocation30_spill] sm:$0xff] %v10637_v5  ;;  %14165 = vst [vmem:[#allocation31_spill] sm:$0xff] %v10640_v11  ;;  %2325 = vperm.xlu0 %9179, %v10637_v5   ;;  %2320 = vperm.xlu1 %9180, %v10640_v11  }
 0x2ed   : > { %2477 = vst.msk [vmem:[%s10462_s5 + $0x70] sm:$0xff] %vm2462_vm4, %v10637_v5  ;;  %2476 = vst.msk [vmem:[%s10462_s5 + $0x68] sm:$0xff] %vm2462_vm4, %v10640_v11  ;;  %v2188_v54 = vpop.xlane.xlu0 %2187  ;;  %v8767_v11 = vld [vmem:[%s10179_s1 + $0x68] sm:$0xff]  }
 0x2ee   : > { %v10658_v61 = vmax.f32 %v10643_v13, %v2188_v54  ;;  %v9426_v54 = vmov 1966171168  }
 0x2ef   : > { %v3480_v9 = vunpack.c.l.s4 %v9426_v54 }
 0x2f0   : > { %14167 = vst [vmem:[#allocation33_spill] sm:$0xff] %v10658_v61  ;;  %2478 = vst.msk [vmem:[%s10462_s5 + $0x78] sm:$0xff] %vm2462_vm4, %v10658_v61  ;;  %2330 = vperm.xlu1 %9180, %v10658_v61  }
 0x2f1   : > { %v3481_v25 = vunpack.c.0.s8 %v3480_v9 }
 0x349   : > { %v2261_v48 = vpop.permute.xlu0 %2260 }
 0x34a   : > { %v2334_v35 = vsub.f32 %v10387_v16, %v2261_v48 }
 0x34b   : > { %v2256_v27 = vpop.permute.xlu1 %2255 }
 0x34c   : > { %v2351_v58 = vmul.f32 1.442695, %v2334_v35  ;;  %v2333_v8 = vsub.f32 %v10390_v20, %v2256_v27  ;;  %v10672_v20 = vshrl.u32 %v14084_v60, 7 }
 0x34e   : > { %9181 = vpow2.f32 %v2351_v58  ;;  %v2349_v31 = vmul.f32 1.442695, %v2333_v8  ;;  %v10677_v9 = vsub.s32 %v3481_v25, %v10672_v20  ;;  %v10685_v35 = vsub.s32 0, %v10672_v20 }
 0x34f   : > { %v2271_v59 = vpop.permute.xlu1 %2270 }
 0x350   : > { %9183 = vpow2.f32 %v2349_v31  ;;  %v2336_v33 = vsub.f32 %v10396_v34, %v2271_v59 }
 0x352   : > { %v2355_v44 = vmul.f32 1.442695, %v2336_v33 }
 0x353   : > { %v2266_v45 = vpop.permute.xlu1 %2265  ;;  %v2276_v32 = vpop.permute.xlu0 %2275 }
 0x354   : > { %9185 = vpow2.f32 %v2355_v44  ;;  %v2335_v16 = vsub.f32 %v10404_v50, %v2266_v45  ;;  %v2337_v48 = vsub.f32 %v10402_v49, %v2276_v32  ;;  %v10680_v45 = vld [vmem:[%s10179_s1 + $0x40] sm:$0xff]  }
 0x356   : > { %v2353_v8 = vmul.f32 1.442695, %v2335_v16  ;;  %v2357_v27 = vmul.f32 1.442695, %v2337_v48  ;;  %v8270_v16 = vunpack.c.l.bf16 %v10680_v45 }
 0x357   : > { %v2281_v58 = vpop.permute.xlu1 %2280  ;;  %v2286_v31 = vpop.permute.xlu0 %2285 }
 0x358   : > { %9187 = vpow2.f32 %v2353_v8  ;;  %v2338_v34 = vsub.f32 %v10413_v3, %v2281_v58  ;;  %v2339_v59 = vsub.f32 %v10411_v2, %v2286_v31 }
 0x359   : > { %9189 = vpow2.f32 %v2357_v27 }
 0x35a   : > { %v2359_v44 = vmul.f32 1.442695, %v2338_v34  ;;  %v2361_v50 = vmul.f32 1.442695, %v2339_v59 }
 0x35b   : > { %v10682_v49 = vpop.eup %9181  ;;  %v2291_v32 = vpop.permute.xlu1 %2290 }
 0x35c   : > { %v2296_v33 = vpop.permute.xlu0 %2295  ;;  %9191 = vpow2.f32 %v2359_v44  ;;  %v2340_v3 = vsub.f32 %v10422_v22, %v2291_v32  ;;  %2416 = vadd.xlane.f32.xlu1 %v10682_v49  ;;  %v3534_v25 = vrot.slane %v10682_v49, %v10677_v9 }
 0x35d   : > { %v2341_v2 = vsub.f32 %v10420_v21, %v2296_v33  ;;  %v10692_v54 = vpop.eup %9183  ;;  %9193 = vpow2.f32 %v2361_v50 }
 0x35e   : > { %v2363_v48 = vmul.f32 1.442695, %v2340_v3  ;;  %2414 = vadd.xlane.f32.xlu0 %v10692_v54  ;;  %9034 = vmatprep.mubr.f32.mxu1 %v10692_v54  ;;  %v10698_v22 = vrot.slane %v3534_v25, %v10677_v9  ;;  %v10702_v21 = vrot.slane %v10692_v54, %v10677_v9  ;;  %v3542_v50 = vcombine.high %v3534_v25, %v3534_v25 }
 0x35f   : > { %v2365_v8 = vmul.f32 1.442695, %v2341_v2  ;;  %v2301_v27 = vpop.permute.xlu1 %2300  ;;  %9035 = vmatmul.mubr.f32.vlgmr.msra.gmra.mxu1 %v10682_v49  ;;  %v10713_v2 = vld [vmem:[%s10179_s1] sm:$0xff]  }
 0x360   : > { %v2306_v58 = vpop.permute.xlu0 %2305  ;;  %9195 = vpow2.f32 %v2363_v48  ;;  %v2342_v31 = vsub.f32 %v10431_v39, %v2301_v27  ;;  %v4297_v59 = vrot.slane %v10698_v22, %v10685_v35  ;;  %v10717_v48 = vrot.slane %v10702_v21, %v10677_v9 }
 0x361   : > { %v2343_v34 = vsub.f32 %v10429_v38, %v2306_v58  ;;  %v10709_v44 = vpop.eup %9185  ;;  %9197 = vpow2.f32 %v2365_v8  ;;  %v8239_v58 = vunpack.c.h.bf16 %v10713_v2 }
 0x362   : > { %v2367_v32 = vmul.f32 1.442695, %v2342_v31  ;;  %2420 = vadd.xlane.f32.xlu0 %v10709_v44  ;;  %v4918_v3 = vmul.f32 %v8270_v16, %v4297_v59  ;;  %v10725_v16 = vrot.slane %v3542_v50, %v10677_v9  ;;  %v3527_v31 = vcombine.high %v10682_v49, %v10682_v49 }
 0x363   : > { %v2369_v33 = vmul.f32 1.442695, %v2343_v34  ;;  %v2311_v39 = vpop.permute.xlu1 %2310 }
 0x364   : > { %v2316_v38 = vpop.permute.xlu0 %2315  ;;  %9199 = vpow2.f32 %v2367_v32  ;;  %v2344_v27 = vsub.f32 %v10439_v56, %v2311_v39  ;;  %5190 = vadd.xlane.f32.xlu1 %v4918_v3  ;;  %v8763_v56 = vld [vmem:[%s10179_s1 + $0x48] sm:$0xff]   ;;  %v8271_v39 = vunpack.c.h.bf16 %v10680_v45 }
 0x365   : > { %v2345_v8 = vsub.f32 %v10437_v55, %v2316_v38  ;;  %v10721_v25 = vpop.eup %9187  ;;  %9201 = vpow2.f32 %v2369_v33  ;;  %v4265_v55 = vrot.slane %v10717_v48, %v10685_v35 }
 0x366   : > { %v2371_v34 = vmul.f32 1.442695, %v2344_v27  ;;  %2418 = vadd.xlane.f32.xlu0 %v10721_v25  ;;  %9037 = vmatprep.mubr.f32.mxu1 %v10721_v25  ;;  %v10734_v32 = vpop.eup %9189  ;;  %v8274_v27 = vunpack.c.l.bf16 %v8763_v56 }
 0x367   : > { %v2373_v60 = vmul.f32 1.442695, %v2345_v8  ;;  %v2321_v3 = vpop.permute.xlu1 %2320  ;;  %9038 = vmatmul.mubr.f32.gmra.mxu1 %v10709_v44  ;;  %v4301_v8 = vrot.slane %v10725_v16, %v10685_v35  ;;  %v4903_v45 = vmul.f32 %v8239_v58, %v4265_v55  ;;  %v3478_v58 = vcombine.high %v10692_v54, %v10692_v54 }
 0x368   : > { %v2326_v50 = vpop.permute.xlu0 %2325  ;;  %9203 = vpow2.f32 %v2371_v34  ;;  %v2346_v49 = vsub.f32 %v10445_v63, %v2321_v3  ;;  %2422 = vadd.xlane.f32.xlu1 %v10734_v32  ;;  %9040 = vmatprep.mubr.f32.mxu1 %v10734_v32  ;;  %v3572_v34 = vcombine.high %v10698_v22, %v10698_v22  ;;  %v10749_v63 = vrot.slane %v3527_v31, %v10677_v9 }
 0x369   : > { %v2347_v33 = vsub.f32 %v10443_v62, %v2326_v50  ;;  %v10742_v38 = vpop.eup %9191  ;;  %9205 = vpow2.f32 %v2373_v60  ;;  %v4919_v22 = vmul.f32 %v8271_v39, %v4297_v59  ;;  %v8238_v31 = vunpack.c.l.bf16 %v10713_v2 }
 0x36a   : > { %v10751_v3 = vpop.eup %9193  ;;  %v2375_v62 = vmul.f32 1.442695, %v2346_v49  ;;  %2424 = vadd.xlane.f32.xlu0 %v10742_v38  ;;  %v8278_v49 = vunpack.c.l.bf16 %v8764_v18  ;;  %v10769_v59 = vrot.slane %v10749_v63, %v10677_v9  ;;  %v8275_v54 = vunpack.c.h.bf16 %v8763_v56 }
 0x36b   : > { %v2377_v50 = vmul.f32 1.442695, %v2347_v33  ;;  %v2331_v5 = vpop.permute.xlu1 %2330  ;;  %9041 = vmatmul.mubr.f32.gmra.mxu1 %v10742_v38  ;;  %v4305_v33 = vrot.slane %v3572_v34, %v10685_v35  ;;  %v4902_v2 = vmul.f32 %v8238_v31, %v4265_v55  ;;  %v10786_v55 = vld [vmem:[%s10179_s1 + $0x10] sm:$0xff]   ;;  %v8279_v31 = vunpack.c.h.bf16 %v8764_v18 }
 0x36c   : > { %9207 = vpow2.f32 %v2375_v62  ;;  %v2348_v46 = vsub.f32 %v10449_v1, %v2331_v5  ;;  %5160 = vadd.xlane.f32.xlu1 %v4903_v45  ;;  %9043 = vmatprep.mubr.f32.mxu1 %v10751_v3  ;;  %v4920_v1 = vmul.f32 %v8274_v27, %v4301_v8  ;;  %v8766_v5 = vld [vmem:[%s10179_s1 + $0x60] sm:$0xff]   ;;  %v4313_v27 = vrot.slane %v10769_v59, %v10685_v35 }
 0x36d   : > { %v10759_v60 = vpop.eup %9195  ;;  %9209 = vpow2.f32 %v2377_v50  ;;  %v8286_v34 = vunpack.c.l.bf16 %v8766_v5  ;;  %v3523_v50 = vcombine.high %v10717_v48, %v10717_v48  ;;  %v10780_v45 = vrot.slane %v3478_v58, %v10677_v9 }
 0x36e   : > { %v10764_v61 = vpop.eup %9197  ;;  %v2379_v62 = vmul.f32 1.442695, %v2348_v46  ;;  %5192 = vadd.xlane.f32.xlu0 %v4919_v22  ;;  %v4922_v46 = vmul.f32 %v8278_v49, %v4305_v33  ;;  %v4921_v56 = vmul.f32 %v8275_v54, %v4301_v8  ;;  %v8246_v48 = vunpack.c.l.bf16 %v10786_v55 }
 0x36f   : > { %9044 = vmatmul.mubr.f32.gmra.mxu1 %v10759_v60  ;;  %v4273_v58 = vrot.slane %v3523_v50, %v10685_v35  ;;  %v4923_v18 = vmul.f32 %v8279_v31, %v4305_v33  ;;  %v8287_v8 = vunpack.c.h.bf16 %v8766_v5  ;;  %v3493_v54 = vcombine.high %v10702_v21, %v10702_v21  ;;  %v8765_v21 = vld [vmem:[%s10179_s1 + $0x58] sm:$0xff]  }
 0x370   : > { %9211 = vpow2.f32 %v2379_v62  ;;  %5194 = vadd.xlane.f32.xlu1 %v4920_v1  ;;  %9046 = vmatprep.mubr.f32.mxu1 %v10764_v61  ;;  %v4926_v62 = vmul.f32 %v8286_v34, %v4313_v27  ;;  %v10794_v1 = vld [vmem:[%s10179_s1 + $0x20] sm:$0xff]   ;;  %v3543_v33 = vcombine.high %v10749_v63, %v10749_v63  ;;  %v8282_v24 = vunpack.c.l.bf16 %v8765_v21 }
 0x371   : > { %v10773_v39 = vpop.eup %9199  ;;  %v4906_v50 = vmul.f32 %v8246_v48, %v4273_v58  ;;  %v4927_v31 = vmul.f32 %v8287_v8, %v4313_v27  ;;  %v3515_v48 = vrot.slane %v3493_v54, %v10677_v9  ;;  %v8290_v8 = vunpack.c.l.bf16 %v8767_v11 }
 0x372   : > { %5158 = vadd.xlane.f32.xlu0 %v4902_v2  ;;  %v10782_v22 = vpop.eup %9201  ;;  %v10798_v2 = vrot.slane %v10780_v45, %v10677_v9  ;;  %v10827_v47 = vrot.slane %v3543_v33, %v10677_v9  ;;  %v10838_v33 = vrot.slane %v10709_v44, %v10677_v9  ;;  %v8247_v26 = vunpack.c.h.bf16 %v10786_v55 }
 0x373   : > { %9047 = vmatmul.mubr.f32.gmra.mxu1 %v10773_v39  ;;  %v4269_v27 = vrot.slane %v3515_v48, %v10685_v35 }
 0x374   : > { %5198 = vadd.xlane.f32.xlu1 %v4922_v46  ;;  %9049 = vmatprep.mubr.f32.mxu1 %v10782_v22  ;;  %v8254_v46 = vunpack.c.l.bf16 %v10794_v1 }
 0x375   : > { %v10789_v49 = vpop.eup %9203 }
 0x376   : > { %5196 = vadd.xlane.f32.xlu0 %v4921_v56  ;;  %v10800_v13 = vpop.eup %9205  ;;  %v4281_v56 = vrot.slane %v10798_v2, %v10685_v35 }
 0x377   : > { %14168 = vst [vmem:[#allocation34_spill] sm:$0xff] %v10800_v13  ;;  %9050 = vmatmul.mubr.f32.gmra.mxu1 %v10789_v49 }
 0x378   : > { %5206 = vadd.xlane.f32.xlu1 %v4926_v62  ;;  %9052 = vmatprep.mubr.f32.mxu1 %v10800_v13  ;;  %v3574_v62 = vcombine.high %v10725_v16, %v10725_v16  ;;  %v4910_v16 = vmul.f32 %v8254_v46, %v4281_v56  ;;  %v4317_v46 = vrot.slane %v10827_v47, %v10685_v35 }
 0x379   : > { %v10806_v34 = vpop.eup %9207 }
 0x37a   : > { %5200 = vadd.xlane.f32.xlu0 %v4923_v18  ;;  %v10815_v5 = vpop.eup %9209  ;;  %v4309_v63 = vrot.slane %v3574_v62, %v10685_v35  ;;  %v3573_v62 = vcombine.high %v10769_v59, %v10769_v59 }
 0x37b   : > { %14169 = vst [vmem:[#allocation35_spill] sm:$0xff] %v10815_v5  ;;  %9053 = vmatmul.mubr.f32.gmra.mxu1 %v10806_v34 }
 0x37c   : > { %5166 = vadd.xlane.f32.xlu1 %v4906_v50  ;;  %9055 = vmatprep.mubr.f32.mxu1 %v10815_v5  ;;  %v8242_v50 = vunpack.c.l.bf16 %v8755_v36  ;;  %v4924_v54 = vmul.f32 %v8282_v24, %v4309_v63  ;;  %v8243_v5 = vunpack.c.h.bf16 %v8755_v36  ;;  %v4321_v6 = vrot.slane %v3573_v62, %v10685_v35 }
 0x37d   : > { %v10821_v18 = vpop.eup %9211  ;;  %v10844_v24 = vrot.slane %v10838_v33, %v10677_v9 }
 0x37e   : > { %14170 = vst [vmem:[#allocation36_spill] sm:$0xff] %v10821_v18  ;;  %5208 = vadd.xlane.f32.xlu0 %v4927_v31  ;;  %v8768_v31 = vld [vmem:[%s10179_s1 + $0x70] sm:$0xff]   ;;  %v4905_v59 = vmul.f32 %v8243_v5, %v4269_v27  ;;  %v8757_v5 = vld [vmem:[%s10179_s1 + $0x18] sm:$0xff]  }
 0x37f   : > { %9056 = vmatmul.mubr.f32.gmra.mxu1 %v10821_v18  ;;  %v4928_v18 = vmul.f32 %v8290_v8, %v4317_v46  ;;  %v8294_v15 = vunpack.c.l.bf16 %v8768_v31  ;;  %v4361_v36 = vrot.slane %v10844_v24, %v10685_v35  ;;  %v8255_v8 = vunpack.c.h.bf16 %v10794_v1 }
 0x380   : > { %5174 = vadd.xlane.f32.xlu1 %v4910_v16  ;;  %v4904_v16 = vmul.f32 %v8242_v50, %v4269_v27  ;;  %v4907_v50 = vmul.f32 %v8247_v26, %v4273_v58  ;;  %v8250_v27 = vunpack.c.l.bf16 %v8757_v5  ;;  %v8759_v26 = vld [vmem:[%s10179_s1 + $0x28] sm:$0xff]   ;;  %v8291_v1 = vunpack.c.h.bf16 %v8767_v11  ;;  %v8769_v11 = vld [vmem:[%s10179_s1 + $0x78] sm:$0xff]  }
 0x381   : > { %v4930_v13 = vmul.f32 %v8294_v15, %v4321_v6  ;;  %v4911_v55 = vmul.f32 %v8255_v8, %v4281_v56  ;;  %v8283_v15 = vunpack.c.h.bf16 %v8765_v21  ;;  %v8760_v21 = vld [vmem:[%s10179_s1 + $0x30] sm:$0xff]   ;;  %v8295_v8 = vunpack.c.h.bf16 %v8768_v31 }
 0x382   : > { %2428 = vadd.xlane.f32.xlu0 %v10759_v60 }
 0x383   : > { %v4925_v58 = vmul.f32 %v8283_v15, %v4309_v63  ;;  %v4931_v15 = vmul.f32 %v8295_v8, %v4321_v6 }
 0x384   : > { %5202 = vadd.xlane.f32.xlu1 %v4924_v54  ;;  %v8334_v54 = vunpack.c.l.bf16 %v8778_v43 }
 0x386   : > { %5162 = vadd.xlane.f32.xlu0 %v4904_v16  ;;  %v4950_v62 = vmul.f32 %v8334_v54, %v4361_v36  ;;  %v3525_v16 = vcombine.high %v3515_v48, %v3515_v48  ;;  %v8258_v48 = vunpack.c.l.bf16 %v8759_v26  ;;  %v3524_v54 = vcombine.high %v10798_v2, %v10798_v2 }
 0x387   : > { %v8335_v2 = vunpack.c.h.bf16 %v8778_v43 }
 0x388   : > { %5210 = vadd.xlane.f32.xlu1 %v4928_v18  ;;  %v3494_v18 = vcombine.high %v10780_v45, %v10780_v45  ;;  %v4289_v63 = vrot.slane %v3524_v54, %v10685_v35 }
 0x38a   : > { %5164 = vadd.xlane.f32.xlu0 %v4905_v59  ;;  %v4277_v59 = vrot.slane %v3525_v16, %v10685_v35 }
 0x38c   : > { %5214 = vadd.xlane.f32.xlu1 %v4930_v13  ;;  %v10856_v13 = vrot.slane %v3494_v18, %v10677_v9  ;;  %v4908_v45 = vmul.f32 %v8250_v27, %v4277_v59  ;;  %v3575_v18 = vcombine.high %v10827_v47, %v10827_v47  ;;  %v8298_v27 = vunpack.c.l.bf16 %v8769_v11 }
 0x38d   : > { %v4951_v47 = vmul.f32 %v8335_v2, %v4361_v36 }
 0x38e   : > { %5168 = vadd.xlane.f32.xlu0 %v4907_v50  ;;  %v4285_v56 = vrot.slane %v10856_v13, %v10685_v35  ;;  %v4929_v50 = vmul.f32 %v8291_v1, %v4317_v46  ;;  %v4325_v31 = vrot.slane %v3575_v18, %v10685_v35 }
 0x390   : > { %5254 = vadd.xlane.f32.xlu1 %v4950_v62  ;;  %v8262_v62 = vunpack.c.l.bf16 %v8760_v21  ;;  %v4912_v16 = vmul.f32 %v8258_v48, %v4285_v56  ;;  %v8251_v48 = vunpack.c.h.bf16 %v8757_v5  ;;  %v4932_v6 = vmul.f32 %v8298_v27, %v4325_v31  ;;  %v8780_v27 = vld [vmem:[%s10179_s1 + $0xd0] sm:$0xff]  }
 0x392   : > { %5176 = vadd.xlane.f32.xlu0 %v4911_v55  ;;  %v3583_v55 = vrot.slane %v10721_v25, %v10677_v9  ;;  %v4914_v46 = vmul.f32 %v8262_v62, %v4289_v63  ;;  %v3625_v62 = vcombine.high %v10709_v44, %v10709_v44 }
 0x394   : > { %2426 = vadd.xlane.f32.xlu1 %v10751_v3  ;;  %v10874_v1 = vrot.slane %v3583_v55, %v10677_v9  ;;  %v10891_v2 = vrot.slane %v3625_v62, %v10677_v9 }
 0x396   : > { %5204 = vadd.xlane.f32.xlu0 %v4925_v58  ;;  %v8770_v58 = vld [vmem:[%s10179_s1 + $0x80] sm:$0xff]   ;;  %v4329_v43 = vrot.slane %v10874_v1, %v10685_v35 }
 0x397   : > { %v8302_v54 = vunpack.c.l.bf16 %v8770_v58 }
 0x398   : > { %5170 = vadd.xlane.f32.xlu1 %v4908_v45  ;;  %v3640_v45 = vcombine.high %v10838_v33, %v10838_v33  ;;  %v8259_v33 = vunpack.c.h.bf16 %v8759_v26  ;;  %v8342_v26 = vunpack.c.l.bf16 %v8780_v27 }
 0x399   : > { %v4934_v5 = vmul.f32 %v8302_v54, %v4329_v43  ;;  %v8299_v54 = vunpack.c.h.bf16 %v8769_v11 }
 0x39a   : > { %5212 = vadd.xlane.f32.xlu0 %v4929_v50  ;;  %v8779_v50 = vld [vmem:[%s10179_s1 + $0xc8] sm:$0xff]   ;;  %v10882_v8 = vrot.slane %v3640_v45, %v10677_v9  ;;  %v4913_v44 = vmul.f32 %v8259_v33, %v4285_v56  ;;  %v3591_v33 = vcombine.high %v3583_v55, %v3583_v55 }
 0x39b   : > { %v8338_v36 = vunpack.c.l.bf16 %v8779_v50 }
 0x39c   : > { %5178 = vadd.xlane.f32.xlu1 %v4912_v16  ;;  %v4909_v16 = vmul.f32 %v8251_v48, %v4277_v59  ;;  %v4365_v18 = vrot.slane %v10882_v8, %v10685_v35  ;;  %v10898_v48 = vrot.slane %v10891_v2, %v10677_v9 }
 0x39e   : > { %5216 = vadd.xlane.f32.xlu0 %v4931_v15  ;;  %v3670_v15 = vcombine.high %v10844_v24, %v10844_v24  ;;  %v4952_v59 = vmul.f32 %v8338_v36, %v4365_v18  ;;  %v4377_v56 = vrot.slane %v10898_v48, %v10685_v35  ;;  %v4933_v36 = vmul.f32 %v8299_v54, %v4325_v31 }
 0x3a0   : > { %5182 = vadd.xlane.f32.xlu1 %v4914_v46  ;;  %v8263_v46 = vunpack.c.h.bf16 %v8760_v21  ;;  %v4369_v45 = vrot.slane %v3670_v15, %v10685_v35  ;;  %v8761_v21 = vld [vmem:[%s10179_s1 + $0x38] sm:$0xff]  }
 0x3a1   : > { %v8266_v15 = vunpack.c.l.bf16 %v8761_v21 }
 0x3a2   : > { %5256 = vadd.xlane.f32.xlu0 %v4951_v47  ;;  %v8782_v47 = vld [vmem:[%s10179_s1 + $0xe0] sm:$0xff]   ;;  %v4915_v24 = vmul.f32 %v8263_v46, %v4289_v63  ;;  %v4954_v62 = vmul.f32 %v8342_v26, %v4369_v45  ;;  %v10908_v46 = vrot.slane %v3591_v33, %v10677_v9 }
 0x3a3   : > { %v8774_v33 = vld [vmem:[%s10179_s1 + $0xa0] sm:$0xff]  }
 0x3a4   : > { %5218 = vadd.xlane.f32.xlu1 %v4932_v6  ;;  %v8350_v6 = vunpack.c.l.bf16 %v8782_v47 }
 0x3a6   : > { %5172 = vadd.xlane.f32.xlu0 %v4909_v16  ;;  %v3526_v16 = vcombine.high %v10856_v13, %v10856_v13  ;;  %v4958_v63 = vmul.f32 %v8350_v6, %v4377_v56  ;;  %v8339_v13 = vunpack.c.h.bf16 %v8779_v50  ;;  %v8772_v6 = vld [vmem:[%s10179_s1 + $0x90] sm:$0xff]  }
 0x3a7   : > { %v8310_v50 = vunpack.c.l.bf16 %v8772_v6 }
 0x3a8   : > { %5222 = vadd.xlane.f32.xlu1 %v4934_v5  ;;  %v8303_v5 = vunpack.c.h.bf16 %v8770_v58  ;;  %v4293_v11 = vrot.slane %v3526_v16, %v10685_v35  ;;  %v4333_v58 = vrot.slane %v10908_v46, %v10685_v35 }
 0x3aa   : > { %5180 = vadd.xlane.f32.xlu0 %v4913_v44  ;;  %v8771_v44 = vld [vmem:[%s10179_s1 + $0x88] sm:$0xff]   ;;  %v4935_v26 = vmul.f32 %v8303_v5, %v4329_v43  ;;  %v4916_v31 = vmul.f32 %v8266_v15, %v4293_v11  ;;  %v8351_v5 = vunpack.c.h.bf16 %v8782_v47  ;;  %v8318_v15 = vunpack.c.l.bf16 %v8774_v33 }
 0x3ab   : > { %v8306_v55 = vunpack.c.l.bf16 %v8771_v44 }
 0x3ac   : > { %5258 = vadd.xlane.f32.xlu1 %v4952_v59  ;;  %v3576_v59 = vcombine.high %v10721_v25, %v10721_v25  ;;  %v8343_v25 = vunpack.c.h.bf16 %v8780_v27  ;;  %v3641_v27 = vcombine.high %v10891_v2, %v10891_v2 }
 0x3ad   : > { %v4936_v43 = vmul.f32 %v8306_v55, %v4333_v58 }
 0x3ae   : > { %5184 = vadd.xlane.f32.xlu0 %v4915_v24  ;;  %v3621_v24 = vcombine.high %v10874_v1, %v10874_v1  ;;  %v10917_v54 = vrot.slane %v3576_v59, %v10677_v9  ;;  %v4955_v1 = vmul.f32 %v8343_v25, %v4369_v45 }
 0x3b0   : > { %5262 = vadd.xlane.f32.xlu1 %v4954_v62  ;;  %v4953_v62 = vmul.f32 %v8339_v13, %v4365_v18  ;;  %v4337_v16 = vrot.slane %v3621_v24, %v10685_v35  ;;  %v3672_v18 = vcombine.high %v10882_v8, %v10882_v8  ;;  %v4959_v13 = vmul.f32 %v8351_v5, %v4377_v56 }
 0x3b1   : > { %v10936_v8 = vrot.slane %v3641_v27, %v10677_v9  ;;  %v8267_v24 = vunpack.c.h.bf16 %v8761_v21  ;;  %v8307_v5 = vunpack.c.h.bf16 %v8771_v44  ;;  %v10957_v27 = vld [vmem:[%s10179_s1 + $0x140] sm:$0xff]  }
 0x3b2   : > { %5220 = vadd.xlane.f32.xlu0 %v4933_v36  ;;  %v10924_v36 = vrot.slane %v10917_v54, %v10677_v9  ;;  %v4373_v45 = vrot.slane %v3672_v18, %v10685_v35 }
 0x3b3   : > { %v4381_v56 = vrot.slane %v10936_v8, %v10685_v35  ;;  %v4917_v21 = vmul.f32 %v8267_v24, %v4293_v11  ;;  %v8398_v11 = vunpack.c.l.bf16 %v10957_v27 }
 0x3b4   : > { %5270 = vadd.xlane.f32.xlu1 %v4958_v63  ;;  %v4938_v63 = vmul.f32 %v8310_v50, %v4337_v16  ;;  %v4345_v59 = vrot.slane %v10924_v36, %v10685_v35  ;;  %v10948_v50 = vld [vmem:[%s10179_s1 + $0xf0] sm:$0xff]  }
 0x3b6   : > { %5224 = vadd.xlane.f32.xlu0 %v4935_v26  ;;  %v8781_v26 = vld [vmem:[%s10179_s1 + $0xd8] sm:$0xff]   ;;  %v4942_v47 = vmul.f32 %v8318_v15, %v4345_v59  ;;  %v8358_v15 = vunpack.c.l.bf16 %v10948_v50 }
 0x3b7   : > { %v8346_v55 = vunpack.c.l.bf16 %v8781_v26 }
 0x3b8   : > { %5186 = vadd.xlane.f32.xlu1 %v4916_v31  ;;  %v8783_v31 = vld [vmem:[%s10179_s1 + $0xe8] sm:$0xff]  }
 0x3b9   : > { %v8354_v2 = vunpack.c.l.bf16 %v8783_v31  ;;  %v4956_v25 = vmul.f32 %v8346_v55, %v4373_v45  ;;  %v14171_v55 = vsub.f32 %v10465_v10, %v10472_v14  ;;  %v8347_v14 = vunpack.c.h.bf16 %v8781_v26 }
 0x3ba   : > { %5260 = vadd.xlane.f32.xlu0 %v4953_v62  ;;  %v3671_v62 = vcombine.high %v10898_v48, %v10898_v48  ;;  %v8355_v26 = vunpack.c.h.bf16 %v8783_v31  ;;  %v14175_v31 = vsub.f32 %v10499_v29, %v10513_v37  ;;  %v11021_v37 = vld [vmem:[%s10179_s1 + $0xf8] sm:$0xff]  }
 0x3bb   : > { %v2223_v24 = vmul.f32 1.442695, %v14171_v55  ;;  %v14176_v55 = vsub.f32 %v10522_v42, %v10542_v52  ;;  %v8399_v52 = vunpack.c.h.bf16 %v10957_v27  ;;  %v2382_v27 = vld [vmem:[%s11031_s8] sm:$0xff] }
 0x3bc   : > { %5226 = vadd.xlane.f32.xlu1 %v4936_v43  ;;  %v10945_v43 = vrot.slane %v10742_v38, %v10677_v9  ;;  %v4385_v48 = vrot.slane %v3671_v62, %v10685_v35  ;;  %v8319_v62 = vunpack.c.h.bf16 %v8774_v33  ;;  %v10989_v33 = vld [vmem:[%s10179_s1 + $0xa8] sm:$0xff]  }
 0x3bd   : > { %9213 = vpow2.f32 %v2223_v24  ;;  %v2231_v24 = vmul.f32 1.442695, %v14176_v55 }
 0x3be   : > { %5264 = vadd.xlane.f32.xlu0 %v4955_v1  ;;  %v4960_v1 = vmul.f32 %v8354_v2, %v4381_v56  ;;  %v10954_v18 = vrot.slane %v10945_v43, %v10677_v9  ;;  %v4962_v44 = vmul.f32 %v8358_v15, %v4385_v48  ;;  %v4943_v10 = vmul.f32 %v8319_v62, %v4345_v59 }
 0x3bf   : > { %v4957_v59 = vmul.f32 %v8347_v14, %v4373_v45  ;;  %v11004_v45 = vld [vmem:[%s10179_s1 + $0xb0] sm:$0xff]  }
 0x3c0   : > { %5230 = vadd.xlane.f32.xlu1 %v4938_v63  ;;  %v8311_v63 = vunpack.c.h.bf16 %v8772_v6  ;;  %v14172_v6 = vsub.f32 %v10468_v12, %v10481_v19  ;;  %v14173_v12 = vsub.f32 %v10485_v23, %v10496_v28  ;;  %v14174_v23 = vsub.f32 %v10502_v30, %v10516_v40 }
 0x3c1   : > { %v2229_v30 = vmul.f32 1.442695, %v14175_v31  ;;  %v4961_v40 = vmul.f32 %v8355_v26, %v4381_v56  ;;  %v8326_v62 = vunpack.c.l.bf16 %v11004_v45  ;;  %v11025_v56 = vrot.slane %v10734_v32, %v10677_v9 }
 0x3c2   : > { %5272 = vadd.xlane.f32.xlu0 %v4959_v13  ;;  %v4937_v13 = vmul.f32 %v8307_v5, %v4333_v58  ;;  %v4939_v2 = vmul.f32 %v8311_v63, %v4337_v16  ;;  %v3623_v58 = vcombine.high %v10908_v46, %v10908_v46  ;;  %v2227_v19 = vmul.f32 1.442695, %v14173_v12 }
 0x3c3   : > { %v2225_v28 = vmul.f32 1.442695, %v14174_v23  ;;  %v8322_v63 = vunpack.c.l.bf16 %v10989_v33 }
 0x3c4   : > { %5238 = vadd.xlane.f32.xlu1 %v4942_v47  ;;  %v10962_v47 = vrot.slane %v10954_v18, %v10685_v35  ;;  %v10983_v16 = vrot.slane %v3623_v58, %v10685_v35 }
 0x3c6   : > { %2432 = vadd.xlane.f32.xlu0 %v10773_v39  ;;  %v4982_v5 = vmul.f32 %v8398_v11, %v10962_v47  ;;  %v8359_v11 = vunpack.c.h.bf16 %v10948_v50  ;;  %v2383_v50 = vld [vmem:[%s11031_s8 + $0x8] sm:$0xff]  ;;  %v4983_v12 = vmul.f32 %v8399_v52, %v10962_v47  ;;  %v11100_v52 = vld [vmem:[%s10179_s1 + $0x150] sm:$0xff]  }
 0x3c7   : > { %v11067_v47 = vld [vmem:[%s10179_s1 + $0x148] sm:$0xff]  }
 0x3c8   : > { %5266 = vadd.xlane.f32.xlu1 %v4956_v25  ;;  %v2221_v25 = vmul.f32 1.442695, %v14172_v6  ;;  %v4963_v42 = vmul.f32 %v8359_v11, %v4385_v48  ;;  %v8362_v6 = vunpack.c.l.bf16 %v11021_v37  ;;  %v8323_v11 = vunpack.c.h.bf16 %v10989_v33 }
 0x3c9   : > { %v3768_v33 = vcombine.high %v10954_v18, %v10954_v18 }
 0x3ca   : > { %5188 = vadd.xlane.f32.xlu0 %v4917_v21  ;;  %v3592_v21 = vcombine.high %v10917_v54, %v10917_v54  ;;  %9215 = vpow2.f32 %v2221_v25 }
 0x3cb   : > { %9217 = vpow2.f32 %v2227_v19 }
 0x3cc   : > { %5274 = vadd.xlane.f32.xlu1 %v4960_v1  ;;  %v10976_v1 = vld [vmem:[%s10179_s1 + $0x98] sm:$0xff]   ;;  %v10986_v54 = vrot.slane %v3592_v21, %v10677_v9  ;;  %9219 = vpow2.f32 %v2225_v28  ;;  %v11047_v21 = vrot.slane %v11025_v56, %v10677_v9 }
 0x3cd   : > { %v8314_v46 = vunpack.c.l.bf16 %v10976_v1  ;;  %9221 = vpow2.f32 %v2229_v30  ;;  %v8315_v19 = vunpack.c.h.bf16 %v10976_v1 }
 0x3ce   : > { %5228 = vadd.xlane.f32.xlu0 %v4937_v13  ;;  %v10999_v13 = vrot.slane %v10986_v54, %v10685_v35  ;;  %9223 = vpow2.f32 %v2231_v24  ;;  %v8402_v24 = vunpack.c.l.bf16 %v11067_v47 }
 0x3cf   : > { %v4940_v15 = vmul.f32 %v8314_v46, %v10983_v16 }
 0x3d0   : > { %5278 = vadd.xlane.f32.xlu1 %v4962_v44  ;;  %v3622_v44 = vcombine.high %v10924_v36, %v10924_v36  ;;  %v4944_v36 = vmul.f32 %v8322_v63, %v10999_v13  ;;  %v11064_v63 = vrot.slane %v11047_v21, %v10685_v35 }
 0x3d2   : > { %5232 = vadd.xlane.f32.xlu0 %v4939_v2  ;;  %v3673_v2 = vcombine.high %v10936_v8, %v10936_v8  ;;  %v11018_v29 = vrot.slane %v3622_v44, %v10685_v35  ;;  %v11028_v8 = vpop.eup %9213  ;;  %v3723_v44 = vcombine.high %v10742_v38, %v10742_v38 }
 0x3d3   : > { %v2399_v14 = vmul.f32 %v11028_v8, %v2383_v50 }
 0x3d4   : > { %5318 = vadd.xlane.f32.xlu1 %v4982_v5  ;;  %v11036_v25 = vrot.slane %v3673_v2, %v10685_v35  ;;  %v4946_v48 = vmul.f32 %v8326_v62, %v11018_v29  ;;  %v11043_v5 = vld [vmem:[%s10179_s1 + $0x100] sm:$0xff]   ;;  %v11097_v62 = vrot.slane %v3723_v44, %v10677_v9 }
 0x3d5   : > { %v8366_v23 = vunpack.c.l.bf16 %v11043_v5 }
 0x3d6   : > { %5240 = vadd.xlane.f32.xlu0 %v4943_v10  ;;  %v3738_v10 = vcombine.high %v10945_v43, %v10945_v43  ;;  %v4964_v26 = vmul.f32 %v8362_v6, %v11036_v25  ;;  %v2385_v43 = vld [vmem:[%s11031_s8 + $0x18] sm:$0xff]  ;;  %v4945_v6 = vmul.f32 %v8323_v11, %v10999_v13  ;;  %v11119_v13 = vrot.slane %v3768_v33, %v10685_v35 }
 0x3d7   : > { %v11038_v58 = vpop.eup %9215  ;;  %v4966_v38 = vmul.f32 %v8366_v23, %v11064_v63  ;;  %v14177_v23 = vlaneseq }
 0x3d8   : > { %2430 = vadd.xlane.f32.xlu1 %v10764_v61  ;;  %v11057_v28 = vpop.eup %9217  ;;  %v11070_v1 = vrot.slane %v3738_v10, %v10677_v9 }
 0x3d9   : > { %v2401_v55 = vmul.f32 %v11057_v28, %v2385_v43  ;;  %v11083_v2 = vpop.eup %9219  ;;  %v5960_v43 = vand.u32 127, %v14177_v23  ;;  %v14180_v23 = vsub.f32 %v10548_v57, %v10567_v4  ;;  %v3674_v4 = vcombine.high %v10734_v32, %v10734_v32 }
 0x3da   : > { %5268 = vadd.xlane.f32.xlu0 %v4957_v59  ;;  %v2398_v59 = vmul.f32 %v11038_v58, %v2382_v27  ;;  %v11106_v27 = vpop.eup %9221 }
 0x3dc   : > { %5234 = vadd.xlane.f32.xlu1 %v4940_v15 }
 0x3de   : > { %5276 = vadd.xlane.f32.xlu0 %v4961_v40  ;;  %v4941_v40 = vmul.f32 %v8315_v19, %v10983_v16  ;;  %v11092_v16 = vrot.slane %v11070_v1, %v10685_v35 }
 0x3e0   : > { %5242 = vadd.xlane.f32.xlu1 %v4944_v36  ;;  %v2384_v36 = vld [vmem:[%s11031_s8 + $0x10] sm:$0xff]  ;;  %v4984_v19 = vmul.f32 %v8402_v24, %v11092_v16 }
 0x3e1   : > { %v2400_v18 = vmul.f32 %v11083_v2, %v2384_v36  ;;  %v5965_v36 = vadd.s32 4294967288, %v5960_v43 }
 0x3e2   : > { %5280 = vadd.xlane.f32.xlu0 %v4963_v42 }
 0x3e4   : > { %5246 = vadd.xlane.f32.xlu1 %v4946_v48  ;;  %v8327_v48 = vunpack.c.h.bf16 %v11004_v45  ;;  %v11122_v45 = vld [vmem:[%s10179_s1 + $0x160] sm:$0xff]  }
 0x3e5   : > { %v2417_v46 = vpop.xlane.xlu1 %2416  ;;  %v8414_v33 = vunpack.c.l.bf16 %v11122_v45 }
 0x3e6   : > { %v11059_v15 = vadd.f32 %v2417_v46, %v2399_v14  ;;  %5320 = vadd.xlane.f32.xlu0 %v4983_v12  ;;  %v2386_v14 = vld [vmem:[%s11031_s8 + $0x20] sm:$0xff]  ;;  %v11110_v12 = vpop.eup %9223  ;;  %v2387_v46 = vld [vmem:[%s11031_s8 + $0x28] sm:$0xff]  ;;  %v4947_v11 = vmul.f32 %v8327_v48, %v11018_v29  ;;  %v11149_v48 = vld [vmem:[%s10179_s1 + $0xb8] sm:$0xff]  }
 0x3e7   : > { %v2415_v31 = vpop.xlane.xlu0 %2414 }
 0x3e8   : > { %2480 = vst.msk [vmem:[%s11031_s8 + $0x8] sm:$0xff] %vm2462_vm4, %v11059_v15  ;;  %v11077_v30 = vadd.f32 %v2415_v31, %v2398_v59  ;;  %5282 = vadd.xlane.f32.xlu1 %v4964_v26  ;;  %v8406_v59 = vunpack.c.l.bf16 %v11100_v52  ;;  %v11126_v26 = vrot.slane %v11097_v62, %v10677_v9 }
 0x3ea   : > { %2479 = vst.msk [vmem:[%s11031_s8] sm:$0xff] %vm2462_vm4, %v11077_v30  ;;  %5236 = vadd.xlane.f32.xlu0 %v4941_v40  ;;  %v2402_v40 = vmul.f32 %v11106_v27, %v2386_v14  ;;  %v4986_v29 = vmul.f32 %v8406_v59, %v11119_v13  ;;  %v11154_v14 = vsub.s32 %v5960_v43, %v10672_v20  ;;  %v8367_v59 = vunpack.c.h.bf16 %v11043_v5  ;;  %v11178_v5 = vld [vmem:[%s10179_s1 + $0x108] sm:$0xff]  }
 0x3eb   : > { %v2421_v42 = vpop.xlane.xlu0 %2420  ;;  %v8330_v43 = vunpack.c.l.bf16 %v11149_v48 }
 0x3ec   : > { %v11102_v50 = vadd.f32 %v2421_v42, %v2401_v55  ;;  %5286 = vadd.xlane.f32.xlu1 %v4966_v38  ;;  %v8363_v55 = vunpack.c.h.bf16 %v11021_v37  ;;  %v2403_v38 = vmul.f32 %v11110_v12, %v2387_v46  ;;  %v3624_v42 = vcombine.high %v10986_v54, %v10986_v54 }
 0x3ed   : > { %v5191_v10 = vpop.xlane.xlu1 %5190  ;;  %v11146_v37 = vrot.slane %v11126_v26, %v10685_v35 }
 0x3ee   : > { %2482 = vst.msk [vmem:[%s11031_s8 + $0x18] sm:$0xff] %vm2462_vm4, %v11102_v50  ;;  %5244 = vadd.xlane.f32.xlu0 %v4945_v6  ;;  %v4965_v46 = vmul.f32 %v8363_v55, %v11036_v25  ;;  %v11175_v25 = vrot.slane %v3624_v42, %v10685_v35  ;;  %v6038_v55 = vrot.slane %v5191_v10, %v11154_v14  ;;  %v8370_v42 = vunpack.c.l.bf16 %v11178_v5 }
 0x3ef   : > { %v2419_v44 = vpop.xlane.xlu0 %2418 }
 0x3f0   : > { %v11129_v31 = vadd.f32 %v2419_v44, %v2400_v18  ;;  %5322 = vadd.xlane.f32.xlu1 %v4984_v19  ;;  %v3689_v18 = vcombine.high %v11025_v56, %v11025_v56  ;;  %v2235_v44 = vmul.f32 1.442695, %v14180_v23  ;;  %v11167_v56 = vsub.s32 %v5965_v36, %v10672_v20 }
 0x3f1   : > { %v2423_v24 = vpop.xlane.xlu1 %2422  ;;  %v8403_v36 = vunpack.c.h.bf16 %v11067_v47  ;;  %v11202_v47 = vrot.slane %v3674_v4, %v10677_v9  ;;  %v8407_v23 = vunpack.c.h.bf16 %v11100_v52 }
 0x3f2   : > { %14178 = vst [vmem:[#allocation37_spill] sm:$0xff] %v11129_v31  ;;  %2481 = vst.msk [vmem:[%s11031_s8 + $0x10] sm:$0xff] %vm2462_vm4, %v11129_v31  ;;  %v11141_v6 = vadd.f32 %v2423_v24, %v2402_v40  ;;  %5248 = vadd.xlane.f32.xlu0 %v4947_v11  ;;  %v4990_v11 = vmul.f32 %v8414_v33, %v11146_v37  ;;  %v11181_v57 = vrot.slane %v3689_v18, %v10677_v9 }
 0x3f3   : > { %v2425_v54 = vpop.xlane.xlu0 %2424  ;;  %9225 = vpow2.f32 %v2235_v44  ;;  %v4948_v18 = vmul.f32 %v8330_v43, %v11175_v25 }
 0x3f4   : > { %14179 = vst [vmem:[#allocation38_spill] sm:$0xff] %v11141_v6  ;;  %2483 = vst.msk [vmem:[%s11031_s8 + $0x20] sm:$0xff] %vm2462_vm4, %v11141_v6  ;;  %v11159_v19 = vadd.f32 %v2425_v54, %v2403_v38  ;;  %5326 = vadd.xlane.f32.xlu1 %v4986_v29  ;;  %v4967_v38 = vmul.f32 %v8367_v59, %v11064_v63  ;;  %v3719_v29 = vcombine.high %v11047_v21, %v11047_v21  ;;  %v11199_v63 = vld [vmem:[%s10179_s1 + $0x110] sm:$0xff]  }
 0x3f5   : > { %v5161_v40 = vpop.xlane.xlu1 %5160  ;;  %v11196_v10 = vrot.slane %v11181_v57, %v10685_v35  ;;  %v4985_v59 = vmul.f32 %v8403_v36, %v11092_v16  ;;  %v8374_v43 = vunpack.c.l.bf16 %v11199_v63  ;;  %v11221_v16 = vrot.slane %v11202_v47, %v10677_v9 }
 0x3f6   : > { %2484 = vst.msk [vmem:[%s11031_s8 + $0x28] sm:$0xff] %vm2462_vm4, %v11159_v19  ;;  %5284 = vadd.xlane.f32.xlu0 %v4965_v46  ;;  %v5969_v46 = vrot.slane %v5161_v40, %v11167_v56  ;;  %v11217_v40 = vld [vmem:[%s10179_s1 + $0x120] sm:$0xff]   ;;  %v4987_v36 = vmul.f32 %v8407_v23, %v11119_v13  ;;  %v3739_v13 = vcombine.high %v11097_v62, %v11097_v62 }
 0x3f7   : > { %v5193_v20 = vpop.xlane.xlu0 %5192  ;;  %v4968_v4 = vmul.f32 %v8370_v42, %v11196_v10  ;;  %v3721_v31 = vcombine.high %v11181_v57, %v11181_v57 }
 0x3f8   : > { %v6042_v24 = vrot.slane %v5193_v20, %v11167_v56  ;;  %5334 = vadd.xlane.f32.xlu1 %v4990_v11  ;;  %v11214_v20 = vrot.slane %v3719_v29, %v10685_v35  ;;  %v8382_v29 = vunpack.c.l.bf16 %v11217_v40 }
 0x3f9   : > { %v5195_v33 = vpop.xlane.xlu1 %5194 }
 0x3fa   : > { %v6043_v32 = vsel %vm5970_vm5, %v6042_v24, %v6038_v55  ;;  %5288 = vadd.xlane.f32.xlu0 %v4967_v38  ;;  %v8415_v55 = vunpack.c.h.bf16 %v11122_v45  ;;  %v6047_v24 = vrot.slane %v5195_v33, %v11154_v14  ;;  %v11234_v45 = vrot.slane %v11221_v16, %v10685_v35  ;;  %v11237_v33 = vld [vmem:[%s10179_s1 + $0x158] sm:$0xff]  }
 0x3fb   : > { %v5159_v54 = vpop.xlane.xlu0 %5158 }
 0x3fc   : > { %v5964_v21 = vrot.slane %v5159_v54, %v11154_v14  ;;  %5250 = vadd.xlane.f32.xlu1 %v4948_v18  ;;  %v3770_v18 = vcombine.high %v11070_v1, %v11070_v1 }
 0x3fd   : > { %v5199_v44 = vpop.xlane.xlu1 %5198 }
 0x3fe   : > { %v11210_v11 = vsel %vm5970_vm5, %v5969_v46, %v5964_v21  ;;  %5324 = vadd.xlane.f32.xlu0 %v4985_v59  ;;  %v4970_v46 = vmul.f32 %v8374_v43, %v11214_v20  ;;  %v6056_v1 = vrot.slane %v5199_v44, %v11154_v14  ;;  %v4991_v43 = vmul.f32 %v8415_v55, %v11146_v37 }
 0x3ff   : > { %v5197_v52 = vpop.xlane.xlu0 %5196  ;;  %v11254_v44 = vrot.slane %v3770_v18, %v10685_v35  ;;  %v14181_v37 = vsub.f32 %v10519_v41, %v10539_v51  ;;  %v8331_v18 = vunpack.c.h.bf16 %v11149_v48  ;;  %v3769_v51 = vcombine.high %v11126_v26, %v11126_v26 }
 0x400   : > { %v6051_v38 = vrot.slane %v5197_v52, %v11167_v56  ;;  %5290 = vadd.xlane.f32.xlu1 %v4968_v4  ;;  %v8410_v52 = vunpack.c.l.bf16 %v11237_v33 }
 0x401   : > { %v5207_v42 = vpop.xlane.xlu1 %5206  ;;  %v2233_v55 = vmul.f32 1.442695, %v14181_v37 }
 0x402   : > { %v6052_v54 = vsel %vm5970_vm5, %v6051_v38, %v6047_v24  ;;  %5328 = vadd.xlane.f32.xlu0 %v4987_v36  ;;  %v11248_v24 = vpop.eup %9225  ;;  %v2389_v38 = vld [vmem:[%s11031_s8 + $0x38] sm:$0xff]  ;;  %v11257_v36 = vld [vmem:[%s10179_s1 + $0x168] sm:$0xff]  }
 0x403   : > { %v7129_v21 = vsel %vm7115_vm6, %v6052_v54, %v6043_v32  ;;  %v5201_v59 = vpop.xlane.xlu0 %5200  ;;  %v4974_v32 = vmul.f32 %v8382_v29, %v11234_v45  ;;  %v11260_v54 = vrot.slane %v3739_v13, %v10677_v9  ;;  %v6074_v29 = vrot.slane %v5207_v42, %v11154_v14 }
 0x404   : > { %v6060_v23 = vrot.slane %v5201_v59, %v11167_v56  ;;  %5294 = vadd.xlane.f32.xlu1 %v4970_v46  ;;  %v2405_v13 = vmul.f32 %v11248_v24, %v2389_v38  ;;  %v8418_v41 = vunpack.c.l.bf16 %v11257_v36  ;;  %v4988_v42 = vmul.f32 %v8410_v52, %v11254_v44 }
 0x405   : > { %v11245_v4 = vpop.xlane.xlu1 %5166  ;;  %v11284_v48 = vrot.slane %v11260_v54, %v10685_v35  ;;  %9227 = vpow2.f32 %v2233_v55  ;;  %v4949_v38 = vmul.f32 %v8331_v18, %v11175_v25  ;;  %v8371_v52 = vunpack.c.h.bf16 %v11178_v5  ;;  %v11312_v18 = vld [vmem:[%s10179_s1 + $0x1c0] sm:$0xff]  }
 0x406   : > { %v6061_v62 = vsel %vm5970_vm5, %v6060_v23, %v6056_v1  ;;  %5336 = vadd.xlane.f32.xlu0 %v4991_v43  ;;  %v11288_v43 = vrot.slane %v10759_v60, %v10677_v9 }
 0x407   : > { %v11266_v46 = vsel %vm7117_vm7, %v6061_v62, %v7129_v21  ;;  %v5209_v59 = vpop.xlane.xlu0 %5208  ;;  %v4969_v5 = vmul.f32 %v8371_v52, %v11196_v10 }
 0x408   : > { %v6078_v1 = vrot.slane %v5209_v59, %v11167_v56  ;;  %5302 = vadd.xlane.f32.xlu1 %v4974_v32  ;;  %v11291_v32 = vld [vmem:[%s10179_s1 + $0x170] sm:$0xff]   ;;  %v4992_v59 = vmul.f32 %v8418_v41, %v11284_v48 }
 0x409   : > { %v11271_v23 = vpop.xlane.xlu1 %5174  ;;  %v8422_v55 = vunpack.c.l.bf16 %v11291_v32 }
 0x40a   : > { %v11278_v21 = vsel %vm5970_vm5, %v6078_v1, %v6074_v29  ;;  %2436 = vadd.xlane.f32.xlu0 %v10789_v49  ;;  %v11305_v29 = vrot.slane %v3769_v51, %v10685_v35  ;;  %v11309_v1 = vrot.slane %v11288_v43, %v10677_v9  ;;  %v8462_v51 = vunpack.c.l.bf16 %v11312_v18 }
 0x40b   : > { %v2429_v62 = vpop.xlane.xlu0 %2428 }
 0x40c   : > { %v11293_v26 = vadd.f32 %v2429_v62, %v2405_v13  ;;  %5330 = vadd.xlane.f32.xlu1 %v4988_v42  ;;  %v8375_v13 = vunpack.c.h.bf16 %v11199_v63  ;;  %v4994_v41 = vmul.f32 %v8422_v55, %v11305_v29  ;;  %v11322_v62 = vrot.slane %v11309_v1, %v10685_v35 }
 0x40d   : > { %v11297_v37 = vpop.xlane.xlu1 %5202  ;;  %v8383_v63 = vunpack.c.h.bf16 %v11217_v40 }
 0x40e   : > { %14182 = vst [vmem:[#allocation39_spill] sm:$0xff] %v11293_v26  ;;  %2486 = vst.msk [vmem:[%s11031_s8 + $0x38] sm:$0xff] %vm2462_vm4, %v11293_v26  ;;  %5252 = vadd.xlane.f32.xlu0 %v4949_v38  ;;  %v4971_v10 = vmul.f32 %v8375_v13, %v11214_v20  ;;  %v11357_v26 = vld [vmem:[%s10179_s1 + $0x128] sm:$0xff]  }
 0x40f   : > { %v5163_v25 = vpop.xlane.xlu0 %5162  ;;  %v4975_v57 = vmul.f32 %v8383_v63, %v11234_v45 }
 0x410   : > { %5338 = vadd.xlane.f32.xlu1 %v4992_v59  ;;  %v5975_v6 = vrot.slane %v5163_v25, %v11154_v14  ;;  %v3690_v25 = vcombine.high %v11202_v47, %v11202_v47  ;;  %v8411_v47 = vunpack.c.h.bf16 %v11237_v33 }
 0x411   : > { %v11316_v42 = vpop.xlane.xlu1 %5210 }
 0x412   : > { %5292 = vadd.xlane.f32.xlu0 %v4969_v5  ;;  %v5014_v5 = vmul.f32 %v8462_v51, %v11322_v62  ;;  %v11341_v40 = vpop.eup %9227 }
 0x413   : > { %v5165_v38 = vpop.xlane.xlu0 %5164 }
 0x414   : > { %v5979_v59 = vrot.slane %v5165_v38, %v11167_v56  ;;  %5342 = vadd.xlane.f32.xlu1 %v4994_v41  ;;  %v11339_v41 = vld [vmem:[%s10179_s1 + $0x118] sm:$0xff]   ;;  %v2388_v38 = vld [vmem:[%s11031_s8 + $0x30] sm:$0xff] }
 0x415   : > { %v11328_v52 = vpop.xlane.xlu1 %5214  ;;  %v2404_v63 = vmul.f32 %v11341_v40, %v2388_v38 }
 0x416   : > { %v5980_v55 = vsel %vm5970_vm5, %v5979_v59, %v5975_v6  ;;  %5296 = vadd.xlane.f32.xlu0 %v4971_v10  ;;  %v5984_v6 = vrot.slane %v11245_v4, %v11154_v14  ;;  %v8378_v10 = vunpack.c.l.bf16 %v11339_v41  ;;  %v11360_v4 = vrot.slane %v3690_v25, %v10677_v9 }
 0x417   : > { %v7116_v20 = vsel %vm7115_vm6, %v5980_v55, %v11210_v11  ;;  %v5169_v13 = vpop.xlane.xlu0 %5168  ;;  %v11354_v55 = vrot.slane %v3721_v31, %v10685_v35  ;;  %v4989_v31 = vmul.f32 %v8411_v47, %v11254_v44  ;;  %v8419_v25 = vunpack.c.h.bf16 %v11257_v36  ;;  %v11386_v44 = vld [vmem:[%s10179_s1 + $0x130] sm:$0xff]  }
 0x418   : > { %v5988_v51 = vrot.slane %v5169_v13, %v11167_v56  ;;  %5382 = vadd.xlane.f32.xlu1 %v5014_v5  ;;  %v6002_v5 = vrot.slane %v11271_v23, %v11154_v14  ;;  %v8423_v47 = vunpack.c.h.bf16 %v11291_v32  ;;  %v3771_v32 = vcombine.high %v11260_v54, %v11260_v54 }
 0x419   : > { %v11349_v59 = vpop.xlane.xlu1 %5254  ;;  %v4972_v23 = vmul.f32 %v8378_v10, %v11354_v55  ;;  %v4993_v10 = vmul.f32 %v8419_v25, %v11284_v48  ;;  %v11411_v48 = vrot.slane %v10751_v3, %v10677_v9 }
 0x41a   : > { %v5989_v11 = vsel %vm5970_vm5, %v5988_v51, %v5984_v6  ;;  %5304 = vadd.xlane.f32.xlu0 %v4975_v57  ;;  %v3720_v51 = vcombine.high %v11221_v16, %v11221_v16  ;;  %v6065_v16 = vrot.slane %v11297_v37, %v11154_v14  ;;  %v4995_v54 = vmul.f32 %v8423_v47, %v11305_v29 }
 0x41b   : > { %v11363_v45 = vsel %vm7117_vm7, %v5989_v11, %v7116_v20  ;;  %v5177_v33 = vpop.xlane.xlu0 %5176  ;;  %v8386_v20 = vunpack.c.l.bf16 %v11357_v26  ;;  %v11383_v11 = vrot.slane %v11360_v4, %v10685_v35  ;;  %v3836_v47 = vcombine.high %v11288_v43, %v11288_v43 }
 0x41c   : > { %v6006_v13 = vrot.slane %v5177_v33, %v11167_v56  ;;  %2434 = vadd.xlane.f32.xlu1 %v10782_v22 }
 0x41d   : > { %v2427_v6 = vpop.xlane.xlu1 %2426  ;;  %v4976_v37 = vmul.f32 %v8386_v20, %v11383_v11  ;;  %v6083_v20 = vrot.slane %v11316_v42, %v11154_v14  ;;  %v11431_v42 = vld [vmem:[%s10179_s1 + $0x180] sm:$0xff]  }
 0x41e   : > { %v11376_v57 = vsel %vm5970_vm5, %v6006_v13, %v6002_v5  ;;  %v11378_v38 = vadd.f32 %v2427_v6, %v2404_v63  ;;  %5332 = vadd.xlane.f32.xlu0 %v4989_v31  ;;  %v8390_v5 = vunpack.c.l.bf16 %v11386_v44  ;;  %v11404_v31 = vrot.slane %v3720_v51, %v10685_v35  ;;  %v11407_v6 = vld [vmem:[%s10179_s1 + $0x178] sm:$0xff]  }
 0x41f   : > { %v5205_v36 = vpop.xlane.xlu0 %5204 }
 0x420   : > { %2485 = vst.msk [vmem:[%s11031_s8 + $0x30] sm:$0xff] %vm2462_vm4, %v11378_v38  ;;  %v6069_v33 = vrot.slane %v5205_v36, %v11167_v56  ;;  %5298 = vadd.xlane.f32.xlu1 %v4972_v23  ;;  %v8463_v36 = vunpack.c.h.bf16 %v11312_v18  ;;  %v4978_v18 = vmul.f32 %v8390_v5, %v11404_v31 }
 0x421   : > { %v11396_v63 = vpop.xlane.xlu1 %5170 }
 0x422   : > { %v6070_v13 = vsel %vm5970_vm5, %v6069_v33, %v6065_v16  ;;  %5340 = vadd.xlane.f32.xlu0 %v4993_v10  ;;  %v8426_v10 = vunpack.c.l.bf16 %v11407_v6  ;;  %v5015_v5 = vmul.f32 %v8463_v36, %v11322_v62  ;;  %v11458_v62 = vrot.slane %v3836_v47, %v10677_v9 }
 0x423   : > { %v7131_v25 = vsel %vm7119_vm8, %v6070_v13, %v11266_v46  ;;  %v5213_v23 = vpop.xlane.xlu0 %5212  ;;  %v11426_v46 = vrot.slane %v3771_v32, %v10685_v35  ;;  %v6092_v32 = vrot.slane %v11328_v52, %v11154_v14 }
 0x424   : > { %v7132_v51 = vsel %vm7121_vm9, %v11278_v21, %v7131_v25  ;;  %v6087_v16 = vrot.slane %v5213_v23, %v11167_v56  ;;  %5306 = vadd.xlane.f32.xlu1 %v4976_v37  ;;  %v11435_v21 = vrot.slane %v11411_v48, %v10677_v9  ;;  %v8379_v23 = vunpack.c.h.bf16 %v11339_v41 }
 0x425   : > { %v11422_v33 = vpop.xlane.xlu1 %5178  ;;  %v3821_v41 = vcombine.high %v10759_v60, %v10759_v60  ;;  %v3866_v60 = vcombine.high %v11309_v1, %v11309_v1  ;;  %v5993_v1 = vrot.slane %v11396_v63, %v11154_v14  ;;  %v11503_v63 = vld [vmem:[%s10179_s1 + $0x1e0] sm:$0xff]  }
 0x426   : > { %v6088_v29 = vsel %vm5970_vm5, %v6087_v16, %v6083_v20  ;;  %5344 = vadd.xlane.f32.xlu0 %v4995_v54  ;;  %v4996_v20 = vmul.f32 %v8426_v10, %v11426_v46  ;;  %v8430_v16 = vunpack.c.l.bf16 %v11431_v42  ;;  %v11452_v52 = vrot.slane %v11435_v21, %v10685_v35 }
 0x427   : > { %v7133_v13 = vsel %vm7123_vm10, %v6088_v29, %v7132_v51  ;;  %v5217_v37 = vpop.xlane.xlu0 %5216  ;;  %v11455_v51 = vld [vmem:[%s10179_s1 + $0x1c8] sm:$0xff]   ;;  %v6182_v29 = vrot.slane %v11349_v59, %v11154_v14 }
 0x428   : > { %v6096_v25 = vrot.slane %v5217_v37, %v11167_v56  ;;  %5310 = vadd.xlane.f32.xlu1 %v4978_v18  ;;  %v4973_v37 = vmul.f32 %v8379_v23, %v11354_v55  ;;  %v4998_v59 = vmul.f32 %v8430_v16, %v11452_v52  ;;  %v11484_v55 = vld [vmem:[%s10179_s1 + $0x1d0] sm:$0xff]   ;;  %v8391_v16 = vunpack.c.h.bf16 %v11386_v44 }
 0x429   : > { %v11445_v54 = vpop.xlane.xlu1 %5182 }
 0x42a   : > { %v6097_v43 = vsel %vm5970_vm5, %v6096_v25, %v6092_v32  ;;  %5384 = vadd.xlane.f32.xlu0 %v5015_v5  ;;  %v8387_v32 = vunpack.c.h.bf16 %v11357_v26  ;;  %v8466_v25 = vunpack.c.l.bf16 %v11455_v51  ;;  %v11481_v5 = vrot.slane %v11458_v62, %v10685_v35 }
 0x42b   : > { %v5257_v36 = vpop.xlane.xlu0 %5256  ;;  %v11463_v10 = vsel %vm7125_vm11, %v6097_v43, %v7133_v13  ;;  %v11487_v26 = vrot.slane %v3821_v41, %v10677_v9 }
 0x42c   : > { %v6186_v18 = vrot.slane %v5257_v36, %v11167_v56  ;;  %5346 = vadd.xlane.f32.xlu1 %v4996_v20  ;;  %v4977_v43 = vmul.f32 %v8387_v32, %v11383_v11  ;;  %v5016_v41 = vmul.f32 %v8466_v25, %v11481_v5  ;;  %v8427_v32 = vunpack.c.h.bf16 %v11407_v6 }
 0x42d   : > { %v11470_v47 = vpop.xlane.xlu1 %5218 }
 0x42e   : > { %v11476_v13 = vsel %vm5970_vm5, %v6186_v18, %v6182_v29  ;;  %5300 = vadd.xlane.f32.xlu0 %v4973_v37  ;;  %v8470_v29 = vunpack.c.l.bf16 %v11484_v55  ;;  %v11500_v37 = vrot.slane %v3866_v60, %v10685_v35 }
 0x42f   : > { %v5173_v23 = vpop.xlane.xlu0 %5172 }
 0x430   : > { %v5997_v20 = vrot.slane %v5173_v23, %v11167_v56  ;;  %5350 = vadd.xlane.f32.xlu1 %v4998_v59  ;;  %v11507_v59 = vrot.slane %v11487_v26, %v10677_v9  ;;  %v6011_v23 = vrot.slane %v11422_v33, %v11154_v14  ;;  %v5018_v33 = vmul.f32 %v8470_v29, %v11500_v37 }
 0x431   : > { %v11494_v36 = vpop.xlane.xlu1 %5222  ;;  %v4997_v29 = vmul.f32 %v8427_v32, %v11426_v46 }
 0x432   : > { %v5998_v18 = vsel %vm5970_vm5, %v5997_v20, %v5993_v1  ;;  %5308 = vadd.xlane.f32.xlu0 %v4977_v43  ;;  %v4979_v1 = vmul.f32 %v8391_v16, %v11404_v31  ;;  %v8478_v43 = vunpack.c.l.bf16 %v11503_v63  ;;  %v3787_v31 = vcombine.high %v11411_v48, %v11411_v48 }
 0x433   : > { %v7120_v11 = vsel %vm7119_vm8, %v5998_v18, %v11363_v45  ;;  %v5181_v44 = vpop.xlane.xlu0 %5180  ;;  %v3722_v45 = vcombine.high %v11360_v4, %v11360_v4  ;;  %v11530_v18 = vld [vmem:[%s10179_s1 + $0x138] sm:$0xff]   ;;  %v6020_v4 = vrot.slane %v11445_v54, %v11154_v14 }
 0x434   : > { %v7122_v25 = vsel %vm7121_vm9, %v11376_v57, %v7120_v11  ;;  %v6015_v60 = vrot.slane %v5181_v44, %v11167_v56  ;;  %5386 = vadd.xlane.f32.xlu1 %v5016_v41  ;;  %v11527_v57 = vrot.slane %v11507_v59, %v10685_v35  ;;  %v8431_v44 = vunpack.c.h.bf16 %v11431_v42 }
 0x435   : > { %v11518_v20 = vpop.xlane.xlu1 %5258  ;;  %v8394_v48 = vunpack.c.l.bf16 %v11530_v18  ;;  %v11555_v46 = vrot.slane %v3787_v31, %v10677_v9  ;;  %v6101_v42 = vrot.slane %v11470_v47, %v11154_v14 }
 0x436   : > { %v6016_v6 = vsel %vm5970_vm5, %v6015_v60, %v6011_v23  ;;  %5312 = vadd.xlane.f32.xlu0 %v4979_v1  ;;  %v14183_v23 = vsub.f32 %v10574_v7, %v10592_v17  ;;  %v3772_v7 = vcombine.high %v10751_v3, %v10751_v3  ;;  %v3817_v3 = vcombine.high %v11435_v21, %v11435_v21 }
 0x437   : > { %v7124_v16 = vsel %vm7123_vm10, %v6016_v6, %v7122_v25  ;;  %v5185_v41 = vpop.xlane.xlu0 %5184  ;;  %v11547_v25 = vrot.slane %v3722_v45, %v10685_v35  ;;  %v5022_v6 = vmul.f32 %v8478_v43, %v11527_v57  ;;  %v4999_v45 = vmul.f32 %v8431_v44, %v11452_v52  ;;  %v11576_v52 = vld [vmem:[%s10179_s1 + $0x190] sm:$0xff]  }
 0x438   : > { %v6024_v11 = vrot.slane %v5185_v41, %v11167_v56  ;;  %5390 = vadd.xlane.f32.xlu1 %v5018_v33  ;;  %v2239_v60 = vmul.f32 1.442695, %v14183_v23  ;;  %v11552_v33 = vld [vmem:[%s10179_s1 + $0x188] sm:$0xff]   ;;  %v8467_v43 = vunpack.c.h.bf16 %v11455_v51  ;;  %v11579_v51 = vrot.slane %v3772_v7, %v10677_v9 }
 0x439   : > { %v11543_v1 = vpop.xlane.xlu1 %5262  ;;  %v8434_v31 = vunpack.c.l.bf16 %v11552_v33  ;;  %v4980_v47 = vmul.f32 %v8394_v48, %v11547_v25  ;;  %v8471_v44 = vunpack.c.h.bf16 %v11484_v55  ;;  %v6110_v23 = vrot.slane %v11494_v36, %v11154_v14 }
 0x43a   : > { %v6025_v54 = vsel %vm5970_vm5, %v6024_v11, %v6020_v4  ;;  %5348 = vadd.xlane.f32.xlu0 %v4997_v29  ;;  %9229 = vpow2.f32 %v2239_v60  ;;  %v11573_v11 = vrot.slane %v11555_v46, %v10685_v35  ;;  %v5017_v48 = vmul.f32 %v8467_v43, %v11481_v5 }
 0x43b   : > { %v5221_v17 = vpop.xlane.xlu0 %5220  ;;  %v11601_v36 = vrot.slane %v3817_v3, %v10685_v35  ;;  %v11608_v5 = vrot.slane %v11579_v51, %v10677_v9  ;;  %v8479_v43 = vunpack.c.h.bf16 %v11503_v63  ;;  %v3837_v63 = vcombine.high %v11487_v26, %v11487_v26 }
 0x43c   : > { %v6105_v32 = vrot.slane %v5221_v17, %v11167_v56  ;;  %5398 = vadd.xlane.f32.xlu1 %v5022_v6  ;;  %v11591_v6 = vsel %vm7125_vm11, %v6025_v54, %v7124_v16  ;;  %v8438_v17 = vunpack.c.l.bf16 %v11576_v52  ;;  %v6191_v54 = vrot.slane %v11518_v20, %v11154_v14 }
 0x43d   : > { %v11564_v41 = vpop.xlane.xlu1 %5270  ;;  %v11624_v20 = vrot.slane %v11608_v5, %v10685_v35 }
 0x43e   : > { %v6106_v4 = vsel %vm5970_vm5, %v6105_v32, %v6101_v42  ;;  %5352 = vadd.xlane.f32.xlu0 %v4999_v45  ;;  %v11604_v42 = vld [vmem:[%s10179_s1 + $0x1a0] sm:$0xff]   ;;  %v5019_v45 = vmul.f32 %v8471_v44, %v11500_v37  ;;  %v11627_v37 = vld [vmem:[%s10179_s1 + $0x1d8] sm:$0xff]  }
 0x43f   : > { %v5225_v29 = vpop.xlane.xlu0 %5224  ;;  %v11584_v21 = vsel %vm7127_vm12, %v6106_v4, %v11463_v10  ;;  %v5000_v10 = vmul.f32 %v8434_v31, %v11573_v11  ;;  %v8446_v3 = vunpack.c.l.bf16 %v11604_v42  ;;  %v3868_v4 = vcombine.high %v11458_v62, %v11458_v62 }
 0x440   : > { %14184 = vst [vmem:[#allocation40_spill] sm:$0xff] %v11584_v21  ;;  %v6114_v60 = vrot.slane %v5225_v29, %v11167_v56  ;;  %5314 = vadd.xlane.f32.xlu1 %v4980_v47  ;;  %v5002_v29 = vmul.f32 %v8438_v17, %v11601_v36 }
 0x441   : > { %v11593_v7 = vpop.xlane.xlu1 %5186 }
 0x442   : > { %v11597_v55 = vsel %vm5970_vm5, %v6114_v60, %v6110_v23  ;;  %5388 = vadd.xlane.f32.xlu0 %v5017_v48  ;;  %v6200_v23 = vrot.slane %v11543_v1, %v11154_v14  ;;  %v5023_v48 = vmul.f32 %v8479_v43, %v11527_v57  ;;  %v11649_v1 = vld [vmem:[%s10179_s1 + $0x1e8] sm:$0xff]   ;;  %v14185_v57 = vsub.f32 %v10545_v53, %v10564_v0 }
 0x443   : > { %v5261_v16 = vpop.xlane.xlu0 %5260  ;;  %v8482_v53 = vunpack.c.l.bf16 %v11649_v1  ;;  %v3867_v0 = vcombine.high %v11507_v59, %v11507_v59 }
 0x444   : > { %v6195_v32 = vrot.slane %v5261_v16, %v11167_v56  ;;  %5354 = vadd.xlane.f32.xlu1 %v5000_v10  ;;  %v8474_v10 = vunpack.c.l.bf16 %v11627_v37  ;;  %v2237_v43 = vmul.f32 1.442695, %v14185_v57 }
 0x445   : > { %v11615_v31 = vpop.xlane.xlu1 %5226 }
 0x446   : > { %v6196_v47 = vsel %vm5970_vm5, %v6195_v32, %v6191_v54  ;;  %5392 = vadd.xlane.f32.xlu0 %v5019_v45  ;;  %v2391_v54 = vld [vmem:[%s11031_s8 + $0x48] sm:$0xff]  ;;  %v11646_v32 = vrot.slane %v3868_v4, %v10685_v35  ;;  %v11652_v45 = vrot.slane %v3837_v63, %v10677_v9  ;;  %9231 = vpow2.f32 %v2237_v43 }
 0x447   : > { %v7143_v44 = vsel %vm7115_vm6, %v6196_v47, %v11476_v13  ;;  %v5265_v62 = vpop.xlane.xlu0 %5264  ;;  %v11640_v16 = vpop.eup %9229  ;;  %v5006_v13 = vmul.f32 %v8446_v3, %v11624_v20  ;;  %v6218_v3 = vrot.slane %v11564_v41, %v11154_v14 }
 0x448   : > { %v6204_v60 = vrot.slane %v5265_v62, %v11167_v56  ;;  %5358 = vadd.xlane.f32.xlu1 %v5002_v29  ;;  %v8395_v62 = vunpack.c.h.bf16 %v11530_v18  ;;  %v2407_v63 = vmul.f32 %v11640_v16, %v2391_v54  ;;  %v5020_v41 = vmul.f32 %v8474_v10, %v11646_v32 }
 0x449   : > { %v11637_v17 = vpop.xlane.xlu1 %5230  ;;  %v11677_v18 = vrot.slane %v11652_v45, %v10685_v35  ;;  %v8435_v10 = vunpack.c.h.bf16 %v11552_v33  ;;  %v6029_v33 = vrot.slane %v11593_v7, %v11154_v14 }
 0x44a   : > { %v6205_v26 = vsel %vm5970_vm5, %v6204_v60, %v6200_v23  ;;  %5400 = vadd.xlane.f32.xlu0 %v5023_v48  ;;  %v11681_v60 = vrot.slane %v10773_v39, %v10677_v9 }
 0x44b   : > { %v11658_v47 = vsel %vm7117_vm7, %v6205_v26, %v7143_v44  ;;  %v5273_v29 = vpop.xlane.xlu0 %5272  ;;  %v11684_v26 = vld [vmem:[%s10179_s1 + $0x1f0] sm:$0xff]   ;;  %v5024_v57 = vmul.f32 %v8482_v53, %v11677_v18  ;;  %v8439_v53 = vunpack.c.h.bf16 %v11576_v52 }
 0x44c   : > { %v6222_v4 = vrot.slane %v5273_v29, %v11167_v56  ;;  %5366 = vadd.xlane.f32.xlu1 %v5006_v13  ;;  %v4981_v13 = vmul.f32 %v8395_v62, %v11547_v25  ;;  %v8486_v43 = vunpack.c.l.bf16 %v11684_v26  ;;  %v11698_v29 = vrot.slane %v3867_v0, %v10685_v35 }
 0x44d   : > { %v11664_v23 = vpop.xlane.xlu1 %5238 }
 0x44e   : > { %v11671_v44 = vsel %vm5970_vm5, %v6222_v4, %v6218_v3  ;;  %2440 = vadd.xlane.f32.xlu0 %v10806_v34  ;;  %v11702_v3 = vrot.slane %v11681_v60, %v10677_v9  ;;  %v11705_v4 = vld [vmem:[%s10179_s1 + $0x240] sm:$0xff]  }
 0x44f   : > { %v2433_v48 = vpop.xlane.xlu0 %2432 }
 0x450   : > { %v11686_v59 = vadd.f32 %v2433_v48, %v2407_v63  ;;  %5394 = vadd.xlane.f32.xlu1 %v5020_v41  ;;  %v5001_v63 = vmul.f32 %v8435_v10, %v11573_v11  ;;  %v5026_v48 = vmul.f32 %v8486_v43, %v11698_v29  ;;  %v11719_v21 = vrot.slane %v11702_v3, %v10685_v35 }
 0x451   : > { %v11690_v54 = vpop.xlane.xlu1 %5266  ;;  %v6119_v11 = vrot.slane %v11615_v31, %v11154_v14  ;;  %v5003_v10 = vmul.f32 %v8439_v53, %v11601_v36  ;;  %v3788_v31 = vcombine.high %v11579_v51, %v11579_v51  ;;  %v11738_v53 = vld [vmem:[%s10179_s1 + $0x198] sm:$0xff]   ;;  %v2390_v51 = vld [vmem:[%s11031_s8 + $0x40] sm:$0xff] }
 0x452   : > { %2488 = vst.msk [vmem:[%s11031_s8 + $0x48] sm:$0xff] %vm2462_vm4, %v11686_v59  ;;  %5316 = vadd.xlane.f32.xlu0 %v4981_v13  ;;  %v8526_v13 = vunpack.c.l.bf16 %v11705_v4 }
 0x453   : > { %v5189_v25 = vpop.xlane.xlu0 %5188 }
 0x454   : > { %v6033_v62 = vrot.slane %v5189_v25, %v11167_v56  ;;  %5402 = vadd.xlane.f32.xlu1 %v5024_v57  ;;  %v8447_v57 = vunpack.c.h.bf16 %v11604_v42  ;;  %v8475_v42 = vunpack.c.h.bf16 %v11627_v37 }
 0x455   : > { %v11712_v41 = vpop.xlane.xlu1 %5274 }
 0x456   : > { %v6034_v0 = vsel %vm5970_vm5, %v6033_v62, %v6029_v33  ;;  %5356 = vadd.xlane.f32.xlu0 %v5001_v63  ;;  %v5046_v33 = vmul.f32 %v8526_v13, %v11719_v21  ;;  %v3819_v62 = vcombine.high %v11555_v46, %v11555_v46  ;;  %v6128_v13 = vrot.slane %v11637_v17, %v11154_v14  ;;  %v11759_v17 = vld [vmem:[%s10179_s1 + $0x1a8] sm:$0xff]  }
 0x457   : > { %v5229_v7 = vpop.xlane.xlu0 %5228  ;;  %v5007_v46 = vmul.f32 %v8447_v57, %v11624_v20  ;;  %v6146_v57 = vrot.slane %v11664_v23, %v11154_v14 }
 0x458   : > { %v6123_v52 = vrot.slane %v5229_v7, %v11167_v56  ;;  %5406 = vadd.xlane.f32.xlu1 %v5026_v48  ;;  %v11740_v48 = vpop.eup %9231 }
 0x459   : > { %v11726_v43 = vpop.xlane.xlu1 %5278 }
 0x45a   : > { %v6124_v25 = vsel %vm5970_vm5, %v6123_v52, %v6119_v11  ;;  %5360 = vadd.xlane.f32.xlu0 %v5003_v10  ;;  %v8442_v52 = vunpack.c.l.bf16 %v11738_v53  ;;  %v11756_v10 = vrot.slane %v3819_v62, %v10685_v35  ;;  %v14187_v62 = vld [vmem:[#allocation34_spill] sm:$0xff] }
 0x45b   : > { %v7136_v63 = vsel %vm7115_vm6, %v6124_v25, %v11597_v55  ;;  %v5233_v36 = vpop.xlane.xlu0 %5232  ;;  %v11749_v55 = vsel %vm7127_vm12, %v6034_v0, %v11591_v6  ;;  %v11762_v25 = vrot.slane %v3788_v31, %v10677_v9  ;;  %v2406_v0 = vmul.f32 %v11740_v48, %v2390_v51 }
 0x45c   : > { %v6132_v7 = vrot.slane %v5233_v36, %v11167_v56  ;;  %5446 = vadd.xlane.f32.xlu1 %v5046_v33  ;;  %14186 = vst [vmem:[#allocation41_spill] sm:$0xff] %v11749_v55  ;;  %v5021_v36 = vmul.f32 %v8475_v42, %v11646_v32  ;;  %v8483_v31 = vunpack.c.h.bf16 %v11649_v1  ;;  %v5004_v23 = vmul.f32 %v8442_v52, %v11756_v10  ;;  %v11788_v32 = vld [vmem:[%s10179_s1 + $0x1b0] sm:$0xff]  }
 0x45d   : > { %v11751_v11 = vpop.xlane.xlu1 %5318  ;;  %v6209_v42 = vrot.slane %v11690_v54, %v11154_v14  ;;  %v8487_v52 = vunpack.c.h.bf16 %v11684_v26 }
 0x45e   : > { %v6133_v37 = vsel %vm5970_vm5, %v6132_v7, %v6128_v13  ;;  %5368 = vadd.xlane.f32.xlu0 %v5007_v46  ;;  %v3818_v7 = vcombine.high %v11608_v5, %v11608_v5 }
 0x45f   : > { %v11765_v20 = vsel %vm7117_vm7, %v6133_v37, %v7136_v63  ;;  %v5241_v6 = vpop.xlane.xlu0 %5240  ;;  %v8450_v63 = vunpack.c.l.bf16 %v11759_v17  ;;  %v11785_v37 = vrot.slane %v11762_v25, %v10685_v35 }
 0x460   : > { %v6150_v33 = vrot.slane %v5241_v6, %v11167_v56  ;;  %2438 = vadd.xlane.f32.xlu1 %v14187_v62  ;;  %v5025_v6 = vmul.f32 %v8483_v31, %v11677_v18  ;;  %v11813_v18 = vrot.slane %v10764_v61, %v10677_v9 }
 0x461   : > { %v2431_v13 = vpop.xlane.xlu1 %2430  ;;  %v5008_v54 = vmul.f32 %v8450_v63, %v11785_v37 }
 0x462   : > { %v11778_v46 = vsel %vm5970_vm5, %v6150_v33, %v6146_v57  ;;  %v11780_v51 = vadd.f32 %v2431_v13, %v2406_v0  ;;  %5396 = vadd.xlane.f32.xlu0 %v5021_v36  ;;  %v8454_v57 = vunpack.c.l.bf16 %v11788_v32  ;;  %v3869_v33 = vcombine.high %v11652_v45, %v11652_v45 }
 0x463   : > { %v5269_v1 = vpop.xlane.xlu0 %5268  ;;  %v11806_v13 = vrot.slane %v3818_v7, %v10685_v35  ;;  %v8527_v45 = vunpack.c.h.bf16 %v11705_v4 }
 0x464   : > { %14188 = vst [vmem:[#allocation34_spill] sm:$0xff] %v11780_v51  ;;  %2487 = vst.msk [vmem:[%s11031_s8 + $0x40] sm:$0xff] %vm2462_vm4, %v11780_v51  ;;  %v6213_v5 = vrot.slane %v5269_v1, %v11167_v56  ;;  %5362 = vadd.xlane.f32.xlu1 %v5004_v23  ;;  %v11809_v23 = vld [vmem:[%s10179_s1 + $0x1f8] sm:$0xff]   ;;  %v6227_v1 = vrot.slane %v11712_v41, %v11154_v14 }
 0x465   : > { %v11798_v0 = vpop.xlane.xlu1 %5234  ;;  %v5010_v41 = vmul.f32 %v8454_v57, %v11806_v13  ;;  %v5047_v57 = vmul.f32 %v8527_v45, %v11719_v21  ;;  %v3919_v21 = vcombine.high %v10773_v39, %v10773_v39  ;;  %v8451_v45 = vunpack.c.h.bf16 %v11759_v17 }
 0x466   : > { %v6214_v36 = vsel %vm5970_vm5, %v6213_v5, %v6209_v42  ;;  %5404 = vadd.xlane.f32.xlu0 %v5025_v6  ;;  %v5027_v42 = vmul.f32 %v8487_v52, %v11698_v29  ;;  %v8490_v6 = vunpack.c.l.bf16 %v11809_v23  ;;  %v3934_v29 = vcombine.high %v11681_v60, %v11681_v60 }
 0x467   : > { %v7145_v26 = vsel %vm7119_vm8, %v6214_v36, %v11658_v47  ;;  %v5277_v31 = vpop.xlane.xlu0 %5276  ;;  %v11828_v47 = vrot.slane %v3869_v33, %v10685_v35  ;;  %v11833_v36 = vld [vmem:[%s10179_s1 + $0x200] sm:$0xff]   ;;  %v6236_v33 = vrot.slane %v11726_v43, %v11154_v14  ;;  %v11857_v43 = vld [vmem:[%s10179_s1 + $0x248] sm:$0xff]   ;;  %v3964_v39 = vcombine.high %v11702_v3, %v11702_v3 }
 0x468   : > { %v7146_v63 = vsel %vm7121_vm9, %v11671_v44, %v7145_v26  ;;  %v6231_v7 = vrot.slane %v5277_v31, %v11167_v56  ;;  %5370 = vadd.xlane.f32.xlu1 %v5008_v54  ;;  %v11837_v44 = vrot.slane %v11813_v18, %v10677_v9  ;;  %v8443_v31 = vunpack.c.h.bf16 %v11738_v53 }
 0x469   : > { %v11824_v5 = vpop.xlane.xlu1 %5242  ;;  %v6137_v3 = vrot.slane %v11798_v0, %v11154_v14  ;;  %v11905_v0 = vld [vmem:[%s10179_s1 + $0x260] sm:$0xff]  }
 0x46a   : > { %v6232_v4 = vsel %vm5970_vm5, %v6231_v7, %v6227_v1  ;;  %5408 = vadd.xlane.f32.xlu0 %v5027_v42  ;;  %v5028_v7 = vmul.f32 %v8490_v6, %v11828_v47  ;;  %v8494_v42 = vunpack.c.l.bf16 %v11833_v36  ;;  %v6326_v6 = vrot.slane %v11751_v11, %v11154_v14 }
 0x46b   : > { %v7147_v52 = vsel %vm7123_vm10, %v6232_v4, %v7146_v63  ;;  %v5281_v54 = vpop.xlane.xlu0 %5280  ;;  %v11854_v63 = vrot.slane %v11837_v44, %v10685_v35  ;;  %v11860_v4 = vrot.slane %v3934_v29, %v10677_v9 }
 0x46c   : > { %v6240_v26 = vrot.slane %v5281_v54, %v11167_v56  ;;  %5374 = vadd.xlane.f32.xlu1 %v5010_v41  ;;  %v5005_v54 = vmul.f32 %v8443_v31, %v11756_v10 }
 0x46d   : > { %v11847_v1 = vpop.xlane.xlu1 %5246  ;;  %v5030_v11 = vmul.f32 %v8494_v42, %v11854_v63  ;;  %v11883_v10 = vrot.slane %v11860_v4, %v10685_v35  ;;  %v8455_v42 = vunpack.c.h.bf16 %v11788_v32 }
 0x46e   : > { %v6241_v60 = vsel %vm5970_vm5, %v6240_v26, %v6236_v33  ;;  %5448 = vadd.xlane.f32.xlu0 %v5047_v57  ;;  %v8530_v26 = vunpack.c.l.bf16 %v11857_v43  ;;  %v11889_v57 = vrot.slane %v3919_v21, %v10677_v9 }
 0x46f   : > { %v5321_v53 = vpop.xlane.xlu0 %5320  ;;  %v11870_v33 = vsel %vm7125_vm11, %v6241_v60, %v7147_v52  ;;  %v11886_v52 = vld [vmem:[%s10179_s1 + $0x250] sm:$0xff]   ;;  %v5009_v60 = vmul.f32 %v8451_v45, %v11785_v37  ;;  %v8491_v45 = vunpack.c.h.bf16 %v11809_v23 }
 0x470   : > { %v6330_v41 = vrot.slane %v5321_v53, %v11167_v56  ;;  %5410 = vadd.xlane.f32.xlu1 %v5028_v7  ;;  %v5048_v21 = vmul.f32 %v8530_v26, %v11883_v10 }
 0x471   : > { %v11872_v29 = vpop.xlane.xlu1 %5282 }
 0x472   : > { %v11878_v17 = vsel %vm5970_vm5, %v6330_v41, %v6326_v6  ;;  %5364 = vadd.xlane.f32.xlu0 %v5005_v54  ;;  %v8534_v6 = vunpack.c.l.bf16 %v11886_v52  ;;  %v11902_v54 = vrot.slane %v3964_v39, %v10685_v35 }
 0x473   : > { %v5237_v31 = vpop.xlane.xlu0 %5236 }
 0x474   : > { %v6141_v7 = vrot.slane %v5237_v31, %v11167_v56  ;;  %5414 = vadd.xlane.f32.xlu1 %v5030_v11  ;;  %v11909_v11 = vrot.slane %v11889_v57, %v10677_v9  ;;  %v6155_v31 = vrot.slane %v11824_v5, %v11154_v14  ;;  %v5050_v5 = vmul.f32 %v8534_v6, %v11902_v54 }
 0x475   : > { %v11896_v53 = vpop.xlane.xlu1 %5286  ;;  %v5029_v6 = vmul.f32 %v8491_v45, %v11828_v47 }
 0x476   : > { %v6142_v41 = vsel %vm5970_vm5, %v6141_v7, %v6137_v3  ;;  %5372 = vadd.xlane.f32.xlu0 %v5009_v60  ;;  %v5011_v3 = vmul.f32 %v8455_v42, %v11806_v13  ;;  %v8542_v60 = vunpack.c.l.bf16 %v11905_v0  ;;  %v3885_v13 = vcombine.high %v11813_v18, %v11813_v18 }
 0x477   : > { %v7138_v37 = vsel %vm7119_vm8, %v6142_v41, %v11765_v20  ;;  %v5245_v32 = vpop.xlane.xlu0 %5244  ;;  %v3820_v20 = vcombine.high %v11762_v25, %v11762_v25  ;;  %v11932_v41 = vld [vmem:[%s10179_s1 + $0x1b8] sm:$0xff]   ;;  %v6164_v25 = vrot.slane %v11847_v1, %v11154_v14 }
 0x478   : > { %v7139_v26 = vsel %vm7121_vm9, %v11778_v46, %v7138_v37  ;;  %v6159_v39 = vrot.slane %v5245_v32, %v11167_v56  ;;  %5450 = vadd.xlane.f32.xlu1 %v5048_v21  ;;  %v11929_v46 = vrot.slane %v11909_v11, %v10685_v35  ;;  %v8495_v32 = vunpack.c.h.bf16 %v11833_v36 }
 0x479   : > { %v11920_v7 = vpop.xlane.xlu1 %5322  ;;  %v8458_v18 = vunpack.c.l.bf16 %v11932_v41  ;;  %v11957_v47 = vrot.slane %v3885_v13, %v10677_v9  ;;  %v3870_v36 = vcombine.high %v10764_v61, %v10764_v61 }
 0x47a   : > { %v6160_v23 = vsel %vm5970_vm5, %v6159_v39, %v6155_v31  ;;  %5376 = vadd.xlane.f32.xlu0 %v5011_v3  ;;  %v14189_v31 = vld [vmem:[#allocation25_spill] sm:$0xff]  ;;  %v14190_v39 = vld [vmem:[#allocation27_spill] sm:$0xff] }
 0x47b   : > { %v7140_v42 = vsel %vm7123_vm10, %v6160_v23, %v7139_v26  ;;  %v5249_v21 = vpop.xlane.xlu0 %5248  ;;  %v14191_v3 = vsub.f32 %v14189_v31, %v14190_v39  ;;  %v11949_v26 = vrot.slane %v3820_v20, %v10685_v35  ;;  %v5054_v23 = vmul.f32 %v8542_v60, %v11929_v46 }
 0x47c   : > { %v6168_v37 = vrot.slane %v5249_v21, %v11167_v56  ;;  %5454 = vadd.xlane.f32.xlu1 %v5050_v5  ;;  %v11954_v5 = vld [vmem:[%s10179_s1 + $0x208] sm:$0xff]   ;;  %v6245_v21 = vrot.slane %v11872_v29, %v11154_v14  ;;  %v8531_v60 = vunpack.c.h.bf16 %v11857_v43  ;;  %v11975_v31 = vrot.slane %v11957_v47, %v10685_v35 }
 0x47d   : > { %v2243_v55 = vmul.f32 1.442695, %v14191_v3  ;;  %v11945_v51 = vpop.xlane.xlu1 %5326  ;;  %v8498_v13 = vunpack.c.l.bf16 %v11954_v5  ;;  %v5012_v29 = vmul.f32 %v8458_v18, %v11949_v26 }
 0x47e   : > { %v6169_v1 = vsel %vm5970_vm5, %v6168_v37, %v6164_v25  ;;  %5412 = vadd.xlane.f32.xlu0 %v5029_v6  ;;  %v5031_v25 = vmul.f32 %v8495_v32, %v11854_v63  ;;  %v3915_v6 = vcombine.high %v11837_v44, %v11837_v44  ;;  %v11978_v63 = vld [vmem:[%s10179_s1 + $0x210] sm:$0xff]   ;;  %v8535_v32 = vunpack.c.h.bf16 %v11886_v52 }
 0x47f   : > { %v5285_v45 = vpop.xlane.xlu0 %5284  ;;  %9233 = vpow2.f32 %v2243_v55  ;;  %v11981_v55 = vrot.slane %v3870_v36, %v10677_v9  ;;  %v6254_v44 = vrot.slane %v11896_v53, %v11154_v14  ;;  %v5049_v3 = vmul.f32 %v8531_v60, %v11883_v10 }
 0x480   : > { %v6249_v20 = vrot.slane %v5285_v45, %v11167_v56  ;;  %5462 = vadd.xlane.f32.xlu1 %v5054_v23  ;;  %v8502_v36 = vunpack.c.l.bf16 %v11978_v63  ;;  %v11996_v45 = vrot.slane %v3915_v6, %v10685_v35  ;;  %v5032_v53 = vmul.f32 %v8498_v13, %v11975_v31 }
 0x481   : > { %v11966_v37 = vpop.xlane.xlu1 %5334  ;;  %v12010_v10 = vsel %vm7125_vm11, %v6169_v1, %v7140_v42  ;;  %v5051_v6 = vmul.f32 %v8535_v32, %v11902_v54  ;;  %v8543_v13 = vunpack.c.h.bf16 %v11905_v0  ;;  %v12029_v54 = vld [vmem:[%s10179_s1 + $0x258] sm:$0xff]   ;;  %v3935_v0 = vcombine.high %v11889_v57, %v11889_v57 }
 0x482   : > { %v6250_v61 = vsel %vm5970_vm5, %v6249_v20, %v6245_v21  ;;  %5416 = vadd.xlane.f32.xlu0 %v5031_v25  ;;  %v12003_v21 = vld [vmem:[%s10179_s1 + $0x220] sm:$0xff]   ;;  %v6335_v25 = vrot.slane %v11920_v7, %v11154_v14  ;;  %v5034_v1 = vmul.f32 %v8502_v36, %v11996_v45 }
 0x483   : > { %v5289_v43 = vpop.xlane.xlu0 %5288  ;;  %v11990_v18 = vsel %vm7127_vm12, %v6250_v61, %v11870_v33  ;;  %v12007_v33 = vrot.slane %v11981_v55, %v10677_v9 }
 0x484   : > { %v6258_v39 = vrot.slane %v5289_v43, %v11167_v56  ;;  %5378 = vadd.xlane.f32.xlu1 %v5012_v29  ;;  %14192 = vst [vmem:[#allocation25_spill] sm:$0xff] %v11990_v18  ;;  %v8510_v29 = vunpack.c.l.bf16 %v12003_v21  ;;  %v3966_v43 = vcombine.high %v11860_v4, %v11860_v4 }
 0x485   : > { %v11992_v23 = vpop.xlane.xlu1 %5250  ;;  %v12026_v7 = vrot.slane %v12007_v33, %v10685_v35 }
 0x486   : > { %v11999_v52 = vsel %vm5970_vm5, %v6258_v39, %v6254_v44  ;;  %5452 = vadd.xlane.f32.xlu0 %v5049_v3  ;;  %v6344_v44 = vrot.slane %v11945_v51, %v11154_v14  ;;  %v5055_v3 = vmul.f32 %v8543_v13, %v11929_v46  ;;  %v12051_v51 = vld [vmem:[%s10179_s1 + $0x268] sm:$0xff]   ;;  %v14193_v46 = vld [vmem:[#allocation22_spill] sm:$0xff] }
 0x487   : > { %v5325_v20 = vpop.xlane.xlu0 %5324  ;;  %v14194_v13 = vld [vmem:[#allocation23_spill] sm:$0xff] }
 0x488   : > { %v6339_v60 = vrot.slane %v5325_v20, %v11167_v56  ;;  %5418 = vadd.xlane.f32.xlu1 %v5032_v53  ;;  %v8538_v53 = vunpack.c.l.bf16 %v12029_v54 }
 0x489   : > { %v12017_v61 = vpop.xlane.xlu1 %5290 }
 0x48a   : > { %v6340_v42 = vsel %vm5970_vm5, %v6339_v60, %v6335_v25  ;;  %5456 = vadd.xlane.f32.xlu0 %v5051_v6  ;;  %v2393_v25 = vld [vmem:[%s11031_s8 + $0x58] sm:$0xff]  ;;  %v12048_v60 = vrot.slane %v3966_v43, %v10685_v35  ;;  %v12054_v6 = vrot.slane %v3935_v0, %v10677_v9 }
 0x48b   : > { %v7157_v32 = vsel %vm7115_vm6, %v6340_v42, %v11878_v17  ;;  %v5329_v4 = vpop.xlane.xlu0 %5328  ;;  %v5038_v17 = vmul.f32 %v8510_v29, %v12026_v7  ;;  %v14195_v42 = vsub.f32 %v14193_v46, %v14194_v13  ;;  %v6362_v29 = vrot.slane %v11966_v37, %v11154_v14 }
 0x48c   : > { %v6348_v39 = vrot.slane %v5329_v4, %v11167_v56  ;;  %5422 = vadd.xlane.f32.xlu1 %v5034_v1  ;;  %v12042_v20 = vpop.eup %9233  ;;  %v8546_v46 = vunpack.c.l.bf16 %v12051_v51  ;;  %v5052_v13 = vmul.f32 %v8538_v53, %v12048_v60  ;;  %v12077_v37 = vrot.slane %v12054_v6, %v10685_v35 }
 0x48d   : > { %v12039_v36 = vpop.xlane.xlu1 %5294  ;;  %v2241_v1 = vmul.f32 1.442695, %v14195_v42  ;;  %v2409_v0 = vmul.f32 %v12042_v20, %v2393_v25  ;;  %v12082_v42 = vld [vmem:[%s10179_s1 + $0x270] sm:$0xff]  }
 0x48e   : > { %v6349_v57 = vsel %vm5970_vm5, %v6348_v39, %v6344_v44  ;;  %5464 = vadd.xlane.f32.xlu0 %v5055_v3  ;;  %v8459_v39 = vunpack.c.h.bf16 %v11932_v41  ;;  %v3965_v41 = vcombine.high %v11909_v11, %v11909_v11  ;;  %v5056_v53 = vmul.f32 %v8546_v46, %v12077_v37 }
 0x48f   : > { %v12060_v4 = vsel %vm7117_vm7, %v6349_v57, %v7157_v32  ;;  %v5337_v44 = vpop.xlane.xlu0 %5336  ;;  %v14196_v57 = vld [vmem:[#allocation36_spill] sm:$0xff]  ;;  %9235 = vpow2.f32 %v2241_v1  ;;  %v8550_v11 = vunpack.c.l.bf16 %v12082_v42 }
 0x490   : > { %v6366_v43 = vrot.slane %v5337_v44, %v11167_v56  ;;  %5430 = vadd.xlane.f32.xlu1 %v5038_v17  ;;  %v5013_v44 = vmul.f32 %v8459_v39, %v11949_v26  ;;  %v12096_v1 = vrot.slane %v3965_v41, %v10685_v35  ;;  %v6173_v26 = vrot.slane %v11992_v23, %v11154_v14 }
 0x491   : > { %v12066_v3 = vpop.xlane.xlu1 %5302  ;;  %v3886_v23 = vcombine.high %v11981_v55, %v11981_v55 }
 0x492   : > { %v12071_v32 = vsel %vm5970_vm5, %v6366_v43, %v6362_v29  ;;  %2444 = vadd.xlane.f32.xlu0 %v14196_v57  ;;  %v8499_v29 = vunpack.c.h.bf16 %v11954_v5  ;;  %v5058_v41 = vmul.f32 %v8550_v11, %v12096_v1  ;;  %v8511_v11 = vunpack.c.h.bf16 %v12003_v21 }
 0x493   : > { %v2437_v17 = vpop.xlane.xlu0 %2436  ;;  %v8547_v57 = vunpack.c.h.bf16 %v12051_v51  ;;  %v3975_v51 = vrot.slane %v10782_v22, %v10677_v9 }
 0x494   : > { %v12084_v25 = vadd.f32 %v2437_v17, %v2409_v0  ;;  %5458 = vadd.xlane.f32.xlu1 %v5052_v13  ;;  %v5033_v39 = vmul.f32 %v8499_v29, %v11975_v31  ;;  %v8503_v13 = vunpack.c.h.bf16 %v11978_v63  ;;  %v6263_v31 = vrot.slane %v12017_v61, %v11154_v14 }
 0x495   : > { %v12088_v43 = vpop.xlane.xlu1 %5330  ;;  %v12130_v61 = vrot.slane %v3886_v23, %v10677_v9  ;;  %v8539_v23 = vunpack.c.h.bf16 %v12029_v54 }
 0x496   : > { %2490 = vst.msk [vmem:[%s11031_s8 + $0x58] sm:$0xff] %vm2462_vm4, %v12084_v25  ;;  %5380 = vadd.xlane.f32.xlu0 %v5013_v44  ;;  %v3917_v44 = vcombine.high %v11957_v47, %v11957_v47  ;;  %v5035_v29 = vmul.f32 %v8503_v13, %v11996_v45 }
 0x497   : > { %v5253_v0 = vpop.xlane.xlu0 %5252 }
 0x498   : > { %v6177_v5 = vrot.slane %v5253_v0, %v11167_v56  ;;  %5466 = vadd.xlane.f32.xlu1 %v5056_v53  ;;  %v12112_v53 = vld [vmem:[%s10179_s1 + $0x218] sm:$0xff]  }
 0x499   : > { %v12103_v17 = vpop.xlane.xlu1 %5338  ;;  %v8506_v55 = vunpack.c.l.bf16 %v12112_v53 }
 0x49a   : > { %v6178_v46 = vsel %vm5970_vm5, %v6177_v5, %v6173_v26  ;;  %5420 = vadd.xlane.f32.xlu0 %v5033_v39  ;;  %v12124_v5 = vrot.slane %v3917_v44, %v10685_v35  ;;  %v12127_v39 = vld [vmem:[%s10179_s1 + $0x228] sm:$0xff]   ;;  %v5039_v44 = vmul.f32 %v8511_v11, %v12026_v7  ;;  %v12155_v7 = vld [vmem:[%s10179_s1 + $0x230] sm:$0xff]  }
 0x49b   : > { %v5293_v0 = vpop.xlane.xlu0 %5292  ;;  %v12159_v54 = vsel %vm7127_vm12, %v6178_v46, %v12010_v10  ;;  %v8518_v46 = vunpack.c.l.bf16 %v12155_v7 }
 0x49c   : > { %v6267_v63 = vrot.slane %v5293_v0, %v11167_v56  ;;  %5470 = vadd.xlane.f32.xlu1 %v5058_v41  ;;  %v12134_v13 = vpop.eup %9235  ;;  %v6272_v41 = vrot.slane %v12039_v36, %v11154_v14  ;;  %v5036_v36 = vmul.f32 %v8506_v55, %v12124_v5  ;;  %14198 = vst [vmem:[#allocation27_spill] sm:$0xff] %v12159_v54 }
 0x49d   : > { %v12119_v26 = vpop.xlane.xlu1 %5342  ;;  %v6290_v55 = vrot.slane %v12066_v3, %v11154_v14 }
 0x49e   : > { %v6268_v47 = vsel %vm5970_vm5, %v6267_v63, %v6263_v31  ;;  %5424 = vadd.xlane.f32.xlu0 %v5035_v29  ;;  %v14197_v31 = vld [vmem:[#allocation35_spill] sm:$0xff]  ;;  %v2392_v63 = vld [vmem:[%s11031_s8 + $0x50] sm:$0xff] }
 0x49f   : > { %v7150_v45 = vsel %vm7115_vm6, %v6268_v47, %v11999_v52  ;;  %v5297_v21 = vpop.xlane.xlu0 %5296  ;;  %v8514_v52 = vunpack.c.l.bf16 %v12127_v39  ;;  %v3916_v47 = vcombine.high %v12007_v33, %v12007_v33 }
 0x4a0   : > { %v6276_v0 = vrot.slane %v5297_v21, %v11167_v56  ;;  %2442 = vadd.xlane.f32.xlu1 %v14197_v31  ;;  %v12152_v21 = vrot.slane %v12130_v61, %v10685_v35 }
 0x4a1   : > { %v12143_v29 = vpop.xlane.xlu1 %5382 }
 0x4a2   : > { %v6277_v18 = vsel %vm5970_vm5, %v6276_v0, %v6272_v41  ;;  %5432 = vadd.xlane.f32.xlu0 %v5039_v44  ;;  %v2408_v41 = vmul.f32 %v12134_v13, %v2392_v63  ;;  %v5053_v44 = vmul.f32 %v8539_v23, %v12048_v60  ;;  %v12183_v60 = vld [vmem:[%s10179_s1 + $0x278] sm:$0xff]  }
 0x4a3   : > { %v12162_v11 = vsel %vm7117_vm7, %v6277_v18, %v7150_v45  ;;  %v5305_v33 = vpop.xlane.xlu0 %5304  ;;  %v12172_v18 = vrot.slane %v3916_v47, %v10685_v35  ;;  %v3967_v45 = vcombine.high %v12054_v6, %v12054_v6  ;;  %v6353_v47 = vrot.slane %v12088_v43, %v11154_v14 }
 0x4a4   : > { %v6294_v0 = vrot.slane %v5305_v33, %v11167_v56  ;;  %5426 = vadd.xlane.f32.xlu1 %v5036_v36  ;;  %v5040_v36 = vmul.f32 %v8514_v52, %v12152_v21  ;;  %v5057_v33 = vmul.f32 %v8547_v57, %v12077_v37  ;;  %v8551_v52 = vunpack.c.h.bf16 %v12082_v42 }
 0x4a5   : > { %v2435_v10 = vpop.xlane.xlu1 %2434  ;;  %v12201_v43 = vrot.slane %v3967_v45, %v10685_v35  ;;  %v8507_v42 = vunpack.c.h.bf16 %v12112_v53 }
 0x4a6   : > { %v12177_v63 = vsel %vm5970_vm5, %v6294_v0, %v6290_v55  ;;  %v12179_v3 = vadd.f32 %v2435_v10, %v2408_v41  ;;  %5460 = vadd.xlane.f32.xlu0 %v5053_v44  ;;  %v8554_v55 = vunpack.c.l.bf16 %v12183_v60  ;;  %v5042_v44 = vmul.f32 %v8518_v46, %v12172_v18  ;;  %v12204_v10 = vld [vmem:[%s10179_s1 + $0x280] sm:$0xff]  }
 0x4a7   : > { %v5333_v23 = vpop.xlane.xlu0 %5332 }
 0x4a8   : > { %2489 = vst.msk [vmem:[%s11031_s8 + $0x50] sm:$0xff] %vm2462_vm4, %v12179_v3  ;;  %v6357_v6 = vrot.slane %v5333_v23, %v11167_v56  ;;  %5434 = vadd.xlane.f32.xlu1 %v5040_v36  ;;  %v3991_v36 = vrot.slane %v3975_v51, %v10677_v9  ;;  %v6371_v23 = vrot.slane %v12103_v17, %v11154_v14 }
 0x4a9   : > { %v12195_v41 = vpop.xlane.xlu1 %5298  ;;  %v5060_v17 = vmul.f32 %v8554_v55, %v12201_v43  ;;  %v8515_v55 = vunpack.c.h.bf16 %v12127_v39 }
 0x4aa   : > { %v6358_v0 = vsel %vm5970_vm5, %v6357_v6, %v6353_v47  ;;  %5468 = vadd.xlane.f32.xlu0 %v5057_v33  ;;  %v5059_v47 = vmul.f32 %v8551_v52, %v12096_v1  ;;  %v8558_v33 = vunpack.c.l.bf16 %v12204_v10 }
 0x4ab   : > { %v7159_v57 = vsel %vm7119_vm8, %v6358_v0, %v12060_v4  ;;  %v5341_v37 = vpop.xlane.xlu0 %5340  ;;  %v3918_v4 = vcombine.high %v12130_v61, %v12130_v61  ;;  %v12224_v0 = vrot.slane %v3991_v36, %v10685_v35 }
 0x4ac   : > { %v7160_v46 = vsel %vm7121_vm9, %v12071_v32, %v7159_v57  ;;  %v6375_v45 = vrot.slane %v5341_v37, %v11167_v56  ;;  %5438 = vadd.xlane.f32.xlu1 %v5042_v44  ;;  %v12227_v32 = vld [vmem:[%s10179_s1 + $0x238] sm:$0xff]   ;;  %v3983_v44 = vcombine.high %v3975_v51, %v3975_v51  ;;  %v6380_v57 = vrot.slane %v12119_v26, %v11154_v14 }
 0x4ad   : > { %v12216_v6 = vpop.xlane.xlu1 %5306  ;;  %v5037_v37 = vmul.f32 %v8507_v42, %v12124_v5  ;;  %v3968_v51 = vcombine.high %v10782_v22, %v10782_v22  ;;  %v12243_v26 = vrot.slane %v3918_v4, %v10685_v35  ;;  %v6470_v42 = vrot.slane %v12143_v29, %v11154_v14 }
 0x4ae   : > { %v6376_v53 = vsel %vm5970_vm5, %v6375_v45, %v6371_v23  ;;  %5472 = vadd.xlane.f32.xlu0 %v5059_v47  ;;  %v8522_v45 = vunpack.c.l.bf16 %v12227_v32  ;;  %v5062_v47 = vmul.f32 %v8558_v33, %v12224_v0  ;;  %v4005_v5 = vrot.slane %v3983_v44, %v10677_v9 }
 0x4af   : > { %v7161_v1 = vsel %vm7123_vm10, %v6376_v53, %v7160_v46  ;;  %v5345_v52 = vpop.xlane.xlu0 %5344  ;;  %v12246_v53 = vld [vmem:[%s10179_s1 + $0x288] sm:$0xff]   ;;  %v5041_v22 = vmul.f32 %v8515_v55, %v12152_v21 }
 0x4b0   : > { %v6384_v61 = vrot.slane %v5345_v52, %v11167_v56  ;;  %5474 = vadd.xlane.f32.xlu1 %v5060_v17  ;;  %v8519_v52 = vunpack.c.h.bf16 %v12155_v7  ;;  %v8562_v4 = vunpack.c.l.bf16 %v12246_v53  ;;  %v5044_v29 = vmul.f32 %v8522_v45, %v12243_v26  ;;  %v12269_v7 = vld [vmem:[%s10179_s1 + $0x290] sm:$0xff]  }
 0x4b1   : > { %v12235_v23 = vpop.xlane.xlu1 %5310  ;;  %v12266_v21 = vrot.slane %v4005_v5, %v10685_v35  ;;  %v8566_v45 = vunpack.c.l.bf16 %v12269_v7 }
 0x4b2   : > { %v6385_v46 = vsel %vm5970_vm5, %v6384_v61, %v6380_v57  ;;  %5428 = vadd.xlane.f32.xlu0 %v5037_v37  ;;  %v3982_v57 = vrot.slane %v3968_v51, %v10677_v9  ;;  %v4013_v37 = vcombine.high %v3991_v36, %v3991_v36  ;;  %v6281_v51 = vrot.slane %v12195_v41, %v11154_v14  ;;  %v12285_v41 = vld [vmem:[%s10179_s1 + $0x2a0] sm:$0xff]  }
 0x4b3   : > { %v5385_v39 = vpop.xlane.xlu0 %5384  ;;  %v12259_v61 = vsel %vm7125_vm11, %v6385_v46, %v7161_v1  ;;  %v5043_v46 = vmul.f32 %v8519_v52, %v12172_v18  ;;  %v5064_v36 = vmul.f32 %v8562_v4, %v12266_v21  ;;  %v8559_v52 = vunpack.c.h.bf16 %v12204_v10 }
 0x4b4   : > { %v6474_v17 = vrot.slane %v5385_v39, %v11167_v56  ;;  %5478 = vadd.xlane.f32.xlu1 %v5062_v47  ;;  %v8555_v47 = vunpack.c.h.bf16 %v12183_v60 }
 0x4b5   : > { %v12254_v33 = vpop.xlane.xlu1 %5346 }
 0x4b6   : > { %v12262_v44 = vsel %vm5970_vm5, %v6474_v17, %v6470_v42  ;;  %5436 = vadd.xlane.f32.xlu0 %v5041_v22  ;;  %v12282_v17 = vrot.slane %v4013_v37, %v10685_v35  ;;  %v3998_v22 = vrot.slane %v3982_v57, %v10677_v9 }
 0x4b7   : > { %v5301_v55 = vpop.xlane.xlu0 %5300 }
 0x4b8   : > { %v6285_v1 = vrot.slane %v5301_v55, %v11167_v56  ;;  %5442 = vadd.xlane.f32.xlu1 %v5044_v29  ;;  %v6299_v29 = vrot.slane %v12216_v6, %v11154_v14  ;;  %v5061_v55 = vmul.f32 %v8555_v47, %v12201_v43  ;;  %v5066_v10 = vmul.f32 %v8566_v45, %v12282_v17 }
 0x4b9   : > { %v12276_v39 = vpop.xlane.xlu1 %5350  ;;  %v12303_v6 = vrot.slane %v3998_v22, %v10685_v35  ;;  %v6308_v47 = vrot.slane %v12235_v23, %v11154_v14  ;;  %v8523_v45 = vunpack.c.h.bf16 %v12227_v32 }
 0x4ba   : > { %v6286_v42 = vsel %vm5970_vm5, %v6285_v1, %v6281_v51  ;;  %5440 = vadd.xlane.f32.xlu0 %v5043_v46  ;;  %v8574_v1 = vunpack.c.l.bf16 %v12285_v41  ;;  %v3984_v46 = vcombine.high %v3982_v57, %v3982_v57 }
 0x4bb   : > { %v7152_v18 = vsel %vm7119_vm8, %v6286_v42, %v12162_v11  ;;  %v5309_v60 = vpop.xlane.xlu0 %5308  ;;  %v12306_v42 = vld [vmem:[%s10179_s1 + $0x298] sm:$0xff]  }
 0x4bc   : > { %v7153_v4 = vsel %vm7121_vm9, %v12177_v63, %v7152_v18  ;;  %v6303_v37 = vrot.slane %v5309_v60, %v11167_v56  ;;  %5482 = vadd.xlane.f32.xlu1 %v5064_v36  ;;  %v4015_v63 = vcombine.high %v4005_v5, %v4005_v5  ;;  %v5063_v18 = vmul.f32 %v8559_v52, %v12224_v0  ;;  %v14199_v60 = vld [vmem:[#allocation29_spill] sm:$0xff]  ;;  %v12327_v52 = vld [vmem:[%s10179_s1 + $0x2a8] sm:$0xff]  }
 0x4bd   : > { %v12297_v51 = vpop.xlane.xlu1 %5386  ;;  %v8570_v5 = vunpack.c.l.bf16 %v12306_v42  ;;  %v5070_v23 = vmul.f32 %v8574_v1, %v12303_v6  ;;  %v4012_v0 = vrot.slane %v3984_v46, %v10677_v9 }
 0x4be   : > { %v6304_v11 = vsel %vm5970_vm5, %v6303_v37, %v6299_v29  ;;  %5476 = vadd.xlane.f32.xlu0 %v5061_v55  ;;  %v14200_v29 = vld [vmem:[#allocation31_spill] sm:$0xff] }
 0x4bf   : > { %v7154_v36 = vsel %vm7123_vm10, %v6304_v11, %v7153_v4  ;;  %v5313_v43 = vpop.xlane.xlu0 %5312  ;;  %v14201_v37 = vsub.f32 %v14199_v60, %v14200_v29  ;;  %v12323_v11 = vrot.slane %v4015_v63, %v10685_v35  ;;  %v4014_v63 = vcombine.high %v3998_v22, %v3998_v22  ;;  %v12343_v29 = vld [vmem:[%s10179_s1 + $0x2b0] sm:$0xff]  }
 0x4c0   : > { %v6312_v57 = vrot.slane %v5313_v43, %v11167_v56  ;;  %5486 = vadd.xlane.f32.xlu1 %v5066_v10  ;;  %v6389_v10 = vrot.slane %v12254_v33, %v11154_v14  ;;  %v8578_v60 = vunpack.c.l.bf16 %v12327_v52  ;;  %v12340_v33 = vrot.slane %v4012_v0, %v10685_v35 }
 0x4c1   : > { %v2247_v55 = vmul.f32 1.442695, %v14201_v37  ;;  %v12317_v54 = vpop.xlane.xlu1 %5390  ;;  %v8567_v37 = vunpack.c.h.bf16 %v12269_v7  ;;  %v12367_v7 = vld [vmem:[%s10179_s1 + $0x2b8] sm:$0xff]  }
 0x4c2   : > { %v6313_v4 = vsel %vm5970_vm5, %v6312_v57, %v6308_v47  ;;  %5480 = vadd.xlane.f32.xlu0 %v5063_v18  ;;  %v5045_v47 = vmul.f32 %v8523_v45, %v12243_v26  ;;  %v8563_v57 = vunpack.c.h.bf16 %v12246_v53  ;;  %v5068_v18 = vmul.f32 %v8570_v5, %v12323_v11 }
 0x4c3   : > { %v5349_v32 = vpop.xlane.xlu0 %5348  ;;  %9237 = vpow2.f32 %v2247_v55  ;;  %v6398_v53 = vrot.slane %v12276_v39, %v11154_v14  ;;  %v8582_v5 = vunpack.c.l.bf16 %v12343_v29 }
 0x4c4   : > { %v6393_v43 = vrot.slane %v5349_v32, %v11167_v56  ;;  %5494 = vadd.xlane.f32.xlu1 %v5070_v23  ;;  %v5065_v22 = vmul.f32 %v8563_v57, %v12266_v21  ;;  %v12354_v23 = vrot.slane %v4014_v63, %v10685_v35  ;;  %v4024_v32 = vrot.slane %v10789_v49, %v10677_v9 }
 0x4c5   : > { %v12334_v1 = vpop.xlane.xlu1 %5398  ;;  %v5072_v21 = vmul.f32 %v8578_v60, %v12340_v33  ;;  %v6479_v63 = vrot.slane %v12297_v51, %v11154_v14  ;;  %v8586_v60 = vunpack.c.l.bf16 %v12367_v7 }
 0x4c6   : > { %v6394_v46 = vsel %vm5970_vm5, %v6393_v43, %v6389_v10  ;;  %5444 = vadd.xlane.f32.xlu0 %v5045_v47  ;;  %v4016_v43 = vcombine.high %v4012_v0, %v4012_v0  ;;  %v12370_v47 = vsel %vm7125_vm11, %v6313_v4, %v7154_v36  ;;  %v4040_v0 = vrot.slane %v4024_v32, %v10677_v9 }
 0x4c7   : > { %v5353_v26 = vpop.xlane.xlu0 %5352  ;;  %v12360_v39 = vsel %vm7127_vm12, %v6394_v46, %v12259_v61  ;;  %v5067_v46 = vmul.f32 %v8567_v37, %v12282_v17  ;;  %v5074_v4 = vmul.f32 %v8582_v5, %v12354_v23  ;;  %v4032_v17 = vcombine.high %v4024_v32, %v4024_v32 }
 0x4c8   : > { %v6402_v45 = vrot.slane %v5353_v26, %v11167_v56  ;;  %5490 = vadd.xlane.f32.xlu1 %v5068_v18  ;;  %14202 = vst [vmem:[#allocation22_spill] sm:$0xff] %v12360_v39  ;;  %v8575_v18 = vunpack.c.h.bf16 %v12285_v41  ;;  %v12384_v51 = vrot.slane %v4016_v43, %v10685_v35  ;;  %v12400_v32 = vrot.slane %v4040_v0, %v10685_v35 }
 0x4c9   : > { %v12350_v55 = vpop.xlane.xlu1 %5314  ;;  %v6506_v31 = vrot.slane %v12334_v1, %v11154_v14 }
 0x4ca   : > { %v12363_v10 = vsel %vm5970_vm5, %v6402_v45, %v6398_v53  ;;  %5484 = vadd.xlane.f32.xlu0 %v5065_v22  ;;  %v12387_v53 = vld [vmem:[%s10179_s1 + $0x2c0] sm:$0xff]   ;;  %v6488_v22 = vrot.slane %v12317_v54, %v11154_v14  ;;  %v5071_v5 = vmul.f32 %v8575_v18, %v12303_v6  ;;  %v5076_v54 = vmul.f32 %v8586_v60, %v12384_v51 }
 0x4cb   : > { %v5389_v57 = vpop.xlane.xlu0 %5388  ;;  %v4054_v6 = vrot.slane %v4032_v17, %v10677_v9  ;;  %v14204_v18 = vld [vmem:[#allocation26_spill] sm:$0xff] }
 0x4cc   : > { %v6483_v61 = vrot.slane %v5389_v57, %v11167_v56  ;;  %5498 = vadd.xlane.f32.xlu1 %v5072_v21  ;;  %v8571_v21 = vunpack.c.h.bf16 %v12306_v42  ;;  %v8590_v57 = vunpack.c.l.bf16 %v12387_v53  ;;  %v14203_v42 = vld [vmem:[#allocation24_spill] sm:$0xff] }
 0x4cd   : > { %v12377_v26 = vpop.xlane.xlu1 %5354  ;;  %v12431_v1 = vrot.slane %v4054_v6, %v10685_v35 }
 0x4ce   : > { %v6484_v36 = vsel %vm5970_vm5, %v6483_v61, %v6479_v63  ;;  %5488 = vadd.xlane.f32.xlu0 %v5067_v46  ;;  %v2395_v61 = vld [vmem:[%s11031_s8 + $0x68] sm:$0xff]  ;;  %v5069_v60 = vmul.f32 %v8571_v21, %v12323_v11  ;;  %v4017_v11 = vcombine.high %v10789_v49, %v10789_v49  ;;  %v12436_v21 = vld [vmem:[%s10179_s1 + $0x2d0] sm:$0xff]  }
 0x4cf   : > { %v7171_v41 = vsel %vm7115_vm6, %v6484_v36, %v12262_v44  ;;  %v5393_v45 = vpop.xlane.xlu0 %5392  ;;  %v12408_v46 = vld [vmem:[%s10179_s1 + $0x2c8] sm:$0xff]   ;;  %v14205_v36 = vsub.f32 %v14203_v42, %v14204_v18  ;;  %v5078_v42 = vmul.f32 %v8590_v57, %v12400_v32  ;;  %v4064_v18 = vcombine.high %v4054_v6, %v4054_v6 }
 0x4d0   : > { %v6492_v37 = vrot.slane %v5393_v45, %v11167_v56  ;;  %5502 = vadd.xlane.f32.xlu1 %v5074_v4  ;;  %v12402_v63 = vpop.eup %9237  ;;  %v6317_v6 = vrot.slane %v12350_v55, %v11154_v14  ;;  %v12470_v55 = vld [vmem:[%s10179_s1 + $0x2e0] sm:$0xff]  }
 0x4d1   : > { %v12396_v43 = vpop.xlane.xlu1 %5358  ;;  %v2245_v4 = vmul.f32 1.442695, %v14205_v36 }
 0x4d2   : > { %v6493_v44 = vsel %vm5970_vm5, %v6492_v37, %v6488_v22  ;;  %5496 = vadd.xlane.f32.xlu0 %v5071_v5  ;;  %v8579_v37 = vunpack.c.h.bf16 %v12327_v52  ;;  %v2411_v5 = vmul.f32 %v12402_v63, %v2395_v61 }
 0x4d3   : > { %v12415_v45 = vsel %vm7117_vm7, %v6493_v44, %v7171_v41  ;;  %v5401_v39 = vpop.xlane.xlu0 %5400  ;;  %v8594_v41 = vunpack.c.l.bf16 %v12408_v46  ;;  %9239 = vpow2.f32 %v2245_v4  ;;  %v12453_v4 = vld [vmem:[%s10179_s1 + $0x2d8] sm:$0xff]  }
 0x4d4   : > { %v6510_v22 = vrot.slane %v5401_v39, %v11167_v56  ;;  %5506 = vadd.xlane.f32.xlu1 %v5076_v54  ;;  %v4062_v39 = vcombine.high %v4040_v0, %v4040_v0  ;;  %v5073_v54 = vmul.f32 %v8579_v37, %v12340_v33  ;;  %v8598_v0 = vunpack.c.l.bf16 %v12436_v21 }
 0x4d5   : > { %v12422_v17 = vpop.xlane.xlu1 %5366  ;;  %v5080_v49 = vmul.f32 %v8594_v41, %v12431_v1  ;;  %v4031_v33 = vrot.slane %v4017_v11, %v10677_v9  ;;  %v8587_v37 = vunpack.c.h.bf16 %v12367_v7  ;;  %v12465_v41 = vrot.slane %v4064_v18, %v10685_v35 }
 0x4d6   : > { %v12428_v44 = vsel %vm5970_vm5, %v6510_v22, %v6506_v31  ;;  %5492 = vadd.xlane.f32.xlu0 %v5069_v60  ;;  %v8583_v31 = vunpack.c.h.bf16 %v12343_v29  ;;  %v12450_v36 = vrot.slane %v4062_v39, %v10685_v35  ;;  %v6407_v7 = vrot.slane %v12377_v26, %v11154_v14  ;;  %v12487_v26 = vld [vmem:[%s10179_s1 + $0x2e8] sm:$0xff]  }
 0x4d7   : > { %v2441_v52 = vpop.xlane.xlu0 %2440  ;;  %v5077_v18 = vmul.f32 %v8587_v37, %v12384_v51 }
 0x4d8   : > { %v12438_v57 = vadd.f32 %v2441_v52, %v2411_v5  ;;  %5510 = vadd.xlane.f32.xlu1 %v5078_v42  ;;  %v5075_v60 = vmul.f32 %v8583_v31, %v12354_v23  ;;  %v8602_v42 = vunpack.c.l.bf16 %v12453_v4  ;;  %v5082_v11 = vmul.f32 %v8598_v0, %v12450_v36 }
 0x4d9   : > { %v12442_v61 = vpop.xlane.xlu1 %5394  ;;  %v4047_v52 = vrot.slane %v4031_v33, %v10677_v9  ;;  %v4033_v23 = vcombine.high %v4031_v33, %v4031_v33  ;;  %v8606_v0 = vunpack.c.l.bf16 %v12470_v55 }
 0x4da   : > { %2492 = vst.msk [vmem:[%s11031_s8 + $0x68] sm:$0xff] %vm2462_vm4, %v12438_v57  ;;  %5500 = vadd.xlane.f32.xlu0 %v5073_v54  ;;  %v5084_v33 = vmul.f32 %v8602_v42, %v12465_v41 }
 0x4db   : > { %v5317_v29 = vpop.xlane.xlu0 %5316 }
 0x4dc   : > { %v6321_v22 = vrot.slane %v5317_v29, %v11167_v56  ;;  %5514 = vadd.xlane.f32.xlu1 %v5080_v49  ;;  %v8591_v49 = vunpack.c.h.bf16 %v12387_v53 }
 0x4dd   : > { %v12461_v5 = vpop.xlane.xlu1 %5402 }
 0x4de   : > { %v6322_v39 = vsel %vm5970_vm5, %v6321_v22, %v6317_v6  ;;  %5504 = vadd.xlane.f32.xlu0 %v5075_v60  ;;  %v12484_v22 = vrot.slane %v4047_v52, %v10685_v35  ;;  %v4061_v60 = vrot.slane %v4033_v23, %v10677_v9  ;;  %v5079_v42 = vmul.f32 %v8591_v49, %v12400_v32 }
 0x4df   : > { %v5357_v54 = vpop.xlane.xlu0 %5356  ;;  %v8610_v23 = vunpack.c.l.bf16 %v12487_v26  ;;  %v12513_v32 = vsel %vm7127_vm12, %v6322_v39, %v12370_v47 }
 0x4e0   : > { %v6411_v31 = vrot.slane %v5357_v54, %v11167_v56  ;;  %5518 = vadd.xlane.f32.xlu1 %v5082_v11  ;;  %v12492_v37 = vpop.eup %9239  ;;  %v6416_v11 = vrot.slane %v12396_v43, %v11154_v14  ;;  %v12506_v43 = vrot.slane %v4061_v60, %v10685_v35  ;;  %14207 = vst [vmem:[#allocation29_spill] sm:$0xff] %v12513_v32 }
 0x4e1   : > { %v12478_v29 = vpop.xlane.xlu1 %5406 }
 0x4e2   : > { %14206 = vst [vmem:[#allocation23_spill] sm:$0xff] %v12478_v29  ;;  %v6412_v6 = vsel %vm5970_vm5, %v6411_v31, %v6407_v7  ;;  %5508 = vadd.xlane.f32.xlu0 %v5077_v18  ;;  %v2394_v7 = vld [vmem:[%s11031_s8 + $0x60] sm:$0xff]  ;;  %v8595_v31 = vunpack.c.h.bf16 %v12408_v46  ;;  %v5086_v29 = vmul.f32 %v8606_v0, %v12484_v22 }
 0x4e3   : > { %v7164_v51 = vsel %vm7115_vm6, %v6412_v6, %v12363_v10  ;;  %v5361_v53 = vpop.xlane.xlu0 %5360  ;;  %v4063_v10 = vcombine.high %v4047_v52, %v4047_v52  ;;  %v2410_v52 = vmul.f32 %v12492_v37, %v2394_v7 }
 0x4e4   : > { %v6420_v54 = vrot.slane %v5361_v53, %v11167_v56  ;;  %5522 = vadd.xlane.f32.xlu1 %v5084_v33  ;;  %v12509_v53 = vld [vmem:[%s10179_s1 + $0x2f0] sm:$0xff]   ;;  %v6434_v33 = vrot.slane %v12422_v17, %v11154_v14 }
 0x4e5   : > { %v12500_v18 = vpop.xlane.xlu1 %5446  ;;  %v8614_v39 = vunpack.c.l.bf16 %v12509_v53 }
 0x4e6   : > { %v6421_v6 = vsel %vm5970_vm5, %v6420_v54, %v6416_v11  ;;  %5512 = vadd.xlane.f32.xlu0 %v5079_v42  ;;  %v5081_v11 = vmul.f32 %v8595_v31, %v12431_v1  ;;  %v8599_v54 = vunpack.c.h.bf16 %v12436_v21  ;;  %v4073_v42 = vrot.slane %v14187_v62, %v10677_v9  ;;  %v12537_v1 = vld [vmem:[%s10179_s1 + $0x2f8] sm:$0xff]  }
 0x4e7   : > { %v12516_v46 = vsel %vm7117_vm7, %v6421_v6, %v7164_v51  ;;  %v5369_v49 = vpop.xlane.xlu0 %5368  ;;  %v12526_v51 = vrot.slane %v4063_v10, %v10685_v35  ;;  %v4065_v21 = vcombine.high %v4061_v60, %v4061_v60  ;;  %v6497_v10 = vrot.slane %v12442_v61, %v11154_v14 }
 0x4e8   : > { %v6438_v0 = vrot.slane %v5369_v49, %v11167_v56  ;;  %5526 = vadd.xlane.f32.xlu1 %v5086_v29  ;;  %v5088_v29 = vmul.f32 %v8610_v23, %v12506_v43  ;;  %v5083_v49 = vmul.f32 %v8599_v54, %v12450_v36  ;;  %v8618_v23 = vunpack.c.l.bf16 %v12537_v1 }
 0x4e9   : > { %v2439_v47 = vpop.xlane.xlu1 %2438  ;;  %v5090_v61 = vmul.f32 %v8614_v39, %v12526_v51  ;;  %v8607_v54 = vunpack.c.h.bf16 %v12470_v55 }
 0x4ea   : > { %v12531_v7 = vsel %vm5970_vm5, %v6438_v0, %v6434_v33  ;;  %v12533_v17 = vadd.f32 %v2439_v47, %v2410_v52  ;;  %5516 = vadd.xlane.f32.xlu0 %v5081_v11  ;;  %v8603_v52 = vunpack.c.h.bf16 %v12453_v4  ;;  %v4089_v0 = vrot.slane %v4073_v42, %v10677_v9  ;;  %v12555_v47 = vld [vmem:[%s10179_s1 + $0x300] sm:$0xff]  }
 0x4eb   : > { %v5397_v31 = vpop.xlane.xlu0 %5396  ;;  %v12552_v11 = vrot.slane %v4065_v21, %v10685_v35 }
 0x4ec   : > { %2491 = vst.msk [vmem:[%s11031_s8 + $0x60] sm:$0xff] %vm2462_vm4, %v12533_v17  ;;  %v6501_v6 = vrot.slane %v5397_v31, %v11167_v56  ;;  %5530 = vadd.xlane.f32.xlu1 %v5088_v29  ;;  %v4081_v29 = vcombine.high %v4073_v42, %v4073_v42  ;;  %v6515_v31 = vrot.slane %v12461_v5, %v11154_v14  ;;  %v8622_v42 = vunpack.c.l.bf16 %v12555_v47 }
 0x4ed   : > { %v5363_v33 = vpop.xlane.xlu1 %5362  ;;  %v5085_v21 = vmul.f32 %v8603_v52, %v12465_v41  ;;  %v5092_v55 = vmul.f32 %v8618_v23, %v12552_v11  ;;  %v12579_v41 = vld [vmem:[%s10179_s1 + $0x308] sm:$0xff]   ;;  %v5087_v52 = vmul.f32 %v8607_v54, %v12484_v22  ;;  %v4066_v23 = vcombine.high %v14187_v62, %v14187_v62 }
 0x4ee   : > { %v6502_v60 = vsel %vm5970_vm5, %v6501_v6, %v6497_v10  ;;  %5520 = vadd.xlane.f32.xlu0 %v5083_v49  ;;  %v4649_v49 = vrot.slane %v4089_v0, %v10685_v35  ;;  %v4103_v5 = vrot.slane %v4081_v29, %v10677_v9 }
 0x4ef   : > { %v7173_v36 = vsel %vm7119_vm8, %v6502_v60, %v12415_v45  ;;  %v5405_v4 = vpop.xlane.xlu0 %5404  ;;  %v4080_v62 = vrot.slane %v4066_v23, %v10677_v9 }
 0x4f0   : > { %v7174_v10 = vsel %vm7121_vm9, %v12428_v44, %v7173_v36  ;;  %v6519_v39 = vrot.slane %v5405_v4, %v11167_v56  ;;  %5534 = vadd.xlane.f32.xlu1 %v5090_v61  ;;  %v8611_v61 = vunpack.c.h.bf16 %v12487_v26  ;;  %v5094_v29 = vmul.f32 %v8622_v42, %v4649_v49 }
 0x4f1   : > { %v12566_v6 = vpop.xlane.xlu1 %5370  ;;  %v8626_v4 = vunpack.c.l.bf16 %v12579_v41  ;;  %v8615_v26 = vunpack.c.h.bf16 %v12509_v53 }
 0x4f2   : > { %v6520_v45 = vsel %vm5970_vm5, %v6519_v39, %v6515_v31  ;;  %5524 = vadd.xlane.f32.xlu0 %v5085_v21  ;;  %v4653_v31 = vrot.slane %v4103_v5, %v10685_v35  ;;  %v12592_v21 = vld [vmem:[%s10179_s1 + $0x310] sm:$0xff]   ;;  %v5089_v22 = vmul.f32 %v8611_v61, %v12506_v43  ;;  %v8619_v61 = vunpack.c.h.bf16 %v12537_v1  ;;  %v8854_v1 = vld [vmem:[%s10179_s1 + $0x320] sm:$0xff]  }
 0x4f3   : > { %v12574_v44 = vsel %vm7123_vm10, %v6520_v45, %v7174_v10  ;;  %v12576_v60 = vpop.xlane.xlu0 %5408  ;;  %v4111_v10 = vcombine.high %v4089_v0, %v4089_v0  ;;  %v8630_v45 = vunpack.c.l.bf16 %v12592_v21  ;;  %v12602_v0 = vld [vmem:[%s10179_s1 + $0x318] sm:$0xff]   ;;  %v5091_v53 = vmul.f32 %v8615_v26, %v12526_v51 }
 0x4f4   : > { %14208 = vst [vmem:[#allocation31_spill] sm:$0xff] %v12574_v44  ;;  %5538 = vadd.xlane.f32.xlu1 %v5092_v55  ;;  %v5096_v42 = vmul.f32 %v8626_v4, %v4653_v31  ;;  %v8634_v4 = vunpack.c.l.bf16 %v12602_v0 }
 0x4f5   : > { %v12583_v36 = vpop.xlane.xlu1 %5374  ;;  %v4657_v55 = vrot.slane %v4111_v10, %v10685_v35  ;;  %v4096_v10 = vrot.slane %v4080_v62, %v10677_v9 }
 0x4f6   : > { %14209 = vst [vmem:[#allocation24_spill] sm:$0xff] %v12583_v36  ;;  %5528 = vadd.xlane.f32.xlu0 %v5087_v52  ;;  %v4113_v52 = vcombine.high %v4103_v5, %v4103_v5 }
 0x4f7   : > { %v12589_v39 = vpop.xlane.xlu0 %5448  ;;  %v5098_v5 = vmul.f32 %v8630_v45, %v4657_v55 }
 0x4f8   : > { %5542 = vadd.xlane.f32.xlu1 %v5094_v29  ;;  %v6425_v29 = vrot.slane %v5363_v33, %v11154_v14  ;;  %v4661_v44 = vrot.slane %v4113_v52, %v10685_v35  ;;  %v4082_v33 = vcombine.high %v4080_v62, %v4080_v62  ;;  %v8638_v52 = vunpack.c.l.bf16 %v8854_v1 }
 0x4f9   : > { %v12596_v54 = vpop.xlane.xlu1 %5410 }
 0x4fa   : > { %14210 = vst [vmem:[#allocation26_spill] sm:$0xff] %v12596_v54  ;;  %5532 = vadd.xlane.f32.xlu0 %v5089_v22  ;;  %v5100_v62 = vmul.f32 %v8634_v4, %v4661_v44 }
 0x4fb   : > { %v5365_v32 = vpop.xlane.xlu0 %5364 }
 0x4fc   : > { %v6429_v43 = vrot.slane %v5365_v32, %v11167_v56  ;;  %5546 = vadd.xlane.f32.xlu1 %v5096_v42  ;;  %v5093_v42 = vmul.f32 %v8619_v61, %v12552_v11  ;;  %v14214_v11 = vld [vmem:[#allocation32_spill] sm:$0xff]  ;;  %v14215_v61 = vld [vmem:[#allocation33_spill] sm:$0xff] }
 0x4fd   : > { %v12608_v23 = vpop.xlane.xlu1 %5414 }
 0x4fe   : > { %14211 = vst [vmem:[#allocation42_spill] sm:$0xff] %v12608_v23  ;;  %v6430_v22 = vsel %vm5970_vm5, %v6429_v43, %v6425_v29  ;;  %5536 = vadd.xlane.f32.xlu0 %v5091_v53  ;;  %v8623_v29 = vunpack.c.h.bf16 %v12555_v47  ;;  %v4110_v43 = vrot.slane %v4082_v33, %v10677_v9  ;;  %v14216_v47 = vsub.f32 %v14214_v11, %v14215_v61  ;;  %v8856_v33 = vld [vmem:[%s10179_s1 + $0x330] sm:$0xff]  }
 0x4ff   : > { %v7166_v32 = vsel %vm7119_vm8, %v6430_v22, %v12516_v46  ;;  %v12616_v51 = vpop.xlane.xlu0 %5372  ;;  %v4665_v46 = vrot.slane %v4096_v10, %v10685_v35  ;;  %v8855_v22 = vld [vmem:[%s10179_s1 + $0x328] sm:$0xff]   ;;  %v12648_v61 = vrot.slane %v10806_v34, %v10677_v9 }
 0x500   : > { %v12621_v26 = vsel %vm7121_vm9, %v12531_v7, %v7166_v32  ;;  %5550 = vadd.xlane.f32.xlu1 %v5098_v5  ;;  %v5095_v7 = vmul.f32 %v8623_v29, %v4649_v49  ;;  %v8627_v5 = vunpack.c.h.bf16 %v12579_v41  ;;  %v2251_v32 = vmul.f32 1.442695, %v14216_v47  ;;  %v8857_v47 = vld [vmem:[%s10179_s1 + $0x338] sm:$0xff]  }
 0x501   : > { %14212 = vst [vmem:[#allocation43_spill] sm:$0xff] %v12621_v26  ;;  %v12625_v45 = vpop.xlane.xlu1 %5450  ;;  %v5102_v4 = vmul.f32 %v8638_v52, %v4665_v46  ;;  %v4669_v23 = vrot.slane %v4110_v43, %v10685_v35  ;;  %v8631_v41 = vunpack.c.h.bf16 %v12592_v21  ;;  %v8635_v21 = vunpack.c.h.bf16 %v12602_v0 }
 0x502   : > { %14213 = vst [vmem:[#allocation44_spill] sm:$0xff] %v12625_v45  ;;  %5540 = vadd.xlane.f32.xlu0 %v5093_v42  ;;  %v8642_v42 = vunpack.c.l.bf16 %v8855_v22  ;;  %v4112_v45 = vcombine.high %v4096_v10, %v4096_v10  ;;  %v5097_v49 = vmul.f32 %v8627_v5, %v4653_v31  ;;  %9241 = vpow2.f32 %v2251_v32 }
 0x503   : > { %v12629_v53 = vpop.xlane.xlu0 %5376  ;;  %v5099_v31 = vmul.f32 %v8631_v41, %v4657_v55 }
 0x504   : > { %5554 = vadd.xlane.f32.xlu1 %v5100_v62  ;;  %v8646_v62 = vunpack.c.l.bf16 %v8856_v33  ;;  %v5104_v11 = vmul.f32 %v8642_v42, %v4669_v23  ;;  %v4673_v52 = vrot.slane %v4112_v45, %v10685_v35  ;;  %v12659_v45 = vrot.slane %v12648_v61, %v10677_v9 }
 0x505   : > { %v12636_v26 = vpop.xlane.xlu1 %5454 }
 0x506   : > { %14217 = vst [vmem:[#allocation32_spill] sm:$0xff] %v12636_v26  ;;  %5544 = vadd.xlane.f32.xlu0 %v5095_v7  ;;  %v4114_v7 = vcombine.high %v4110_v43, %v4110_v43  ;;  %v5106_v32 = vmul.f32 %v8646_v62, %v4673_v52  ;;  %v4681_v62 = vrot.slane %v12659_v45, %v10685_v35 }
 0x507   : > { %v12640_v54 = vpop.xlane.xlu0 %5412 }
 0x508   : > { %5558 = vadd.xlane.f32.xlu1 %v5102_v4  ;;  %v8650_v4 = vunpack.c.l.bf16 %v8857_v47  ;;  %v4677_v42 = vrot.slane %v4114_v7, %v10685_v35 }
 0x509   : > { %v12643_v29 = vpop.xlane.xlu1 %5462 }
 0x50a   : > { %14218 = vst [vmem:[#allocation33_spill] sm:$0xff] %v12643_v29  ;;  %5548 = vadd.xlane.f32.xlu0 %v5097_v49  ;;  %v8858_v49 = vld [vmem:[%s10179_s1 + $0x340] sm:$0xff]   ;;  %v5101_v29 = vmul.f32 %v8635_v21, %v4661_v44  ;;  %v5108_v0 = vmul.f32 %v8650_v4, %v4677_v42  ;;  %v2397_v4 = vld [vmem:[%s11031_s8 + $0x78] sm:$0xff] }
 0x50b   : > { %v12650_v10 = vpop.xlane.xlu0 %5416  ;;  %v8654_v41 = vunpack.c.l.bf16 %v8858_v49 }
 0x50c   : > { %14219 = vst [vmem:[#allocation45_spill] sm:$0xff] %v12650_v10  ;;  %5562 = vadd.xlane.f32.xlu1 %v5104_v11  ;;  %v8639_v11 = vunpack.c.h.bf16 %v8854_v1 }
 0x50d   : > { %v12654_v5 = vpop.xlane.xlu1 %5378 }
 0x50e   : > { %14220 = vst [vmem:[#allocation46_spill] sm:$0xff] %v12654_v5  ;;  %5552 = vadd.xlane.f32.xlu0 %v5099_v31  ;;  %v14224_v31 = vld [vmem:[#allocation28_spill] sm:$0xff]  ;;  %v14225_v5 = vld [vmem:[#allocation30_spill] sm:$0xff]  ;;  %v5103_v36 = vmul.f32 %v8639_v11, %v4665_v46 }
 0x50f   : > { %v12661_v43 = vpop.xlane.xlu0 %5452  ;;  %v14226_v26 = vsub.f32 %v14224_v31, %v14225_v5  ;;  %v12675_v1 = vpop.eup %9241 }
 0x510   : > { %14221 = vst [vmem:[#allocation47_spill] sm:$0xff] %v12661_v43  ;;  %5566 = vadd.xlane.f32.xlu1 %v5106_v32  ;;  %v8643_v32 = vunpack.c.h.bf16 %v8855_v22 }
 0x511   : > { %v12664_v55 = vpop.xlane.xlu1 %5418  ;;  %v2249_v10 = vmul.f32 1.442695, %v14226_v26  ;;  %v2413_v26 = vmul.f32 %v12675_v1, %v2397_v4 }
 0x512   : > { %14222 = vst [vmem:[#allocation48_spill] sm:$0xff] %v12664_v55  ;;  %5556 = vadd.xlane.f32.xlu0 %v5101_v29  ;;  %v5110_v29 = vmul.f32 %v8654_v41, %v4681_v62  ;;  %v5105_v55 = vmul.f32 %v8643_v32, %v4669_v23 }
 0x513   : > { %v12668_v7 = vpop.xlane.xlu0 %5456  ;;  %9243 = vpow2.f32 %v2249_v10 }
 0x514   : > { %14223 = vst [vmem:[#allocation49_spill] sm:$0xff] %v12668_v7  ;;  %5570 = vadd.xlane.f32.xlu1 %v5108_v0  ;;  %v8647_v7 = vunpack.c.h.bf16 %v8856_v33  ;;  %v8655_v33 = vunpack.c.h.bf16 %v8858_v49  ;;  %9245 = vrcp.f32 %v11059_v15  ;;  %v2529_v15 = vstv %s2528_s2 }
 0x515   : > { %v12673_v44 = vpop.xlane.xlu1 %5422  ;;  %9247 = vrcp.f32 %v11102_v50  ;;  %vm12760_vm13 = vcmp.eq.s32.totalorder %v2529_v15, 1 }
 0x516   : > { %5560 = vadd.xlane.f32.xlu0 %v5103_v36  ;;  %v5107_v5 = vmul.f32 %v8647_v7, %v4673_v52  ;;  %v8651_v36 = vunpack.c.h.bf16 %v8857_v47  ;;  %v5111_v41 = vmul.f32 %v8655_v33, %v4681_v62  ;;  %v2396_v47 = vld [vmem:[%s11031_s8 + $0x70] sm:$0xff]  ;;  %9249 = vrcp.f32 %v11159_v19  ;;  %v14250_v33 = vld [vmem:[#allocation38_spill] sm:$0xff]  ;;  %v14264_v19 = vld [vmem:[#allocation35_spill] sm:$0xff] }
 0x517   : > { %v12677_v21 = vpop.xlane.xlu0 %5464  ;;  %9251 = vrcp.f32 %v11077_v30 }
 0x518   : > { %5574 = vadd.xlane.f32.xlu1 %v5110_v29  ;;  %v5109_v23 = vmul.f32 %v8651_v36, %v4677_v42 }
 0x519   : > { %v12680_v43 = vpop.xlane.xlu1 %5430 }
 0x51a   : > { %14227 = vst [vmem:[#allocation28_spill] sm:$0xff] %v12680_v43  ;;  %5564 = vadd.xlane.f32.xlu0 %v5105_v55 }
 0x51b   : > { %v2445_v46 = vpop.xlane.xlu0 %2444 }
 0x51c   : > { %v12683_v22 = vadd.f32 %v2445_v46, %v2413_v26 }
 0x51d   : > { %v12685_v11 = vpop.xlane.xlu1 %5458 }
 0x51e   : > { %2494 = vst.msk [vmem:[%s11031_s8 + $0x78] sm:$0xff] %vm2462_vm4, %v12683_v22  ;;  %5568 = vadd.xlane.f32.xlu0 %v5107_v5 }
 0x51f   : > { %v12690_v10 = vpop.xlane.xlu0 %5380 }
 0x520   : > { %v12696_v31 = vpop.eup %9243 }
 0x521   : > { %v12692_v55 = vpop.xlane.xlu1 %5466  ;;  %v2412_v32 = vmul.f32 %v12696_v31, %v2396_v47 }
 0x522   : > { %14228 = vst [vmem:[#allocation30_spill] sm:$0xff] %v12692_v55  ;;  %5572 = vadd.xlane.f32.xlu0 %v5109_v23 }
 0x523   : > { %v12694_v0 = vpop.xlane.xlu0 %5420 }
 0x525   : > { %v12698_v52 = vpop.xlane.xlu1 %5470 }
 0x526   : > { %14229 = vst [vmem:[#allocation50_spill] sm:$0xff] %v12698_v52  ;;  %5576 = vadd.xlane.f32.xlu0 %v5111_v41 }
 0x527   : > { %v12701_v7 = vpop.xlane.xlu0 %5424 }
 0x529   : > { %2727 = vperm.xlu1 %9180, %v11038_v58   ;;  %v2443_v42 = vpop.xlane.xlu1 %2442 }
 0x52a   : > { %v12705_v49 = vadd.f32 %v2443_v42, %v2412_v32 }
 0x52b   : > { %v12707_v29 = vpop.xlane.xlu0 %5432 }
 0x52c   : > { %14230 = vst [vmem:[#allocation51_spill] sm:$0xff] %v12707_v29  ;;  %2493 = vst.msk [vmem:[%s11031_s8 + $0x70] sm:$0xff] %vm2462_vm4, %v12705_v49  ;;  %v8874_v29 = vld [vmem:[%s10179_s1 + $0x3c0] sm:$0xff]  }
 0x52d   : > { %2737 = vperm.xlu1 %9180, %v11083_v2   ;;  %v12713_v62 = vpop.xlane.xlu1 %5426 }
 0x52f   : > { %v12715_v4 = vpop.xlane.xlu0 %5460 }
 0x531   : > { %2742 = vperm.xlu1 %9180, %v11057_v28   ;;  %v12718_v26 = vpop.xlane.xlu1 %5434 }
 0x532   : > { %14232 = vst [vmem:[#allocation52_spill] sm:$0xff] %v12718_v26 }
 0x533   : > { %v12720_v58 = vpop.xlane.xlu0 %5468 }
 0x534   : > { %14233 = vst [vmem:[#allocation53_spill] sm:$0xff] %v12720_v58 }
 0x535   : > { %2752 = vperm.xlu1 %9180, %v11110_v12   ;;  %v12723_v46 = vpop.xlane.xlu1 %5438 }
 0x536   : > { %14234 = vst [vmem:[#allocation54_spill] sm:$0xff] %v12723_v46  ;;  %v14265_v46 = vld [vmem:[#allocation36_spill] sm:$0xff] }
 0x537   : > { %v12725_v5 = vpop.xlane.xlu0 %5472 }
 0x538   : > { %14235 = vst [vmem:[#allocation55_spill] sm:$0xff] %v12725_v5 }
 0x539   : > { %2762 = vperm.xlu1 %9180, %v11248_v24   ;;  %v12728_v2 = vpop.xlane.xlu1 %5474 }
 0x53a   : > { %14236 = vst [vmem:[#allocation56_spill] sm:$0xff] %v12728_v2 }
 0x53b   : > { %v12730_v36 = vpop.xlane.xlu0 %5428 }
 0x53c   : > { %2732 = vperm.xlu0 %9179, %v11028_v8  }
 0x53d   : > { %2772 = vperm.xlu1 %9180, %v11640_v16   ;;  %v12735_v28 = vpop.xlane.xlu1 %5478  ;;  %v9246_v16 = vpop.eup %9245 }
 0x53e   : > { %14237 = vst [vmem:[#allocation57_spill] sm:$0xff] %v12735_v28  ;;  %v2532_v30 = vsel %vm12760_vm13, %v9246_v16, 1.0 }
 0x53f   : > { %v12738_v12 = vpop.xlane.xlu0 %5436 }
 0x540   : > { %14238 = vst [vmem:[#allocation58_spill] sm:$0xff] %v12738_v12  ;;  %2747 = vperm.xlu0 %9179, %v11106_v27   ;;  %v14243_v27 = vld [vmem:[#allocation39_spill] sm:$0xff] }
 0x541   : > { %2782 = vperm.xlu1 %9180, %v12042_v20   ;;  %v12743_v24 = vpop.xlane.xlu1 %5442  ;;  %9253 = vrcp.f32 %v14243_v27  ;;  %v14255_v27 = vld [vmem:[#allocation34_spill] sm:$0xff] }
 0x542   : > { %14239 = vst [vmem:[#allocation59_spill] sm:$0xff] %v12743_v24 }
 0x543   : > { %v12745_v23 = vpop.xlane.xlu0 %5440 }
 0x544   : > { %14240 = vst [vmem:[#allocation60_spill] sm:$0xff] %v12745_v23  ;;  %2757 = vperm.xlu0 %9179, %v11341_v40   ;;  %v14247_v40 = vld [vmem:[#allocation37_spill] sm:$0xff] }
 0x545   : > { %2792 = vperm.xlu1 %9180, %v12402_v63   ;;  %v12750_v8 = vpop.xlane.xlu1 %5482  ;;  %9255 = vrcp.f32 %v14247_v40 }
 0x546   : > { %14241 = vst [vmem:[#allocation61_spill] sm:$0xff] %v12750_v8  ;;  %9257 = vrcp.f32 %v11686_v59 }
 0x547   : > { %v12753_v50 = vpop.xlane.xlu0 %5476  ;;  %9259 = vrcp.f32 %v14250_v33 }
 0x548   : > { %14242 = vst [vmem:[#allocation62_spill] sm:$0xff] %v12753_v50  ;;  %2767 = vperm.xlu0 %9179, %v11740_v48   ;;  %v9248_v48 = vpop.eup %9247  ;;  %9261 = vrcp.f32 %v12084_v25 }
 0x549   : > { %2802 = vperm.xlu1 %9180, %v12675_v1   ;;  %v12758_v20 = vpop.xlane.xlu1 %5486  ;;  %v2534_v59 = vsel %vm12760_vm13, %v9248_v48, 1.0  ;;  %v9250_v47 = vpop.eup %9249  ;;  %9263 = vrcp.f32 %v11378_v38 }
 0x54a   : > { %14244 = vst [vmem:[#allocation39_spill] sm:$0xff] %v12758_v20  ;;  %v9252_v42 = vpop.eup %9251  ;;  %9265 = vrcp.f32 %v12438_v57  ;;  %v2536_v25 = vsel %vm12760_vm13, %v9250_v47, 1.0 }
 0x54b   : > { %v12765_v63 = vpop.xlane.xlu0 %5480  ;;  %9267 = vrcp.f32 %v14255_v27  ;;  %v2531_v38 = vsel %vm12760_vm13, %v9252_v42, 1.0 }
 0x54c   : > { %14248 = vst [vmem:[#allocation37_spill] sm:$0xff] %v12765_v63  ;;  %2777 = vperm.xlu0 %9179, %v12134_v13   ;;  %9269 = vrcp.f32 %v12683_v22 }
 0x54d   : > { %2844 = vperm.xlu1 %9180, %v2532_v30   ;;  %v12771_v1 = vpop.xlane.xlu1 %5494  ;;  %9271 = vrcp.f32 %v12179_v3 }
 0x54e   : > { %14249 = vst [vmem:[#allocation63_spill] sm:$0xff] %v12771_v1  ;;  %9273 = vrcp.f32 %v12533_v17 }
 0x54f   : > { %v12774_v41 = vpop.xlane.xlu0 %5444  ;;  %9275 = vrcp.f32 %v12705_v49 }
 0x550   : > { %14251 = vst [vmem:[#allocation38_spill] sm:$0xff] %v12774_v41  ;;  %2787 = vperm.xlu0 %9179, %v12492_v37   ;;  %v9254_v37 = vpop.eup %9253 }
 0x551   : > { %v12780_v13 = vpop.xlane.xlu1 %5490  ;;  %2854 = vperm.xlu1 %9180, %v2534_v59   ;;  %v2538_v57 = vsel %vm12760_vm13, %v9254_v37, 1.0 }
 0x552   : > { %14252 = vst [vmem:[#allocation64_spill] sm:$0xff] %v12780_v13  ;;  %v9256_v40 = vpop.eup %9255 }
 0x553   : > { %v12783_v32 = vpop.xlane.xlu0 %5484  ;;  %v2533_v33 = vsel %vm12760_vm13, %v9256_v40, 1.0 }
 0x554   : > { %14253 = vst [vmem:[#allocation65_spill] sm:$0xff] %v12783_v32  ;;  %2797 = vperm.xlu0 %9179, %v12696_v31   ;;  %v9258_v31 = vpop.eup %9257  ;;  %v12851_v32 = vld [vmem:[%s10179_s1 + $0x380] sm:$0xff]  }
 0x555   : > { %v12789_v15 = vpop.xlane.xlu1 %5498  ;;  %2864 = vperm.xlu1 %9180, %v2536_v25   ;;  %v9260_v59 = vpop.eup %9259  ;;  %v2540_v22 = vsel %vm12760_vm13, %v9258_v31, 1.0 }
 0x556   : > { %14254 = vst [vmem:[#allocation66_spill] sm:$0xff] %v12789_v15  ;;  %v9262_v47 = vpop.eup %9261  ;;  %v2535_v3 = vsel %vm12760_vm13, %v9260_v59, 1.0  ;;  %v4130_v15 = vcombine.high %v12648_v61, %v12648_v61 }
 0x557   : > { %v12792_v16 = vpop.xlane.xlu0 %5488  ;;  %v9264_v37 = vpop.eup %9263  ;;  %v2542_v27 = vsel %vm12760_vm13, %v9262_v47, 1.0 }
 0x558   : > { %14256 = vst [vmem:[#allocation34_spill] sm:$0xff] %v12792_v16  ;;  %2839 = vperm.xlu0 %9179, %v2531_v38   ;;  %v9266_v38 = vpop.eup %9265  ;;  %v2537_v17 = vsel %vm12760_vm13, %v9264_v37, 1.0  ;;  %v12862_v61 = vrot.slane %v4130_v15, %v10677_v9  ;;  %v4220_v15 = vrot.slane %v14265_v46, %v10677_v9 }
 0x559   : > { %v12799_v30 = vpop.xlane.xlu1 %5502  ;;  %2874 = vperm.xlu1 %9180, %v2538_v57   ;;  %v9268_v31 = vpop.eup %9267 }
 0x55a   : > { %14257 = vst [vmem:[#allocation67_spill] sm:$0xff] %v12799_v30  ;;  %v9270_v59 = vpop.eup %9269  ;;  %v4685_v28 = vrot.slane %v12862_v61, %v10685_v35 }
 0x55b   : > { %v12802_v48 = vpop.xlane.xlu0 %5496  ;;  %v2546_v49 = vsel %vm12760_vm13, %v9270_v59, 1.0 }
 0x55c   : > { %14258 = vst [vmem:[#allocation68_spill] sm:$0xff] %v12802_v48  ;;  %2849 = vperm.xlu0 %9179, %v2533_v33   ;;  %v2544_v33 = vsel %vm12760_vm13, %v9266_v38, 1.0 }
 0x55d   : > { %v12808_v42 = vpop.xlane.xlu1 %5506  ;;  %2884 = vperm.xlu1 %9180, %v2540_v22  }
 0x55e   : > { %14259 = vst [vmem:[#allocation69_spill] sm:$0xff] %v12808_v42 }
 0x55f   : > { %v12811_v25 = vpop.xlane.xlu0 %5492 }
 0x560   : > { %14260 = vst [vmem:[#allocation70_spill] sm:$0xff] %v12811_v25  ;;  %2859 = vperm.xlu0 %9179, %v2535_v3   ;;  %v2539_v3 = vsel %vm12760_vm13, %v9268_v31, 1.0  ;;  %v8860_v25 = vld [vmem:[%s10179_s1 + $0x350] sm:$0xff]  }
 0x561   : > { %v12817_v40 = vpop.xlane.xlu1 %5510  ;;  %2894 = vperm.xlu1 %9180, %v2542_v27   ;;  %v9272_v27 = vpop.eup %9271  ;;  %v8662_v20 = vunpack.c.l.bf16 %v8860_v25  ;;  %v8663_v63 = vunpack.c.h.bf16 %v8860_v25 }
 0x562   : > { %v2541_v38 = vsel %vm12760_vm13, %v9272_v27, 1.0 }
 0x563   : > { %v12820_v57 = vpop.xlane.xlu0 %5500 }
 0x564   : > { %14261 = vst [vmem:[#allocation71_spill] sm:$0xff] %v12820_v57  ;;  %2869 = vperm.xlu0 %9179, %v2537_v17   ;;  %v9274_v17 = vpop.eup %9273 }
 0x565   : > { %v5515_v22 = vpop.xlane.xlu1 %5514  ;;  %2904 = vperm.xlu1 %9180, %v2544_v33   ;;  %v2543_v31 = vsel %vm12760_vm13, %v9274_v17, 1.0  ;;  %v12845_v17 = vld [vmem:[%s10179_s1 + $0x348] sm:$0xff]  }
 0x566   : > { %v8658_v1 = vunpack.c.l.bf16 %v12845_v17  ;;  %v6767_v26 = vrot.slane %v5515_v22, %v11154_v14  ;;  %v6758_v22 = vrot.slane %v12817_v40, %v11154_v14 }
 0x567   : > { %v12826_v47 = vpop.xlane.xlu0 %5504 }
 0x568   : > { %14262 = vst [vmem:[#allocation72_spill] sm:$0xff] %v12826_v47  ;;  %2879 = vperm.xlu0 %9179, %v2539_v3   ;;  %v9276_v3 = vpop.eup %9275 }
 0x569   : > { %v5519_v42 = vpop.xlane.xlu1 %5518  ;;  %2914 = vperm.xlu1 %9180, %v2546_v49  }
 0x56a   : > { %v6776_v25 = vrot.slane %v5519_v42, %v11154_v14 }
 0x56b   : > { %v12832_v37 = vpop.xlane.xlu0 %5508 }
 0x56c   : > { %14263 = vst [vmem:[#allocation73_spill] sm:$0xff] %v12832_v37  ;;  %2889 = vperm.xlu0 %9179, %v2541_v38   ;;  %v2545_v37 = vsel %vm12760_vm13, %v9276_v3, 1.0  ;;  %v12856_v3 = vld [vmem:[%s10179_s1 + $0x388] sm:$0xff]  }
 0x56d   : > { %v5523_v33 = vpop.xlane.xlu1 %5522 }
 0x56f   : > { %v5513_v47 = vpop.xlane.xlu0 %5512 }
 0x570   : > { %2899 = vperm.xlu0 %9179, %v2543_v31   ;;  %v4160_v31 = vcombine.high %v12659_v45, %v12659_v45  ;;  %v6762_v41 = vrot.slane %v5513_v47, %v11167_v56  ;;  %v6785_v47 = vrot.slane %v5523_v33, %v11154_v14 }
 0x571   : > { %v5527_v59 = vpop.xlane.xlu1 %5526 }
 0x572   : > { %v4689_v8 = vrot.slane %v4160_v31, %v10685_v35  ;;  %v8687_v31 = vunpack.c.h.bf16 %v12851_v32  ;;  %v6794_v42 = vrot.slane %v5527_v59, %v11154_v14  ;;  %v6763_v55 = vsel %vm5970_vm5, %v6762_v41, %v6758_v22 }
 0x573   : > { %v5517_v49 = vpop.xlane.xlu0 %5516  ;;  %v8718_v22 = vunpack.c.l.bf16 %v8874_v29 }
 0x574   : > { %2909 = vperm.xlu0 %9179, %v2545_v37   ;;  %v4171_v37 = vrot.slane %v14264_v19, %v10677_v9  ;;  %v6771_v45 = vrot.slane %v5517_v49, %v11167_v56  ;;  %v5114_v41 = vmul.f32 %v8662_v20, %v4689_v8 }
 0x575   : > { %v5531_v27 = vpop.xlane.xlu1 %5530 }
 0x576   : > { %v4179_v2 = vcombine.high %v4171_v37, %v4171_v37  ;;  %v12883_v52 = vrot.slane %v4171_v37, %v10677_v9  ;;  %v4236_v37 = vrot.slane %v4220_v15, %v10677_v9  ;;  %v6803_v40 = vrot.slane %v5531_v27, %v11154_v14 }
 0x577   : > { %v5521_v57 = vpop.xlane.xlu0 %5520 }
 0x578   : > { %v6780_v50 = vrot.slane %v5521_v57, %v11167_v56  ;;  %v12893_v5 = vrot.slane %v4179_v2, %v10677_v9  ;;  %v4228_v2 = vcombine.high %v4220_v15, %v4220_v15 }
 0x579   : > { %v5535_v38 = vpop.xlane.xlu1 %5534 }
 0x57a   : > { %v6812_v59 = vrot.slane %v5535_v38, %v11154_v14 }
 0x57b   : > { %v5525_v48 = vpop.xlane.xlu0 %5524 }
 0x57c   : > { %v6789_v49 = vrot.slane %v5525_v48, %v11167_v56  ;;  %v6772_v48 = vsel %vm5970_vm5, %v6771_v45, %v6767_v26 }
 0x57d   : > { %v12840_v30 = vpop.xlane.xlu1 %5538 }
 0x57e   : > { %v6790_v33 = vsel %vm5970_vm5, %v6789_v49, %v6785_v47  ;;  %v5115_v47 = vmul.f32 %v8663_v63, %v4689_v8  ;;  %v6821_v38 = vrot.slane %v12840_v30, %v11154_v14  ;;  %v4745_v8 = vrot.slane %v4236_v37, %v10685_v35 }
 0x57f   : > { %v5529_v16 = vpop.xlane.xlu0 %5528  ;;  %v12923_v63 = vrot.slane %v4228_v2, %v10677_v9 }
 0x580   : > { %v6798_v57 = vrot.slane %v5529_v16, %v11167_v56  ;;  %v6781_v16 = vsel %vm5970_vm5, %v6780_v50, %v6776_v25 }
 0x581   : > { %v12858_v13 = vpop.xlane.xlu1 %5542 }
 0x582   : > { %v6799_v50 = vsel %vm5970_vm5, %v6798_v57, %v6794_v42  ;;  %v8691_v42 = vunpack.c.h.bf16 %v12856_v3 }
 0x583   : > { %v5533_v23 = vpop.xlane.xlu0 %5532 }
 0x584   : > { %v6807_v12 = vrot.slane %v5533_v23, %v11167_v56  ;;  %v7199_v23 = vsel %vm7115_vm6, %v6772_v48, %v6763_v55  ;;  %v5112_v55 = vmul.f32 %v8658_v1, %v4685_v28  ;;  %v4717_v1 = vrot.slane %v12893_v5, %v10685_v35 }
 0x585   : > { %v12878_v24 = vpop.xlane.xlu1 %5546  ;;  %v7200_v25 = vsel %vm7117_vm7, %v6781_v16, %v7199_v23  ;;  %v8875_v16 = vld [vmem:[%s10179_s1 + $0x3c8] sm:$0xff]  }
 0x586   : > { %v6808_v58 = vsel %vm5970_vm5, %v6807_v12, %v6803_v40  ;;  %v7201_v27 = vsel %vm7119_vm8, %v6790_v33, %v7200_v25  ;;  %v4713_v12 = vrot.slane %v12883_v52, %v10685_v35  ;;  %v4258_v25 = vcombine.high %v4236_v37, %v4236_v37 }
 0x587   : > { %v5537_v43 = vpop.xlane.xlu0 %5536  ;;  %v7202_v57 = vsel %vm7121_vm9, %v6799_v50, %v7201_v27  ;;  %v8868_v50 = vld [vmem:[%s10179_s1 + $0x390] sm:$0xff]   ;;  %v6830_v27 = vrot.slane %v12858_v13, %v11154_v14  ;;  %v8722_v37 = vunpack.c.l.bf16 %v8875_v16 }
 0x588   : > { %v6816_v26 = vrot.slane %v5537_v43, %v11167_v56  ;;  %v7203_v20 = vsel %vm7123_vm10, %v6808_v58, %v7202_v57  ;;  %v4209_v58 = vcombine.high %v12883_v52, %v12883_v52  ;;  %v14268_v52 = vunpack.c.l.bf16 %v12851_v32 }
 0x589   : > { %v12904_v45 = vpop.xlane.xlu1 %5550 }
 0x58a   : > { %v6817_v49 = vsel %vm5970_vm5, %v6816_v26, %v6812_v59  ;;  %v14266_v26 = vunpack.c.h.bf16 %v12845_v17  ;;  %v8719_v59 = vunpack.c.h.bf16 %v8874_v29  ;;  %v14269_v29 = vunpack.c.l.bf16 %v12856_v3 }
 0x58b   : > { %v5541_v43 = vpop.xlane.xlu0 %5540  ;;  %v7204_v40 = vsel %vm7125_vm11, %v6817_v49, %v7203_v20  ;;  %v5127_v49 = vmul.f32 %v8687_v31, %v4713_v12  ;;  %v5142_v17 = vmul.f32 %v8718_v22, %v4745_v8  ;;  %v12950_v20 = vmul.f32 %v8691_v42, %v4717_v1  ;;  %v8861_v31 = vld [vmem:[%s10179_s1 + $0x358] sm:$0xff]  }
 0x58c   : > { %v6825_v15 = vrot.slane %v5541_v43, %v11167_v56  ;;  %v5113_v23 = vmul.f32 %v14266_v26, %v4685_v28  ;;  %v5128_v28 = vmul.f32 %v14269_v29, %v4717_v1  ;;  %v4721_v32 = vrot.slane %v4209_v58, %v10685_v35 }
 0x58d   : > { %v12917_v48 = vpop.xlane.xlu1 %5554  ;;  %5578 = vadd.xlane.f32.xlu1 %v5112_v55  ;;  %v5126_v55 = vmul.f32 %v14268_v52, %v4713_v12  ;;  %v4753_v22 = vrot.slane %v4258_v25, %v10685_v35  ;;  %v4115_v1 = vcombine.high %v10806_v34, %v10806_v34  ;;  %v4164_v34 = vcombine.high %v14264_v19, %v14264_v19  ;;  %v8877_v19 = vld [vmem:[%s10179_s1 + $0x3d8] sm:$0xff]  }
 0x58e   : > { %v6826_v30 = vsel %vm5970_vm5, %v6825_v15, %v6821_v38  ;;  %v8876_v38 = vld [vmem:[%s10179_s1 + $0x3d0] sm:$0xff]   ;;  %v4749_v15 = vrot.slane %v12923_v63, %v10685_v35  ;;  %v6848_v29 = vrot.slane %v12904_v45, %v11154_v14 }
 0x58f   : > { %v5545_v33 = vpop.xlane.xlu0 %5544  ;;  %v12935_v2 = vsel %vm7127_vm12, %v6826_v30, %v7204_v40  ;;  %v8694_v30 = vunpack.c.l.bf16 %v8868_v50  ;;  %v12954_v40 = vmul.f32 %v8719_v59, %v4745_v8  ;;  %v8726_v3 = vunpack.c.l.bf16 %v8876_v38 }
 0x590   : > { %14267 = vst [vmem:[#allocation35_spill] sm:$0xff] %v12935_v2  ;;  %v6834_v43 = vrot.slane %v5545_v33, %v11167_v56  ;;  %v6839_v33 = vrot.slane %v12878_v24, %v11154_v14  ;;  %v12964_v58 = vmul.f32 %v8722_v37, %v4749_v15  ;;  %v8666_v8 = vunpack.c.l.bf16 %v8861_v31 }
 0x591   : > { %v12943_v57 = vpop.xlane.xlu1 %5558  ;;  %5582 = vadd.xlane.f32.xlu1 %v5114_v41  ;;  %v8723_v41 = vunpack.c.h.bf16 %v8875_v16  ;;  %v4162_v16 = vcombine.high %v12862_v61, %v12862_v61  ;;  %v12969_v59 = vmul.f32 %v8694_v30, %v4721_v32  ;;  %v8869_v61 = vld [vmem:[%s10179_s1 + $0x398] sm:$0xff]  }
 0x592   : > { %v6835_v13 = vsel %vm5970_vm5, %v6834_v43, %v6830_v27  ;;  %v8695_v27 = vunpack.c.h.bf16 %v8868_v50  ;;  %v4211_v50 = vcombine.high %v12893_v5, %v12893_v5 }
 0x593   : > { %5580 = vadd.xlane.f32.xlu0 %v5113_v23  ;;  %v5549_v12 = vpop.xlane.xlu0 %5548  ;;  %v8727_v23 = vunpack.c.h.bf16 %v8876_v38  ;;  %v12976_v52 = vmul.f32 %v8723_v41, %v4749_v15  ;;  %v4260_v38 = vcombine.high %v12923_v63, %v12923_v63  ;;  %v4693_v15 = vrot.slane %v4162_v16, %v10685_v35 }
 0x594   : > { %v6843_v26 = vrot.slane %v5549_v12, %v11167_v56  ;;  %v12986_v37 = vmul.f32 %v8695_v27, %v4721_v32  ;;  %v8667_v12 = vunpack.c.h.bf16 %v8861_v31  ;;  %v4213_v63 = vcombine.high %v14265_v46, %v14265_v46  ;;  %v8862_v31 = vld [vmem:[%s10179_s1 + $0x360] sm:$0xff]  }
 0x595   : > { %v12962_v42 = vpop.xlane.xlu1 %5562  ;;  %5606 = vadd.xlane.f32.xlu1 %v5126_v55  ;;  %v12978_v55 = vmul.f32 %v8726_v3, %v4753_v22  ;;  %v12993_v30 = vmul.f32 %v8727_v23, %v4753_v22  ;;  %v8698_v41 = vunpack.c.l.bf16 %v8869_v61  ;;  %v4725_v32 = vrot.slane %v4211_v50, %v10685_v35 }
 0x596   : > { %v6844_v24 = vsel %vm5970_vm5, %v6843_v26, %v6839_v33  ;;  %v4178_v3 = vrot.slane %v4164_v34, %v10677_v9  ;;  %v4757_v27 = vrot.slane %v4260_v38, %v10685_v35  ;;  %v8699_v22 = vunpack.c.h.bf16 %v8869_v61  ;;  %v8870_v38 = vld [vmem:[%s10179_s1 + $0x3a0] sm:$0xff]  }
 0x597   : > { %v7206_v25 = vsel %vm7115_vm6, %v6844_v24, %v6835_v13  ;;  %5584 = vadd.xlane.f32.xlu0 %v5115_v47  ;;  %v5553_v43 = vpop.xlane.xlu0 %5552  ;;  %v4129_v13 = vrot.slane %v4115_v1, %v10677_v9  ;;  %v6857_v46 = vrot.slane %v12917_v48, %v11154_v14  ;;  %v13013_v50 = vmul.f32 %v8667_v12, %v4693_v15 }
 0x598   : > { %v6852_v5 = vrot.slane %v5553_v43, %v11167_v56  ;;  %v8731_v34 = vunpack.c.h.bf16 %v8877_v19  ;;  %v13017_v43 = vmul.f32 %v8698_v41, %v4725_v32  ;;  %v8670_v61 = vunpack.c.l.bf16 %v8862_v31  ;;  %v8863_v41 = vld [vmem:[%s10179_s1 + $0x368] sm:$0xff]  }
 0x599   : > { %v12990_v47 = vpop.xlane.xlu1 %5566  ;;  %5610 = vadd.xlane.f32.xlu1 %v5128_v28  ;;  %v8730_v28 = vunpack.c.l.bf16 %v8877_v19  ;;  %v13007_v16 = vrot.slane %v4129_v13, %v10677_v9  ;;  %v4131_v23 = vcombine.high %v4129_v13, %v4129_v13  ;;  %v13027_v19 = vmul.f32 %v8699_v22, %v4725_v32  ;;  %v8878_v13 = vld [vmem:[%s10179_s1 + $0x3e0] sm:$0xff]  }
 0x59a   : > { %v6853_v45 = vsel %vm5970_vm5, %v6852_v5, %v6848_v29  ;;  %v13021_v29 = vrot.slane %v4178_v3, %v10677_v9  ;;  %v6866_v12 = vrot.slane %v12943_v57, %v11154_v14  ;;  %v13042_v32 = vmul.f32 %v8731_v34, %v4757_v27 }
 0x59b   : > { %v7207_v33 = vsel %vm7117_vm7, %v6853_v45, %v7206_v25  ;;  %5608 = vadd.xlane.f32.xlu0 %v5127_v49  ;;  %v5557_v26 = vpop.xlane.xlu0 %5556  ;;  %v13011_v49 = vmul.f32 %v8666_v8, %v4693_v15  ;;  %v4227_v25 = vrot.slane %v4213_v63, %v10677_v9  ;;  %v13025_v8 = vmul.f32 %v8730_v28, %v4757_v27  ;;  %v8871_v27 = vld [vmem:[%s10179_s1 + $0x3a8] sm:$0xff]  }
 0x59c   : > { %v6861_v1 = vrot.slane %v5557_v26, %v11167_v56  ;;  %v4180_v15 = vcombine.high %v4178_v3, %v4178_v3  ;;  %v4697_v45 = vrot.slane %v13007_v16, %v10685_v35  ;;  %v8702_v3 = vunpack.c.l.bf16 %v8870_v38 }
 0x59d   : > { %v13009_v24 = vpop.xlane.xlu1 %5570  ;;  %5638 = vadd.xlane.f32.xlu1 %v5142_v17  ;;  %v8671_v26 = vunpack.c.h.bf16 %v8862_v31  ;;  %v13045_v57 = vrot.slane %v4227_v25, %v10677_v9  ;;  %v4729_v22 = vrot.slane %v13021_v29, %v10685_v35  ;;  %v4229_v31 = vcombine.high %v4227_v25, %v4227_v25 }
 0x59e   : > { %v6862_v48 = vsel %vm5970_vm5, %v6861_v1, %v6857_v46  ;;  %v8734_v46 = vunpack.c.l.bf16 %v8878_v13  ;;  %v8703_v1 = vunpack.c.h.bf16 %v8870_v38  ;;  %v13054_v34 = vrot.slane %v4180_v15, %v10677_v9 }
 0x59f   : > { %v7208_v5 = vsel %vm7119_vm8, %v6862_v48, %v7207_v33  ;;  %5612 = vadd.xlane.f32.xlu0 %v12950_v20  ;;  %v5561_v17 = vpop.xlane.xlu0 %5560  ;;  %v13037_v33 = vrot.slane %v4131_v23, %v10677_v9  ;;  %v4761_v25 = vrot.slane %v13045_v57, %v10685_v35  ;;  %v8735_v15 = vunpack.c.h.bf16 %v8878_v13  ;;  %v8879_v13 = vld [vmem:[%s10179_s1 + $0x3e8] sm:$0xff]  }
 0x5a0   : > { %v6870_v63 = vrot.slane %v5561_v17, %v11167_v56  ;;  %v6875_v17 = vrot.slane %v12962_v42, %v11154_v14  ;;  %v8675_v42 = vunpack.c.h.bf16 %v8863_v41  ;;  %v4161_v2 = vcombine.high %v13007_v16, %v13007_v16 }
 0x5a1   : > { %v13039_v20 = vpop.xlane.xlu1 %5574  ;;  %5642 = vadd.xlane.f32.xlu1 %v12964_v58  ;;  %v8674_v58 = vunpack.c.l.bf16 %v8863_v41  ;;  %v4701_v38 = vrot.slane %v13037_v33, %v10685_v35  ;;  %v13083_v41 = vrot.slane %v4229_v31, %v10677_v9  ;;  %v4210_v31 = vcombine.high %v13021_v29, %v13021_v29 }
 0x5a2   : > { %v6871_v28 = vsel %vm5970_vm5, %v6870_v63, %v6866_v12  ;;  %v13059_v63 = vmul.f32 %v8670_v61, %v4697_v45  ;;  %v13071_v61 = vmul.f32 %v8702_v3, %v4729_v22  ;;  %v8864_v3 = vld [vmem:[%s10179_s1 + $0x370] sm:$0xff]  }
 0x5a3   : > { %v7209_v23 = vsel %vm7121_vm9, %v6871_v28, %v7208_v5  ;;  %5640 = vadd.xlane.f32.xlu0 %v12954_v40  ;;  %v5565_v48 = vpop.xlane.xlu0 %5564  ;;  %v13066_v40 = vmul.f32 %v8671_v26, %v4697_v45  ;;  %v13077_v45 = vmul.f32 %v8703_v1, %v4729_v22  ;;  %v4733_v26 = vrot.slane %v13054_v34, %v10685_v35 }
 0x5a4   : > { %v6879_v12 = vrot.slane %v5565_v48, %v11167_v56  ;;  %v8706_v48 = vunpack.c.l.bf16 %v8871_v27  ;;  %v13094_v1 = vmul.f32 %v8734_v46, %v4761_v25  ;;  %v13098_v9 = vmul.f32 %v8675_v42, %v4701_v38 }
 0x5a5   : > { %v13063_v5 = vpop.permute.xlu1 %2727  ;;  %5614 = vadd.xlane.f32.xlu1 %v12969_v59  ;;  %v4765_v46 = vrot.slane %v13083_v41, %v10685_v35 }
 0x5a6   : > { %14270 = vst [vmem:[#allocation36_spill] sm:$0xff] %v13063_v5  ;;  %v6880_v28 = vsel %vm5970_vm5, %v6879_v12, %v6875_v17  ;;  %v6884_v17 = vrot.slane %v12990_v47, %v11154_v14  ;;  %v13096_v12 = vmul.f32 %v8735_v15, %v4761_v25  ;;  %14272 = vst [vmem:[#allocation75_spill] sm:$0xff] %v13098_v9  ;;  %v8679_v9 = vunpack.c.h.bf16 %v8864_v3 }
 0x5a7   : > { %v7210_v5 = vsel %vm7123_vm10, %v6880_v28, %v7209_v23  ;;  %5644 = vadd.xlane.f32.xlu0 %v12976_v52  ;;  %v5569_v59 = vpop.xlane.xlu0 %5568  ;;  %v13089_v23 = vmul.f32 %v8674_v58, %v4701_v38  ;;  %v8707_v52 = vunpack.c.h.bf16 %v8871_v27  ;;  %v8738_v28 = vunpack.c.l.bf16 %v8879_v13  ;;  %v8880_v38 = vld [vmem:[%s10179_s1 + $0x3f0] sm:$0xff]  }
 0x5a8   : > { %v6888_v16 = vrot.slane %v5569_v59, %v11167_v56  ;;  %v8678_v58 = vunpack.c.l.bf16 %v8864_v3  ;;  %v4705_v27 = vrot.slane %v4161_v2, %v10685_v35  ;;  %v8872_v59 = vld [vmem:[%s10179_s1 + $0x3b0] sm:$0xff]   ;;  %v4259_v25 = vcombine.high %v13045_v57, %v13045_v57 }
 0x5a9   : > { %v13091_v22 = vpop.permute.xlu1 %2737  ;;  %5646 = vadd.xlane.f32.xlu1 %v12978_v55  ;;  %v13106_v55 = vmul.f32 %v8706_v48, %v4733_v26  ;;  %v6893_v15 = vrot.slane %v13009_v24, %v11154_v14  ;;  %v13117_v42 = vmul.f32 %v8707_v52, %v4733_v26  ;;  %v13119_v48 = vpop.f32.mrf.mxu1  ;;  %v4737_v57 = vrot.slane %v4210_v31, %v10685_v35  ;;  %v8865_v52 = vld [vmem:[%s10179_s1 + $0x378] sm:$0xff]  }
 0x5aa   : > { %14271 = vst [vmem:[#allocation74_spill] sm:$0xff] %v13091_v22  ;;  %v6889_v47 = vsel %vm5970_vm5, %v6888_v16, %v6884_v17  ;;  %v8710_v16 = vunpack.c.l.bf16 %v8872_v59  ;;  %v8742_v26 = vunpack.c.l.bf16 %v8880_v38  ;;  %v4212_v3 = vcombine.high %v13054_v34, %v13054_v34 }
 0x5ab   : > { %5616 = vadd.xlane.f32.xlu0 %v12986_v37  ;;  %v5573_v22 = vpop.xlane.xlu0 %5572  ;;  %v7211_v29 = vsel %vm7125_vm11, %v6889_v47, %v7210_v5  ;;  %14273 = vst [vmem:[#allocation76_spill] sm:$0xff] %v13117_v42  ;;  %v8739_v37 = vunpack.c.h.bf16 %v8879_v13  ;;  %v4163_v5 = vcombine.high %v13037_v33, %v13037_v33  ;;  %v8711_v13 = vunpack.c.h.bf16 %v8872_v59 }
 0x5ac   : > { %v6897_v2 = vrot.slane %v5573_v22, %v11167_v56  ;;  %v13128_v22 = vmul.f32 %v8678_v58, %v4705_v27  ;;  %v13132_v42 = vmul.f32 %v8738_v28, %v4765_v46  ;;  %v6902_v31 = vrot.slane %v13039_v20, %v11154_v14  ;;  %v13148_v28 = vpop.f32.mrf.mxu1 }
 0x5ad   : > { %v13121_v17 = vpop.permute.xlu1 %2742  ;;  %5586 = vadd.xlane.f32.xlu1 %v13011_v49  ;;  %v4769_v49 = vrot.slane %v4259_v25, %v10685_v35  ;;  %v13143_v59 = vmul.f32 %v8739_v37, %v4765_v46  ;;  %v13153_v34 = vmul.f32 %v8710_v16, %v4737_v57  ;;  %v4709_v20 = vrot.slane %v4163_v5, %v10685_v35  ;;  %v14279_v16 = vld [vmem:[#allocation23_spill] sm:$0xff] }
 0x5ae   : > { %v6898_v24 = vsel %vm5970_vm5, %v6897_v2, %v6893_v15  ;;  %v13146_v15 = vld [vmem:[%s10179_s1 + $0x3b8] sm:$0xff]   ;;  %v8682_v2 = vunpack.c.l.bf16 %v8865_v52  ;;  %v6528_v46 = vrot.slane %v12576_v60, %v11167_v56  ;;  %v13163_v37 = vmul.f32 %v8711_v13, %v4737_v57 }
 0x5af   : > { %5648 = vadd.xlane.f32.xlu0 %v12993_v30  ;;  %v5577_v47 = vpop.xlane.xlu0 %5576  ;;  %v13138_v33 = vsel %vm7127_vm12, %v6898_v24, %v7211_v29  ;;  %v8743_v30 = vunpack.c.h.bf16 %v8880_v38  ;;  %14275 = vst [vmem:[#allocation78_spill] sm:$0xff] %v13146_v15  ;;  %v13155_v29 = vmul.f32 %v8679_v9, %v4705_v27  ;;  %v8683_v24 = vunpack.c.h.bf16 %v8865_v52 }
 0x5b0   : > { %14274 = vst [vmem:[#allocation77_spill] sm:$0xff] %v13138_v33  ;;  %v6906_v58 = vrot.slane %v5577_v47, %v11167_v56  ;;  %v13166_v47 = vld [vmem:[%s10179_s1 + $0x3f8] sm:$0xff]   ;;  %v13168_v33 = vpop.f32.mrf.mxu1  ;;  %v13173_v9 = vmul.f32 %v8742_v26, %v4769_v49  ;;  %v8714_v27 = vunpack.c.l.bf16 %v13146_v15  ;;  %v13177_v60 = vrot.slane %v4212_v3, %v10685_v35 }
 0x5b1   : > { %v13150_v25 = vpop.permute.xlu1 %2752  ;;  %5618 = vadd.xlane.f32.xlu1 %v13017_v43  ;;  %14277 = vst [vmem:[#allocation80_spill] sm:$0xff] %v13166_v47  ;;  %v6447_v43 = vrot.slane %v12616_v51, %v11167_v56  ;;  %v6524_v57 = vrot.slane %v14279_v16, %v11154_v14  ;;  %v6618_v5 = vrot.slane %v12589_v39, %v11167_v56 }
 0x5b2   : > { %v13161_v38 = vsel %vm5970_vm5, %v6906_v58, %v6902_v31  ;;  %14278 = vst [vmem:[#allocation81_spill] sm:$0xff] %v13177_v60  ;;  %v13183_v13 = vmul.f32 %v8743_v30, %v4769_v49  ;;  %v4261_v51 = vcombine.high %v13083_v41, %v13083_v41  ;;  %v13192_v52 = vmul.f32 %v8682_v2, %v4709_v20  ;;  %v14280_v2 = vld [vmem:[#allocation47_spill] sm:$0xff]  ;;  %v14319_v47 = vld [vmem:[#allocation76_spill] sm:$0xff] }
 0x5b3   : > { %14276 = vst [vmem:[#allocation79_spill] sm:$0xff] %v13161_v38  ;;  %5588 = vadd.xlane.f32.xlu0 %v13013_v50  ;;  %v6443_v50 = vrot.slane %v12566_v6, %v11154_v14  ;;  %v6614_v39 = vrot.slane %v12500_v18, %v11154_v14  ;;  %v6529_v49 = vsel %vm5970_vm5, %v6528_v46, %v6524_v57  ;;  %v13203_v6 = vpop.f32.mrf.mxu1 }
 0x5b4   : > { %v6456_v41 = vrot.slane %v12629_v53, %v11167_v56  ;;  %v13201_v58 = vmul.f32 %v8683_v24, %v4709_v20  ;;  %v6537_v30 = vrot.slane %v12640_v54, %v11167_v56  ;;  %v6627_v16 = vrot.slane %v14280_v2, %v11167_v56  ;;  %v14281_v53 = vld [vmem:[#allocation24_spill] sm:$0xff] }
 0x5b5   : > { %v13189_v26 = vpop.permute.xlu1 %2762  ;;  %5650 = vadd.xlane.f32.xlu1 %v13025_v8  ;;  %v6448_v8 = vsel %vm5970_vm5, %v6447_v43, %v6443_v50  ;;  %v13214_v46 = vmul.f32 %v8714_v27, %v13177_v60  ;;  %v6452_v20 = vrot.slane %v14281_v53, %v11154_v14  ;;  %v6619_v24 = vsel %vm5970_vm5, %v6618_v5, %v6614_v39  ;;  %v14282_v43 = vld [vmem:[#allocation45_spill] sm:$0xff]  ;;  %v14283_v50 = vld [vmem:[#allocation26_spill] sm:$0xff]  ;;  %v14286_v5 = vld [vmem:[#allocation31_spill] sm:$0xff]  ;;  %v13242_v60 = vpop.f32.mrf.mxu1 }
 0x5b6   : > { %v6546_v57 = vrot.slane %v14282_v43, %v11167_v56  ;;  %v13222_v54 = vrot.slane %v4261_v51, %v10685_v35  ;;  %v6533_v2 = vrot.slane %v14283_v50, %v11154_v14  ;;  %v14285_v27 = vld [vmem:[#allocation49_spill] sm:$0xff]  ;;  %v7176_v39 = vsel %vm7125_vm11, %v6529_v49, %v14286_v5  ;;  %v14287_v53 = vld [vmem:[#allocation42_spill] sm:$0xff]  ;;  %v14288_v51 = vld [vmem:[#allocation43_spill] sm:$0xff] }
 0x5b7   : > { %5620 = vadd.xlane.f32.xlu0 %v13027_v19  ;;  %v13211_v18 = vpop.permute.xlu0 %2732  ;;  %v14284_v19 = vld [vmem:[#allocation44_spill] sm:$0xff]  ;;  %v6636_v3 = vrot.slane %v14285_v27, %v11167_v56  ;;  %v6542_v35 = vrot.slane %v14287_v53, %v11154_v14  ;;  %v7168_v43 = vsel %vm7123_vm10, %v6448_v8, %v14288_v51  ;;  %v6457_v50 = vsel %vm5970_vm5, %v6456_v41, %v6452_v20  ;;  %v14290_v41 = vld [vmem:[#allocation33_spill] sm:$0xff] }
 0x5b8   : > { %v6623_v31 = vrot.slane %v14284_v19, %v11154_v14  ;;  %v14289_v19 = vld [vmem:[#allocation32_spill] sm:$0xff]  ;;  %v6538_v27 = vsel %vm5970_vm5, %v6537_v30, %v6533_v2  ;;  %v6555_v49 = vrot.slane %v12694_v0, %v11167_v56  ;;  %v6645_v5 = vrot.slane %v12715_v4, %v11167_v56 }
 0x5b9   : > { %v13230_v38 = vpop.permute.xlu1 %2772  ;;  %5590 = vadd.xlane.f32.xlu1 %v13059_v63  ;;  %v6632_v15 = vrot.slane %v14289_v19, %v11154_v14  ;;  %v6650_v20 = vrot.slane %v14290_v41, %v11154_v14  ;;  %v6547_v53 = vsel %vm5970_vm5, %v6546_v57, %v6542_v35  ;;  %v14291_v51 = vld [vmem:[#allocation48_spill] sm:$0xff]  ;;  %v6654_v4 = vrot.slane %v12677_v21, %v11167_v56  ;;  %v14293_v19 = vld [vmem:[#allocation53_spill] sm:$0xff] }
 0x5ba   : > { %v6628_v63 = vsel %vm5970_vm5, %v6627_v16, %v6623_v31  ;;  %v6551_v30 = vrot.slane %v14291_v51, %v11154_v14  ;;  %v6564_v31 = vrot.slane %v12701_v7, %v11167_v56  ;;  %v6573_v16 = vrot.slane %v12730_v36, %v11167_v56  ;;  %v14292_v7 = vld [vmem:[#allocation46_spill] sm:$0xff]  ;;  %v13277_v36 = vpop.f32.mrf.mxu1  ;;  %v14295_v51 = vld [vmem:[#allocation51_spill] sm:$0xff] }
 0x5bb   : > { %5652 = vadd.xlane.f32.xlu0 %v13042_v32  ;;  %v13251_v8 = vpop.permute.xlu0 %2747  ;;  %v6637_v0 = vsel %vm5970_vm5, %v6636_v3, %v6632_v15  ;;  %v6641_v32 = vrot.slane %v12685_v11, %v11154_v14  ;;  %v6461_v15 = vrot.slane %v14292_v7, %v11154_v14  ;;  %v7185_v3 = vsel %vm7115_vm6, %v6628_v63, %v6619_v24 }
 0x5bc   : > { %v6560_v21 = vrot.slane %v12673_v44, %v11154_v14  ;;  %v6465_v11 = vrot.slane %v12690_v10, %v11167_v56  ;;  %v6556_v2 = vsel %vm5970_vm5, %v6555_v49, %v6551_v30  ;;  %v6569_v35 = vrot.slane %v12713_v62, %v11154_v14 }
 0x5bd   : > { %v13267_v57 = vpop.permute.xlu1 %2782  ;;  %5622 = vadd.xlane.f32.xlu1 %v13071_v61  ;;  %v6646_v61 = vsel %vm5970_vm5, %v6645_v5, %v6641_v32  ;;  %v6663_v41 = vrot.slane %v14293_v19, %v11167_v56  ;;  %v7186_v44 = vsel %vm7117_vm7, %v6637_v0, %v7185_v3  ;;  %v13299_v62 = vsel %vm7127_vm12, %v6538_v27, %v7176_v39  ;;  %v2710_v0 = vld [vmem:[%s13292_s28 + $0x8] sm:$0xff] }
 0x5be   : > { %v6565_v10 = vsel %vm5970_vm5, %v6564_v31, %v6560_v21  ;;  %v7169_v63 = vsel %vm7125_vm11, %v6457_v50, %v7168_v43  ;;  %v6655_v49 = vsel %vm5970_vm5, %v6654_v4, %v6650_v20  ;;  %v6582_v30 = vrot.slane %v14295_v51, %v11167_v56  ;;  %v5672_v32 = vld [vmem:[%s13296_s13 + $0x8] sm:$0xff]  ;;  %v13318_v4 = vpop.f32.mrf.mxu1  ;;  %v2712_v51 = vld [vmem:[%s13292_s28 + $0x18] sm:$0xff] }
 0x5bf   : > { %5592 = vadd.xlane.f32.xlu0 %v13066_v40  ;;  %v13286_v24 = vpop.permute.xlu0 %2757  ;;  %v14294_v40 = vld [vmem:[#allocation30_spill] sm:$0xff]  ;;  %v6574_v31 = vsel %vm5970_vm5, %v6573_v16, %v6569_v35  ;;  %v6466_v39 = vsel %vm5970_vm5, %v6465_v11, %v6461_v15  ;;  %v7178_v43 = vsel %vm7115_vm6, %v6556_v2, %v6547_v53  ;;  %v7187_v50 = vsel %vm7119_vm8, %v6646_v61, %v7186_v44  ;;  %v14296_v27 = vld [vmem:[#allocation55_spill] sm:$0xff]  ;;  %v14297_v16 = vld [vmem:[#allocation28_spill] sm:$0xff] }
 0x5c0   : > { %v6659_v5 = vrot.slane %v14294_v40, %v11154_v14  ;;  %v6672_v20 = vrot.slane %v14296_v27, %v11167_v56  ;;  %v6578_v3 = vrot.slane %v14297_v16, %v11154_v14  ;;  %v7179_v21 = vsel %vm7117_vm7, %v6565_v10, %v7178_v43  ;;  %v14298_v15 = vld [vmem:[#allocation58_spill] sm:$0xff]  ;;  %v14303_v16 = vld [vmem:[#allocation57_spill] sm:$0xff] }
 0x5c1   : > { %v13310_v7 = vpop.permute.xlu1 %2792  ;;  %5654 = vadd.xlane.f32.xlu1 %v13094_v1  ;;  %v6591_v11 = vrot.slane %v14298_v15, %v11167_v56  ;;  %v14299_v2 = vld [vmem:[#allocation50_spill] sm:$0xff]  ;;  %v7180_v61 = vsel %vm7119_vm8, %v6574_v31, %v7179_v21  ;;  %v2806_v19 = vmul.f32 %v13211_v18, %v2710_v0  ;;  %v5688_v44 = vmul.f32 %v5672_v32, %v13211_v18  ;;  %v14302_v32 = vld [vmem:[#allocation56_spill] sm:$0xff] }
 0x5c2   : > { %v6664_v1 = vsel %vm5970_vm5, %v6663_v41, %v6659_v5  ;;  %v6668_v35 = vrot.slane %v14299_v2, %v11154_v14  ;;  %v6583_v10 = vsel %vm5970_vm5, %v6582_v30, %v6578_v3  ;;  %v14300_v41 = vld [vmem:[#allocation52_spill] sm:$0xff]  ;;  %v7188_v5 = vsel %vm7121_vm9, %v6655_v49, %v7187_v50  ;;  %v14301_v18 = vld [vmem:[#allocation54_spill] sm:$0xff]  ;;  %v13352_v50 = vpop.f32.mrf.mxu1 }
 0x5c3   : > { %5624 = vadd.xlane.f32.xlu0 %v13077_v45  ;;  %v13327_v53 = vpop.permute.xlu0 %2767  ;;  %v6587_v40 = vrot.slane %v14300_v41, %v11154_v14  ;;  %v5674_v45 = vld [vmem:[%s13296_s13 + $0x18] sm:$0xff]  ;;  %v13344_v27 = vsel %vm7127_vm12, %v6466_v39, %v7169_v63  ;;  %v7189_v31 = vsel %vm7123_vm10, %v6664_v1, %v7188_v5  ;;  %v6596_v0 = vrot.slane %v14301_v18, %v11154_v14  ;;  %v14304_v3 = vld [vmem:[#allocation60_spill] sm:$0xff]  ;;  %v14306_v5 = vld [vmem:[#allocation62_spill] sm:$0xff] }
 0x5c4   : > { %v6673_v30 = vsel %vm5970_vm5, %v6672_v20, %v6668_v35  ;;  %v6677_v49 = vrot.slane %v14302_v32, %v11154_v14  ;;  %v7181_v63 = vsel %vm7121_vm9, %v6583_v10, %v7180_v61  ;;  %v6600_v21 = vrot.slane %v14304_v3, %v11167_v56  ;;  %v14305_v35 = vld [vmem:[#allocation40_spill] sm:$0xff]  ;;  %v14309_v3 = vld [vmem:[#allocation61_spill] sm:$0xff] }
 0x5c5   : > { %v13340_v43 = vpop.permute.xlu1 %2802  ;;  %5594 = vadd.xlane.f32.xlu1 %v13089_v23  ;;  %v6686_v23 = vrot.slane %v14303_v16, %v11154_v14  ;;  %v6592_v39 = vsel %vm5970_vm5, %v6591_v11, %v6587_v40  ;;  %v2808_v20 = vmul.f32 %v13121_v17, %v2712_v51  ;;  %v5690_v15 = vmul.f32 %v5674_v45, %v13121_v17  ;;  %v14307_v11 = vld [vmem:[#allocation37_spill] sm:$0xff]  ;;  %v2714_v40 = vld [vmem:[%s13292_s28 + $0x28] sm:$0xff]  ;;  %v13377_v45 = vpop.f32.mrf.mxu1 }
 0x5c6   : > { %v2822_v2 = vadd.f32 %v13119_v48, %v2806_v19  ;;  %v7251_v41 = vadd.f32 %v14305_v35, %v5688_v44  ;;  %v6681_v61 = vrot.slane %v14306_v5, %v11167_v56  ;;  %v6690_v10 = vrot.slane %v14307_v11, %v11167_v56  ;;  %v14308_v17 = vld [vmem:[#allocation59_spill] sm:$0xff]  ;;  %v2709_v11 = vld [vmem:[%s13292_s28] sm:$0xff] }
 0x5c7   : > { %5656 = vadd.xlane.f32.xlu0 %v13096_v12  ;;  %v13361_v1 = vpop.permute.xlu0 %2777  ;;  %v5676_v12 = vld [vmem:[%s13296_s13 + $0x28] sm:$0xff]  ;;  %v6605_v48 = vrot.slane %v14308_v17, %v11154_v14  ;;  %v7190_v51 = vsel %vm7125_vm11, %v6673_v30, %v7189_v31  ;;  %v7182_v32 = vsel %vm7123_vm10, %v6592_v39, %v7181_v63  ;;  %v6601_v16 = vsel %vm5970_vm5, %v6600_v21, %v6596_v0  ;;  %v5671_v17 = vld [vmem:[%s13296_s13] sm:$0xff]  ;;  %v2716_v0 = vld [vmem:[%s13292_s28 + $0x38] sm:$0xff] }
 0x5c8   : > { %v6695_v35 = vrot.slane %v14309_v3, %v11154_v14  ;;  %v2810_v31 = vmul.f32 %v13150_v25, %v2714_v40  ;;  %v5692_v30 = vmul.f32 %v5676_v12, %v13150_v25  ;;  %v2824_v63 = vadd.f32 %v13168_v33, %v2808_v20  ;;  %v14313_v39 = vld [vmem:[#allocation25_spill] sm:$0xff]  ;;  %v14314_v3 = vld [vmem:[#allocation39_spill] sm:$0xff]  ;;  %v2711_v20 = vld [vmem:[%s13292_s28 + $0x10] sm:$0xff] }
 0x5c9   : > { %v2845_v18 = vpop.permute.xlu1 %2844  ;;  %5626 = vadd.xlane.f32.xlu1 %v13106_v55  ;;  %v14310_v55 = vld [vmem:[#allocation38_spill] sm:$0xff]  ;;  %v7253_v21 = vadd.f32 %v14313_v39, %v5690_v15  ;;  %v13403_v40 = vsel %vm5970_vm5, %v6690_v10, %v6686_v23  ;;  %v14315_v25 = vld [vmem:[#allocation63_spill] sm:$0xff]  ;;  %v5673_v15 = vld [vmem:[%s13296_s13 + $0x10] sm:$0xff]  ;;  %v13413_v23 = vpop.f32.mrf.mxu1 }
 0x5ca   : > { %v2918_v19 = vmul.f32 %v2845_v18, %v2822_v2  ;;  %v7267_v44 = vmul.f32 %v7251_v41, %v2845_v18  ;;  %v6609_v5 = vrot.slane %v14310_v55, %v11167_v56  ;;  %v14311_v2 = vld [vmem:[#allocation75_spill] sm:$0xff]  ;;  %v6682_v18 = vsel %vm5970_vm5, %v6681_v61, %v6677_v49  ;;  %v14317_v39 = vld [vmem:[#allocation64_spill] sm:$0xff] }
 0x5cb   : > { %5596 = vadd.xlane.f32.xlu0 %v14311_v2  ;;  %v13388_v41 = vpop.permute.xlu0 %2787  ;;  %v6704_v55 = vrot.slane %v14314_v3, %v11154_v14  ;;  %v5678_v2 = vld [vmem:[%s13296_s13 + $0x38] sm:$0xff]  ;;  %v6713_v3 = vrot.slane %v14317_v39, %v11154_v14  ;;  %v14322_v39 = vld [vmem:[#allocation34_spill] sm:$0xff] }
 0x5cc   : > { %14312 = vst [vmem:[#allocation23_spill] sm:$0xff] %v13388_v41  ;;  %2935 = vst.msk [vmem:[%s13292_s28 + $0x8] sm:$0xff] %vm2933_vm14, %v2918_v19  ;;  %v14316_v19 = vld [vmem:[#allocation36_spill] sm:$0xff]  ;;  %v13416_v10 = vsel %vm5970_vm5, %v6609_v5, %v6605_v48  ;;  %v2826_v48 = vadd.f32 %v13242_v60, %v2810_v31  ;;  %v14321_v5 = vld [vmem:[#allocation22_spill] sm:$0xff]  ;;  %v13442_v60 = vsel %vm7125_vm11, %v6601_v16, %v7182_v32 }
 0x5cd   : > { %7284 = vst.msk [vmem:[%s13296_s13 + $0x8] sm:$0xff] %vm7282_vm15, %v7267_v44  ;;  %v2855_v41 = vpop.permute.xlu1 %2854  ;;  %5658 = vadd.xlane.f32.xlu1 %v13132_v42  ;;  %v2805_v33 = vmul.f32 %v14316_v19, %v2709_v11  ;;  %v5687_v49 = vmul.f32 %v5671_v17, %v14316_v19  ;;  %v14318_v42 = vld [vmem:[#allocation65_spill] sm:$0xff]  ;;  %v2812_v11 = vmul.f32 %v13189_v26, %v2716_v0  ;;  %v2713_v32 = vld [vmem:[%s13292_s28 + $0x20] sm:$0xff] }
 0x5ce   : > { %v2920_v61 = vmul.f32 %v2855_v41, %v2824_v63  ;;  %v7269_v44 = vmul.f32 %v7253_v21, %v2855_v41  ;;  %v6699_v12 = vrot.slane %v14318_v42, %v11167_v56  ;;  %v5694_v41 = vmul.f32 %v5678_v2, %v13189_v26  ;;  %v2718_v63 = vld [vmem:[%s13292_s28 + $0x48] sm:$0xff]  ;;  %v5675_v16 = vld [vmem:[%s13296_s13 + $0x20] sm:$0xff] }
 0x5cf   : > { %5628 = vadd.xlane.f32.xlu0 %v14319_v47  ;;  %v13424_v17 = vpop.permute.xlu0 %2797  ;;  %v7255_v21 = vadd.f32 %v14321_v5, %v5692_v30  ;;  %v7191_v19 = vsel %vm7127_vm12, %v6682_v18, %v7190_v51  ;;  %v6708_v0 = vrot.slane %v14322_v39, %v11167_v56  ;;  %v14323_v47 = vld [vmem:[#allocation74_spill] sm:$0xff]  ;;  %v5680_v2 = vld [vmem:[%s13296_s13 + $0x48] sm:$0xff]  ;;  %v2821_v30 = vadd.f32 %v2805_v33, %v13148_v28  ;;  %v14324_v18 = vld [vmem:[#allocation41_spill] sm:$0xff] }
 0x5d0   : > { %14320 = vst [vmem:[#allocation47_spill] sm:$0xff] %v13424_v17  ;;  %2937 = vst.msk [vmem:[%s13292_s28 + $0x18] sm:$0xff] %vm2933_vm14, %v2920_v61  ;;  %v2807_v42 = vmul.f32 %v14323_v47, %v2711_v20  ;;  %v5689_v26 = vmul.f32 %v5673_v15, %v14323_v47  ;;  %v7250_v61 = vadd.f32 %v14324_v18, %v5687_v49  ;;  %v14325_v15 = vld [vmem:[#allocation70_spill] sm:$0xff]  ;;  %v2720_v33 = vld [vmem:[%s13292_s28 + $0x58] sm:$0xff] }
 0x5d1   : > { %7286 = vst.msk [vmem:[%s13296_s13 + $0x18] sm:$0xff] %vm7282_vm15, %v7269_v44  ;;  %v2865_v17 = vpop.permute.xlu1 %2864  ;;  %5598 = vadd.xlane.f32.xlu1 %v13128_v22  ;;  %v13446_v44 = vpop.f32.mrf.mxu1  ;;  %v6700_v20 = vsel %vm5970_vm5, %v6699_v12, %v6695_v35  ;;  %v6717_v5 = vrot.slane %v14325_v15, %v11167_v56  ;;  %v2814_v22 = vmul.f32 %v13230_v38, %v2718_v63  ;;  %v14327_v39 = vld [vmem:[#allocation27_spill] sm:$0xff] }
 0x5d2   : > { %v2922_v31 = vmul.f32 %v2865_v17, %v2826_v48  ;;  %v7271_v51 = vmul.f32 %v7255_v21, %v2865_v17  ;;  %v2828_v17 = vadd.f32 %v13318_v4, %v2812_v11  ;;  %v5696_v28 = vmul.f32 %v5680_v2, %v13230_v38  ;;  %v5682_v11 = vld [vmem:[%s13296_s13 + $0x58] sm:$0xff] }
 0x5d3   : > { %5660 = vadd.xlane.f32.xlu0 %v13143_v59  ;;  %v2840_v48 = vpop.permute.xlu0 %2839  ;;  %v7257_v49 = vadd.f32 %v13299_v62, %v5694_v41  ;;  %v14326_v59 = vld [vmem:[#allocation66_spill] sm:$0xff]  ;;  %v6709_v4 = vsel %vm5970_vm5, %v6708_v0, %v6704_v55  ;;  %v2823_v21 = vadd.f32 %v2807_v42, %v13203_v6  ;;  %v7252_v47 = vadd.f32 %v14327_v39, %v5689_v26  ;;  %v2715_v62 = vld [vmem:[%s13292_s28 + $0x30] sm:$0xff]  ;;  %v14332_v39 = vld [vmem:[#allocation35_spill] sm:$0xff] }
 0x5d4   : > { %2939 = vst.msk [vmem:[%s13292_s28 + $0x28] sm:$0xff] %vm2933_vm14, %v2922_v31  ;;  %v2917_v35 = vmul.f32 %v2840_v48, %v2821_v30  ;;  %v7266_v12 = vmul.f32 %v7250_v61, %v2840_v48  ;;  %v6731_v63 = vrot.slane %v14326_v59, %v11154_v14  ;;  %v2809_v2 = vmul.f32 %v13251_v8, %v2713_v32  ;;  %v5677_v41 = vld [vmem:[%s13296_s13 + $0x30] sm:$0xff] }
 0x5d5   : > { %7288 = vst.msk [vmem:[%s13296_s13 + $0x28] sm:$0xff] %vm7282_vm15, %v7271_v51  ;;  %v2875_v38 = vpop.permute.xlu1 %2874  ;;  %5630 = vadd.xlane.f32.xlu1 %v13153_v34  ;;  %v5691_v31 = vmul.f32 %v5675_v16, %v13251_v8  ;;  %v13478_v51 = vpop.f32.mrf.mxu1  ;;  %v7192_v34 = vsel %vm7115_vm6, %v6700_v20, %v13403_v40  ;;  %v6718_v6 = vsel %vm5970_vm5, %v6717_v5, %v6713_v3  ;;  %v14328_v20 = vld [vmem:[#allocation67_spill] sm:$0xff]  ;;  %v14329_v16 = vld [vmem:[#allocation29_spill] sm:$0xff] }
 0x5d6   : > { %2934 = vst.msk [vmem:[%s13292_s28] sm:$0xff] %vm2933_vm14, %v2917_v35  ;;  %v2924_v55 = vmul.f32 %v2875_v38, %v2828_v17  ;;  %v7273_v0 = vmul.f32 %v7257_v49, %v2875_v38  ;;  %v2816_v42 = vmul.f32 %v13267_v57, %v2720_v33  ;;  %v2830_v26 = vadd.f32 %v13377_v45, %v2814_v22  ;;  %v2722_v5 = vld [vmem:[%s13292_s28 + $0x68] sm:$0xff]  ;;  %v5679_v49 = vld [vmem:[%s13296_s13 + $0x40] sm:$0xff] }
 0x5d7   : > { %7283 = vst.msk [vmem:[%s13296_s13] sm:$0xff] %vm7282_vm15, %v7266_v12  ;;  %5600 = vadd.xlane.f32.xlu0 %v13155_v29  ;;  %v2850_v8 = vpop.permute.xlu0 %2849  ;;  %v5698_v30 = vmul.f32 %v5682_v11, %v13267_v57  ;;  %v7259_v61 = vadd.f32 %v7191_v19, %v5696_v28  ;;  %v7193_v3 = vsel %vm7117_vm7, %v6709_v4, %v7192_v34  ;;  %v9054_v17 = vpop.f32.mrf.mxu1  ;;  %v14330_v28 = vld [vmem:[#allocation68_spill] sm:$0xff]  ;;  %v2717_v12 = vld [vmem:[%s13292_s28 + $0x40] sm:$0xff] }
 0x5d8   : > { %2941 = vst.msk [vmem:[%s13292_s28 + $0x38] sm:$0xff] %vm2933_vm14, %v2924_v55  ;;  %v2919_v18 = vmul.f32 %v2850_v8, %v2823_v21  ;;  %v7268_v40 = vmul.f32 %v7252_v47, %v2850_v8  ;;  %v6740_v15 = vrot.slane %v14328_v20, %v11154_v14  ;;  %v2811_v29 = vmul.f32 %v13286_v24, %v2715_v62 }
 0x5d9   : > { %7290 = vst.msk [vmem:[%s13296_s13 + $0x38] sm:$0xff] %vm7282_vm15, %v7273_v0  ;;  %v5693_v45 = vmul.f32 %v5677_v41, %v13286_v24  ;;  %v2885_v57 = vpop.permute.xlu1 %2884  ;;  %5662 = vadd.xlane.f32.xlu1 %v13173_v9  ;;  %v2825_v32 = vadd.f32 %v2809_v2, %v13277_v36  ;;  %v7254_v48 = vadd.f32 %v14329_v16, %v5691_v31  ;;  %v14331_v9 = vld [vmem:[#allocation71_spill] sm:$0xff]  ;;  %v14333_v2 = vld [vmem:[#allocation72_spill] sm:$0xff]  ;;  %v2721_v16 = vld [vmem:[%s13292_s28 + $0x60] sm:$0xff] }
 0x5da   : > { %2936 = vst.msk [vmem:[%s13292_s28 + $0x10] sm:$0xff] %vm2933_vm14, %v2919_v18  ;;  %v2926_v19 = vmul.f32 %v2885_v57, %v2830_v26  ;;  %v7275_v22 = vmul.f32 %v7259_v61, %v2885_v57  ;;  %v6726_v24 = vrot.slane %v14330_v28, %v11167_v56  ;;  %v7194_v33 = vsel %vm7119_vm8, %v6718_v6, %v7193_v3 }
 0x5db   : > { %7285 = vst.msk [vmem:[%s13296_s13 + $0x10] sm:$0xff] %vm7282_vm15, %v7268_v40  ;;  %v6735_v35 = vrot.slane %v14331_v9, %v11167_v56  ;;  %5632 = vadd.xlane.f32.xlu0 %v13163_v37  ;;  %v2860_v4 = vpop.permute.xlu0 %2859  ;;  %v2832_v11 = vadd.f32 %v13446_v44, %v2816_v42  ;;  %v2818_v36 = vmul.f32 %v13310_v7, %v2722_v5  ;;  %v14334_v37 = vld [vmem:[#allocation73_spill] sm:$0xff]  ;;  %v2719_v42 = vld [vmem:[%s13292_s28 + $0x50] sm:$0xff] }
 0x5dc   : > { %2943 = vst.msk [vmem:[%s13292_s28 + $0x48] sm:$0xff] %vm2933_vm14, %v2926_v19  ;;  %v2921_v38 = vmul.f32 %v2860_v4, %v2825_v32  ;;  %v7270_v21 = vmul.f32 %v7254_v48, %v2860_v4  ;;  %v7261_v47 = vadd.f32 %v14332_v39, %v5698_v30  ;;  %v6744_v31 = vrot.slane %v14333_v2, %v11167_v56  ;;  %v2724_v44 = vld [vmem:[%s13292_s28 + $0x78] sm:$0xff]  ;;  %v2689_v30 = vpop.f32.mrf.mxu1  ;;  %v5681_v40 = vld [vmem:[%s13296_s13 + $0x50] sm:$0xff]  ;;  %v5683_v48 = vld [vmem:[%s13296_s13 + $0x60] sm:$0xff] }
 0x5dd   : > { %7292 = vst.msk [vmem:[%s13296_s13 + $0x48] sm:$0xff] %vm7282_vm15, %v7275_v22  ;;  %v6753_v62 = vrot.slane %v14334_v37, %v11167_v56  ;;  %v2895_v41 = vpop.permute.xlu1 %2894  ;;  %5602 = vadd.xlane.f32.xlu1 %v13192_v52  ;;  %v2827_v55 = vadd.f32 %v2811_v29, %v13352_v50  ;;  %v7256_v0 = vadd.f32 %v13344_v27, %v5693_v45  ;;  %v14336_v27 = vld [vmem:[#allocation69_spill] sm:$0xff]  ;;  %v2723_v37 = vld [vmem:[%s13292_s28 + $0x70] sm:$0xff] }
 0x5de   : > { %v2813_v34 = vmul.f32 %v13327_v53, %v2717_v12  ;;  %v5695_v6 = vmul.f32 %v5679_v49, %v13327_v53  ;;  %2938 = vst.msk [vmem:[%s13292_s28 + $0x20] sm:$0xff] %vm2933_vm14, %v2921_v38  ;;  %v2928_v8 = vmul.f32 %v2895_v41, %v2832_v11  ;;  %v7277_v26 = vmul.f32 %v7261_v47, %v2895_v41  ;;  %v9057_v22 = vpop.f32.mrf.mxu1  ;;  %v14340_v12 = vld [vmem:[#allocation78_spill] sm:$0xff] }
 0x5df   : > { %7287 = vst.msk [vmem:[%s13296_s13 + $0x20] sm:$0xff] %vm7282_vm15, %v7270_v21  ;;  %v14335_v52 = vrot.slane %v14315_v25, %v11154_v14  ;;  %v6749_v18 = vrot.slane %v14336_v27, %v11154_v14  ;;  %v6736_v53 = vsel %vm5970_vm5, %v6735_v35, %v6731_v63  ;;  %5664 = vadd.xlane.f32.xlu0 %v13183_v13  ;;  %v2870_v61 = vpop.permute.xlu0 %2869  ;;  %v14341_v49 = vunpack.c.h.bf16 %v14340_v12  ;;  %v14342_v21 = vld [vmem:[#allocation23_spill] sm:$0xff] }
 0x5e0   : > { %v7184_v25 = vsel %vm7127_vm12, %v13416_v10, %v13442_v60  ;;  %v2820_v3 = vmul.f32 %v13340_v43, %v2724_v44  ;;  %2945 = vst.msk [vmem:[%s13292_s28 + $0x58] sm:$0xff] %vm2933_vm14, %v2928_v8  ;;  %v2923_v20 = vmul.f32 %v2870_v61, %v2827_v55  ;;  %v7272_v59 = vmul.f32 %v7256_v0, %v2870_v61  ;;  %v14343_v55 = vld [vmem:[#allocation47_spill] sm:$0xff] }
 0x5e1   : > { %v6727_v50 = vsel %vm5970_vm5, %v6726_v24, %v14335_v52  ;;  %7294 = vst.msk [vmem:[%s13296_s13 + $0x58] sm:$0xff] %vm7282_vm15, %v7277_v26  ;;  %v2834_v63 = vadd.f32 %v9054_v17, %v2818_v36  ;;  %v6745_v29 = vsel %vm5970_vm5, %v6744_v31, %v6740_v15  ;;  %v6754_v45 = vsel %vm5970_vm5, %v6753_v62, %v6749_v18  ;;  %v13558_v10 = vpop.permute.xlu1 %2904 }
 0x5e2   : > { %v7195_v13 = vsel %vm7121_vm9, %v6727_v50, %v7194_v33  ;;  %v2815_v5 = vmul.f32 %v13361_v1, %v2719_v42  ;;  %5634 = vadd.xlane.f32.xlu1 %v13214_v46  ;;  %v5697_v60 = vmul.f32 %v5681_v40, %v13361_v1  ;;  %2940 = vst.msk [vmem:[%s13292_s28 + $0x30] sm:$0xff] %vm2933_vm14, %v2923_v20  ;;  %v14337_v1 = vld [vmem:[#allocation80_spill] sm:$0xff]  ;;  %v2699_v50 = vpop.f32.mrf.mxu1 }
 0x5e3   : > { %7289 = vst.msk [vmem:[%s13296_s13 + $0x30] sm:$0xff] %vm7282_vm15, %v7272_v59  ;;  %v2930_v57 = vmul.f32 %v13558_v10, %v2834_v63  ;;  %v2829_v19 = vadd.f32 %v2813_v34, %v13413_v23  ;;  %v7258_v15 = vadd.f32 %v7184_v25, %v5695_v6  ;;  %v7196_v32 = vsel %vm7123_vm10, %v6736_v53, %v7195_v13  ;;  %v2880_v46 = vpop.permute.xlu0 %2879  ;;  %v14344_v6 = vld [vmem:[#allocation77_spill] sm:$0xff]  ;;  %v14345_v59 = vld [vmem:[#allocation79_spill] sm:$0xff] }
 0x5e4   : > { %5604 = vadd.xlane.f32.xlu0 %v13201_v58  ;;  %v14338_v17 = vunpack.c.l.bf16 %v14337_v1  ;;  %v2836_v33 = vadd.f32 %v9057_v22, %v2820_v3  ;;  %v7197_v9 = vsel %vm7125_vm11, %v6745_v29, %v7196_v32  ;;  %v14339_v58 = vld [vmem:[#allocation81_spill] sm:$0xff]  ;;  %v2831_v11 = vadd.f32 %v2815_v5, %v13478_v51 }
 0x5e5   : > { %2947 = vst.msk [vmem:[%s13292_s28 + $0x68] sm:$0xff] %vm2933_vm14, %v2930_v57  ;;  %v2925_v24 = vmul.f32 %v2880_v46, %v2829_v19  ;;  %v7274_v23 = vmul.f32 %v7258_v15, %v2880_v46  ;;  %v13578_v35 = vpop.permute.xlu1 %2914  ;;  %v5141_v4 = vmul.f32 %v14341_v49, %v14339_v58  ;;  %v7198_v36 = vsel %vm7127_vm12, %v6754_v45, %v7197_v9 }
 0x5e6   : > { %v5156_v28 = vmul.f32 %v14338_v17, %v13222_v54  ;;  %v8747_v38 = vunpack.c.h.bf16 %v14337_v1  ;;  %v2817_v39 = vmul.f32 %v14342_v21, %v2721_v16  ;;  %v5699_v47 = vmul.f32 %v5683_v48, %v14342_v21 }
 0x5e7   : > { %2942 = vst.msk [vmem:[%s13292_s28 + $0x40] sm:$0xff] %vm2933_vm14, %v2925_v24  ;;  %v2932_v2 = vmul.f32 %v13578_v35, %v2836_v33  ;;  %v7260_v31 = vadd.f32 %v7198_v36, %v5697_v60  ;;  %v2890_v51 = vpop.permute.xlu0 %2889  ;;  %v2819_v0 = vmul.f32 %v14343_v55, %v2723_v37 }
 0x5e8   : > { %5666 = vadd.xlane.f32.xlu1 %v5156_v28  ;;  %7291 = vst.msk [vmem:[%s13296_s13 + $0x40] sm:$0xff] %vm7282_vm15, %v7274_v23  ;;  %5636 = vadd.xlane.f32.xlu0 %v5141_v4  ;;  %v2927_v62 = vmul.f32 %v2890_v51, %v2831_v11  ;;  %v5157_v41 = vmul.f32 %v8747_v38, %v13222_v54 }
 0x5e9   : > { %2949 = vst.msk [vmem:[%s13292_s28 + $0x78] sm:$0xff] %vm2933_vm14, %v2932_v2  ;;  %v7276_v44 = vmul.f32 %v7260_v31, %v2890_v51  ;;  %v2833_v34 = vadd.f32 %v2817_v39, %v2689_v30  ;;  %v7262_v42 = vadd.f32 %v14344_v6, %v5699_v47  ;;  %v2835_v54 = vadd.f32 %v2819_v0, %v2699_v50 }
 0x5ea   : > { %2944 = vst.msk [vmem:[%s13292_s28 + $0x50] sm:$0xff] %vm2933_vm14, %v2927_v62 }
 0x5eb   : > { %7293 = vst.msk [vmem:[%s13296_s13 + $0x50] sm:$0xff] %vm7282_vm15, %v7276_v44  ;;  %v2900_v8 = vpop.permute.xlu0 %2899 }
 0x5ec   : > { %5668 = vadd.xlane.f32.xlu0 %v5157_v41  ;;  %v2929_v26 = vmul.f32 %v2900_v8, %v2833_v34  ;;  %v7278_v52 = vmul.f32 %v7262_v42, %v2900_v8 }
 0x5ee   : > { %2946 = vst.msk [vmem:[%s13292_s28 + $0x60] sm:$0xff] %vm2933_vm14, %v2929_v26 }
 0x5ef   : > { %7295 = vst.msk [vmem:[%s13296_s13 + $0x60] sm:$0xff] %vm7282_vm15, %v7278_v52  ;;  %v13607_v27 = vpop.permute.xlu0 %2909 }
 0x5f0   : > { %v2931_v18 = vmul.f32 %v13607_v27, %v2835_v54 }
 0x5f2   : > { %2948 = vst.msk [vmem:[%s13292_s28 + $0x70] sm:$0xff] %vm2933_vm14, %v2931_v18 }
 0x616   : > { %v5579_v53 = vpop.xlane.xlu1 %5578 }
 0x617   : > { %v6911_v61 = vrot.slane %v5579_v53, %v11154_v14 }
 0x61a   : > { %v5583_v30 = vpop.xlane.xlu1 %5582 }
 0x61b   : > { %v6920_v29 = vrot.slane %v5583_v30, %v11154_v14  ;;  %v5684_v30 = vld [vmem:[%s13296_s13 + $0x68] sm:$0xff] }
 0x61c   : > { %v5581_v40 = vpop.xlane.xlu0 %5580 }
 0x61d   : > { %v6915_v25 = vrot.slane %v5581_v40, %v11167_v56 }
 0x61e   : > { %v5607_v3 = vpop.xlane.xlu1 %5606 }
 0x61f   : > { %v6916_v20 = vsel %vm5970_vm5, %v6915_v25, %v6911_v61  ;;  %v6974_v15 = vrot.slane %v5607_v3, %v11154_v14  ;;  %v5685_v25 = vld [vmem:[%s13296_s13 + $0x70] sm:$0xff] }
 0x620   : > { %v7213_v63 = vsel %vm7115_vm6, %v6916_v20, %v14345_v59  ;;  %v5585_v13 = vpop.xlane.xlu0 %5584 }
 0x621   : > { %v6924_v45 = vrot.slane %v5585_v13, %v11167_v56 }
 0x622   : > { %v5611_v5 = vpop.xlane.xlu1 %5610 }
 0x623   : > { %v6925_v60 = vsel %vm5970_vm5, %v6924_v45, %v6920_v29  ;;  %v6983_v46 = vrot.slane %v5611_v5, %v11154_v14  ;;  %v5700_v29 = vmul.f32 %v5684_v30, %v13310_v7 }
 0x624   : > { %v13621_v57 = vsel %vm7117_vm7, %v6925_v60, %v7213_v63  ;;  %v5609_v19 = vpop.xlane.xlu0 %5608 }
 0x625   : > { %v6978_v22 = vrot.slane %v5609_v19, %v11167_v56  ;;  %v13660_v19 = vmul.f32 %v5685_v25, %v14343_v55 }
 0x626   : > { %v5639_v32 = vpop.xlane.xlu1 %5638 }
 0x627   : > { %v6979_v16 = vsel %vm5970_vm5, %v6978_v22, %v6974_v15  ;;  %v7046_v33 = vrot.slane %v5639_v32, %v11154_v14 }
 0x628   : > { %v5613_v48 = vpop.xlane.xlu0 %5612 }
 0x629   : > { %v6987_v1 = vrot.slane %v5613_v48, %v11167_v56 }
 0x62a   : > { %v5643_v17 = vpop.xlane.xlu1 %5642 }
 0x62b   : > { %v6988_v28 = vsel %vm5970_vm5, %v6987_v1, %v6983_v46  ;;  %v7055_v3 = vrot.slane %v5643_v17, %v11154_v14 }
 0x62c   : > { %v7220_v24 = vsel %vm7115_vm6, %v6988_v28, %v6979_v16  ;;  %v5641_v23 = vpop.xlane.xlu0 %5640 }
 0x62d   : > { %v7050_v9 = vrot.slane %v5641_v23, %v11167_v56 }
 0x62e   : > { %v5615_v58 = vpop.xlane.xlu1 %5614 }
 0x62f   : > { %v7051_v12 = vsel %vm5970_vm5, %v7050_v9, %v7046_v33  ;;  %v6992_v59 = vrot.slane %v5615_v58, %v11154_v14 }
 0x630   : > { %v5645_v49 = vpop.xlane.xlu0 %5644 }
 0x631   : > { %v7059_v53 = vrot.slane %v5645_v49, %v11167_v56 }
 0x632   : > { %v5647_v4 = vpop.xlane.xlu1 %5646 }
 0x633   : > { %v7060_v45 = vsel %vm5970_vm5, %v7059_v53, %v7055_v3  ;;  %v7064_v48 = vrot.slane %v5647_v4, %v11154_v14 }
 0x634   : > { %v5617_v11 = vpop.xlane.xlu0 %5616  ;;  %v7227_v17 = vsel %vm7115_vm6, %v7060_v45, %v7051_v12 }
 0x635   : > { %v6996_v40 = vrot.slane %v5617_v11, %v11167_v56 }
 0x636   : > { %v5587_v36 = vpop.xlane.xlu1 %5586 }
 0x637   : > { %v6929_v5 = vrot.slane %v5587_v36, %v11154_v14  ;;  %v6997_v15 = vsel %vm5970_vm5, %v6996_v40, %v6992_v59 }
 0x638   : > { %v5649_v38 = vpop.xlane.xlu0 %5648  ;;  %v7221_v9 = vsel %vm7117_vm7, %v6997_v15, %v7220_v24 }
 0x639   : > { %v7068_v22 = vrot.slane %v5649_v38, %v11167_v56 }
 0x63a   : > { %v5619_v21 = vpop.xlane.xlu1 %5618 }
 0x63b   : > { %v7001_v32 = vrot.slane %v5619_v21, %v11154_v14  ;;  %v7069_v11 = vsel %vm5970_vm5, %v7068_v22, %v7064_v48 }
 0x63c   : > { %v5589_v39 = vpop.xlane.xlu0 %5588 }
 0x63d   : > { %v6933_v20 = vrot.slane %v5589_v39, %v11167_v56 }
 0x63e   : > { %v5651_v47 = vpop.xlane.xlu1 %5650 }
 0x63f   : > { %v6934_v7 = vsel %vm5970_vm5, %v6933_v20, %v6929_v5  ;;  %v7073_v36 = vrot.slane %v5651_v47, %v11154_v14  ;;  %v7228_v5 = vsel %vm7117_vm7, %v7069_v11, %v7227_v17 }
 0x640   : > { %v5621_v2 = vpop.xlane.xlu0 %5620  ;;  %v7215_v12 = vsel %vm7119_vm8, %v6934_v7, %v13621_v57  ;;  %v5686_v7 = vld [vmem:[%s13296_s13 + $0x78] sm:$0xff] }
 0x641   : > { %v7005_v63 = vrot.slane %v5621_v2, %v11167_v56 }
 0x642   : > { %v5591_v31 = vpop.xlane.xlu1 %5590 }
 0x643   : > { %v6938_v46 = vrot.slane %v5591_v31, %v11154_v14  ;;  %v7006_v55 = vsel %vm5970_vm5, %v7005_v63, %v7001_v32 }
 0x644   : > { %v5653_v37 = vpop.xlane.xlu0 %5652  ;;  %v7222_v21 = vsel %vm7119_vm8, %v7006_v55, %v7221_v9  ;;  %v5702_v9 = vmul.f32 %v5686_v7, %v13340_v43  ;;  %v7469_v43 = vld [vmem:[%s10181_s19 + $0x8] sm:$0xff] (%p9596_p2)  ;;  %v7561_v7 = vld [vmem:[%s10181_s19 + $0x178] sm:$0xff] (%p9596_p2) }
 0x645   : > { %v7077_v28 = vrot.slane %v5653_v37, %v11167_v56  ;;  %7470 = vst [vmem:[%s13754_s21 + $0x8] sm:$0xff] (%p9596_p2), %v7469_v43  ;;  %7562 = vst [vmem:[%s13754_s21 + $0x278] sm:$0xff] (%p9596_p2), %v7561_v7 }
 0x646   : > { %v5623_v51 = vpop.xlane.xlu1 %5622 }
 0x647   : > { %v7010_v39 = vrot.slane %v5623_v51, %v11154_v14  ;;  %v7078_v31 = vsel %vm5970_vm5, %v7077_v28, %v7073_v36  ;;  %v7477_v36 = vld [vmem:[%s10181_s19 + $0x28] sm:$0xff] (%p9596_p2) }
 0x648   : > { %v5593_v62 = vpop.xlane.xlu0 %5592  ;;  %7478 = vst [vmem:[%s13754_s21 + $0x28] sm:$0xff] (%p9596_p2), %v7477_v36 }
 0x649   : > { %v6942_v60 = vrot.slane %v5593_v62, %v11167_v56 }
 0x64a   : > { %v13633_v44 = vpop.xlane.xlu1 %5654 }
 0x64b   : > { %v6943_v58 = vsel %vm5970_vm5, %v6942_v60, %v6938_v46  ;;  %v7229_v46 = vsel %vm7119_vm8, %v7078_v31, %v7228_v5  ;;  %v7489_v31 = vld [vmem:[%s10181_s19 + $0x58] sm:$0xff] (%p9596_p2)  ;;  %v7543_v5 = vld [vmem:[%s10181_s19 + $0x130] sm:$0xff] (%p9596_p2) }
 0x64c   : > { %v5625_v41 = vpop.xlane.xlu0 %5624  ;;  %v7216_v37 = vsel %vm7121_vm9, %v6943_v58, %v7215_v12  ;;  %7490 = vst [vmem:[%s13754_s21 + $0x58] sm:$0xff] (%p9596_p2), %v7489_v31  ;;  %7544 = vst [vmem:[%s13754_s21 + $0x230] sm:$0xff] (%p9596_p2), %v7543_v5 }
 0x64d   : > { %v7014_v49 = vrot.slane %v5625_v41, %v11167_v56 }
 0x64e   : > { %v5595_v0 = vpop.xlane.xlu1 %5594 }
 0x64f   : > { %v6947_v4 = vrot.slane %v5595_v0, %v11154_v14  ;;  %v7015_v0 = vsel %vm5970_vm5, %v7014_v49, %v7010_v39  ;;  %v7483_v39 = vld [vmem:[%s10181_s19 + $0x40] sm:$0xff] (%p9596_p2) }
 0x650   : > { %v13635_v34 = vpop.xlane.xlu0 %5656  ;;  %v7223_v20 = vsel %vm7121_vm9, %v7015_v0, %v7222_v21  ;;  %v7481_v21 = vld [vmem:[%s10181_s19 + $0x38] sm:$0xff] (%p9596_p2)  ;;  %7484 = vst [vmem:[%s13754_s21 + $0x40] sm:$0xff] (%p9596_p2), %v7483_v39  ;;  %v7501_v0 = vld [vmem:[%s10181_s19 + $0x88] sm:$0xff] (%p9596_p2) }
 0x651   : > { %7482 = vst [vmem:[%s13754_s21 + $0x38] sm:$0xff] (%p9596_p2), %v7481_v21  ;;  %7502 = vst [vmem:[%s13754_s21 + $0x108] sm:$0xff] (%p9596_p2), %v7501_v0 }
 0x652   : > { %v13637_v6 = vpop.xlane.xlu1 %5626 }
 0x654   : > { %v5597_v42 = vpop.xlane.xlu0 %5596 }
 0x655   : > { %v6951_v1 = vrot.slane %v5597_v42, %v11167_v56  ;;  %v7019_v42 = vrot.slane %v13637_v6, %v11154_v14 }
 0x656   : > { %v13639_v8 = vpop.xlane.xlu1 %5658 }
 0x657   : > { %v6952_v24 = vsel %vm5970_vm5, %v6951_v1, %v6947_v4 }
 0x658   : > { %v5629_v26 = vpop.xlane.xlu0 %5628  ;;  %v7217_v53 = vsel %vm7123_vm10, %v6952_v24, %v7216_v37  ;;  %v7485_v24 = vld [vmem:[%s10181_s19 + $0x48] sm:$0xff] (%p9596_p2)  ;;  %v7491_v37 = vld [vmem:[%s10181_s19 + $0x60] sm:$0xff] (%p9596_p2) }
 0x659   : > { %v7023_v2 = vrot.slane %v5629_v26, %v11167_v56  ;;  %v7082_v26 = vrot.slane %v13633_v44, %v11154_v14  ;;  %7486 = vst [vmem:[%s13754_s21 + $0x48] sm:$0xff] (%p9596_p2), %v7485_v24  ;;  %7492 = vst [vmem:[%s13754_s21 + $0x60] sm:$0xff] (%p9596_p2), %v7491_v37 }
 0x65a   : > { %v5599_v52 = vpop.xlane.xlu1 %5598 }
 0x65b   : > { %v6956_v38 = vrot.slane %v5599_v52, %v11154_v14  ;;  %v7024_v40 = vsel %vm5970_vm5, %v7023_v2, %v7019_v42  ;;  %v7487_v2 = vld [vmem:[%s10181_s19 + $0x50] sm:$0xff] (%p9596_p2) }
 0x65c   : > { %v13641_v50 = vpop.xlane.xlu0 %5660  ;;  %v7224_v15 = vsel %vm7123_vm10, %v7024_v40, %v7223_v20  ;;  %7488 = vst [vmem:[%s13754_s21 + $0x50] sm:$0xff] (%p9596_p2), %v7487_v2  ;;  %v7503_v42 = vld [vmem:[%s10181_s19 + $0x90] sm:$0xff] (%p9596_p2)  ;;  %v7517_v40 = vld [vmem:[%s10181_s19 + $0xc8] sm:$0xff] (%p9596_p2) }
 0x65d   : > { %v7095_v6 = vrot.slane %v13641_v50, %v11167_v56  ;;  %7504 = vst [vmem:[%s13754_s21 + $0x110] sm:$0xff] (%p9596_p2), %v7503_v42  ;;  %7518 = vst [vmem:[%s13754_s21 + $0x148] sm:$0xff] (%p9596_p2), %v7517_v40  ;;  %v7525_v20 = vld [vmem:[%s10181_s19 + $0xe8] sm:$0xff] (%p9596_p2) }
 0x65e   : > { %v13643_v54 = vpop.xlane.xlu1 %5630  ;;  %7526 = vst [vmem:[%s13754_s21 + $0x168] sm:$0xff] (%p9596_p2), %v7525_v20 }
 0x65f   : > { %v7028_v30 = vrot.slane %v13643_v54, %v11154_v14  ;;  %v7091_v54 = vrot.slane %v13639_v8, %v11154_v14 }
 0x660   : > { %v5601_v18 = vpop.xlane.xlu0 %5600 }
 0x661   : > { %v6960_v23 = vrot.slane %v5601_v18, %v11167_v56  ;;  %v7086_v18 = vrot.slane %v13635_v34, %v11167_v56 }
 0x662   : > { %v13648_v61 = vpop.xlane.xlu1 %5662 }
 0x663   : > { %v6961_v62 = vsel %vm5970_vm5, %v6960_v23, %v6956_v38  ;;  %v7087_v60 = vsel %vm5970_vm5, %v7086_v18, %v7082_v26  ;;  %v7100_v22 = vrot.slane %v13648_v61, %v11154_v14  ;;  %v7479_v38 = vld [vmem:[%s10181_s19 + $0x30] sm:$0xff] (%p9596_p2)  ;;  %v7509_v26 = vld [vmem:[%s10181_s19 + $0xa8] sm:$0xff] (%p9596_p2) }
 0x664   : > { %v5633_v13 = vpop.xlane.xlu0 %5632  ;;  %v7218_v25 = vsel %vm7125_vm11, %v6961_v62, %v7217_v53  ;;  %v7230_v61 = vsel %vm7121_vm9, %v7087_v60, %v7229_v46  ;;  %7480 = vst [vmem:[%s13754_s21 + $0x30] sm:$0xff] (%p9596_p2), %v7479_v38  ;;  %v7493_v62 = vld [vmem:[%s10181_s19 + $0x68] sm:$0xff] (%p9596_p2)  ;;  %v7511_v18 = vld [vmem:[%s10181_s19 + $0xb0] sm:$0xff] (%p9596_p2)  ;;  %v7513_v53 = vld [vmem:[%s10181_s19 + $0xb8] sm:$0xff] (%p9596_p2) }
 0x665   : > { %v7032_v57 = vrot.slane %v5633_v13, %v11167_v56  ;;  %7494 = vst [vmem:[%s13754_s21 + $0x68] sm:$0xff] (%p9596_p2), %v7493_v62  ;;  %7510 = vst [vmem:[%s13754_s21 + $0x128] sm:$0xff] (%p9596_p2), %v7509_v26  ;;  %v7545_v60 = vld [vmem:[%s10181_s19 + $0x138] sm:$0xff] (%p9596_p2)  ;;  %v7563_v46 = vld [vmem:[%s10181_s19 + $0x180] sm:$0xff] (%p9596_p2) }
 0x666   : > { %v5603_v16 = vpop.xlane.xlu1 %5602  ;;  %7512 = vst [vmem:[%s13754_s21 + $0x130] sm:$0xff] (%p9596_p2), %v7511_v18  ;;  %7514 = vst [vmem:[%s13754_s21 + $0x138] sm:$0xff] (%p9596_p2), %v7513_v53 }
 0x667   : > { %v6965_v51 = vrot.slane %v5603_v16, %v11154_v14  ;;  %v7033_v44 = vsel %vm5970_vm5, %v7032_v57, %v7028_v30  ;;  %v7096_v16 = vsel %vm5970_vm5, %v7095_v6, %v7091_v54  ;;  %v7495_v57 = vld [vmem:[%s10181_s19 + $0x70] sm:$0xff] (%p9596_p2)  ;;  %v7515_v30 = vld [vmem:[%s10181_s19 + $0xc0] sm:$0xff] (%p9596_p2)  ;;  %7546 = vst [vmem:[%s13754_s21 + $0x238] sm:$0xff] (%p9596_p2), %v7545_v60  ;;  %7564 = vst [vmem:[%s13754_s21 + $0x300] sm:$0xff] (%p9596_p2), %v7563_v46 }
 0x668   : > { %v5665_v33 = vpop.xlane.xlu0 %5664  ;;  %v7225_v8 = vsel %vm7125_vm11, %v7033_v44, %v7224_v15  ;;  %7496 = vst [vmem:[%s13754_s21 + $0x70] sm:$0xff] (%p9596_p2), %v7495_v57  ;;  %v7519_v6 = vld [vmem:[%s10181_s19 + $0xd0] sm:$0xff] (%p9596_p2)  ;;  %7516 = vst [vmem:[%s13754_s21 + $0x140] sm:$0xff] (%p9596_p2), %v7515_v30  ;;  %v7547_v15 = vld [vmem:[%s10181_s19 + $0x140] sm:$0xff] (%p9596_p2) }
 0x669   : > { %v7104_v34 = vrot.slane %v5665_v33, %v11167_v56  ;;  %v7231_v33 = vsel %vm7123_vm10, %v7096_v16, %v7230_v61  ;;  %7520 = vst [vmem:[%s13754_s21 + $0x150] sm:$0xff] (%p9596_p2), %v7519_v6  ;;  %v7527_v44 = vld [vmem:[%s10181_s19 + $0xf0] sm:$0xff] (%p9596_p2)  ;;  %7548 = vst [vmem:[%s13754_s21 + $0x240] sm:$0xff] (%p9596_p2), %v7547_v15  ;;  %v7553_v16 = vld [vmem:[%s10181_s19 + $0x158] sm:$0xff] (%p9596_p2) }
 0x66a   : > { %7528 = vst [vmem:[%s13754_s21 + $0x170] sm:$0xff] (%p9596_p2), %v7527_v44  ;;  %v7535_v54 = vld [vmem:[%s10181_s19 + $0x110] sm:$0xff] (%p9596_p2)  ;;  %7554 = vst [vmem:[%s13754_s21 + $0x258] sm:$0xff] (%p9596_p2), %v7553_v16  ;;  %v7571_v61 = vld [vmem:[%s10181_s19 + $0x1a0] sm:$0xff] (%p9596_p2) }
 0x66b   : > { %v5635_v41 = vpop.xlane.xlu1 %5634  ;;  %v7105_v1 = vsel %vm5970_vm5, %v7104_v34, %v7100_v22  ;;  %v7529_v34 = vld [vmem:[%s10181_s19 + $0xf8] sm:$0xff] (%p9596_p2)  ;;  %7536 = vst [vmem:[%s13754_s21 + $0x210] sm:$0xff] (%p9596_p2), %v7535_v54  ;;  %v7549_v22 = vld [vmem:[%s10181_s19 + $0x148] sm:$0xff] (%p9596_p2)  ;;  %7572 = vst [vmem:[%s13754_s21 + $0x320] sm:$0xff] (%p9596_p2), %v7571_v61 }
 0x66c   : > { %v7037_v13 = vrot.slane %v5635_v41, %v11154_v14  ;;  %v7232_v58 = vsel %vm7125_vm11, %v7105_v1, %v7231_v33  ;;  %v7497_v41 = vld [vmem:[%s10181_s19 + $0x78] sm:$0xff] (%p9596_p2)  ;;  %7530 = vst [vmem:[%s13754_s21 + $0x178] sm:$0xff] (%p9596_p2), %v7529_v34  ;;  %7550 = vst [vmem:[%s13754_s21 + $0x248] sm:$0xff] (%p9596_p2), %v7549_v22  ;;  %v7565_v1 = vld [vmem:[%s10181_s19 + $0x188] sm:$0xff] (%p9596_p2) }
 0x66d   : > { %v5605_v47 = vpop.xlane.xlu0 %5604  ;;  %7498 = vst [vmem:[%s13754_s21 + $0x78] sm:$0xff] (%p9596_p2), %v7497_v41  ;;  %7566 = vst [vmem:[%s13754_s21 + $0x308] sm:$0xff] (%p9596_p2), %v7565_v1  ;;  %v7579_v33 = vld [vmem:[%s10181_s19 + $0x1c0] sm:$0xff] (%p9596_p2) }
 0x66e   : > { %v6969_v52 = vrot.slane %v5605_v47, %v11167_v56  ;;  %v7499_v47 = vld [vmem:[%s10181_s19 + $0x80] sm:$0xff] (%p9596_p2)  ;;  %7580 = vst [vmem:[%s13754_s21 + $0x340] sm:$0xff] (%p9596_p2), %v7579_v33 }
 0x66f   : > { %7500 = vst [vmem:[%s13754_s21 + $0x100] sm:$0xff] (%p9596_p2), %v7499_v47 }
 0x670   : > { %v6970_v3 = vsel %vm5970_vm5, %v6969_v52, %v6965_v51  ;;  %v7505_v51 = vld [vmem:[%s10181_s19 + $0x98] sm:$0xff] (%p9596_p2)  ;;  %v7507_v52 = vld [vmem:[%s10181_s19 + $0xa0] sm:$0xff] (%p9596_p2) }
 0x671   : > { %v7219_v59 = vsel %vm7127_vm12, %v6970_v3, %v7218_v25  ;;  %v5637_v63 = vpop.xlane.xlu0 %5636  ;;  %v5667_v32 = vpop.xlane.xlu1 %5666  ;;  %7506 = vst [vmem:[%s13754_s21 + $0x118] sm:$0xff] (%p9596_p2), %v7505_v51  ;;  %7508 = vst [vmem:[%s13754_s21 + $0x120] sm:$0xff] (%p9596_p2), %v7507_v52  ;;  %v7521_v25 = vld [vmem:[%s10181_s19 + $0xd8] sm:$0xff] (%p9596_p2)  ;;  %v7523_v3 = vld [vmem:[%s10181_s19 + $0xe0] sm:$0xff] (%p9596_p2) }
 0x672   : > { %v7263_v50 = vadd.f32 %v7219_v59, %v5700_v29  ;;  %v7041_v45 = vrot.slane %v5637_v63, %v11167_v56  ;;  %v7109_v28 = vrot.slane %v5667_v32, %v11154_v14  ;;  %7522 = vst [vmem:[%s13754_s21 + $0x158] sm:$0xff] (%p9596_p2), %v7521_v25  ;;  %7524 = vst [vmem:[%s13754_s21 + $0x160] sm:$0xff] (%p9596_p2), %v7523_v3  ;;  %v7531_v59 = vld [vmem:[%s10181_s19 + $0x100] sm:$0xff] (%p9596_p2)  ;;  %v7533_v63 = vld [vmem:[%s10181_s19 + $0x108] sm:$0xff] (%p9596_p2) }
 0x673   : > { %7532 = vst [vmem:[%s13754_s21 + $0x200] sm:$0xff] (%p9596_p2), %v7531_v59  ;;  %7534 = vst [vmem:[%s13754_s21 + $0x208] sm:$0xff] (%p9596_p2), %v7533_v63  ;;  %v7551_v32 = vld [vmem:[%s10181_s19 + $0x150] sm:$0xff] (%p9596_p2) }
 0x674   : > { %v7279_v48 = vmul.f32 %v7263_v50, %v13558_v10  ;;  %v7042_v29 = vsel %vm5970_vm5, %v7041_v45, %v7037_v13  ;;  %v7537_v13 = vld [vmem:[%s10181_s19 + $0x118] sm:$0xff] (%p9596_p2)  ;;  %v7539_v50 = vld [vmem:[%s10181_s19 + $0x120] sm:$0xff] (%p9596_p2)  ;;  %v7541_v45 = vld [vmem:[%s10181_s19 + $0x128] sm:$0xff] (%p9596_p2)  ;;  %7552 = vst [vmem:[%s13754_s21 + $0x250] sm:$0xff] (%p9596_p2), %v7551_v32 }
 0x675   : > { %v7226_v17 = vsel %vm7127_vm12, %v7042_v29, %v7225_v8  ;;  %v5669_v55 = vpop.xlane.xlu0 %5668  ;;  %7538 = vst [vmem:[%s13754_s21 + $0x218] sm:$0xff] (%p9596_p2), %v7537_v13  ;;  %7540 = vst [vmem:[%s13754_s21 + $0x220] sm:$0xff] (%p9596_p2), %v7539_v50  ;;  %v7555_v8 = vld [vmem:[%s10181_s19 + $0x160] sm:$0xff] (%p9596_p2)  ;;  %v7559_v29 = vld [vmem:[%s10181_s19 + $0x170] sm:$0xff] (%p9596_p2) }
 0x676   : > { %7296 = vst.msk [vmem:[%s13296_s13 + $0x68] sm:$0xff] %vm7282_vm15, %v7279_v48  ;;  %v7264_v10 = vadd.f32 %v7226_v17, %v13660_v19  ;;  %v7113_v23 = vrot.slane %v5669_v55, %v11167_v56  ;;  %v7467_v56 = vld [vmem:[%s10181_s19] sm:$0xff] (%p9596_p2)  ;;  %7542 = vst [vmem:[%s13754_s21 + $0x228] sm:$0xff] (%p9596_p2), %v7541_v45  ;;  %v7557_v48 = vld [vmem:[%s10181_s19 + $0x168] sm:$0xff] (%p9596_p2) }
 0x677   : > { %v7475_v19 = vld [vmem:[%s10181_s19 + $0x20] sm:$0xff] (%p9596_p2)  ;;  %7468 = vst [vmem:[%s13754_s21] sm:$0xff] (%p9596_p2), %v7467_v56  ;;  %7556 = vst [vmem:[%s13754_s21 + $0x260] sm:$0xff] (%p9596_p2), %v7555_v8  ;;  %v7567_v17 = vld [vmem:[%s10181_s19 + $0x190] sm:$0xff] (%p9596_p2) }
 0x678   : > { %v7280_v49 = vmul.f32 %v7264_v10, %v13607_v27  ;;  %v7114_v4 = vsel %vm5970_vm5, %v7113_v23, %v7109_v28  ;;  %v7471_v27 = vld [vmem:[%s10181_s19 + $0x10] sm:$0xff] (%p9596_p2)  ;;  %7476 = vst [vmem:[%s13754_s21 + $0x20] sm:$0xff] (%p9596_p2), %v7475_v19  ;;  %7558 = vst [vmem:[%s13754_s21 + $0x268] sm:$0xff] (%p9596_p2), %v7557_v48  ;;  %v7569_v55 = vld [vmem:[%s10181_s19 + $0x198] sm:$0xff] (%p9596_p2) }
 0x679   : > { %v7233_v11 = vsel %vm7127_vm12, %v7114_v4, %v7232_v58  ;;  %7472 = vst [vmem:[%s13754_s21 + $0x10] sm:$0xff] (%p9596_p2), %v7471_v27  ;;  %7560 = vst [vmem:[%s13754_s21 + $0x270] sm:$0xff] (%p9596_p2), %v7559_v29  ;;  %v7573_v28 = vld [vmem:[%s10181_s19 + $0x1a8] sm:$0xff] (%p9596_p2)  ;;  %v7575_v10 = vld [vmem:[%s10181_s19 + $0x1b0] sm:$0xff] (%p9596_p2) }
 0x67a   : > { %7297 = vst.msk [vmem:[%s13296_s13 + $0x70] sm:$0xff] %vm7282_vm15, %v7280_v49  ;;  %v7265_v12 = vadd.f32 %v7233_v11, %v5702_v9  ;;  %7309 = sbr.rel (!%p9596_p2) target bundleno = 1666 (0x682), region = 101  ;;  %7568 = vst [vmem:[%s13754_s21 + $0x310] sm:$0xff] (%p9596_p2), %v7567_v17  ;;  %v7577_v23 = vld [vmem:[%s10181_s19 + $0x1b8] sm:$0xff] (%p9596_p2)  ;;  %v7581_v9 = vld [vmem:[%s10181_s19 + $0x1c8] sm:$0xff] (%p9596_p2) }
 0x67b   : > { %7570 = vst [vmem:[%s13754_s21 + $0x318] sm:$0xff] (%p9596_p2), %v7569_v55  ;;  %7574 = vst [vmem:[%s13754_s21 + $0x328] sm:$0xff] (%p9596_p2), %v7573_v28  ;;  %v7583_v58 = vld [vmem:[%s10181_s19 + $0x1d0] sm:$0xff] (%p9596_p2)  ;;  %v7585_v49 = vld [vmem:[%s10181_s19 + $0x1d8] sm:$0xff] (%p9596_p2) }
 0x67c   : > { %v7281_v14 = vmul.f32 %v7265_v12, %v13578_v35  ;;  %v7473_v35 = vld [vmem:[%s10181_s19 + $0x18] sm:$0xff] (%p9596_p2)  ;;  %7576 = vst [vmem:[%s13754_s21 + $0x330] sm:$0xff] (%p9596_p2), %v7575_v10  ;;  %7578 = vst [vmem:[%s13754_s21 + $0x338] sm:$0xff] (%p9596_p2), %v7577_v23  ;;  %v7587_v4 = vld [vmem:[%s10181_s19 + $0x1e0] sm:$0xff] (%p9596_p2) }
 0x67d   : > { %7474 = vst [vmem:[%s13754_s21 + $0x18] sm:$0xff] (%p9596_p2), %v7473_v35  ;;  %7582 = vst [vmem:[%s13754_s21 + $0x348] sm:$0xff] (%p9596_p2), %v7581_v9  ;;  %v7589_v11 = vld [vmem:[%s10181_s19 + $0x1e8] sm:$0xff] (%p9596_p2)  ;;  %v7591_v12 = vld [vmem:[%s10181_s19 + $0x1f0] sm:$0xff] (%p9596_p2) }
 0x67e   : > { %7298 = vst.msk [vmem:[%s13296_s13 + $0x78] sm:$0xff] %vm7282_vm15, %v7281_v14  ;;  %7584 = vst [vmem:[%s13754_s21 + $0x350] sm:$0xff] (%p9596_p2), %v7583_v58  ;;  %v7593_v14 = vld [vmem:[%s10181_s19 + $0x1f8] sm:$0xff] (%p9596_p2) }
 0x67f   : > { %7586 = vst [vmem:[%s13754_s21 + $0x358] sm:$0xff] %v7585_v49  ;;  %7588 = vst [vmem:[%s13754_s21 + $0x360] sm:$0xff] %v7587_v4 }
 0x680   : > { %7590 = vst [vmem:[%s13754_s21 + $0x368] sm:$0xff] %v7589_v11  ;;  %7592 = vst [vmem:[%s13754_s21 + $0x370] sm:$0xff] %v7591_v12 }
 0x681   : > { %7594 = vst [vmem:[%s13754_s21 + $0x378] sm:$0xff] %v7593_v14 }
 0x682 PF: > { %7600 = sbr.rel (!%p9596_p2) target bundleno = 1706 (0x6aa), region = 139  ;;  %s8203_s1 = sshll.u32 (%p9596_p2), %s9401_s14, 7 }
 0x683   : > { %s14347_s6 = sld [smem:[#allocation90_spill]] (%p9596_p2) }
 0x688   : > { %v7758_v56 = vld [vmem:[%s10183_s20] sm:$0xff]  ;;  %v7760_v43 = vld [vmem:[%s10183_s20 + $0x8] sm:$0xff]  ;;  %v7762_v27 = vld [vmem:[%s10183_s20 + $0x10] sm:$0xff] }
 0x689   : > { %s13890_s16 = scalar_lea.vmem %s14347_s6, %s8203_s1  ;;  %v7764_v35 = vld [vmem:[%s10183_s20 + $0x18] sm:$0xff]  ;;  %v7766_v19 = vld [vmem:[%s10183_s20 + $0x20] sm:$0xff]  ;;  %v7768_v36 = vld [vmem:[%s10183_s20 + $0x28] sm:$0xff] }
 0x68a   : > { %7759 = vst [vmem:[%s13890_s16] sm:$0xff] %v7758_v56  ;;  %7761 = vst [vmem:[%s13890_s16 + $0x8] sm:$0xff] %v7760_v43  ;;  %v7770_v38 = vld [vmem:[%s10183_s20 + $0x30] sm:$0xff]  ;;  %v7772_v21 = vld [vmem:[%s10183_s20 + $0x38] sm:$0xff] }
 0x68b   : > { %7763 = vst [vmem:[%s13890_s16 + $0x10] sm:$0xff] %v7762_v27  ;;  %7765 = vst [vmem:[%s13890_s16 + $0x18] sm:$0xff] %v7764_v35  ;;  %v7774_v39 = vld [vmem:[%s10183_s20 + $0x40] sm:$0xff]  ;;  %v7776_v24 = vld [vmem:[%s10183_s20 + $0x48] sm:$0xff] }
 0x68c   : > { %7767 = vst [vmem:[%s13890_s16 + $0x20] sm:$0xff] %v7766_v19  ;;  %7769 = vst [vmem:[%s13890_s16 + $0x28] sm:$0xff] %v7768_v36  ;;  %v7778_v2 = vld [vmem:[%s10183_s20 + $0x50] sm:$0xff]  ;;  %v7780_v31 = vld [vmem:[%s10183_s20 + $0x58] sm:$0xff] }
 0x68d   : > { %7771 = vst [vmem:[%s13890_s16 + $0x30] sm:$0xff] %v7770_v38  ;;  %7773 = vst [vmem:[%s13890_s16 + $0x38] sm:$0xff] %v7772_v21  ;;  %v7782_v37 = vld [vmem:[%s10183_s20 + $0x60] sm:$0xff]  ;;  %v7784_v62 = vld [vmem:[%s10183_s20 + $0x68] sm:$0xff] }
 0x68e   : > { %7775 = vst [vmem:[%s13890_s16 + $0x40] sm:$0xff] %v7774_v39  ;;  %7777 = vst [vmem:[%s13890_s16 + $0x48] sm:$0xff] %v7776_v24  ;;  %v7786_v57 = vld [vmem:[%s10183_s20 + $0x70] sm:$0xff]  ;;  %v7788_v41 = vld [vmem:[%s10183_s20 + $0x78] sm:$0xff] }
 0x68f   : > { %7779 = vst [vmem:[%s13890_s16 + $0x50] sm:$0xff] %v7778_v2  ;;  %7781 = vst [vmem:[%s13890_s16 + $0x58] sm:$0xff] %v7780_v31  ;;  %v7790_v47 = vld [vmem:[%s10183_s20 + $0x80] sm:$0xff]  ;;  %v7792_v0 = vld [vmem:[%s10183_s20 + $0x88] sm:$0xff] }
 0x690   : > { %7783 = vst [vmem:[%s13890_s16 + $0x60] sm:$0xff] %v7782_v37  ;;  %7785 = vst [vmem:[%s13890_s16 + $0x68] sm:$0xff] %v7784_v62  ;;  %v7794_v42 = vld [vmem:[%s10183_s20 + $0x90] sm:$0xff]  ;;  %v7796_v51 = vld [vmem:[%s10183_s20 + $0x98] sm:$0xff] }
 0x691   : > { %7787 = vst [vmem:[%s13890_s16 + $0x70] sm:$0xff] %v7786_v57  ;;  %7789 = vst [vmem:[%s13890_s16 + $0x78] sm:$0xff] %v7788_v41  ;;  %v7798_v52 = vld [vmem:[%s10183_s20 + $0xa0] sm:$0xff]  ;;  %v7800_v26 = vld [vmem:[%s10183_s20 + $0xa8] sm:$0xff] }
 0x692   : > { %7791 = vst [vmem:[%s13890_s16 + $0x100] sm:$0xff] %v7790_v47  ;;  %7793 = vst [vmem:[%s13890_s16 + $0x108] sm:$0xff] %v7792_v0  ;;  %v7802_v18 = vld [vmem:[%s10183_s20 + $0xb0] sm:$0xff]  ;;  %v7804_v53 = vld [vmem:[%s10183_s20 + $0xb8] sm:$0xff] }
 0x693   : > { %7795 = vst [vmem:[%s13890_s16 + $0x110] sm:$0xff] %v7794_v42  ;;  %7797 = vst [vmem:[%s13890_s16 + $0x118] sm:$0xff] %v7796_v51  ;;  %v7806_v30 = vld [vmem:[%s10183_s20 + $0xc0] sm:$0xff]  ;;  %v7808_v40 = vld [vmem:[%s10183_s20 + $0xc8] sm:$0xff] }
 0x694   : > { %7799 = vst [vmem:[%s13890_s16 + $0x120] sm:$0xff] %v7798_v52  ;;  %7801 = vst [vmem:[%s13890_s16 + $0x128] sm:$0xff] %v7800_v26  ;;  %v7810_v6 = vld [vmem:[%s10183_s20 + $0xd0] sm:$0xff]  ;;  %v7812_v25 = vld [vmem:[%s10183_s20 + $0xd8] sm:$0xff] }
 0x695   : > { %7803 = vst [vmem:[%s13890_s16 + $0x130] sm:$0xff] %v7802_v18  ;;  %7805 = vst [vmem:[%s13890_s16 + $0x138] sm:$0xff] %v7804_v53  ;;  %v7814_v3 = vld [vmem:[%s10183_s20 + $0xe0] sm:$0xff]  ;;  %v7816_v20 = vld [vmem:[%s10183_s20 + $0xe8] sm:$0xff] }
 0x696   : > { %7807 = vst [vmem:[%s13890_s16 + $0x140] sm:$0xff] %v7806_v30  ;;  %7809 = vst [vmem:[%s13890_s16 + $0x148] sm:$0xff] %v7808_v40  ;;  %v7818_v44 = vld [vmem:[%s10183_s20 + $0xf0] sm:$0xff]  ;;  %v7820_v34 = vld [vmem:[%s10183_s20 + $0xf8] sm:$0xff] }
 0x697   : > { %7811 = vst [vmem:[%s13890_s16 + $0x150] sm:$0xff] %v7810_v6  ;;  %7813 = vst [vmem:[%s13890_s16 + $0x158] sm:$0xff] %v7812_v25  ;;  %v7822_v59 = vld [vmem:[%s10183_s20 + $0x100] sm:$0xff]  ;;  %v7824_v63 = vld [vmem:[%s10183_s20 + $0x108] sm:$0xff] }
 0x698   : > { %7815 = vst [vmem:[%s13890_s16 + $0x160] sm:$0xff] %v7814_v3  ;;  %7817 = vst [vmem:[%s13890_s16 + $0x168] sm:$0xff] %v7816_v20  ;;  %v7826_v54 = vld [vmem:[%s10183_s20 + $0x110] sm:$0xff]  ;;  %v7828_v13 = vld [vmem:[%s10183_s20 + $0x118] sm:$0xff] }
 0x699   : > { %7819 = vst [vmem:[%s13890_s16 + $0x170] sm:$0xff] %v7818_v44  ;;  %7821 = vst [vmem:[%s13890_s16 + $0x178] sm:$0xff] %v7820_v34  ;;  %v7830_v50 = vld [vmem:[%s10183_s20 + $0x120] sm:$0xff]  ;;  %v7832_v45 = vld [vmem:[%s10183_s20 + $0x128] sm:$0xff] }
 0x69a   : > { %7823 = vst [vmem:[%s13890_s16 + $0x200] sm:$0xff] %v7822_v59  ;;  %7825 = vst [vmem:[%s13890_s16 + $0x208] sm:$0xff] %v7824_v63  ;;  %v7834_v5 = vld [vmem:[%s10183_s20 + $0x130] sm:$0xff]  ;;  %v7836_v60 = vld [vmem:[%s10183_s20 + $0x138] sm:$0xff] }
 0x69b   : > { %7827 = vst [vmem:[%s13890_s16 + $0x210] sm:$0xff] %v7826_v54  ;;  %7829 = vst [vmem:[%s13890_s16 + $0x218] sm:$0xff] %v7828_v13  ;;  %v7838_v15 = vld [vmem:[%s10183_s20 + $0x140] sm:$0xff]  ;;  %v7840_v22 = vld [vmem:[%s10183_s20 + $0x148] sm:$0xff] }
 0x69c   : > { %7831 = vst [vmem:[%s13890_s16 + $0x220] sm:$0xff] %v7830_v50  ;;  %7833 = vst [vmem:[%s13890_s16 + $0x228] sm:$0xff] %v7832_v45  ;;  %v7842_v32 = vld [vmem:[%s10183_s20 + $0x150] sm:$0xff]  ;;  %v7844_v16 = vld [vmem:[%s10183_s20 + $0x158] sm:$0xff] }
 0x69d   : > { %7835 = vst [vmem:[%s13890_s16 + $0x230] sm:$0xff] %v7834_v5  ;;  %7837 = vst [vmem:[%s13890_s16 + $0x238] sm:$0xff] %v7836_v60  ;;  %v7846_v8 = vld [vmem:[%s10183_s20 + $0x160] sm:$0xff]  ;;  %v7848_v48 = vld [vmem:[%s10183_s20 + $0x168] sm:$0xff] }
 0x69e   : > { %7839 = vst [vmem:[%s13890_s16 + $0x240] sm:$0xff] %v7838_v15  ;;  %7841 = vst [vmem:[%s13890_s16 + $0x248] sm:$0xff] %v7840_v22  ;;  %v7850_v29 = vld [vmem:[%s10183_s20 + $0x170] sm:$0xff]  ;;  %v7852_v7 = vld [vmem:[%s10183_s20 + $0x178] sm:$0xff] }
 0x69f   : > { %7843 = vst [vmem:[%s13890_s16 + $0x250] sm:$0xff] %v7842_v32  ;;  %7845 = vst [vmem:[%s13890_s16 + $0x258] sm:$0xff] %v7844_v16  ;;  %v7854_v46 = vld [vmem:[%s10183_s20 + $0x180] sm:$0xff]  ;;  %v7856_v1 = vld [vmem:[%s10183_s20 + $0x188] sm:$0xff] }
 0x6a0   : > { %7847 = vst [vmem:[%s13890_s16 + $0x260] sm:$0xff] %v7846_v8  ;;  %7849 = vst [vmem:[%s13890_s16 + $0x268] sm:$0xff] %v7848_v48  ;;  %v7858_v17 = vld [vmem:[%s10183_s20 + $0x190] sm:$0xff]  ;;  %v7860_v55 = vld [vmem:[%s10183_s20 + $0x198] sm:$0xff] }
 0x6a1   : > { %7851 = vst [vmem:[%s13890_s16 + $0x270] sm:$0xff] %v7850_v29  ;;  %7853 = vst [vmem:[%s13890_s16 + $0x278] sm:$0xff] %v7852_v7  ;;  %v7862_v61 = vld [vmem:[%s10183_s20 + $0x1a0] sm:$0xff]  ;;  %v7864_v28 = vld [vmem:[%s10183_s20 + $0x1a8] sm:$0xff] }
 0x6a2   : > { %7855 = vst [vmem:[%s13890_s16 + $0x300] sm:$0xff] %v7854_v46  ;;  %7857 = vst [vmem:[%s13890_s16 + $0x308] sm:$0xff] %v7856_v1  ;;  %v7866_v10 = vld [vmem:[%s10183_s20 + $0x1b0] sm:$0xff]  ;;  %v7868_v23 = vld [vmem:[%s10183_s20 + $0x1b8] sm:$0xff] }
 0x6a3   : > { %7859 = vst [vmem:[%s13890_s16 + $0x310] sm:$0xff] %v7858_v17  ;;  %7861 = vst [vmem:[%s13890_s16 + $0x318] sm:$0xff] %v7860_v55  ;;  %v7870_v33 = vld [vmem:[%s10183_s20 + $0x1c0] sm:$0xff]  ;;  %v7872_v9 = vld [vmem:[%s10183_s20 + $0x1c8] sm:$0xff] }
 0x6a4   : > { %7863 = vst [vmem:[%s13890_s16 + $0x320] sm:$0xff] %v7862_v61  ;;  %7865 = vst [vmem:[%s13890_s16 + $0x328] sm:$0xff] %v7864_v28  ;;  %v7874_v58 = vld [vmem:[%s10183_s20 + $0x1d0] sm:$0xff]  ;;  %v7876_v49 = vld [vmem:[%s10183_s20 + $0x1d8] sm:$0xff] }
 0x6a5   : > { %7867 = vst [vmem:[%s13890_s16 + $0x330] sm:$0xff] %v7866_v10  ;;  %7869 = vst [vmem:[%s13890_s16 + $0x338] sm:$0xff] %v7868_v23  ;;  %v7878_v4 = vld [vmem:[%s10183_s20 + $0x1e0] sm:$0xff]  ;;  %v7880_v11 = vld [vmem:[%s10183_s20 + $0x1e8] sm:$0xff] }
 0x6a6   : > { %7871 = vst [vmem:[%s13890_s16 + $0x340] sm:$0xff] %v7870_v33  ;;  %7873 = vst [vmem:[%s13890_s16 + $0x348] sm:$0xff] %v7872_v9  ;;  %v7882_v12 = vld [vmem:[%s10183_s20 + $0x1f0] sm:$0xff]  ;;  %v7884_v14 = vld [vmem:[%s10183_s20 + $0x1f8] sm:$0xff] }
 0x6a7   : > { %7875 = vst [vmem:[%s13890_s16 + $0x350] sm:$0xff] %v7874_v58  ;;  %7877 = vst [vmem:[%s13890_s16 + $0x358] sm:$0xff] %v7876_v49 }
 0x6a8   : > { %7879 = vst [vmem:[%s13890_s16 + $0x360] sm:$0xff] %v7878_v4  ;;  %7881 = vst [vmem:[%s13890_s16 + $0x368] sm:$0xff] %v7880_v11 }
 0x6a9   : > { %7883 = vst [vmem:[%s13890_s16 + $0x370] sm:$0xff] %v7882_v12  ;;  %7885 = vst [vmem:[%s13890_s16 + $0x378] sm:$0xff] %v7884_v14 }
 0x6aa PF: > { %s22_s18 = sadd.s32 1, %s9417_s18   ;;  %s14349_s27 = sld [smem:[#allocation10_spill]] }
 0x6ab   : > { %p14018_p2 = scmp.ge.s32.totalorder %s22_s18, 18   ;;  %s14350_s28 = sld [smem:[#allocation21_spill]] }
 0x6ac   : > { %s14351_s14 = sld [smem:[#allocation19_spill]]  ;;  %s14360_s29 = smov %s9377_s30 }
 0x6ad   : > { %s14352_s17 = sld [smem:[#allocation11_spill]]  ;;  %s14362_s9 = smov %s9385_s10 }
 0x6ae   : > { %s14353_s11 = sld [smem:[#allocation20_spill]]  ;;  %s14364_s12 = smov %s9405_s15 }
 0x6af   : > { %s14354_s13 = sld [smem:[#allocation14_spill]] }
 0x6b0   : > { %s14355_s7 = sld [smem:[#allocation15_spill]] }
 0x6b1   : > { %s14356_s20 = sld [smem:[#allocation16_spill]] }
 0x6b2   : > { %s14357_s16 = sld [smem:[#allocation17_spill]]  ;;  %s14361_s30 = smov %s14351_s14 }
 0x6b3   : > { %s14358_s22 = sld [smem:[#allocation18_spill]]  ;;  %s14363_s10 = smov %s14352_s17 }
 0x6b5   :  { %21 = sbr.rel (!%p14018_p2) target bundleno = 18 (0x12), region = 252 }
 0x6b6   : > { %s14365_s14 = smov %s14355_s7 }
 0x6b7   : > { %s14366_s15 = smov %s14356_s20 }
 0x6b9   : > { %s14367_s17 = smov %s14358_s22 }
 0x6ba   :  { %7908 = vsyncpa [#allocation5], 1 }
 0x6bb   :  { %7910 = vsyncpa [#allocation5 + $0x1], 1 }

</bundles_post_ra>
